<compile_context>
chip_gen: v6e
topology: v6e:2x2x1
jax: 0.10.0
libtpu: 0.0.40
codegen_flags: <defaults>
</compile_context>

<pallas_src>
import functools

import jax
import jax.numpy as jnp
from jax.experimental import pallas as pl
from jax.experimental.pallas import tpu as pltpu

LN_EPS = 1e-5          # PyTorch layer_norm_eps default
FFN_DIM = 2048         # PyTorch dim_feedforward default
NHEAD = 8
NUM_LAYERS = 3


# ------------------------------ kernel helpers ------------------------------

def _layernorm(y, g, b):
    """Single-pass LayerNorm over the last axis (f32), variance clamped."""
    d = y.shape[-1]
    inv_d = 1.0 / float(d)
    mean = jnp.sum(y, axis=-1, keepdims=True) * inv_d
    msq = jnp.sum(y * y, axis=-1, keepdims=True) * inv_d
    var = jnp.maximum(msq - mean * mean, 0.0)        # cancellation safety
    return (y - mean) * jax.lax.rsqrt(var + LN_EPS) * g + b


def _transformer_stack_kernel(
    x_ref,                                  # (bc, S, D) f32 activation block
    wqkv_ref, bqkv_ref,                     # (L, D, 3D) bf16, (L, 1, 3D) f32
    wo_ref, bo_ref,                         # (L, D, D)  bf16, (L, 1, D)  f32
    g1_ref, beta1_ref,                      # (L, 1, D) f32
    w1_ref, b1_ref,                         # (L, D, F) bf16, (L, 1, F) f32
    w2_ref, b2_ref,                         # (L, F, D) bf16, (L, 1, D) f32
    g2_ref, beta2_ref,                      # (L, 1, D) f32
    o_ref,                                  # (bc, S, D) f32
    *, nhead,
):
    bc, S, D = x_ref.shape
    hd = D // nhead
    R = bc * S
    num_layers = wqkv_ref.shape[0]

    # Flatten (batch, seq) onto the sublane axis for all projection matmuls.
    x = x_ref[...].reshape(R, D)            # (R, D) f32

    for l in range(num_layers):             # static layer loop, weights resident
        wqkv_l = wqkv_ref[l]                # (D, 3D) bf16
        wo_l = wo_ref[l]                    # (D, D)  bf16

        # ---- fused QKV projection (1/sqrt(hd) folded into Q columns) -------
        qkv = jnp.dot(x.astype(jnp.bfloat16), wqkv_l,
                      preferred_element_type=jnp.float32) + bqkv_ref[l]
        qb = qkv[:, :D].reshape(bc, S, D).astype(jnp.bfloat16)
        kb = qkv[:, D:2 * D].reshape(bc, S, D).astype(jnp.bfloat16)
        vb = qkv[:, 2 * D:].reshape(bc, S, D).astype(jnp.bfloat16)

        # ---- multi-head attention, out_proj folded into the head loop ------
        # (no head concatenate; the (R, D) "attn" tensor is never built)
        # TODO(synk): for large S, switch to lax.fori_loop over heads plus a
        # flash-style online-softmax over K/V tiles so the per-head (S, S)
        # score tile is bounded by (Tq, Tk) instead of S^2.
        y = jnp.zeros((R, D), jnp.float32)
        for h in range(nhead):
            lo, hi = h * hd, (h + 1) * hd
            s = jnp.einsum("bqh,bkh->bqk", qb[..., lo:hi], kb[..., lo:hi],
                           preferred_element_type=jnp.float32)      # (bc,S,S)
            s = s - jnp.max(s, axis=-1, keepdims=True)
            p = jnp.exp(s)
            # exact reciprocal (approx=True gives ~1e-3 rel. error vs torch)
            p = p * pl.reciprocal(jnp.sum(p, axis=-1, keepdims=True))
            head = jnp.einsum("bqk,bkh->bqh", p.astype(jnp.bfloat16),
                              vb[..., lo:hi],
                              preferred_element_type=jnp.float32)    # (bc,S,hd)
            y = y + jnp.dot(head.reshape(R, hd).astype(jnp.bfloat16),
                            wo_l[lo:hi, :],
                            preferred_element_type=jnp.float32)      # (R, D)
        y = y + bo_ref[l]

        # ---- residual + LayerNorm1 (post-norm) -----------------------------
        x = _layernorm(x + y, g1_ref[l], beta1_ref[l])

        # ---- FFN (linear -> ReLU -> linear) + residual + LayerNorm2 --------
        # TODO(synk): chunk the FFN hidden dim F for large S to bound the
        # (R, F) f32 hidden working set on v7x's 64 MiB VMEM.
        h1 = jnp.dot(x.astype(jnp.bfloat16), w1_ref[l],
                     preferred_element_type=jnp.float32) + b1_ref[l]
        h1 = jnp.maximum(h1, 0.0)
        y2 = jnp.dot(h1.astype(jnp.bfloat16), w2_ref[l],
                     preferred_element_type=jnp.float32) + b2_ref[l]
        x = _layernorm(x + y2, g2_ref[l], beta2_ref[l])

    o_ref[...] = x.reshape(bc, S, D)


# ------------------------------ host wrappers --------------------------------

def _vmem_limit_bytes(bc, S, D, F, L):
    """Working-set estimate (single-buffered weights, double-buffered
    activation blocks, f32 intermediates + their bf16 casts, lane padding),
    capped at ~75% of physical VMEM (never the full 64 MiB of a v7x TC)."""
    def lanes(n):
        return max(n, 128)                      # minor-dim pads to 128 lanes
    R = bc * S
    # resident weights (bf16) + biases / LN params (f32), all L layers, x1
    wts = L * 2 * (D * lanes(3 * D) + D * lanes(D) + D * lanes(F) + F * lanes(D))
    wts += L * 4 * (lanes(3 * D) + lanes(F) + 6 * lanes(D))
    # activations: x in / out blocks (double-buffered) + f32 temps + bf16 casts
    act = 4 * (4 * R * lanes(D) + R * lanes(3 * D) + 3 * R * lanes(D) + R * lanes(F))
    act += 2 * (R * lanes(3 * D) + R * lanes(F) + R * lanes(D))
    att = bc * S * lanes(S) * (4 + 2) * 2       # scores + probs (+ margin)
    need = int(1.25 * (wts + act + att)) + (2 << 20)
    try:
        phys = int(pltpu.get_tpu_info().vmem_capacity_bytes)
    except Exception:
        phys = 64 * 1024 * 1024                 # v7x per-TC (most restrictive)
    cap = int(0.75 * phys)
    return min(cap, max(need, 16 * 1024 * 1024))


def _transformer_stack(x_bsd, p, *, nhead=NHEAD):
    """All fused encoder layers in one pallas_call.  x_bsd: (B, S, D) f32.
    p: dict of layer-stacked params (leading axis = num_layers)."""
    B, S, D = x_bsd.shape
    L, _, F = p["w1"].shape

    # One grid step over the whole batch when the activation working set is
    # small (amortizes per-step pipeline overhead); else per-batch grid.
    act_bytes = B * S * (3 * D + F) * 6
    bc = B if act_bytes <= (8 << 20) else 1
    grid = (B // bc,)

    # Whole-array VMEM residency => single-buffered weights (no 2x pipeline
    # buffers for constant operands), shared across all grid steps.
    wspec = pl.BlockSpec(memory_space=pltpu.MemorySpace.VMEM)
    kernel = functools.partial(_transformer_stack_kernel, nhead=nhead)

    return pl.pallas_call(
        kernel,
        out_shape=jax.ShapeDtypeStruct((B, S, D), jnp.float32),
        grid=grid,
        in_specs=[pl.BlockSpec((bc, S, D), lambda i: (i, 0, 0))] + [wspec] * 12,
        out_specs=pl.BlockSpec((bc, S, D), lambda i: (i, 0, 0)),
        compiler_params=pltpu.CompilerParams(
            dimension_semantics=("parallel",),
            vmem_limit_bytes=_vmem_limit_bytes(bc, S, D, F, L),
        ),
    )(
        x_bsd,
        p["wqkv"], p["bqkv"], p["wo"], p["bo"],
        p["g1"], p["beta1"],
        p["w1"], p["b1"], p["w2"], p["b2"],
        p["g2"], p["beta2"],
    )


def _prepare_params(params, nhead=NHEAD):
    """Fold 1/sqrt(head_dim) into the Q columns of in_proj, cast matmul
    weights to bf16 (MXU operands), keep biases / LN params f32, and stack
    all layers along a leading axis so the whole stack is one kernel call."""
    prepped = []
    for p in params:
        D = p["out_proj_w"].shape[0]
        hd = D // nhead
        scale = 1.0 / float(hd) ** 0.5
        col_scale = jnp.concatenate(
            [jnp.full((D,), scale, jnp.float32), jnp.ones((2 * D,), jnp.float32)]
        )[None, :]
        prepped.append(dict(
            wqkv=(p["in_proj_w"] * col_scale).astype(jnp.bfloat16),
            bqkv=(p["in_proj_b"] * col_scale).astype(jnp.float32),
            wo=p["out_proj_w"].astype(jnp.bfloat16),
            bo=p["out_proj_b"].astype(jnp.float32),
            w1=p["w1"].astype(jnp.bfloat16),
            b1=p["b1"].astype(jnp.float32),
            w2=p["w2"].astype(jnp.bfloat16),
            b2=p["b2"].astype(jnp.float32),
            g1=p["g1"], beta1=p["beta1"], g2=p["g2"], beta2=p["beta2"],
        ))
    return {k: jnp.stack([q[k] for q in prepped], axis=0) for k in prepped[0]}


def modality_specific_transformer(x_sbd, params, *, nhead=NHEAD):
    """x_sbd: (S, B, D) f32 — PyTorch batch_first=False layout."""
    x = jnp.transpose(x_sbd, (1, 0, 2))            # -> (B, S, D), done once
    x = _transformer_stack(x, params, nhead=nhead)  # all layers, one kernel
    return jnp.transpose(x, (1, 0, 2))             # -> (S, B, D)


def init_params(key, dim, num_layers=NUM_LAYERS, ffn_dim=FFN_DIM):
    params = []
    for _ in range(num_layers):
        key, k0, k1, k2, k3, k4, k5 = jax.random.split(key, 7)
        params.append(dict(
            # weights stored as (in_features, out_features)
            in_proj_w=jax.random.normal(k0, (dim, 3 * dim), jnp.float32) * 0.05,
            in_proj_b=jax.random.normal(k1, (1, 3 * dim), jnp.float32) * 0.01,
            out_proj_w=jax.random.normal(k2, (dim, dim), jnp.float32) * 0.05,
            out_proj_b=jnp.zeros((1, dim), jnp.float32),
            w1=jax.random.normal(k3, (dim, ffn_dim), jnp.float32) * 0.05,
            b1=jax.random.normal(k4, (1, ffn_dim), jnp.float32) * 0.01,
            w2=jax.random.normal(k5, (ffn_dim, dim), jnp.float32) * 0.05,
            b2=jnp.zeros((1, dim), jnp.float32),
            g1=jnp.ones((1, dim), jnp.float32),
            beta1=jnp.zeros((1, dim), jnp.float32),
            g2=jnp.ones((1, dim), jnp.float32),
            beta2=jnp.zeros((1, dim), jnp.float32),
        ))
    return params


if __name__ == "__main__":
    S, B, DIM = 8, 2, 32            # seq=8, batch=2, d_model=32 (nhead=8 -> hd=4)
    key = jax.random.PRNGKey(0)
    kx, kp = jax.random.split(key)
    x = jax.random.normal(kx, (S, B, DIM), jnp.float32)
    params = _prepare_params(init_params(kp, DIM))

    fwd = jax.jit(lambda x: modality_specific_transformer(x, params))
    out = fwd(x)
    jax.block_until_ready(out)
    assert out.shape == (S, B, DIM)
    assert bool(jnp.all(jnp.isfinite(out)))
    print("KERNEL_OK")
</pallas_src>

<mosaic_0001>
module attributes {stable_mosaic.version = 11 : i64} {
  func.func @_transformer_stack_kernel(%arg0: i32, %arg1: memref<2x8x32xf32, #tpu.memory_space<vmem>>, %arg2: memref<3x32x96xbf16, #tpu.memory_space<vmem>>, %arg3: memref<3x1x96xf32, #tpu.memory_space<vmem>>, %arg4: memref<3x32x32xbf16, #tpu.memory_space<vmem>>, %arg5: memref<3x1x32xf32, #tpu.memory_space<vmem>>, %arg6: memref<3x1x32xf32, #tpu.memory_space<vmem>>, %arg7: memref<3x1x32xf32, #tpu.memory_space<vmem>>, %arg8: memref<3x32x2048xbf16, #tpu.memory_space<vmem>>, %arg9: memref<3x1x2048xf32, #tpu.memory_space<vmem>>, %arg10: memref<3x2048x32xbf16, #tpu.memory_space<vmem>>, %arg11: memref<3x1x32xf32, #tpu.memory_space<vmem>>, %arg12: memref<3x1x32xf32, #tpu.memory_space<vmem>>, %arg13: memref<3x1x32xf32, #tpu.memory_space<vmem>>, %arg14: memref<2x8x32xf32, #tpu.memory_space<vmem>>) attributes {dimension_semantics = [#tpu.dimension_semantics<parallel>], iteration_bounds = array<i64: 1>, scalar_prefetch = 0 : i64, scratch_operands = 0 : i64, tpu.core_type = #tpu.core_type<tc>, window_params = [{transform_indices = @transform_0, window_bounds = array<i64: 2, 8, 32>}, {pipeline_mode = #tpu.pipeline_mode<synchronous>, transform_indices = @transform_1, window_bounds = array<i64: 3, 32, 96>}, {pipeline_mode = #tpu.pipeline_mode<synchronous>, transform_indices = @transform_2, window_bounds = array<i64: 3, 1, 96>}, {pipeline_mode = #tpu.pipeline_mode<synchronous>, transform_indices = @transform_3, window_bounds = array<i64: 3, 32, 32>}, {pipeline_mode = #tpu.pipeline_mode<synchronous>, transform_indices = @transform_4, window_bounds = array<i64: 3, 1, 32>}, {pipeline_mode = #tpu.pipeline_mode<synchronous>, transform_indices = @transform_5, window_bounds = array<i64: 3, 1, 32>}, {pipeline_mode = #tpu.pipeline_mode<synchronous>, transform_indices = @transform_6, window_bounds = array<i64: 3, 1, 32>}, {pipeline_mode = #tpu.pipeline_mode<synchronous>, transform_indices = @transform_7, window_bounds = array<i64: 3, 32, 2048>}, {pipeline_mode = #tpu.pipeline_mode<synchronous>, transform_indices = @transform_8, window_bounds = array<i64: 3, 1, 2048>}, {pipeline_mode = #tpu.pipeline_mode<synchronous>, transform_indices = @transform_9, window_bounds = array<i64: 3, 2048, 32>}, {pipeline_mode = #tpu.pipeline_mode<synchronous>, transform_indices = @transform_10, window_bounds = array<i64: 3, 1, 32>}, {pipeline_mode = #tpu.pipeline_mode<synchronous>, transform_indices = @transform_11, window_bounds = array<i64: 3, 1, 32>}, {pipeline_mode = #tpu.pipeline_mode<synchronous>, transform_indices = @transform_12, window_bounds = array<i64: 3, 1, 32>}, {transform_indices = @transform_13, window_bounds = array<i64: 2, 8, 32>}]} {
    %c0 = arith.constant 0 : index
    %c0_0 = arith.constant 0 : index
    %c0_1 = arith.constant 0 : index
    %0 = vector.load %arg1[%c0, %c0_0, %c0_1] : memref<2x8x32xf32, #tpu.memory_space<vmem>>, vector<2x8x32xf32>
    %1 = vector.shape_cast %0 : vector<2x8x32xf32> to vector<16x32xf32>
    %c0_2 = arith.constant 0 : index
    %c0_3 = arith.constant 0 : index
    %c0_4 = arith.constant 0 : index
    %2 = vector.load %arg2[%c0_2, %c0_3, %c0_4] : memref<3x32x96xbf16, #tpu.memory_space<vmem>>, vector<1x32x96xbf16>
    %3 = vector.shape_cast %2 : vector<1x32x96xbf16> to vector<32x96xbf16>
    %c0_5 = arith.constant 0 : index
    %c0_6 = arith.constant 0 : index
    %c0_7 = arith.constant 0 : index
    %4 = vector.load %arg4[%c0_5, %c0_6, %c0_7] : memref<3x32x32xbf16, #tpu.memory_space<vmem>>, vector<1x32x32xbf16>
    %5 = vector.shape_cast %4 : vector<1x32x32xbf16> to vector<32x32xbf16>
    %6 = arith.truncf %1 : vector<16x32xf32> to vector<16x32xbf16>
    %cst = arith.constant dense<0.000000e+00> : vector<16x96xf32>
    %7 = tpu.matmul %6, %3, %cst {dimension_numbers = #tpu.dot_dimension_numbers<[1], [0], [0], [1], [0, 0, 1, 1], [], []>} : vector<16x32xbf16>, vector<32x96xbf16>, vector<16x96xf32> -> vector<16x96xf32>
    %c0_8 = arith.constant 0 : index
    %c0_9 = arith.constant 0 : index
    %c0_10 = arith.constant 0 : index
    %8 = vector.load %arg3[%c0_8, %c0_9, %c0_10] : memref<3x1x96xf32, #tpu.memory_space<vmem>>, vector<1x1x96xf32>
    %9 = vector.shape_cast %8 : vector<1x1x96xf32> to vector<1x96xf32>
    %10 = vector.broadcast %9 : vector<1x96xf32> to vector<16x96xf32>
    %11 = arith.addf %7, %10 : vector<16x96xf32>
    %12 = vector.extract_strided_slice %11 {offsets = [0, 0], sizes = [16, 32], strides = [1, 1]} : vector<16x96xf32> to vector<16x32xf32>
    %13 = vector.shape_cast %12 : vector<16x32xf32> to vector<2x8x32xf32>
    %14 = arith.truncf %13 : vector<2x8x32xf32> to vector<2x8x32xbf16>
    %15 = vector.extract_strided_slice %11 {offsets = [0, 32], sizes = [16, 32], strides = [1, 1]} : vector<16x96xf32> to vector<16x32xf32>
    %16 = vector.shape_cast %15 : vector<16x32xf32> to vector<2x8x32xf32>
    %17 = arith.truncf %16 : vector<2x8x32xf32> to vector<2x8x32xbf16>
    %18 = vector.extract_strided_slice %11 {offsets = [0, 64], sizes = [16, 32], strides = [1, 1]} : vector<16x96xf32> to vector<16x32xf32>
    %19 = vector.shape_cast %18 : vector<16x32xf32> to vector<2x8x32xf32>
    %20 = arith.truncf %19 : vector<2x8x32xf32> to vector<2x8x32xbf16>
    %cst_11 = arith.constant 0.000000e+00 : f32
    %21 = vector.broadcast %cst_11 : f32 to vector<16x32xf32>
    %22 = vector.extract_strided_slice %14 {offsets = [0, 0, 0], sizes = [2, 8, 4], strides = [1, 1, 1]} : vector<2x8x32xbf16> to vector<2x8x4xbf16>
    %23 = vector.extract_strided_slice %17 {offsets = [0, 0, 0], sizes = [2, 8, 4], strides = [1, 1, 1]} : vector<2x8x32xbf16> to vector<2x8x4xbf16>
    "tpu.trace_start"() <{level = 10 : i32, message = "bqh,bkh->bqk"}> : () -> ()
    %cst_12 = arith.constant dense<0.000000e+00> : vector<2x8x8xf32>
    %24 = tpu.matmul %22, %23, %cst_12 {dimension_numbers = #tpu.dot_dimension_numbers<[2], [2], [1], [1], [0, 0, 0, 1, 1, 1], [0], [0]>} : vector<2x8x4xbf16>, vector<2x8x4xbf16>, vector<2x8x8xf32> -> vector<2x8x8xf32>
    "tpu.trace_stop"() : () -> ()
    %cst_13 = arith.constant dense<0xFF800000> : vector<2x8xf32>
    %25 = vector.multi_reduction <maximumf>, %24, %cst_13 [2] : vector<2x8x8xf32> to vector<2x8xf32>
    %26 = vector.shape_cast %25 : vector<2x8xf32> to vector<2x8x1xf32>
    %27 = vector.broadcast %26 : vector<2x8x1xf32> to vector<2x8x8xf32>
    %28 = arith.subf %24, %27 : vector<2x8x8xf32>
    %29 = math.exp %28 : vector<2x8x8xf32>
    %cst_14 = arith.constant dense<0.000000e+00> : vector<2x8xf32>
    %30 = vector.multi_reduction <add>, %29, %cst_14 [2] : vector<2x8x8xf32> to vector<2x8xf32>
    %31 = vector.shape_cast %30 : vector<2x8xf32> to vector<2x8x1xf32>
    %32 = tpu.reciprocal %31 : vector<2x8x1xf32> -> vector<2x8x1xf32>
    %33 = vector.broadcast %32 : vector<2x8x1xf32> to vector<2x8x8xf32>
    %34 = arith.mulf %29, %33 : vector<2x8x8xf32>
    %35 = arith.truncf %34 : vector<2x8x8xf32> to vector<2x8x8xbf16>
    %36 = vector.extract_strided_slice %20 {offsets = [0, 0, 0], sizes = [2, 8, 4], strides = [1, 1, 1]} : vector<2x8x32xbf16> to vector<2x8x4xbf16>
    "tpu.trace_start"() <{level = 10 : i32, message = "bqk,bkh->bqh"}> : () -> ()
    %cst_15 = arith.constant dense<0.000000e+00> : vector<2x8x4xf32>
    %37 = tpu.matmul %35, %36, %cst_15 {dimension_numbers = #tpu.dot_dimension_numbers<[2], [1], [1], [2], [0, 0, 0, 1, 1, 2], [0], [0]>} : vector<2x8x8xbf16>, vector<2x8x4xbf16>, vector<2x8x4xf32> -> vector<2x8x4xf32>
    "tpu.trace_stop"() : () -> ()
    %38 = vector.shape_cast %37 : vector<2x8x4xf32> to vector<16x4xf32>
    %39 = arith.truncf %38 : vector<16x4xf32> to vector<16x4xbf16>
    %40 = vector.extract_strided_slice %5 {offsets = [0, 0], sizes = [4, 32], strides = [1, 1]} : vector<32x32xbf16> to vector<4x32xbf16>
    %cst_16 = arith.constant dense<0.000000e+00> : vector<16x32xf32>
    %41 = tpu.matmul %39, %40, %cst_16 {dimension_numbers = #tpu.dot_dimension_numbers<[1], [0], [0], [1], [0, 0, 1, 1], [], []>} : vector<16x4xbf16>, vector<4x32xbf16>, vector<16x32xf32> -> vector<16x32xf32>
    %42 = arith.addf %21, %41 : vector<16x32xf32>
    %43 = vector.extract_strided_slice %14 {offsets = [0, 0, 4], sizes = [2, 8, 4], strides = [1, 1, 1]} : vector<2x8x32xbf16> to vector<2x8x4xbf16>
    %44 = vector.extract_strided_slice %17 {offsets = [0, 0, 4], sizes = [2, 8, 4], strides = [1, 1, 1]} : vector<2x8x32xbf16> to vector<2x8x4xbf16>
    "tpu.trace_start"() <{level = 10 : i32, message = "bqh,bkh->bqk"}> : () -> ()
    %cst_17 = arith.constant dense<0.000000e+00> : vector<2x8x8xf32>
    %45 = tpu.matmul %43, %44, %cst_17 {dimension_numbers = #tpu.dot_dimension_numbers<[2], [2], [1], [1], [0, 0, 0, 1, 1, 1], [0], [0]>} : vector<2x8x4xbf16>, vector<2x8x4xbf16>, vector<2x8x8xf32> -> vector<2x8x8xf32>
    "tpu.trace_stop"() : () -> ()
    %cst_18 = arith.constant dense<0xFF800000> : vector<2x8xf32>
    %46 = vector.multi_reduction <maximumf>, %45, %cst_18 [2] : vector<2x8x8xf32> to vector<2x8xf32>
    %47 = vector.shape_cast %46 : vector<2x8xf32> to vector<2x8x1xf32>
    %48 = vector.broadcast %47 : vector<2x8x1xf32> to vector<2x8x8xf32>
    %49 = arith.subf %45, %48 : vector<2x8x8xf32>
    %50 = math.exp %49 : vector<2x8x8xf32>
    %cst_19 = arith.constant dense<0.000000e+00> : vector<2x8xf32>
    %51 = vector.multi_reduction <add>, %50, %cst_19 [2] : vector<2x8x8xf32> to vector<2x8xf32>
    %52 = vector.shape_cast %51 : vector<2x8xf32> to vector<2x8x1xf32>
    %53 = tpu.reciprocal %52 : vector<2x8x1xf32> -> vector<2x8x1xf32>
    %54 = vector.broadcast %53 : vector<2x8x1xf32> to vector<2x8x8xf32>
    %55 = arith.mulf %50, %54 : vector<2x8x8xf32>
    %56 = arith.truncf %55 : vector<2x8x8xf32> to vector<2x8x8xbf16>
    %57 = vector.extract_strided_slice %20 {offsets = [0, 0, 4], sizes = [2, 8, 4], strides = [1, 1, 1]} : vector<2x8x32xbf16> to vector<2x8x4xbf16>
    "tpu.trace_start"() <{level = 10 : i32, message = "bqk,bkh->bqh"}> : () -> ()
    %cst_20 = arith.constant dense<0.000000e+00> : vector<2x8x4xf32>
    %58 = tpu.matmul %56, %57, %cst_20 {dimension_numbers = #tpu.dot_dimension_numbers<[2], [1], [1], [2], [0, 0, 0, 1, 1, 2], [0], [0]>} : vector<2x8x8xbf16>, vector<2x8x4xbf16>, vector<2x8x4xf32> -> vector<2x8x4xf32>
    "tpu.trace_stop"() : () -> ()
    %59 = vector.shape_cast %58 : vector<2x8x4xf32> to vector<16x4xf32>
    %60 = arith.truncf %59 : vector<16x4xf32> to vector<16x4xbf16>
    %61 = vector.extract_strided_slice %5 {offsets = [4, 0], sizes = [4, 32], strides = [1, 1]} : vector<32x32xbf16> to vector<4x32xbf16>
    %cst_21 = arith.constant dense<0.000000e+00> : vector<16x32xf32>
    %62 = tpu.matmul %60, %61, %cst_21 {dimension_numbers = #tpu.dot_dimension_numbers<[1], [0], [0], [1], [0, 0, 1, 1], [], []>} : vector<16x4xbf16>, vector<4x32xbf16>, vector<16x32xf32> -> vector<16x32xf32>
    %63 = arith.addf %42, %62 : vector<16x32xf32>
    %64 = vector.extract_strided_slice %14 {offsets = [0, 0, 8], sizes = [2, 8, 4], strides = [1, 1, 1]} : vector<2x8x32xbf16> to vector<2x8x4xbf16>
    %65 = vector.extract_strided_slice %17 {offsets = [0, 0, 8], sizes = [2, 8, 4], strides = [1, 1, 1]} : vector<2x8x32xbf16> to vector<2x8x4xbf16>
    "tpu.trace_start"() <{level = 10 : i32, message = "bqh,bkh->bqk"}> : () -> ()
    %cst_22 = arith.constant dense<0.000000e+00> : vector<2x8x8xf32>
    %66 = tpu.matmul %64, %65, %cst_22 {dimension_numbers = #tpu.dot_dimension_numbers<[2], [2], [1], [1], [0, 0, 0, 1, 1, 1], [0], [0]>} : vector<2x8x4xbf16>, vector<2x8x4xbf16>, vector<2x8x8xf32> -> vector<2x8x8xf32>
    "tpu.trace_stop"() : () -> ()
    %cst_23 = arith.constant dense<0xFF800000> : vector<2x8xf32>
    %67 = vector.multi_reduction <maximumf>, %66, %cst_23 [2] : vector<2x8x8xf32> to vector<2x8xf32>
    %68 = vector.shape_cast %67 : vector<2x8xf32> to vector<2x8x1xf32>
    %69 = vector.broadcast %68 : vector<2x8x1xf32> to vector<2x8x8xf32>
    %70 = arith.subf %66, %69 : vector<2x8x8xf32>
    %71 = math.exp %70 : vector<2x8x8xf32>
    %cst_24 = arith.constant dense<0.000000e+00> : vector<2x8xf32>
    %72 = vector.multi_reduction <add>, %71, %cst_24 [2] : vector<2x8x8xf32> to vector<2x8xf32>
    %73 = vector.shape_cast %72 : vector<2x8xf32> to vector<2x8x1xf32>
    %74 = tpu.reciprocal %73 : vector<2x8x1xf32> -> vector<2x8x1xf32>
    %75 = vector.broadcast %74 : vector<2x8x1xf32> to vector<2x8x8xf32>
    %76 = arith.mulf %71, %75 : vector<2x8x8xf32>
    %77 = arith.truncf %76 : vector<2x8x8xf32> to vector<2x8x8xbf16>
    %78 = vector.extract_strided_slice %20 {offsets = [0, 0, 8], sizes = [2, 8, 4], strides = [1, 1, 1]} : vector<2x8x32xbf16> to vector<2x8x4xbf16>
    "tpu.trace_start"() <{level = 10 : i32, message = "bqk,bkh->bqh"}> : () -> ()
    %cst_25 = arith.constant dense<0.000000e+00> : vector<2x8x4xf32>
    %79 = tpu.matmul %77, %78, %cst_25 {dimension_numbers = #tpu.dot_dimension_numbers<[2], [1], [1], [2], [0, 0, 0, 1, 1, 2], [0], [0]>} : vector<2x8x8xbf16>, vector<2x8x4xbf16>, vector<2x8x4xf32> -> vector<2x8x4xf32>
    "tpu.trace_stop"() : () -> ()
    %80 = vector.shape_cast %79 : vector<2x8x4xf32> to vector<16x4xf32>
    %81 = arith.truncf %80 : vector<16x4xf32> to vector<16x4xbf16>
    %82 = vector.extract_strided_slice %5 {offsets = [8, 0], sizes = [4, 32], strides = [1, 1]} : vector<32x32xbf16> to vector<4x32xbf16>
    %cst_26 = arith.constant dense<0.000000e+00> : vector<16x32xf32>
    %83 = tpu.matmul %81, %82, %cst_26 {dimension_numbers = #tpu.dot_dimension_numbers<[1], [0], [0], [1], [0, 0, 1, 1], [], []>} : vector<16x4xbf16>, vector<4x32xbf16>, vector<16x32xf32> -> vector<16x32xf32>
    %84 = arith.addf %63, %83 : vector<16x32xf32>
    %85 = vector.extract_strided_slice %14 {offsets = [0, 0, 12], sizes = [2, 8, 4], strides = [1, 1, 1]} : vector<2x8x32xbf16> to vector<2x8x4xbf16>
    %86 = vector.extract_strided_slice %17 {offsets = [0, 0, 12], sizes = [2, 8, 4], strides = [1, 1, 1]} : vector<2x8x32xbf16> to vector<2x8x4xbf16>
    "tpu.trace_start"() <{level = 10 : i32, message = "bqh,bkh->bqk"}> : () -> ()
    %cst_27 = arith.constant dense<0.000000e+00> : vector<2x8x8xf32>
    %87 = tpu.matmul %85, %86, %cst_27 {dimension_numbers = #tpu.dot_dimension_numbers<[2], [2], [1], [1], [0, 0, 0, 1, 1, 1], [0], [0]>} : vector<2x8x4xbf16>, vector<2x8x4xbf16>, vector<2x8x8xf32> -> vector<2x8x8xf32>
    "tpu.trace_stop"() : () -> ()
    %cst_28 = arith.constant dense<0xFF800000> : vector<2x8xf32>
    %88 = vector.multi_reduction <maximumf>, %87, %cst_28 [2] : vector<2x8x8xf32> to vector<2x8xf32>
    %89 = vector.shape_cast %88 : vector<2x8xf32> to vector<2x8x1xf32>
    %90 = vector.broadcast %89 : vector<2x8x1xf32> to vector<2x8x8xf32>
    %91 = arith.subf %87, %90 : vector<2x8x8xf32>
    %92 = math.exp %91 : vector<2x8x8xf32>
    %cst_29 = arith.constant dense<0.000000e+00> : vector<2x8xf32>
    %93 = vector.multi_reduction <add>, %92, %cst_29 [2] : vector<2x8x8xf32> to vector<2x8xf32>
    %94 = vector.shape_cast %93 : vector<2x8xf32> to vector<2x8x1xf32>
    %95 = tpu.reciprocal %94 : vector<2x8x1xf32> -> vector<2x8x1xf32>
    %96 = vector.broadcast %95 : vector<2x8x1xf32> to vector<2x8x8xf32>
    %97 = arith.mulf %92, %96 : vector<2x8x8xf32>
    %98 = arith.truncf %97 : vector<2x8x8xf32> to vector<2x8x8xbf16>
    %99 = vector.extract_strided_slice %20 {offsets = [0, 0, 12], sizes = [2, 8, 4], strides = [1, 1, 1]} : vector<2x8x32xbf16> to vector<2x8x4xbf16>
    "tpu.trace_start"() <{level = 10 : i32, message = "bqk,bkh->bqh"}> : () -> ()
    %cst_30 = arith.constant dense<0.000000e+00> : vector<2x8x4xf32>
    %100 = tpu.matmul %98, %99, %cst_30 {dimension_numbers = #tpu.dot_dimension_numbers<[2], [1], [1], [2], [0, 0, 0, 1, 1, 2], [0], [0]>} : vector<2x8x8xbf16>, vector<2x8x4xbf16>, vector<2x8x4xf32> -> vector<2x8x4xf32>
    "tpu.trace_stop"() : () -> ()
    %101 = vector.shape_cast %100 : vector<2x8x4xf32> to vector<16x4xf32>
    %102 = arith.truncf %101 : vector<16x4xf32> to vector<16x4xbf16>
    %103 = vector.extract_strided_slice %5 {offsets = [12, 0], sizes = [4, 32], strides = [1, 1]} : vector<32x32xbf16> to vector<4x32xbf16>
    %cst_31 = arith.constant dense<0.000000e+00> : vector<16x32xf32>
    %104 = tpu.matmul %102, %103, %cst_31 {dimension_numbers = #tpu.dot_dimension_numbers<[1], [0], [0], [1], [0, 0, 1, 1], [], []>} : vector<16x4xbf16>, vector<4x32xbf16>, vector<16x32xf32> -> vector<16x32xf32>
    %105 = arith.addf %84, %104 : vector<16x32xf32>
    %106 = vector.extract_strided_slice %14 {offsets = [0, 0, 16], sizes = [2, 8, 4], strides = [1, 1, 1]} : vector<2x8x32xbf16> to vector<2x8x4xbf16>
    %107 = vector.extract_strided_slice %17 {offsets = [0, 0, 16], sizes = [2, 8, 4], strides = [1, 1, 1]} : vector<2x8x32xbf16> to vector<2x8x4xbf16>
    "tpu.trace_start"() <{level = 10 : i32, message = "bqh,bkh->bqk"}> : () -> ()
    %cst_32 = arith.constant dense<0.000000e+00> : vector<2x8x8xf32>
    %108 = tpu.matmul %106, %107, %cst_32 {dimension_numbers = #tpu.dot_dimension_numbers<[2], [2], [1], [1], [0, 0, 0, 1, 1, 1], [0], [0]>} : vector<2x8x4xbf16>, vector<2x8x4xbf16>, vector<2x8x8xf32> -> vector<2x8x8xf32>
    "tpu.trace_stop"() : () -> ()
    %cst_33 = arith.constant dense<0xFF800000> : vector<2x8xf32>
    %109 = vector.multi_reduction <maximumf>, %108, %cst_33 [2] : vector<2x8x8xf32> to vector<2x8xf32>
    %110 = vector.shape_cast %109 : vector<2x8xf32> to vector<2x8x1xf32>
    %111 = vector.broadcast %110 : vector<2x8x1xf32> to vector<2x8x8xf32>
    %112 = arith.subf %108, %111 : vector<2x8x8xf32>
    %113 = math.exp %112 : vector<2x8x8xf32>
    %cst_34 = arith.constant dense<0.000000e+00> : vector<2x8xf32>
    %114 = vector.multi_reduction <add>, %113, %cst_34 [2] : vector<2x8x8xf32> to vector<2x8xf32>
    %115 = vector.shape_cast %114 : vector<2x8xf32> to vector<2x8x1xf32>
    %116 = tpu.reciprocal %115 : vector<2x8x1xf32> -> vector<2x8x1xf32>
    %117 = vector.broadcast %116 : vector<2x8x1xf32> to vector<2x8x8xf32>
    %118 = arith.mulf %113, %117 : vector<2x8x8xf32>
    %119 = arith.truncf %118 : vector<2x8x8xf32> to vector<2x8x8xbf16>
    %120 = vector.extract_strided_slice %20 {offsets = [0, 0, 16], sizes = [2, 8, 4], strides = [1, 1, 1]} : vector<2x8x32xbf16> to vector<2x8x4xbf16>
    "tpu.trace_start"() <{level = 10 : i32, message = "bqk,bkh->bqh"}> : () -> ()
    %cst_35 = arith.constant dense<0.000000e+00> : vector<2x8x4xf32>
    %121 = tpu.matmul %119, %120, %cst_35 {dimension_numbers = #tpu.dot_dimension_numbers<[2], [1], [1], [2], [0, 0, 0, 1, 1, 2], [0], [0]>} : vector<2x8x8xbf16>, vector<2x8x4xbf16>, vector<2x8x4xf32> -> vector<2x8x4xf32>
    "tpu.trace_stop"() : () -> ()
    %122 = vector.shape_cast %121 : vector<2x8x4xf32> to vector<16x4xf32>
    %123 = arith.truncf %122 : vector<16x4xf32> to vector<16x4xbf16>
    %124 = vector.extract_strided_slice %5 {offsets = [16, 0], sizes = [4, 32], strides = [1, 1]} : vector<32x32xbf16> to vector<4x32xbf16>
    %cst_36 = arith.constant dense<0.000000e+00> : vector<16x32xf32>
    %125 = tpu.matmul %123, %124, %cst_36 {dimension_numbers = #tpu.dot_dimension_numbers<[1], [0], [0], [1], [0, 0, 1, 1], [], []>} : vector<16x4xbf16>, vector<4x32xbf16>, vector<16x32xf32> -> vector<16x32xf32>
    %126 = arith.addf %105, %125 : vector<16x32xf32>
    %127 = vector.extract_strided_slice %14 {offsets = [0, 0, 20], sizes = [2, 8, 4], strides = [1, 1, 1]} : vector<2x8x32xbf16> to vector<2x8x4xbf16>
    %128 = vector.extract_strided_slice %17 {offsets = [0, 0, 20], sizes = [2, 8, 4], strides = [1, 1, 1]} : vector<2x8x32xbf16> to vector<2x8x4xbf16>
    "tpu.trace_start"() <{level = 10 : i32, message = "bqh,bkh->bqk"}> : () -> ()
    %cst_37 = arith.constant dense<0.000000e+00> : vector<2x8x8xf32>
    %129 = tpu.matmul %127, %128, %cst_37 {dimension_numbers = #tpu.dot_dimension_numbers<[2], [2], [1], [1], [0, 0, 0, 1, 1, 1], [0], [0]>} : vector<2x8x4xbf16>, vector<2x8x4xbf16>, vector<2x8x8xf32> -> vector<2x8x8xf32>
    "tpu.trace_stop"() : () -> ()
    %cst_38 = arith.constant dense<0xFF800000> : vector<2x8xf32>
    %130 = vector.multi_reduction <maximumf>, %129, %cst_38 [2] : vector<2x8x8xf32> to vector<2x8xf32>
    %131 = vector.shape_cast %130 : vector<2x8xf32> to vector<2x8x1xf32>
    %132 = vector.broadcast %131 : vector<2x8x1xf32> to vector<2x8x8xf32>
    %133 = arith.subf %129, %132 : vector<2x8x8xf32>
    %134 = math.exp %133 : vector<2x8x8xf32>
    %cst_39 = arith.constant dense<0.000000e+00> : vector<2x8xf32>
    %135 = vector.multi_reduction <add>, %134, %cst_39 [2] : vector<2x8x8xf32> to vector<2x8xf32>
    %136 = vector.shape_cast %135 : vector<2x8xf32> to vector<2x8x1xf32>
    %137 = tpu.reciprocal %136 : vector<2x8x1xf32> -> vector<2x8x1xf32>
    %138 = vector.broadcast %137 : vector<2x8x1xf32> to vector<2x8x8xf32>
    %139 = arith.mulf %134, %138 : vector<2x8x8xf32>
    %140 = arith.truncf %139 : vector<2x8x8xf32> to vector<2x8x8xbf16>
    %141 = vector.extract_strided_slice %20 {offsets = [0, 0, 20], sizes = [2, 8, 4], strides = [1, 1, 1]} : vector<2x8x32xbf16> to vector<2x8x4xbf16>
    "tpu.trace_start"() <{level = 10 : i32, message = "bqk,bkh->bqh"}> : () -> ()
    %cst_40 = arith.constant dense<0.000000e+00> : vector<2x8x4xf32>
    %142 = tpu.matmul %140, %141, %cst_40 {dimension_numbers = #tpu.dot_dimension_numbers<[2], [1], [1], [2], [0, 0, 0, 1, 1, 2], [0], [0]>} : vector<2x8x8xbf16>, vector<2x8x4xbf16>, vector<2x8x4xf32> -> vector<2x8x4xf32>
    "tpu.trace_stop"() : () -> ()
    %143 = vector.shape_cast %142 : vector<2x8x4xf32> to vector<16x4xf32>
    %144 = arith.truncf %143 : vector<16x4xf32> to vector<16x4xbf16>
    %145 = vector.extract_strided_slice %5 {offsets = [20, 0], sizes = [4, 32], strides = [1, 1]} : vector<32x32xbf16> to vector<4x32xbf16>
    %cst_41 = arith.constant dense<0.000000e+00> : vector<16x32xf32>
    %146 = tpu.matmul %144, %145, %cst_41 {dimension_numbers = #tpu.dot_dimension_numbers<[1], [0], [0], [1], [0, 0, 1, 1], [], []>} : vector<16x4xbf16>, vector<4x32xbf16>, vector<16x32xf32> -> vector<16x32xf32>
    %147 = arith.addf %126, %146 : vector<16x32xf32>
    %148 = vector.extract_strided_slice %14 {offsets = [0, 0, 24], sizes = [2, 8, 4], strides = [1, 1, 1]} : vector<2x8x32xbf16> to vector<2x8x4xbf16>
    %149 = vector.extract_strided_slice %17 {offsets = [0, 0, 24], sizes = [2, 8, 4], strides = [1, 1, 1]} : vector<2x8x32xbf16> to vector<2x8x4xbf16>
    "tpu.trace_start"() <{level = 10 : i32, message = "bqh,bkh->bqk"}> : () -> ()
    %cst_42 = arith.constant dense<0.000000e+00> : vector<2x8x8xf32>
    %150 = tpu.matmul %148, %149, %cst_42 {dimension_numbers = #tpu.dot_dimension_numbers<[2], [2], [1], [1], [0, 0, 0, 1, 1, 1], [0], [0]>} : vector<2x8x4xbf16>, vector<2x8x4xbf16>, vector<2x8x8xf32> -> vector<2x8x8xf32>
    "tpu.trace_stop"() : () -> ()
    %cst_43 = arith.constant dense<0xFF800000> : vector<2x8xf32>
    %151 = vector.multi_reduction <maximumf>, %150, %cst_43 [2] : vector<2x8x8xf32> to vector<2x8xf32>
    %152 = vector.shape_cast %151 : vector<2x8xf32> to vector<2x8x1xf32>
    %153 = vector.broadcast %152 : vector<2x8x1xf32> to vector<2x8x8xf32>
    %154 = arith.subf %150, %153 : vector<2x8x8xf32>
    %155 = math.exp %154 : vector<2x8x8xf32>
    %cst_44 = arith.constant dense<0.000000e+00> : vector<2x8xf32>
    %156 = vector.multi_reduction <add>, %155, %cst_44 [2] : vector<2x8x8xf32> to vector<2x8xf32>
    %157 = vector.shape_cast %156 : vector<2x8xf32> to vector<2x8x1xf32>
    %158 = tpu.reciprocal %157 : vector<2x8x1xf32> -> vector<2x8x1xf32>
    %159 = vector.broadcast %158 : vector<2x8x1xf32> to vector<2x8x8xf32>
    %160 = arith.mulf %155, %159 : vector<2x8x8xf32>
    %161 = arith.truncf %160 : vector<2x8x8xf32> to vector<2x8x8xbf16>
    %162 = vector.extract_strided_slice %20 {offsets = [0, 0, 24], sizes = [2, 8, 4], strides = [1, 1, 1]} : vector<2x8x32xbf16> to vector<2x8x4xbf16>
    "tpu.trace_start"() <{level = 10 : i32, message = "bqk,bkh->bqh"}> : () -> ()
    %cst_45 = arith.constant dense<0.000000e+00> : vector<2x8x4xf32>
    %163 = tpu.matmul %161, %162, %cst_45 {dimension_numbers = #tpu.dot_dimension_numbers<[2], [1], [1], [2], [0, 0, 0, 1, 1, 2], [0], [0]>} : vector<2x8x8xbf16>, vector<2x8x4xbf16>, vector<2x8x4xf32> -> vector<2x8x4xf32>
    "tpu.trace_stop"() : () -> ()
    %164 = vector.shape_cast %163 : vector<2x8x4xf32> to vector<16x4xf32>
    %165 = arith.truncf %164 : vector<16x4xf32> to vector<16x4xbf16>
    %166 = vector.extract_strided_slice %5 {offsets = [24, 0], sizes = [4, 32], strides = [1, 1]} : vector<32x32xbf16> to vector<4x32xbf16>
    %cst_46 = arith.constant dense<0.000000e+00> : vector<16x32xf32>
    %167 = tpu.matmul %165, %166, %cst_46 {dimension_numbers = #tpu.dot_dimension_numbers<[1], [0], [0], [1], [0, 0, 1, 1], [], []>} : vector<16x4xbf16>, vector<4x32xbf16>, vector<16x32xf32> -> vector<16x32xf32>
    %168 = arith.addf %147, %167 : vector<16x32xf32>
    %169 = vector.extract_strided_slice %14 {offsets = [0, 0, 28], sizes = [2, 8, 4], strides = [1, 1, 1]} : vector<2x8x32xbf16> to vector<2x8x4xbf16>
    %170 = vector.extract_strided_slice %17 {offsets = [0, 0, 28], sizes = [2, 8, 4], strides = [1, 1, 1]} : vector<2x8x32xbf16> to vector<2x8x4xbf16>
    "tpu.trace_start"() <{level = 10 : i32, message = "bqh,bkh->bqk"}> : () -> ()
    %cst_47 = arith.constant dense<0.000000e+00> : vector<2x8x8xf32>
    %171 = tpu.matmul %169, %170, %cst_47 {dimension_numbers = #tpu.dot_dimension_numbers<[2], [2], [1], [1], [0, 0, 0, 1, 1, 1], [0], [0]>} : vector<2x8x4xbf16>, vector<2x8x4xbf16>, vector<2x8x8xf32> -> vector<2x8x8xf32>
    "tpu.trace_stop"() : () -> ()
    %cst_48 = arith.constant dense<0xFF800000> : vector<2x8xf32>
    %172 = vector.multi_reduction <maximumf>, %171, %cst_48 [2] : vector<2x8x8xf32> to vector<2x8xf32>
    %173 = vector.shape_cast %172 : vector<2x8xf32> to vector<2x8x1xf32>
    %174 = vector.broadcast %173 : vector<2x8x1xf32> to vector<2x8x8xf32>
    %175 = arith.subf %171, %174 : vector<2x8x8xf32>
    %176 = math.exp %175 : vector<2x8x8xf32>
    %cst_49 = arith.constant dense<0.000000e+00> : vector<2x8xf32>
    %177 = vector.multi_reduction <add>, %176, %cst_49 [2] : vector<2x8x8xf32> to vector<2x8xf32>
    %178 = vector.shape_cast %177 : vector<2x8xf32> to vector<2x8x1xf32>
    %179 = tpu.reciprocal %178 : vector<2x8x1xf32> -> vector<2x8x1xf32>
    %180 = vector.broadcast %179 : vector<2x8x1xf32> to vector<2x8x8xf32>
    %181 = arith.mulf %176, %180 : vector<2x8x8xf32>
    %182 = arith.truncf %181 : vector<2x8x8xf32> to vector<2x8x8xbf16>
    %183 = vector.extract_strided_slice %20 {offsets = [0, 0, 28], sizes = [2, 8, 4], strides = [1, 1, 1]} : vector<2x8x32xbf16> to vector<2x8x4xbf16>
    "tpu.trace_start"() <{level = 10 : i32, message = "bqk,bkh->bqh"}> : () -> ()
    %cst_50 = arith.constant dense<0.000000e+00> : vector<2x8x4xf32>
    %184 = tpu.matmul %182, %183, %cst_50 {dimension_numbers = #tpu.dot_dimension_numbers<[2], [1], [1], [2], [0, 0, 0, 1, 1, 2], [0], [0]>} : vector<2x8x8xbf16>, vector<2x8x4xbf16>, vector<2x8x4xf32> -> vector<2x8x4xf32>
    "tpu.trace_stop"() : () -> ()
    %185 = vector.shape_cast %184 : vector<2x8x4xf32> to vector<16x4xf32>
    %186 = arith.truncf %185 : vector<16x4xf32> to vector<16x4xbf16>
    %187 = vector.extract_strided_slice %5 {offsets = [28, 0], sizes = [4, 32], strides = [1, 1]} : vector<32x32xbf16> to vector<4x32xbf16>
    %cst_51 = arith.constant dense<0.000000e+00> : vector<16x32xf32>
    %188 = tpu.matmul %186, %187, %cst_51 {dimension_numbers = #tpu.dot_dimension_numbers<[1], [0], [0], [1], [0, 0, 1, 1], [], []>} : vector<16x4xbf16>, vector<4x32xbf16>, vector<16x32xf32> -> vector<16x32xf32>
    %189 = arith.addf %168, %188 : vector<16x32xf32>
    %c0_52 = arith.constant 0 : index
    %c0_53 = arith.constant 0 : index
    %c0_54 = arith.constant 0 : index
    %190 = vector.load %arg5[%c0_52, %c0_53, %c0_54] : memref<3x1x32xf32, #tpu.memory_space<vmem>>, vector<1x1x32xf32>
    %191 = vector.shape_cast %190 : vector<1x1x32xf32> to vector<1x32xf32>
    %192 = vector.broadcast %191 : vector<1x32xf32> to vector<16x32xf32>
    %193 = arith.addf %189, %192 : vector<16x32xf32>
    %194 = arith.addf %1, %193 : vector<16x32xf32>
    %c0_55 = arith.constant 0 : index
    %c0_56 = arith.constant 0 : index
    %c0_57 = arith.constant 0 : index
    %195 = vector.load %arg6[%c0_55, %c0_56, %c0_57] : memref<3x1x32xf32, #tpu.memory_space<vmem>>, vector<1x1x32xf32>
    %196 = vector.shape_cast %195 : vector<1x1x32xf32> to vector<1x32xf32>
    %c0_58 = arith.constant 0 : index
    %c0_59 = arith.constant 0 : index
    %c0_60 = arith.constant 0 : index
    %197 = vector.load %arg7[%c0_58, %c0_59, %c0_60] : memref<3x1x32xf32, #tpu.memory_space<vmem>>, vector<1x1x32xf32>
    %198 = vector.shape_cast %197 : vector<1x1x32xf32> to vector<1x32xf32>
    %cst_61 = arith.constant dense<0.000000e+00> : vector<16xf32>
    %199 = vector.multi_reduction <add>, %194, %cst_61 [1] : vector<16x32xf32> to vector<16xf32>
    %200 = vector.shape_cast %199 : vector<16xf32> to vector<16x1xf32>
    %cst_62 = arith.constant 3.125000e-02 : f32
    %201 = vector.broadcast %cst_62 : f32 to vector<16x1xf32>
    %202 = arith.mulf %200, %201 : vector<16x1xf32>
    %203 = arith.mulf %194, %194 : vector<16x32xf32>
    %cst_63 = arith.constant dense<0.000000e+00> : vector<16xf32>
    %204 = vector.multi_reduction <add>, %203, %cst_63 [1] : vector<16x32xf32> to vector<16xf32>
    %205 = vector.shape_cast %204 : vector<16xf32> to vector<16x1xf32>
    %cst_64 = arith.constant 3.125000e-02 : f32
    %206 = vector.broadcast %cst_64 : f32 to vector<16x1xf32>
    %207 = arith.mulf %205, %206 : vector<16x1xf32>
    %208 = arith.mulf %202, %202 : vector<16x1xf32>
    %209 = arith.subf %207, %208 : vector<16x1xf32>
    %cst_65 = arith.constant 0.000000e+00 : f32
    %210 = vector.broadcast %cst_65 : f32 to vector<16x1xf32>
    %211 = arith.maximumf %209, %210 : vector<16x1xf32>
    %212 = vector.broadcast %202 : vector<16x1xf32> to vector<16x32xf32>
    %213 = arith.subf %194, %212 : vector<16x32xf32>
    %cst_66 = arith.constant 9.99999974E-6 : f32
    %214 = vector.broadcast %cst_66 : f32 to vector<16x1xf32>
    %215 = arith.addf %211, %214 : vector<16x1xf32>
    %216 = math.rsqrt %215 : vector<16x1xf32>
    %217 = vector.broadcast %216 : vector<16x1xf32> to vector<16x32xf32>
    %218 = arith.mulf %213, %217 : vector<16x32xf32>
    %219 = vector.broadcast %196 : vector<1x32xf32> to vector<16x32xf32>
    %220 = arith.mulf %218, %219 : vector<16x32xf32>
    %221 = vector.broadcast %198 : vector<1x32xf32> to vector<16x32xf32>
    %222 = arith.addf %220, %221 : vector<16x32xf32>
    %223 = arith.truncf %222 : vector<16x32xf32> to vector<16x32xbf16>
    %c0_67 = arith.constant 0 : index
    %c0_68 = arith.constant 0 : index
    %c0_69 = arith.constant 0 : index
    %224 = vector.load %arg8[%c0_67, %c0_68, %c0_69] : memref<3x32x2048xbf16, #tpu.memory_space<vmem>>, vector<1x32x2048xbf16>
    %225 = vector.shape_cast %224 : vector<1x32x2048xbf16> to vector<32x2048xbf16>
    %cst_70 = arith.constant dense<0.000000e+00> : vector<16x2048xf32>
    %226 = tpu.matmul %223, %225, %cst_70 {dimension_numbers = #tpu.dot_dimension_numbers<[1], [0], [0], [1], [0, 0, 1, 1], [], []>} : vector<16x32xbf16>, vector<32x2048xbf16>, vector<16x2048xf32> -> vector<16x2048xf32>
    %c0_71 = arith.constant 0 : index
    %c0_72 = arith.constant 0 : index
    %c0_73 = arith.constant 0 : index
    %227 = vector.load %arg9[%c0_71, %c0_72, %c0_73] : memref<3x1x2048xf32, #tpu.memory_space<vmem>>, vector<1x1x2048xf32>
    %228 = vector.shape_cast %227 : vector<1x1x2048xf32> to vector<1x2048xf32>
    %229 = vector.broadcast %228 : vector<1x2048xf32> to vector<16x2048xf32>
    %230 = arith.addf %226, %229 : vector<16x2048xf32>
    %cst_74 = arith.constant 0.000000e+00 : f32
    %231 = vector.broadcast %cst_74 : f32 to vector<16x2048xf32>
    %232 = arith.maximumf %230, %231 : vector<16x2048xf32>
    %233 = arith.truncf %232 : vector<16x2048xf32> to vector<16x2048xbf16>
    %c0_75 = arith.constant 0 : index
    %c0_76 = arith.constant 0 : index
    %c0_77 = arith.constant 0 : index
    %234 = vector.load %arg10[%c0_75, %c0_76, %c0_77] : memref<3x2048x32xbf16, #tpu.memory_space<vmem>>, vector<1x2048x32xbf16>
    %235 = vector.shape_cast %234 : vector<1x2048x32xbf16> to vector<2048x32xbf16>
    %cst_78 = arith.constant dense<0.000000e+00> : vector<16x32xf32>
    %236 = tpu.matmul %233, %235, %cst_78 {dimension_numbers = #tpu.dot_dimension_numbers<[1], [0], [0], [1], [0, 0, 1, 1], [], []>} : vector<16x2048xbf16>, vector<2048x32xbf16>, vector<16x32xf32> -> vector<16x32xf32>
    %c0_79 = arith.constant 0 : index
    %c0_80 = arith.constant 0 : index
    %c0_81 = arith.constant 0 : index
    %237 = vector.load %arg11[%c0_79, %c0_80, %c0_81] : memref<3x1x32xf32, #tpu.memory_space<vmem>>, vector<1x1x32xf32>
    %238 = vector.shape_cast %237 : vector<1x1x32xf32> to vector<1x32xf32>
    %239 = vector.broadcast %238 : vector<1x32xf32> to vector<16x32xf32>
    %240 = arith.addf %236, %239 : vector<16x32xf32>
    %241 = arith.addf %222, %240 : vector<16x32xf32>
    %c0_82 = arith.constant 0 : index
    %c0_83 = arith.constant 0 : index
    %c0_84 = arith.constant 0 : index
    %242 = vector.load %arg12[%c0_82, %c0_83, %c0_84] : memref<3x1x32xf32, #tpu.memory_space<vmem>>, vector<1x1x32xf32>
    %243 = vector.shape_cast %242 : vector<1x1x32xf32> to vector<1x32xf32>
    %c0_85 = arith.constant 0 : index
    %c0_86 = arith.constant 0 : index
    %c0_87 = arith.constant 0 : index
    %244 = vector.load %arg13[%c0_85, %c0_86, %c0_87] : memref<3x1x32xf32, #tpu.memory_space<vmem>>, vector<1x1x32xf32>
    %245 = vector.shape_cast %244 : vector<1x1x32xf32> to vector<1x32xf32>
    %cst_88 = arith.constant dense<0.000000e+00> : vector<16xf32>
    %246 = vector.multi_reduction <add>, %241, %cst_88 [1] : vector<16x32xf32> to vector<16xf32>
    %247 = vector.shape_cast %246 : vector<16xf32> to vector<16x1xf32>
    %cst_89 = arith.constant 3.125000e-02 : f32
    %248 = vector.broadcast %cst_89 : f32 to vector<16x1xf32>
    %249 = arith.mulf %247, %248 : vector<16x1xf32>
    %250 = arith.mulf %241, %241 : vector<16x32xf32>
    %cst_90 = arith.constant dense<0.000000e+00> : vector<16xf32>
    %251 = vector.multi_reduction <add>, %250, %cst_90 [1] : vector<16x32xf32> to vector<16xf32>
    %252 = vector.shape_cast %251 : vector<16xf32> to vector<16x1xf32>
    %cst_91 = arith.constant 3.125000e-02 : f32
    %253 = vector.broadcast %cst_91 : f32 to vector<16x1xf32>
    %254 = arith.mulf %252, %253 : vector<16x1xf32>
    %255 = arith.mulf %249, %249 : vector<16x1xf32>
    %256 = arith.subf %254, %255 : vector<16x1xf32>
    %cst_92 = arith.constant 0.000000e+00 : f32
    %257 = vector.broadcast %cst_92 : f32 to vector<16x1xf32>
    %258 = arith.maximumf %256, %257 : vector<16x1xf32>
    %259 = vector.broadcast %249 : vector<16x1xf32> to vector<16x32xf32>
    %260 = arith.subf %241, %259 : vector<16x32xf32>
    %cst_93 = arith.constant 9.99999974E-6 : f32
    %261 = vector.broadcast %cst_93 : f32 to vector<16x1xf32>
    %262 = arith.addf %258, %261 : vector<16x1xf32>
    %263 = math.rsqrt %262 : vector<16x1xf32>
    %264 = vector.broadcast %263 : vector<16x1xf32> to vector<16x32xf32>
    %265 = arith.mulf %260, %264 : vector<16x32xf32>
    %266 = vector.broadcast %243 : vector<1x32xf32> to vector<16x32xf32>
    %267 = arith.mulf %265, %266 : vector<16x32xf32>
    %268 = vector.broadcast %245 : vector<1x32xf32> to vector<16x32xf32>
    %269 = arith.addf %267, %268 : vector<16x32xf32>
    %c1 = arith.constant 1 : index
    %c0_94 = arith.constant 0 : index
    %c0_95 = arith.constant 0 : index
    %270 = vector.load %arg2[%c1, %c0_94, %c0_95] : memref<3x32x96xbf16, #tpu.memory_space<vmem>>, vector<1x32x96xbf16>
    %271 = vector.shape_cast %270 : vector<1x32x96xbf16> to vector<32x96xbf16>
    %c1_96 = arith.constant 1 : index
    %c0_97 = arith.constant 0 : index
    %c0_98 = arith.constant 0 : index
    %272 = vector.load %arg4[%c1_96, %c0_97, %c0_98] : memref<3x32x32xbf16, #tpu.memory_space<vmem>>, vector<1x32x32xbf16>
    %273 = vector.shape_cast %272 : vector<1x32x32xbf16> to vector<32x32xbf16>
    %274 = arith.truncf %269 : vector<16x32xf32> to vector<16x32xbf16>
    %cst_99 = arith.constant dense<0.000000e+00> : vector<16x96xf32>
    %275 = tpu.matmul %274, %271, %cst_99 {dimension_numbers = #tpu.dot_dimension_numbers<[1], [0], [0], [1], [0, 0, 1, 1], [], []>} : vector<16x32xbf16>, vector<32x96xbf16>, vector<16x96xf32> -> vector<16x96xf32>
    %c1_100 = arith.constant 1 : index
    %c0_101 = arith.constant 0 : index
    %c0_102 = arith.constant 0 : index
    %276 = vector.load %arg3[%c1_100, %c0_101, %c0_102] : memref<3x1x96xf32, #tpu.memory_space<vmem>>, vector<1x1x96xf32>
    %277 = vector.shape_cast %276 : vector<1x1x96xf32> to vector<1x96xf32>
    %278 = vector.broadcast %277 : vector<1x96xf32> to vector<16x96xf32>
    %279 = arith.addf %275, %278 : vector<16x96xf32>
    %280 = vector.extract_strided_slice %279 {offsets = [0, 0], sizes = [16, 32], strides = [1, 1]} : vector<16x96xf32> to vector<16x32xf32>
    %281 = vector.shape_cast %280 : vector<16x32xf32> to vector<2x8x32xf32>
    %282 = arith.truncf %281 : vector<2x8x32xf32> to vector<2x8x32xbf16>
    %283 = vector.extract_strided_slice %279 {offsets = [0, 32], sizes = [16, 32], strides = [1, 1]} : vector<16x96xf32> to vector<16x32xf32>
    %284 = vector.shape_cast %283 : vector<16x32xf32> to vector<2x8x32xf32>
    %285 = arith.truncf %284 : vector<2x8x32xf32> to vector<2x8x32xbf16>
    %286 = vector.extract_strided_slice %279 {offsets = [0, 64], sizes = [16, 32], strides = [1, 1]} : vector<16x96xf32> to vector<16x32xf32>
    %287 = vector.shape_cast %286 : vector<16x32xf32> to vector<2x8x32xf32>
    %288 = arith.truncf %287 : vector<2x8x32xf32> to vector<2x8x32xbf16>
    %cst_103 = arith.constant 0.000000e+00 : f32
    %289 = vector.broadcast %cst_103 : f32 to vector<16x32xf32>
    %290 = vector.extract_strided_slice %282 {offsets = [0, 0, 0], sizes = [2, 8, 4], strides = [1, 1, 1]} : vector<2x8x32xbf16> to vector<2x8x4xbf16>
    %291 = vector.extract_strided_slice %285 {offsets = [0, 0, 0], sizes = [2, 8, 4], strides = [1, 1, 1]} : vector<2x8x32xbf16> to vector<2x8x4xbf16>
    "tpu.trace_start"() <{level = 10 : i32, message = "bqh,bkh->bqk"}> : () -> ()
    %cst_104 = arith.constant dense<0.000000e+00> : vector<2x8x8xf32>
    %292 = tpu.matmul %290, %291, %cst_104 {dimension_numbers = #tpu.dot_dimension_numbers<[2], [2], [1], [1], [0, 0, 0, 1, 1, 1], [0], [0]>} : vector<2x8x4xbf16>, vector<2x8x4xbf16>, vector<2x8x8xf32> -> vector<2x8x8xf32>
    "tpu.trace_stop"() : () -> ()
    %cst_105 = arith.constant dense<0xFF800000> : vector<2x8xf32>
    %293 = vector.multi_reduction <maximumf>, %292, %cst_105 [2] : vector<2x8x8xf32> to vector<2x8xf32>
    %294 = vector.shape_cast %293 : vector<2x8xf32> to vector<2x8x1xf32>
    %295 = vector.broadcast %294 : vector<2x8x1xf32> to vector<2x8x8xf32>
    %296 = arith.subf %292, %295 : vector<2x8x8xf32>
    %297 = math.exp %296 : vector<2x8x8xf32>
    %cst_106 = arith.constant dense<0.000000e+00> : vector<2x8xf32>
    %298 = vector.multi_reduction <add>, %297, %cst_106 [2] : vector<2x8x8xf32> to vector<2x8xf32>
    %299 = vector.shape_cast %298 : vector<2x8xf32> to vector<2x8x1xf32>
    %300 = tpu.reciprocal %299 : vector<2x8x1xf32> -> vector<2x8x1xf32>
    %301 = vector.broadcast %300 : vector<2x8x1xf32> to vector<2x8x8xf32>
    %302 = arith.mulf %297, %301 : vector<2x8x8xf32>
    %303 = arith.truncf %302 : vector<2x8x8xf32> to vector<2x8x8xbf16>
    %304 = vector.extract_strided_slice %288 {offsets = [0, 0, 0], sizes = [2, 8, 4], strides = [1, 1, 1]} : vector<2x8x32xbf16> to vector<2x8x4xbf16>
    "tpu.trace_start"() <{level = 10 : i32, message = "bqk,bkh->bqh"}> : () -> ()
    %cst_107 = arith.constant dense<0.000000e+00> : vector<2x8x4xf32>
    %305 = tpu.matmul %303, %304, %cst_107 {dimension_numbers = #tpu.dot_dimension_numbers<[2], [1], [1], [2], [0, 0, 0, 1, 1, 2], [0], [0]>} : vector<2x8x8xbf16>, vector<2x8x4xbf16>, vector<2x8x4xf32> -> vector<2x8x4xf32>
    "tpu.trace_stop"() : () -> ()
    %306 = vector.shape_cast %305 : vector<2x8x4xf32> to vector<16x4xf32>
    %307 = arith.truncf %306 : vector<16x4xf32> to vector<16x4xbf16>
    %308 = vector.extract_strided_slice %273 {offsets = [0, 0], sizes = [4, 32], strides = [1, 1]} : vector<32x32xbf16> to vector<4x32xbf16>
    %cst_108 = arith.constant dense<0.000000e+00> : vector<16x32xf32>
    %309 = tpu.matmul %307, %308, %cst_108 {dimension_numbers = #tpu.dot_dimension_numbers<[1], [0], [0], [1], [0, 0, 1, 1], [], []>} : vector<16x4xbf16>, vector<4x32xbf16>, vector<16x32xf32> -> vector<16x32xf32>
    %310 = arith.addf %289, %309 : vector<16x32xf32>
    %311 = vector.extract_strided_slice %282 {offsets = [0, 0, 4], sizes = [2, 8, 4], strides = [1, 1, 1]} : vector<2x8x32xbf16> to vector<2x8x4xbf16>
    %312 = vector.extract_strided_slice %285 {offsets = [0, 0, 4], sizes = [2, 8, 4], strides = [1, 1, 1]} : vector<2x8x32xbf16> to vector<2x8x4xbf16>
    "tpu.trace_start"() <{level = 10 : i32, message = "bqh,bkh->bqk"}> : () -> ()
    %cst_109 = arith.constant dense<0.000000e+00> : vector<2x8x8xf32>
    %313 = tpu.matmul %311, %312, %cst_109 {dimension_numbers = #tpu.dot_dimension_numbers<[2], [2], [1], [1], [0, 0, 0, 1, 1, 1], [0], [0]>} : vector<2x8x4xbf16>, vector<2x8x4xbf16>, vector<2x8x8xf32> -> vector<2x8x8xf32>
    "tpu.trace_stop"() : () -> ()
    %cst_110 = arith.constant dense<0xFF800000> : vector<2x8xf32>
    %314 = vector.multi_reduction <maximumf>, %313, %cst_110 [2] : vector<2x8x8xf32> to vector<2x8xf32>
    %315 = vector.shape_cast %314 : vector<2x8xf32> to vector<2x8x1xf32>
    %316 = vector.broadcast %315 : vector<2x8x1xf32> to vector<2x8x8xf32>
    %317 = arith.subf %313, %316 : vector<2x8x8xf32>
    %318 = math.exp %317 : vector<2x8x8xf32>
    %cst_111 = arith.constant dense<0.000000e+00> : vector<2x8xf32>
    %319 = vector.multi_reduction <add>, %318, %cst_111 [2] : vector<2x8x8xf32> to vector<2x8xf32>
    %320 = vector.shape_cast %319 : vector<2x8xf32> to vector<2x8x1xf32>
    %321 = tpu.reciprocal %320 : vector<2x8x1xf32> -> vector<2x8x1xf32>
    %322 = vector.broadcast %321 : vector<2x8x1xf32> to vector<2x8x8xf32>
    %323 = arith.mulf %318, %322 : vector<2x8x8xf32>
    %324 = arith.truncf %323 : vector<2x8x8xf32> to vector<2x8x8xbf16>
    %325 = vector.extract_strided_slice %288 {offsets = [0, 0, 4], sizes = [2, 8, 4], strides = [1, 1, 1]} : vector<2x8x32xbf16> to vector<2x8x4xbf16>
    "tpu.trace_start"() <{level = 10 : i32, message = "bqk,bkh->bqh"}> : () -> ()
    %cst_112 = arith.constant dense<0.000000e+00> : vector<2x8x4xf32>
    %326 = tpu.matmul %324, %325, %cst_112 {dimension_numbers = #tpu.dot_dimension_numbers<[2], [1], [1], [2], [0, 0, 0, 1, 1, 2], [0], [0]>} : vector<2x8x8xbf16>, vector<2x8x4xbf16>, vector<2x8x4xf32> -> vector<2x8x4xf32>
    "tpu.trace_stop"() : () -> ()
    %327 = vector.shape_cast %326 : vector<2x8x4xf32> to vector<16x4xf32>
    %328 = arith.truncf %327 : vector<16x4xf32> to vector<16x4xbf16>
    %329 = vector.extract_strided_slice %273 {offsets = [4, 0], sizes = [4, 32], strides = [1, 1]} : vector<32x32xbf16> to vector<4x32xbf16>
    %cst_113 = arith.constant dense<0.000000e+00> : vector<16x32xf32>
    %330 = tpu.matmul %328, %329, %cst_113 {dimension_numbers = #tpu.dot_dimension_numbers<[1], [0], [0], [1], [0, 0, 1, 1], [], []>} : vector<16x4xbf16>, vector<4x32xbf16>, vector<16x32xf32> -> vector<16x32xf32>
    %331 = arith.addf %310, %330 : vector<16x32xf32>
    %332 = vector.extract_strided_slice %282 {offsets = [0, 0, 8], sizes = [2, 8, 4], strides = [1, 1, 1]} : vector<2x8x32xbf16> to vector<2x8x4xbf16>
    %333 = vector.extract_strided_slice %285 {offsets = [0, 0, 8], sizes = [2, 8, 4], strides = [1, 1, 1]} : vector<2x8x32xbf16> to vector<2x8x4xbf16>
    "tpu.trace_start"() <{level = 10 : i32, message = "bqh,bkh->bqk"}> : () -> ()
    %cst_114 = arith.constant dense<0.000000e+00> : vector<2x8x8xf32>
    %334 = tpu.matmul %332, %333, %cst_114 {dimension_numbers = #tpu.dot_dimension_numbers<[2], [2], [1], [1], [0, 0, 0, 1, 1, 1], [0], [0]>} : vector<2x8x4xbf16>, vector<2x8x4xbf16>, vector<2x8x8xf32> -> vector<2x8x8xf32>
    "tpu.trace_stop"() : () -> ()
    %cst_115 = arith.constant dense<0xFF800000> : vector<2x8xf32>
    %335 = vector.multi_reduction <maximumf>, %334, %cst_115 [2] : vector<2x8x8xf32> to vector<2x8xf32>
    %336 = vector.shape_cast %335 : vector<2x8xf32> to vector<2x8x1xf32>
    %337 = vector.broadcast %336 : vector<2x8x1xf32> to vector<2x8x8xf32>
    %338 = arith.subf %334, %337 : vector<2x8x8xf32>
    %339 = math.exp %338 : vector<2x8x8xf32>
    %cst_116 = arith.constant dense<0.000000e+00> : vector<2x8xf32>
    %340 = vector.multi_reduction <add>, %339, %cst_116 [2] : vector<2x8x8xf32> to vector<2x8xf32>
    %341 = vector.shape_cast %340 : vector<2x8xf32> to vector<2x8x1xf32>
    %342 = tpu.reciprocal %341 : vector<2x8x1xf32> -> vector<2x8x1xf32>
    %343 = vector.broadcast %342 : vector<2x8x1xf32> to vector<2x8x8xf32>
    %344 = arith.mulf %339, %343 : vector<2x8x8xf32>
    %345 = arith.truncf %344 : vector<2x8x8xf32> to vector<2x8x8xbf16>
    %346 = vector.extract_strided_slice %288 {offsets = [0, 0, 8], sizes = [2, 8, 4], strides = [1, 1, 1]} : vector<2x8x32xbf16> to vector<2x8x4xbf16>
    "tpu.trace_start"() <{level = 10 : i32, message = "bqk,bkh->bqh"}> : () -> ()
    %cst_117 = arith.constant dense<0.000000e+00> : vector<2x8x4xf32>
    %347 = tpu.matmul %345, %346, %cst_117 {dimension_numbers = #tpu.dot_dimension_numbers<[2], [1], [1], [2], [0, 0, 0, 1, 1, 2], [0], [0]>} : vector<2x8x8xbf16>, vector<2x8x4xbf16>, vector<2x8x4xf32> -> vector<2x8x4xf32>
    "tpu.trace_stop"() : () -> ()
    %348 = vector.shape_cast %347 : vector<2x8x4xf32> to vector<16x4xf32>
    %349 = arith.truncf %348 : vector<16x4xf32> to vector<16x4xbf16>
    %350 = vector.extract_strided_slice %273 {offsets = [8, 0], sizes = [4, 32], strides = [1, 1]} : vector<32x32xbf16> to vector<4x32xbf16>
    %cst_118 = arith.constant dense<0.000000e+00> : vector<16x32xf32>
    %351 = tpu.matmul %349, %350, %cst_118 {dimension_numbers = #tpu.dot_dimension_numbers<[1], [0], [0], [1], [0, 0, 1, 1], [], []>} : vector<16x4xbf16>, vector<4x32xbf16>, vector<16x32xf32> -> vector<16x32xf32>
    %352 = arith.addf %331, %351 : vector<16x32xf32>
    %353 = vector.extract_strided_slice %282 {offsets = [0, 0, 12], sizes = [2, 8, 4], strides = [1, 1, 1]} : vector<2x8x32xbf16> to vector<2x8x4xbf16>
    %354 = vector.extract_strided_slice %285 {offsets = [0, 0, 12], sizes = [2, 8, 4], strides = [1, 1, 1]} : vector<2x8x32xbf16> to vector<2x8x4xbf16>
    "tpu.trace_start"() <{level = 10 : i32, message = "bqh,bkh->bqk"}> : () -> ()
    %cst_119 = arith.constant dense<0.000000e+00> : vector<2x8x8xf32>
    %355 = tpu.matmul %353, %354, %cst_119 {dimension_numbers = #tpu.dot_dimension_numbers<[2], [2], [1], [1], [0, 0, 0, 1, 1, 1], [0], [0]>} : vector<2x8x4xbf16>, vector<2x8x4xbf16>, vector<2x8x8xf32> -> vector<2x8x8xf32>
    "tpu.trace_stop"() : () -> ()
    %cst_120 = arith.constant dense<0xFF800000> : vector<2x8xf32>
    %356 = vector.multi_reduction <maximumf>, %355, %cst_120 [2] : vector<2x8x8xf32> to vector<2x8xf32>
    %357 = vector.shape_cast %356 : vector<2x8xf32> to vector<2x8x1xf32>
    %358 = vector.broadcast %357 : vector<2x8x1xf32> to vector<2x8x8xf32>
    %359 = arith.subf %355, %358 : vector<2x8x8xf32>
    %360 = math.exp %359 : vector<2x8x8xf32>
    %cst_121 = arith.constant dense<0.000000e+00> : vector<2x8xf32>
    %361 = vector.multi_reduction <add>, %360, %cst_121 [2] : vector<2x8x8xf32> to vector<2x8xf32>
    %362 = vector.shape_cast %361 : vector<2x8xf32> to vector<2x8x1xf32>
    %363 = tpu.reciprocal %362 : vector<2x8x1xf32> -> vector<2x8x1xf32>
    %364 = vector.broadcast %363 : vector<2x8x1xf32> to vector<2x8x8xf32>
    %365 = arith.mulf %360, %364 : vector<2x8x8xf32>
    %366 = arith.truncf %365 : vector<2x8x8xf32> to vector<2x8x8xbf16>
    %367 = vector.extract_strided_slice %288 {offsets = [0, 0, 12], sizes = [2, 8, 4], strides = [1, 1, 1]} : vector<2x8x32xbf16> to vector<2x8x4xbf16>
    "tpu.trace_start"() <{level = 10 : i32, message = "bqk,bkh->bqh"}> : () -> ()
    %cst_122 = arith.constant dense<0.000000e+00> : vector<2x8x4xf32>
    %368 = tpu.matmul %366, %367, %cst_122 {dimension_numbers = #tpu.dot_dimension_numbers<[2], [1], [1], [2], [0, 0, 0, 1, 1, 2], [0], [0]>} : vector<2x8x8xbf16>, vector<2x8x4xbf16>, vector<2x8x4xf32> -> vector<2x8x4xf32>
    "tpu.trace_stop"() : () -> ()
    %369 = vector.shape_cast %368 : vector<2x8x4xf32> to vector<16x4xf32>
    %370 = arith.truncf %369 : vector<16x4xf32> to vector<16x4xbf16>
    %371 = vector.extract_strided_slice %273 {offsets = [12, 0], sizes = [4, 32], strides = [1, 1]} : vector<32x32xbf16> to vector<4x32xbf16>
    %cst_123 = arith.constant dense<0.000000e+00> : vector<16x32xf32>
    %372 = tpu.matmul %370, %371, %cst_123 {dimension_numbers = #tpu.dot_dimension_numbers<[1], [0], [0], [1], [0, 0, 1, 1], [], []>} : vector<16x4xbf16>, vector<4x32xbf16>, vector<16x32xf32> -> vector<16x32xf32>
    %373 = arith.addf %352, %372 : vector<16x32xf32>
    %374 = vector.extract_strided_slice %282 {offsets = [0, 0, 16], sizes = [2, 8, 4], strides = [1, 1, 1]} : vector<2x8x32xbf16> to vector<2x8x4xbf16>
    %375 = vector.extract_strided_slice %285 {offsets = [0, 0, 16], sizes = [2, 8, 4], strides = [1, 1, 1]} : vector<2x8x32xbf16> to vector<2x8x4xbf16>
    "tpu.trace_start"() <{level = 10 : i32, message = "bqh,bkh->bqk"}> : () -> ()
    %cst_124 = arith.constant dense<0.000000e+00> : vector<2x8x8xf32>
    %376 = tpu.matmul %374, %375, %cst_124 {dimension_numbers = #tpu.dot_dimension_numbers<[2], [2], [1], [1], [0, 0, 0, 1, 1, 1], [0], [0]>} : vector<2x8x4xbf16>, vector<2x8x4xbf16>, vector<2x8x8xf32> -> vector<2x8x8xf32>
    "tpu.trace_stop"() : () -> ()
    %cst_125 = arith.constant dense<0xFF800000> : vector<2x8xf32>
    %377 = vector.multi_reduction <maximumf>, %376, %cst_125 [2] : vector<2x8x8xf32> to vector<2x8xf32>
    %378 = vector.shape_cast %377 : vector<2x8xf32> to vector<2x8x1xf32>
    %379 = vector.broadcast %378 : vector<2x8x1xf32> to vector<2x8x8xf32>
    %380 = arith.subf %376, %379 : vector<2x8x8xf32>
    %381 = math.exp %380 : vector<2x8x8xf32>
    %cst_126 = arith.constant dense<0.000000e+00> : vector<2x8xf32>
    %382 = vector.multi_reduction <add>, %381, %cst_126 [2] : vector<2x8x8xf32> to vector<2x8xf32>
    %383 = vector.shape_cast %382 : vector<2x8xf32> to vector<2x8x1xf32>
    %384 = tpu.reciprocal %383 : vector<2x8x1xf32> -> vector<2x8x1xf32>
    %385 = vector.broadcast %384 : vector<2x8x1xf32> to vector<2x8x8xf32>
    %386 = arith.mulf %381, %385 : vector<2x8x8xf32>
    %387 = arith.truncf %386 : vector<2x8x8xf32> to vector<2x8x8xbf16>
    %388 = vector.extract_strided_slice %288 {offsets = [0, 0, 16], sizes = [2, 8, 4], strides = [1, 1, 1]} : vector<2x8x32xbf16> to vector<2x8x4xbf16>
    "tpu.trace_start"() <{level = 10 : i32, message = "bqk,bkh->bqh"}> : () -> ()
    %cst_127 = arith.constant dense<0.000000e+00> : vector<2x8x4xf32>
    %389 = tpu.matmul %387, %388, %cst_127 {dimension_numbers = #tpu.dot_dimension_numbers<[2], [1], [1], [2], [0, 0, 0, 1, 1, 2], [0], [0]>} : vector<2x8x8xbf16>, vector<2x8x4xbf16>, vector<2x8x4xf32> -> vector<2x8x4xf32>
    "tpu.trace_stop"() : () -> ()
    %390 = vector.shape_cast %389 : vector<2x8x4xf32> to vector<16x4xf32>
    %391 = arith.truncf %390 : vector<16x4xf32> to vector<16x4xbf16>
    %392 = vector.extract_strided_slice %273 {offsets = [16, 0], sizes = [4, 32], strides = [1, 1]} : vector<32x32xbf16> to vector<4x32xbf16>
    %cst_128 = arith.constant dense<0.000000e+00> : vector<16x32xf32>
    %393 = tpu.matmul %391, %392, %cst_128 {dimension_numbers = #tpu.dot_dimension_numbers<[1], [0], [0], [1], [0, 0, 1, 1], [], []>} : vector<16x4xbf16>, vector<4x32xbf16>, vector<16x32xf32> -> vector<16x32xf32>
    %394 = arith.addf %373, %393 : vector<16x32xf32>
    %395 = vector.extract_strided_slice %282 {offsets = [0, 0, 20], sizes = [2, 8, 4], strides = [1, 1, 1]} : vector<2x8x32xbf16> to vector<2x8x4xbf16>
    %396 = vector.extract_strided_slice %285 {offsets = [0, 0, 20], sizes = [2, 8, 4], strides = [1, 1, 1]} : vector<2x8x32xbf16> to vector<2x8x4xbf16>
    "tpu.trace_start"() <{level = 10 : i32, message = "bqh,bkh->bqk"}> : () -> ()
    %cst_129 = arith.constant dense<0.000000e+00> : vector<2x8x8xf32>
    %397 = tpu.matmul %395, %396, %cst_129 {dimension_numbers = #tpu.dot_dimension_numbers<[2], [2], [1], [1], [0, 0, 0, 1, 1, 1], [0], [0]>} : vector<2x8x4xbf16>, vector<2x8x4xbf16>, vector<2x8x8xf32> -> vector<2x8x8xf32>
    "tpu.trace_stop"() : () -> ()
    %cst_130 = arith.constant dense<0xFF800000> : vector<2x8xf32>
    %398 = vector.multi_reduction <maximumf>, %397, %cst_130 [2] : vector<2x8x8xf32> to vector<2x8xf32>
    %399 = vector.shape_cast %398 : vector<2x8xf32> to vector<2x8x1xf32>
    %400 = vector.broadcast %399 : vector<2x8x1xf32> to vector<2x8x8xf32>
    %401 = arith.subf %397, %400 : vector<2x8x8xf32>
    %402 = math.exp %401 : vector<2x8x8xf32>
    %cst_131 = arith.constant dense<0.000000e+00> : vector<2x8xf32>
    %403 = vector.multi_reduction <add>, %402, %cst_131 [2] : vector<2x8x8xf32> to vector<2x8xf32>
    %404 = vector.shape_cast %403 : vector<2x8xf32> to vector<2x8x1xf32>
    %405 = tpu.reciprocal %404 : vector<2x8x1xf32> -> vector<2x8x1xf32>
    %406 = vector.broadcast %405 : vector<2x8x1xf32> to vector<2x8x8xf32>
    %407 = arith.mulf %402, %406 : vector<2x8x8xf32>
    %408 = arith.truncf %407 : vector<2x8x8xf32> to vector<2x8x8xbf16>
    %409 = vector.extract_strided_slice %288 {offsets = [0, 0, 20], sizes = [2, 8, 4], strides = [1, 1, 1]} : vector<2x8x32xbf16> to vector<2x8x4xbf16>
    "tpu.trace_start"() <{level = 10 : i32, message = "bqk,bkh->bqh"}> : () -> ()
    %cst_132 = arith.constant dense<0.000000e+00> : vector<2x8x4xf32>
    %410 = tpu.matmul %408, %409, %cst_132 {dimension_numbers = #tpu.dot_dimension_numbers<[2], [1], [1], [2], [0, 0, 0, 1, 1, 2], [0], [0]>} : vector<2x8x8xbf16>, vector<2x8x4xbf16>, vector<2x8x4xf32> -> vector<2x8x4xf32>
    "tpu.trace_stop"() : () -> ()
    %411 = vector.shape_cast %410 : vector<2x8x4xf32> to vector<16x4xf32>
    %412 = arith.truncf %411 : vector<16x4xf32> to vector<16x4xbf16>
    %413 = vector.extract_strided_slice %273 {offsets = [20, 0], sizes = [4, 32], strides = [1, 1]} : vector<32x32xbf16> to vector<4x32xbf16>
    %cst_133 = arith.constant dense<0.000000e+00> : vector<16x32xf32>
    %414 = tpu.matmul %412, %413, %cst_133 {dimension_numbers = #tpu.dot_dimension_numbers<[1], [0], [0], [1], [0, 0, 1, 1], [], []>} : vector<16x4xbf16>, vector<4x32xbf16>, vector<16x32xf32> -> vector<16x32xf32>
    %415 = arith.addf %394, %414 : vector<16x32xf32>
    %416 = vector.extract_strided_slice %282 {offsets = [0, 0, 24], sizes = [2, 8, 4], strides = [1, 1, 1]} : vector<2x8x32xbf16> to vector<2x8x4xbf16>
    %417 = vector.extract_strided_slice %285 {offsets = [0, 0, 24], sizes = [2, 8, 4], strides = [1, 1, 1]} : vector<2x8x32xbf16> to vector<2x8x4xbf16>
    "tpu.trace_start"() <{level = 10 : i32, message = "bqh,bkh->bqk"}> : () -> ()
    %cst_134 = arith.constant dense<0.000000e+00> : vector<2x8x8xf32>
    %418 = tpu.matmul %416, %417, %cst_134 {dimension_numbers = #tpu.dot_dimension_numbers<[2], [2], [1], [1], [0, 0, 0, 1, 1, 1], [0], [0]>} : vector<2x8x4xbf16>, vector<2x8x4xbf16>, vector<2x8x8xf32> -> vector<2x8x8xf32>
    "tpu.trace_stop"() : () -> ()
    %cst_135 = arith.constant dense<0xFF800000> : vector<2x8xf32>
    %419 = vector.multi_reduction <maximumf>, %418, %cst_135 [2] : vector<2x8x8xf32> to vector<2x8xf32>
    %420 = vector.shape_cast %419 : vector<2x8xf32> to vector<2x8x1xf32>
    %421 = vector.broadcast %420 : vector<2x8x1xf32> to vector<2x8x8xf32>
    %422 = arith.subf %418, %421 : vector<2x8x8xf32>
    %423 = math.exp %422 : vector<2x8x8xf32>
    %cst_136 = arith.constant dense<0.000000e+00> : vector<2x8xf32>
    %424 = vector.multi_reduction <add>, %423, %cst_136 [2] : vector<2x8x8xf32> to vector<2x8xf32>
    %425 = vector.shape_cast %424 : vector<2x8xf32> to vector<2x8x1xf32>
    %426 = tpu.reciprocal %425 : vector<2x8x1xf32> -> vector<2x8x1xf32>
    %427 = vector.broadcast %426 : vector<2x8x1xf32> to vector<2x8x8xf32>
    %428 = arith.mulf %423, %427 : vector<2x8x8xf32>
    %429 = arith.truncf %428 : vector<2x8x8xf32> to vector<2x8x8xbf16>
    %430 = vector.extract_strided_slice %288 {offsets = [0, 0, 24], sizes = [2, 8, 4], strides = [1, 1, 1]} : vector<2x8x32xbf16> to vector<2x8x4xbf16>
    "tpu.trace_start"() <{level = 10 : i32, message = "bqk,bkh->bqh"}> : () -> ()
    %cst_137 = arith.constant dense<0.000000e+00> : vector<2x8x4xf32>
    %431 = tpu.matmul %429, %430, %cst_137 {dimension_numbers = #tpu.dot_dimension_numbers<[2], [1], [1], [2], [0, 0, 0, 1, 1, 2], [0], [0]>} : vector<2x8x8xbf16>, vector<2x8x4xbf16>, vector<2x8x4xf32> -> vector<2x8x4xf32>
    "tpu.trace_stop"() : () -> ()
    %432 = vector.shape_cast %431 : vector<2x8x4xf32> to vector<16x4xf32>
    %433 = arith.truncf %432 : vector<16x4xf32> to vector<16x4xbf16>
    %434 = vector.extract_strided_slice %273 {offsets = [24, 0], sizes = [4, 32], strides = [1, 1]} : vector<32x32xbf16> to vector<4x32xbf16>
    %cst_138 = arith.constant dense<0.000000e+00> : vector<16x32xf32>
    %435 = tpu.matmul %433, %434, %cst_138 {dimension_numbers = #tpu.dot_dimension_numbers<[1], [0], [0], [1], [0, 0, 1, 1], [], []>} : vector<16x4xbf16>, vector<4x32xbf16>, vector<16x32xf32> -> vector<16x32xf32>
    %436 = arith.addf %415, %435 : vector<16x32xf32>
    %437 = vector.extract_strided_slice %282 {offsets = [0, 0, 28], sizes = [2, 8, 4], strides = [1, 1, 1]} : vector<2x8x32xbf16> to vector<2x8x4xbf16>
    %438 = vector.extract_strided_slice %285 {offsets = [0, 0, 28], sizes = [2, 8, 4], strides = [1, 1, 1]} : vector<2x8x32xbf16> to vector<2x8x4xbf16>
    "tpu.trace_start"() <{level = 10 : i32, message = "bqh,bkh->bqk"}> : () -> ()
    %cst_139 = arith.constant dense<0.000000e+00> : vector<2x8x8xf32>
    %439 = tpu.matmul %437, %438, %cst_139 {dimension_numbers = #tpu.dot_dimension_numbers<[2], [2], [1], [1], [0, 0, 0, 1, 1, 1], [0], [0]>} : vector<2x8x4xbf16>, vector<2x8x4xbf16>, vector<2x8x8xf32> -> vector<2x8x8xf32>
    "tpu.trace_stop"() : () -> ()
    %cst_140 = arith.constant dense<0xFF800000> : vector<2x8xf32>
    %440 = vector.multi_reduction <maximumf>, %439, %cst_140 [2] : vector<2x8x8xf32> to vector<2x8xf32>
    %441 = vector.shape_cast %440 : vector<2x8xf32> to vector<2x8x1xf32>
    %442 = vector.broadcast %441 : vector<2x8x1xf32> to vector<2x8x8xf32>
    %443 = arith.subf %439, %442 : vector<2x8x8xf32>
    %444 = math.exp %443 : vector<2x8x8xf32>
    %cst_141 = arith.constant dense<0.000000e+00> : vector<2x8xf32>
    %445 = vector.multi_reduction <add>, %444, %cst_141 [2] : vector<2x8x8xf32> to vector<2x8xf32>
    %446 = vector.shape_cast %445 : vector<2x8xf32> to vector<2x8x1xf32>
    %447 = tpu.reciprocal %446 : vector<2x8x1xf32> -> vector<2x8x1xf32>
    %448 = vector.broadcast %447 : vector<2x8x1xf32> to vector<2x8x8xf32>
    %449 = arith.mulf %444, %448 : vector<2x8x8xf32>
    %450 = arith.truncf %449 : vector<2x8x8xf32> to vector<2x8x8xbf16>
    %451 = vector.extract_strided_slice %288 {offsets = [0, 0, 28], sizes = [2, 8, 4], strides = [1, 1, 1]} : vector<2x8x32xbf16> to vector<2x8x4xbf16>
    "tpu.trace_start"() <{level = 10 : i32, message = "bqk,bkh->bqh"}> : () -> ()
    %cst_142 = arith.constant dense<0.000000e+00> : vector<2x8x4xf32>
    %452 = tpu.matmul %450, %451, %cst_142 {dimension_numbers = #tpu.dot_dimension_numbers<[2], [1], [1], [2], [0, 0, 0, 1, 1, 2], [0], [0]>} : vector<2x8x8xbf16>, vector<2x8x4xbf16>, vector<2x8x4xf32> -> vector<2x8x4xf32>
    "tpu.trace_stop"() : () -> ()
    %453 = vector.shape_cast %452 : vector<2x8x4xf32> to vector<16x4xf32>
    %454 = arith.truncf %453 : vector<16x4xf32> to vector<16x4xbf16>
    %455 = vector.extract_strided_slice %273 {offsets = [28, 0], sizes = [4, 32], strides = [1, 1]} : vector<32x32xbf16> to vector<4x32xbf16>
    %cst_143 = arith.constant dense<0.000000e+00> : vector<16x32xf32>
    %456 = tpu.matmul %454, %455, %cst_143 {dimension_numbers = #tpu.dot_dimension_numbers<[1], [0], [0], [1], [0, 0, 1, 1], [], []>} : vector<16x4xbf16>, vector<4x32xbf16>, vector<16x32xf32> -> vector<16x32xf32>
    %457 = arith.addf %436, %456 : vector<16x32xf32>
    %c1_144 = arith.constant 1 : index
    %c0_145 = arith.constant 0 : index
    %c0_146 = arith.constant 0 : index
    %458 = vector.load %arg5[%c1_144, %c0_145, %c0_146] : memref<3x1x32xf32, #tpu.memory_space<vmem>>, vector<1x1x32xf32>
    %459 = vector.shape_cast %458 : vector<1x1x32xf32> to vector<1x32xf32>
    %460 = vector.broadcast %459 : vector<1x32xf32> to vector<16x32xf32>
    %461 = arith.addf %457, %460 : vector<16x32xf32>
    %462 = arith.addf %269, %461 : vector<16x32xf32>
    %c1_147 = arith.constant 1 : index
    %c0_148 = arith.constant 0 : index
    %c0_149 = arith.constant 0 : index
    %463 = vector.load %arg6[%c1_147, %c0_148, %c0_149] : memref<3x1x32xf32, #tpu.memory_space<vmem>>, vector<1x1x32xf32>
    %464 = vector.shape_cast %463 : vector<1x1x32xf32> to vector<1x32xf32>
    %c1_150 = arith.constant 1 : index
    %c0_151 = arith.constant 0 : index
    %c0_152 = arith.constant 0 : index
    %465 = vector.load %arg7[%c1_150, %c0_151, %c0_152] : memref<3x1x32xf32, #tpu.memory_space<vmem>>, vector<1x1x32xf32>
    %466 = vector.shape_cast %465 : vector<1x1x32xf32> to vector<1x32xf32>
    %cst_153 = arith.constant dense<0.000000e+00> : vector<16xf32>
    %467 = vector.multi_reduction <add>, %462, %cst_153 [1] : vector<16x32xf32> to vector<16xf32>
    %468 = vector.shape_cast %467 : vector<16xf32> to vector<16x1xf32>
    %cst_154 = arith.constant 3.125000e-02 : f32
    %469 = vector.broadcast %cst_154 : f32 to vector<16x1xf32>
    %470 = arith.mulf %468, %469 : vector<16x1xf32>
    %471 = arith.mulf %462, %462 : vector<16x32xf32>
    %cst_155 = arith.constant dense<0.000000e+00> : vector<16xf32>
    %472 = vector.multi_reduction <add>, %471, %cst_155 [1] : vector<16x32xf32> to vector<16xf32>
    %473 = vector.shape_cast %472 : vector<16xf32> to vector<16x1xf32>
    %cst_156 = arith.constant 3.125000e-02 : f32
    %474 = vector.broadcast %cst_156 : f32 to vector<16x1xf32>
    %475 = arith.mulf %473, %474 : vector<16x1xf32>
    %476 = arith.mulf %470, %470 : vector<16x1xf32>
    %477 = arith.subf %475, %476 : vector<16x1xf32>
    %cst_157 = arith.constant 0.000000e+00 : f32
    %478 = vector.broadcast %cst_157 : f32 to vector<16x1xf32>
    %479 = arith.maximumf %477, %478 : vector<16x1xf32>
    %480 = vector.broadcast %470 : vector<16x1xf32> to vector<16x32xf32>
    %481 = arith.subf %462, %480 : vector<16x32xf32>
    %cst_158 = arith.constant 9.99999974E-6 : f32
    %482 = vector.broadcast %cst_158 : f32 to vector<16x1xf32>
    %483 = arith.addf %479, %482 : vector<16x1xf32>
    %484 = math.rsqrt %483 : vector<16x1xf32>
    %485 = vector.broadcast %484 : vector<16x1xf32> to vector<16x32xf32>
    %486 = arith.mulf %481, %485 : vector<16x32xf32>
    %487 = vector.broadcast %464 : vector<1x32xf32> to vector<16x32xf32>
    %488 = arith.mulf %486, %487 : vector<16x32xf32>
    %489 = vector.broadcast %466 : vector<1x32xf32> to vector<16x32xf32>
    %490 = arith.addf %488, %489 : vector<16x32xf32>
    %491 = arith.truncf %490 : vector<16x32xf32> to vector<16x32xbf16>
    %c1_159 = arith.constant 1 : index
    %c0_160 = arith.constant 0 : index
    %c0_161 = arith.constant 0 : index
    %492 = vector.load %arg8[%c1_159, %c0_160, %c0_161] : memref<3x32x2048xbf16, #tpu.memory_space<vmem>>, vector<1x32x2048xbf16>
    %493 = vector.shape_cast %492 : vector<1x32x2048xbf16> to vector<32x2048xbf16>
    %cst_162 = arith.constant dense<0.000000e+00> : vector<16x2048xf32>
    %494 = tpu.matmul %491, %493, %cst_162 {dimension_numbers = #tpu.dot_dimension_numbers<[1], [0], [0], [1], [0, 0, 1, 1], [], []>} : vector<16x32xbf16>, vector<32x2048xbf16>, vector<16x2048xf32> -> vector<16x2048xf32>
    %c1_163 = arith.constant 1 : index
    %c0_164 = arith.constant 0 : index
    %c0_165 = arith.constant 0 : index
    %495 = vector.load %arg9[%c1_163, %c0_164, %c0_165] : memref<3x1x2048xf32, #tpu.memory_space<vmem>>, vector<1x1x2048xf32>
    %496 = vector.shape_cast %495 : vector<1x1x2048xf32> to vector<1x2048xf32>
    %497 = vector.broadcast %496 : vector<1x2048xf32> to vector<16x2048xf32>
    %498 = arith.addf %494, %497 : vector<16x2048xf32>
    %cst_166 = arith.constant 0.000000e+00 : f32
    %499 = vector.broadcast %cst_166 : f32 to vector<16x2048xf32>
    %500 = arith.maximumf %498, %499 : vector<16x2048xf32>
    %501 = arith.truncf %500 : vector<16x2048xf32> to vector<16x2048xbf16>
    %c1_167 = arith.constant 1 : index
    %c0_168 = arith.constant 0 : index
    %c0_169 = arith.constant 0 : index
    %502 = vector.load %arg10[%c1_167, %c0_168, %c0_169] : memref<3x2048x32xbf16, #tpu.memory_space<vmem>>, vector<1x2048x32xbf16>
    %503 = vector.shape_cast %502 : vector<1x2048x32xbf16> to vector<2048x32xbf16>
    %cst_170 = arith.constant dense<0.000000e+00> : vector<16x32xf32>
    %504 = tpu.matmul %501, %503, %cst_170 {dimension_numbers = #tpu.dot_dimension_numbers<[1], [0], [0], [1], [0, 0, 1, 1], [], []>} : vector<16x2048xbf16>, vector<2048x32xbf16>, vector<16x32xf32> -> vector<16x32xf32>
    %c1_171 = arith.constant 1 : index
    %c0_172 = arith.constant 0 : index
    %c0_173 = arith.constant 0 : index
    %505 = vector.load %arg11[%c1_171, %c0_172, %c0_173] : memref<3x1x32xf32, #tpu.memory_space<vmem>>, vector<1x1x32xf32>
    %506 = vector.shape_cast %505 : vector<1x1x32xf32> to vector<1x32xf32>
    %507 = vector.broadcast %506 : vector<1x32xf32> to vector<16x32xf32>
    %508 = arith.addf %504, %507 : vector<16x32xf32>
    %509 = arith.addf %490, %508 : vector<16x32xf32>
    %c1_174 = arith.constant 1 : index
    %c0_175 = arith.constant 0 : index
    %c0_176 = arith.constant 0 : index
    %510 = vector.load %arg12[%c1_174, %c0_175, %c0_176] : memref<3x1x32xf32, #tpu.memory_space<vmem>>, vector<1x1x32xf32>
    %511 = vector.shape_cast %510 : vector<1x1x32xf32> to vector<1x32xf32>
    %c1_177 = arith.constant 1 : index
    %c0_178 = arith.constant 0 : index
    %c0_179 = arith.constant 0 : index
    %512 = vector.load %arg13[%c1_177, %c0_178, %c0_179] : memref<3x1x32xf32, #tpu.memory_space<vmem>>, vector<1x1x32xf32>
    %513 = vector.shape_cast %512 : vector<1x1x32xf32> to vector<1x32xf32>
    %cst_180 = arith.constant dense<0.000000e+00> : vector<16xf32>
    %514 = vector.multi_reduction <add>, %509, %cst_180 [1] : vector<16x32xf32> to vector<16xf32>
    %515 = vector.shape_cast %514 : vector<16xf32> to vector<16x1xf32>
    %cst_181 = arith.constant 3.125000e-02 : f32
    %516 = vector.broadcast %cst_181 : f32 to vector<16x1xf32>
    %517 = arith.mulf %515, %516 : vector<16x1xf32>
    %518 = arith.mulf %509, %509 : vector<16x32xf32>
    %cst_182 = arith.constant dense<0.000000e+00> : vector<16xf32>
    %519 = vector.multi_reduction <add>, %518, %cst_182 [1] : vector<16x32xf32> to vector<16xf32>
    %520 = vector.shape_cast %519 : vector<16xf32> to vector<16x1xf32>
    %cst_183 = arith.constant 3.125000e-02 : f32
    %521 = vector.broadcast %cst_183 : f32 to vector<16x1xf32>
    %522 = arith.mulf %520, %521 : vector<16x1xf32>
    %523 = arith.mulf %517, %517 : vector<16x1xf32>
    %524 = arith.subf %522, %523 : vector<16x1xf32>
    %cst_184 = arith.constant 0.000000e+00 : f32
    %525 = vector.broadcast %cst_184 : f32 to vector<16x1xf32>
    %526 = arith.maximumf %524, %525 : vector<16x1xf32>
    %527 = vector.broadcast %517 : vector<16x1xf32> to vector<16x32xf32>
    %528 = arith.subf %509, %527 : vector<16x32xf32>
    %cst_185 = arith.constant 9.99999974E-6 : f32
    %529 = vector.broadcast %cst_185 : f32 to vector<16x1xf32>
    %530 = arith.addf %526, %529 : vector<16x1xf32>
    %531 = math.rsqrt %530 : vector<16x1xf32>
    %532 = vector.broadcast %531 : vector<16x1xf32> to vector<16x32xf32>
    %533 = arith.mulf %528, %532 : vector<16x32xf32>
    %534 = vector.broadcast %511 : vector<1x32xf32> to vector<16x32xf32>
    %535 = arith.mulf %533, %534 : vector<16x32xf32>
    %536 = vector.broadcast %513 : vector<1x32xf32> to vector<16x32xf32>
    %537 = arith.addf %535, %536 : vector<16x32xf32>
    %c2 = arith.constant 2 : index
    %c0_186 = arith.constant 0 : index
    %c0_187 = arith.constant 0 : index
    %538 = vector.load %arg2[%c2, %c0_186, %c0_187] : memref<3x32x96xbf16, #tpu.memory_space<vmem>>, vector<1x32x96xbf16>
    %539 = vector.shape_cast %538 : vector<1x32x96xbf16> to vector<32x96xbf16>
    %c2_188 = arith.constant 2 : index
    %c0_189 = arith.constant 0 : index
    %c0_190 = arith.constant 0 : index
    %540 = vector.load %arg4[%c2_188, %c0_189, %c0_190] : memref<3x32x32xbf16, #tpu.memory_space<vmem>>, vector<1x32x32xbf16>
    %541 = vector.shape_cast %540 : vector<1x32x32xbf16> to vector<32x32xbf16>
    %542 = arith.truncf %537 : vector<16x32xf32> to vector<16x32xbf16>
    %cst_191 = arith.constant dense<0.000000e+00> : vector<16x96xf32>
    %543 = tpu.matmul %542, %539, %cst_191 {dimension_numbers = #tpu.dot_dimension_numbers<[1], [0], [0], [1], [0, 0, 1, 1], [], []>} : vector<16x32xbf16>, vector<32x96xbf16>, vector<16x96xf32> -> vector<16x96xf32>
    %c2_192 = arith.constant 2 : index
    %c0_193 = arith.constant 0 : index
    %c0_194 = arith.constant 0 : index
    %544 = vector.load %arg3[%c2_192, %c0_193, %c0_194] : memref<3x1x96xf32, #tpu.memory_space<vmem>>, vector<1x1x96xf32>
    %545 = vector.shape_cast %544 : vector<1x1x96xf32> to vector<1x96xf32>
    %546 = vector.broadcast %545 : vector<1x96xf32> to vector<16x96xf32>
    %547 = arith.addf %543, %546 : vector<16x96xf32>
    %548 = vector.extract_strided_slice %547 {offsets = [0, 0], sizes = [16, 32], strides = [1, 1]} : vector<16x96xf32> to vector<16x32xf32>
    %549 = vector.shape_cast %548 : vector<16x32xf32> to vector<2x8x32xf32>
    %550 = arith.truncf %549 : vector<2x8x32xf32> to vector<2x8x32xbf16>
    %551 = vector.extract_strided_slice %547 {offsets = [0, 32], sizes = [16, 32], strides = [1, 1]} : vector<16x96xf32> to vector<16x32xf32>
    %552 = vector.shape_cast %551 : vector<16x32xf32> to vector<2x8x32xf32>
    %553 = arith.truncf %552 : vector<2x8x32xf32> to vector<2x8x32xbf16>
    %554 = vector.extract_strided_slice %547 {offsets = [0, 64], sizes = [16, 32], strides = [1, 1]} : vector<16x96xf32> to vector<16x32xf32>
    %555 = vector.shape_cast %554 : vector<16x32xf32> to vector<2x8x32xf32>
    %556 = arith.truncf %555 : vector<2x8x32xf32> to vector<2x8x32xbf16>
    %cst_195 = arith.constant 0.000000e+00 : f32
    %557 = vector.broadcast %cst_195 : f32 to vector<16x32xf32>
    %558 = vector.extract_strided_slice %550 {offsets = [0, 0, 0], sizes = [2, 8, 4], strides = [1, 1, 1]} : vector<2x8x32xbf16> to vector<2x8x4xbf16>
    %559 = vector.extract_strided_slice %553 {offsets = [0, 0, 0], sizes = [2, 8, 4], strides = [1, 1, 1]} : vector<2x8x32xbf16> to vector<2x8x4xbf16>
    "tpu.trace_start"() <{level = 10 : i32, message = "bqh,bkh->bqk"}> : () -> ()
    %cst_196 = arith.constant dense<0.000000e+00> : vector<2x8x8xf32>
    %560 = tpu.matmul %558, %559, %cst_196 {dimension_numbers = #tpu.dot_dimension_numbers<[2], [2], [1], [1], [0, 0, 0, 1, 1, 1], [0], [0]>} : vector<2x8x4xbf16>, vector<2x8x4xbf16>, vector<2x8x8xf32> -> vector<2x8x8xf32>
    "tpu.trace_stop"() : () -> ()
    %cst_197 = arith.constant dense<0xFF800000> : vector<2x8xf32>
    %561 = vector.multi_reduction <maximumf>, %560, %cst_197 [2] : vector<2x8x8xf32> to vector<2x8xf32>
    %562 = vector.shape_cast %561 : vector<2x8xf32> to vector<2x8x1xf32>
    %563 = vector.broadcast %562 : vector<2x8x1xf32> to vector<2x8x8xf32>
    %564 = arith.subf %560, %563 : vector<2x8x8xf32>
    %565 = math.exp %564 : vector<2x8x8xf32>
    %cst_198 = arith.constant dense<0.000000e+00> : vector<2x8xf32>
    %566 = vector.multi_reduction <add>, %565, %cst_198 [2] : vector<2x8x8xf32> to vector<2x8xf32>
    %567 = vector.shape_cast %566 : vector<2x8xf32> to vector<2x8x1xf32>
    %568 = tpu.reciprocal %567 : vector<2x8x1xf32> -> vector<2x8x1xf32>
    %569 = vector.broadcast %568 : vector<2x8x1xf32> to vector<2x8x8xf32>
    %570 = arith.mulf %565, %569 : vector<2x8x8xf32>
    %571 = arith.truncf %570 : vector<2x8x8xf32> to vector<2x8x8xbf16>
    %572 = vector.extract_strided_slice %556 {offsets = [0, 0, 0], sizes = [2, 8, 4], strides = [1, 1, 1]} : vector<2x8x32xbf16> to vector<2x8x4xbf16>
    "tpu.trace_start"() <{level = 10 : i32, message = "bqk,bkh->bqh"}> : () -> ()
    %cst_199 = arith.constant dense<0.000000e+00> : vector<2x8x4xf32>
    %573 = tpu.matmul %571, %572, %cst_199 {dimension_numbers = #tpu.dot_dimension_numbers<[2], [1], [1], [2], [0, 0, 0, 1, 1, 2], [0], [0]>} : vector<2x8x8xbf16>, vector<2x8x4xbf16>, vector<2x8x4xf32> -> vector<2x8x4xf32>
    "tpu.trace_stop"() : () -> ()
    %574 = vector.shape_cast %573 : vector<2x8x4xf32> to vector<16x4xf32>
    %575 = arith.truncf %574 : vector<16x4xf32> to vector<16x4xbf16>
    %576 = vector.extract_strided_slice %541 {offsets = [0, 0], sizes = [4, 32], strides = [1, 1]} : vector<32x32xbf16> to vector<4x32xbf16>
    %cst_200 = arith.constant dense<0.000000e+00> : vector<16x32xf32>
    %577 = tpu.matmul %575, %576, %cst_200 {dimension_numbers = #tpu.dot_dimension_numbers<[1], [0], [0], [1], [0, 0, 1, 1], [], []>} : vector<16x4xbf16>, vector<4x32xbf16>, vector<16x32xf32> -> vector<16x32xf32>
    %578 = arith.addf %557, %577 : vector<16x32xf32>
    %579 = vector.extract_strided_slice %550 {offsets = [0, 0, 4], sizes = [2, 8, 4], strides = [1, 1, 1]} : vector<2x8x32xbf16> to vector<2x8x4xbf16>
    %580 = vector.extract_strided_slice %553 {offsets = [0, 0, 4], sizes = [2, 8, 4], strides = [1, 1, 1]} : vector<2x8x32xbf16> to vector<2x8x4xbf16>
    "tpu.trace_start"() <{level = 10 : i32, message = "bqh,bkh->bqk"}> : () -> ()
    %cst_201 = arith.constant dense<0.000000e+00> : vector<2x8x8xf32>
    %581 = tpu.matmul %579, %580, %cst_201 {dimension_numbers = #tpu.dot_dimension_numbers<[2], [2], [1], [1], [0, 0, 0, 1, 1, 1], [0], [0]>} : vector<2x8x4xbf16>, vector<2x8x4xbf16>, vector<2x8x8xf32> -> vector<2x8x8xf32>
    "tpu.trace_stop"() : () -> ()
    %cst_202 = arith.constant dense<0xFF800000> : vector<2x8xf32>
    %582 = vector.multi_reduction <maximumf>, %581, %cst_202 [2] : vector<2x8x8xf32> to vector<2x8xf32>
    %583 = vector.shape_cast %582 : vector<2x8xf32> to vector<2x8x1xf32>
    %584 = vector.broadcast %583 : vector<2x8x1xf32> to vector<2x8x8xf32>
    %585 = arith.subf %581, %584 : vector<2x8x8xf32>
    %586 = math.exp %585 : vector<2x8x8xf32>
    %cst_203 = arith.constant dense<0.000000e+00> : vector<2x8xf32>
    %587 = vector.multi_reduction <add>, %586, %cst_203 [2] : vector<2x8x8xf32> to vector<2x8xf32>
    %588 = vector.shape_cast %587 : vector<2x8xf32> to vector<2x8x1xf32>
    %589 = tpu.reciprocal %588 : vector<2x8x1xf32> -> vector<2x8x1xf32>
    %590 = vector.broadcast %589 : vector<2x8x1xf32> to vector<2x8x8xf32>
    %591 = arith.mulf %586, %590 : vector<2x8x8xf32>
    %592 = arith.truncf %591 : vector<2x8x8xf32> to vector<2x8x8xbf16>
    %593 = vector.extract_strided_slice %556 {offsets = [0, 0, 4], sizes = [2, 8, 4], strides = [1, 1, 1]} : vector<2x8x32xbf16> to vector<2x8x4xbf16>
    "tpu.trace_start"() <{level = 10 : i32, message = "bqk,bkh->bqh"}> : () -> ()
    %cst_204 = arith.constant dense<0.000000e+00> : vector<2x8x4xf32>
    %594 = tpu.matmul %592, %593, %cst_204 {dimension_numbers = #tpu.dot_dimension_numbers<[2], [1], [1], [2], [0, 0, 0, 1, 1, 2], [0], [0]>} : vector<2x8x8xbf16>, vector<2x8x4xbf16>, vector<2x8x4xf32> -> vector<2x8x4xf32>
    "tpu.trace_stop"() : () -> ()
    %595 = vector.shape_cast %594 : vector<2x8x4xf32> to vector<16x4xf32>
    %596 = arith.truncf %595 : vector<16x4xf32> to vector<16x4xbf16>
    %597 = vector.extract_strided_slice %541 {offsets = [4, 0], sizes = [4, 32], strides = [1, 1]} : vector<32x32xbf16> to vector<4x32xbf16>
    %cst_205 = arith.constant dense<0.000000e+00> : vector<16x32xf32>
    %598 = tpu.matmul %596, %597, %cst_205 {dimension_numbers = #tpu.dot_dimension_numbers<[1], [0], [0], [1], [0, 0, 1, 1], [], []>} : vector<16x4xbf16>, vector<4x32xbf16>, vector<16x32xf32> -> vector<16x32xf32>
    %599 = arith.addf %578, %598 : vector<16x32xf32>
    %600 = vector.extract_strided_slice %550 {offsets = [0, 0, 8], sizes = [2, 8, 4], strides = [1, 1, 1]} : vector<2x8x32xbf16> to vector<2x8x4xbf16>
    %601 = vector.extract_strided_slice %553 {offsets = [0, 0, 8], sizes = [2, 8, 4], strides = [1, 1, 1]} : vector<2x8x32xbf16> to vector<2x8x4xbf16>
    "tpu.trace_start"() <{level = 10 : i32, message = "bqh,bkh->bqk"}> : () -> ()
    %cst_206 = arith.constant dense<0.000000e+00> : vector<2x8x8xf32>
    %602 = tpu.matmul %600, %601, %cst_206 {dimension_numbers = #tpu.dot_dimension_numbers<[2], [2], [1], [1], [0, 0, 0, 1, 1, 1], [0], [0]>} : vector<2x8x4xbf16>, vector<2x8x4xbf16>, vector<2x8x8xf32> -> vector<2x8x8xf32>
    "tpu.trace_stop"() : () -> ()
    %cst_207 = arith.constant dense<0xFF800000> : vector<2x8xf32>
    %603 = vector.multi_reduction <maximumf>, %602, %cst_207 [2] : vector<2x8x8xf32> to vector<2x8xf32>
    %604 = vector.shape_cast %603 : vector<2x8xf32> to vector<2x8x1xf32>
    %605 = vector.broadcast %604 : vector<2x8x1xf32> to vector<2x8x8xf32>
    %606 = arith.subf %602, %605 : vector<2x8x8xf32>
    %607 = math.exp %606 : vector<2x8x8xf32>
    %cst_208 = arith.constant dense<0.000000e+00> : vector<2x8xf32>
    %608 = vector.multi_reduction <add>, %607, %cst_208 [2] : vector<2x8x8xf32> to vector<2x8xf32>
    %609 = vector.shape_cast %608 : vector<2x8xf32> to vector<2x8x1xf32>
    %610 = tpu.reciprocal %609 : vector<2x8x1xf32> -> vector<2x8x1xf32>
    %611 = vector.broadcast %610 : vector<2x8x1xf32> to vector<2x8x8xf32>
    %612 = arith.mulf %607, %611 : vector<2x8x8xf32>
    %613 = arith.truncf %612 : vector<2x8x8xf32> to vector<2x8x8xbf16>
    %614 = vector.extract_strided_slice %556 {offsets = [0, 0, 8], sizes = [2, 8, 4], strides = [1, 1, 1]} : vector<2x8x32xbf16> to vector<2x8x4xbf16>
    "tpu.trace_start"() <{level = 10 : i32, message = "bqk,bkh->bqh"}> : () -> ()
    %cst_209 = arith.constant dense<0.000000e+00> : vector<2x8x4xf32>
    %615 = tpu.matmul %613, %614, %cst_209 {dimension_numbers = #tpu.dot_dimension_numbers<[2], [1], [1], [2], [0, 0, 0, 1, 1, 2], [0], [0]>} : vector<2x8x8xbf16>, vector<2x8x4xbf16>, vector<2x8x4xf32> -> vector<2x8x4xf32>
    "tpu.trace_stop"() : () -> ()
    %616 = vector.shape_cast %615 : vector<2x8x4xf32> to vector<16x4xf32>
    %617 = arith.truncf %616 : vector<16x4xf32> to vector<16x4xbf16>
    %618 = vector.extract_strided_slice %541 {offsets = [8, 0], sizes = [4, 32], strides = [1, 1]} : vector<32x32xbf16> to vector<4x32xbf16>
    %cst_210 = arith.constant dense<0.000000e+00> : vector<16x32xf32>
    %619 = tpu.matmul %617, %618, %cst_210 {dimension_numbers = #tpu.dot_dimension_numbers<[1], [0], [0], [1], [0, 0, 1, 1], [], []>} : vector<16x4xbf16>, vector<4x32xbf16>, vector<16x32xf32> -> vector<16x32xf32>
    %620 = arith.addf %599, %619 : vector<16x32xf32>
    %621 = vector.extract_strided_slice %550 {offsets = [0, 0, 12], sizes = [2, 8, 4], strides = [1, 1, 1]} : vector<2x8x32xbf16> to vector<2x8x4xbf16>
    %622 = vector.extract_strided_slice %553 {offsets = [0, 0, 12], sizes = [2, 8, 4], strides = [1, 1, 1]} : vector<2x8x32xbf16> to vector<2x8x4xbf16>
    "tpu.trace_start"() <{level = 10 : i32, message = "bqh,bkh->bqk"}> : () -> ()
    %cst_211 = arith.constant dense<0.000000e+00> : vector<2x8x8xf32>
    %623 = tpu.matmul %621, %622, %cst_211 {dimension_numbers = #tpu.dot_dimension_numbers<[2], [2], [1], [1], [0, 0, 0, 1, 1, 1], [0], [0]>} : vector<2x8x4xbf16>, vector<2x8x4xbf16>, vector<2x8x8xf32> -> vector<2x8x8xf32>
    "tpu.trace_stop"() : () -> ()
    %cst_212 = arith.constant dense<0xFF800000> : vector<2x8xf32>
    %624 = vector.multi_reduction <maximumf>, %623, %cst_212 [2] : vector<2x8x8xf32> to vector<2x8xf32>
    %625 = vector.shape_cast %624 : vector<2x8xf32> to vector<2x8x1xf32>
    %626 = vector.broadcast %625 : vector<2x8x1xf32> to vector<2x8x8xf32>
    %627 = arith.subf %623, %626 : vector<2x8x8xf32>
    %628 = math.exp %627 : vector<2x8x8xf32>
    %cst_213 = arith.constant dense<0.000000e+00> : vector<2x8xf32>
    %629 = vector.multi_reduction <add>, %628, %cst_213 [2] : vector<2x8x8xf32> to vector<2x8xf32>
    %630 = vector.shape_cast %629 : vector<2x8xf32> to vector<2x8x1xf32>
    %631 = tpu.reciprocal %630 : vector<2x8x1xf32> -> vector<2x8x1xf32>
    %632 = vector.broadcast %631 : vector<2x8x1xf32> to vector<2x8x8xf32>
    %633 = arith.mulf %628, %632 : vector<2x8x8xf32>
    %634 = arith.truncf %633 : vector<2x8x8xf32> to vector<2x8x8xbf16>
    %635 = vector.extract_strided_slice %556 {offsets = [0, 0, 12], sizes = [2, 8, 4], strides = [1, 1, 1]} : vector<2x8x32xbf16> to vector<2x8x4xbf16>
    "tpu.trace_start"() <{level = 10 : i32, message = "bqk,bkh->bqh"}> : () -> ()
    %cst_214 = arith.constant dense<0.000000e+00> : vector<2x8x4xf32>
    %636 = tpu.matmul %634, %635, %cst_214 {dimension_numbers = #tpu.dot_dimension_numbers<[2], [1], [1], [2], [0, 0, 0, 1, 1, 2], [0], [0]>} : vector<2x8x8xbf16>, vector<2x8x4xbf16>, vector<2x8x4xf32> -> vector<2x8x4xf32>
    "tpu.trace_stop"() : () -> ()
    %637 = vector.shape_cast %636 : vector<2x8x4xf32> to vector<16x4xf32>
    %638 = arith.truncf %637 : vector<16x4xf32> to vector<16x4xbf16>
    %639 = vector.extract_strided_slice %541 {offsets = [12, 0], sizes = [4, 32], strides = [1, 1]} : vector<32x32xbf16> to vector<4x32xbf16>
    %cst_215 = arith.constant dense<0.000000e+00> : vector<16x32xf32>
    %640 = tpu.matmul %638, %639, %cst_215 {dimension_numbers = #tpu.dot_dimension_numbers<[1], [0], [0], [1], [0, 0, 1, 1], [], []>} : vector<16x4xbf16>, vector<4x32xbf16>, vector<16x32xf32> -> vector<16x32xf32>
    %641 = arith.addf %620, %640 : vector<16x32xf32>
    %642 = vector.extract_strided_slice %550 {offsets = [0, 0, 16], sizes = [2, 8, 4], strides = [1, 1, 1]} : vector<2x8x32xbf16> to vector<2x8x4xbf16>
    %643 = vector.extract_strided_slice %553 {offsets = [0, 0, 16], sizes = [2, 8, 4], strides = [1, 1, 1]} : vector<2x8x32xbf16> to vector<2x8x4xbf16>
    "tpu.trace_start"() <{level = 10 : i32, message = "bqh,bkh->bqk"}> : () -> ()
    %cst_216 = arith.constant dense<0.000000e+00> : vector<2x8x8xf32>
    %644 = tpu.matmul %642, %643, %cst_216 {dimension_numbers = #tpu.dot_dimension_numbers<[2], [2], [1], [1], [0, 0, 0, 1, 1, 1], [0], [0]>} : vector<2x8x4xbf16>, vector<2x8x4xbf16>, vector<2x8x8xf32> -> vector<2x8x8xf32>
    "tpu.trace_stop"() : () -> ()
    %cst_217 = arith.constant dense<0xFF800000> : vector<2x8xf32>
    %645 = vector.multi_reduction <maximumf>, %644, %cst_217 [2] : vector<2x8x8xf32> to vector<2x8xf32>
    %646 = vector.shape_cast %645 : vector<2x8xf32> to vector<2x8x1xf32>
    %647 = vector.broadcast %646 : vector<2x8x1xf32> to vector<2x8x8xf32>
    %648 = arith.subf %644, %647 : vector<2x8x8xf32>
    %649 = math.exp %648 : vector<2x8x8xf32>
    %cst_218 = arith.constant dense<0.000000e+00> : vector<2x8xf32>
    %650 = vector.multi_reduction <add>, %649, %cst_218 [2] : vector<2x8x8xf32> to vector<2x8xf32>
    %651 = vector.shape_cast %650 : vector<2x8xf32> to vector<2x8x1xf32>
    %652 = tpu.reciprocal %651 : vector<2x8x1xf32> -> vector<2x8x1xf32>
    %653 = vector.broadcast %652 : vector<2x8x1xf32> to vector<2x8x8xf32>
    %654 = arith.mulf %649, %653 : vector<2x8x8xf32>
    %655 = arith.truncf %654 : vector<2x8x8xf32> to vector<2x8x8xbf16>
    %656 = vector.extract_strided_slice %556 {offsets = [0, 0, 16], sizes = [2, 8, 4], strides = [1, 1, 1]} : vector<2x8x32xbf16> to vector<2x8x4xbf16>
    "tpu.trace_start"() <{level = 10 : i32, message = "bqk,bkh->bqh"}> : () -> ()
    %cst_219 = arith.constant dense<0.000000e+00> : vector<2x8x4xf32>
    %657 = tpu.matmul %655, %656, %cst_219 {dimension_numbers = #tpu.dot_dimension_numbers<[2], [1], [1], [2], [0, 0, 0, 1, 1, 2], [0], [0]>} : vector<2x8x8xbf16>, vector<2x8x4xbf16>, vector<2x8x4xf32> -> vector<2x8x4xf32>
    "tpu.trace_stop"() : () -> ()
    %658 = vector.shape_cast %657 : vector<2x8x4xf32> to vector<16x4xf32>
    %659 = arith.truncf %658 : vector<16x4xf32> to vector<16x4xbf16>
    %660 = vector.extract_strided_slice %541 {offsets = [16, 0], sizes = [4, 32], strides = [1, 1]} : vector<32x32xbf16> to vector<4x32xbf16>
    %cst_220 = arith.constant dense<0.000000e+00> : vector<16x32xf32>
    %661 = tpu.matmul %659, %660, %cst_220 {dimension_numbers = #tpu.dot_dimension_numbers<[1], [0], [0], [1], [0, 0, 1, 1], [], []>} : vector<16x4xbf16>, vector<4x32xbf16>, vector<16x32xf32> -> vector<16x32xf32>
    %662 = arith.addf %641, %661 : vector<16x32xf32>
    %663 = vector.extract_strided_slice %550 {offsets = [0, 0, 20], sizes = [2, 8, 4], strides = [1, 1, 1]} : vector<2x8x32xbf16> to vector<2x8x4xbf16>
    %664 = vector.extract_strided_slice %553 {offsets = [0, 0, 20], sizes = [2, 8, 4], strides = [1, 1, 1]} : vector<2x8x32xbf16> to vector<2x8x4xbf16>
    "tpu.trace_start"() <{level = 10 : i32, message = "bqh,bkh->bqk"}> : () -> ()
    %cst_221 = arith.constant dense<0.000000e+00> : vector<2x8x8xf32>
    %665 = tpu.matmul %663, %664, %cst_221 {dimension_numbers = #tpu.dot_dimension_numbers<[2], [2], [1], [1], [0, 0, 0, 1, 1, 1], [0], [0]>} : vector<2x8x4xbf16>, vector<2x8x4xbf16>, vector<2x8x8xf32> -> vector<2x8x8xf32>
    "tpu.trace_stop"() : () -> ()
    %cst_222 = arith.constant dense<0xFF800000> : vector<2x8xf32>
    %666 = vector.multi_reduction <maximumf>, %665, %cst_222 [2] : vector<2x8x8xf32> to vector<2x8xf32>
    %667 = vector.shape_cast %666 : vector<2x8xf32> to vector<2x8x1xf32>
    %668 = vector.broadcast %667 : vector<2x8x1xf32> to vector<2x8x8xf32>
    %669 = arith.subf %665, %668 : vector<2x8x8xf32>
    %670 = math.exp %669 : vector<2x8x8xf32>
    %cst_223 = arith.constant dense<0.000000e+00> : vector<2x8xf32>
    %671 = vector.multi_reduction <add>, %670, %cst_223 [2] : vector<2x8x8xf32> to vector<2x8xf32>
    %672 = vector.shape_cast %671 : vector<2x8xf32> to vector<2x8x1xf32>
    %673 = tpu.reciprocal %672 : vector<2x8x1xf32> -> vector<2x8x1xf32>
    %674 = vector.broadcast %673 : vector<2x8x1xf32> to vector<2x8x8xf32>
    %675 = arith.mulf %670, %674 : vector<2x8x8xf32>
    %676 = arith.truncf %675 : vector<2x8x8xf32> to vector<2x8x8xbf16>
    %677 = vector.extract_strided_slice %556 {offsets = [0, 0, 20], sizes = [2, 8, 4], strides = [1, 1, 1]} : vector<2x8x32xbf16> to vector<2x8x4xbf16>
    "tpu.trace_start"() <{level = 10 : i32, message = "bqk,bkh->bqh"}> : () -> ()
    %cst_224 = arith.constant dense<0.000000e+00> : vector<2x8x4xf32>
    %678 = tpu.matmul %676, %677, %cst_224 {dimension_numbers = #tpu.dot_dimension_numbers<[2], [1], [1], [2], [0, 0, 0, 1, 1, 2], [0], [0]>} : vector<2x8x8xbf16>, vector<2x8x4xbf16>, vector<2x8x4xf32> -> vector<2x8x4xf32>
    "tpu.trace_stop"() : () -> ()
    %679 = vector.shape_cast %678 : vector<2x8x4xf32> to vector<16x4xf32>
    %680 = arith.truncf %679 : vector<16x4xf32> to vector<16x4xbf16>
    %681 = vector.extract_strided_slice %541 {offsets = [20, 0], sizes = [4, 32], strides = [1, 1]} : vector<32x32xbf16> to vector<4x32xbf16>
    %cst_225 = arith.constant dense<0.000000e+00> : vector<16x32xf32>
    %682 = tpu.matmul %680, %681, %cst_225 {dimension_numbers = #tpu.dot_dimension_numbers<[1], [0], [0], [1], [0, 0, 1, 1], [], []>} : vector<16x4xbf16>, vector<4x32xbf16>, vector<16x32xf32> -> vector<16x32xf32>
    %683 = arith.addf %662, %682 : vector<16x32xf32>
    %684 = vector.extract_strided_slice %550 {offsets = [0, 0, 24], sizes = [2, 8, 4], strides = [1, 1, 1]} : vector<2x8x32xbf16> to vector<2x8x4xbf16>
    %685 = vector.extract_strided_slice %553 {offsets = [0, 0, 24], sizes = [2, 8, 4], strides = [1, 1, 1]} : vector<2x8x32xbf16> to vector<2x8x4xbf16>
    "tpu.trace_start"() <{level = 10 : i32, message = "bqh,bkh->bqk"}> : () -> ()
    %cst_226 = arith.constant dense<0.000000e+00> : vector<2x8x8xf32>
    %686 = tpu.matmul %684, %685, %cst_226 {dimension_numbers = #tpu.dot_dimension_numbers<[2], [2], [1], [1], [0, 0, 0, 1, 1, 1], [0], [0]>} : vector<2x8x4xbf16>, vector<2x8x4xbf16>, vector<2x8x8xf32> -> vector<2x8x8xf32>
    "tpu.trace_stop"() : () -> ()
    %cst_227 = arith.constant dense<0xFF800000> : vector<2x8xf32>
    %687 = vector.multi_reduction <maximumf>, %686, %cst_227 [2] : vector<2x8x8xf32> to vector<2x8xf32>
    %688 = vector.shape_cast %687 : vector<2x8xf32> to vector<2x8x1xf32>
    %689 = vector.broadcast %688 : vector<2x8x1xf32> to vector<2x8x8xf32>
    %690 = arith.subf %686, %689 : vector<2x8x8xf32>
    %691 = math.exp %690 : vector<2x8x8xf32>
    %cst_228 = arith.constant dense<0.000000e+00> : vector<2x8xf32>
    %692 = vector.multi_reduction <add>, %691, %cst_228 [2] : vector<2x8x8xf32> to vector<2x8xf32>
    %693 = vector.shape_cast %692 : vector<2x8xf32> to vector<2x8x1xf32>
    %694 = tpu.reciprocal %693 : vector<2x8x1xf32> -> vector<2x8x1xf32>
    %695 = vector.broadcast %694 : vector<2x8x1xf32> to vector<2x8x8xf32>
    %696 = arith.mulf %691, %695 : vector<2x8x8xf32>
    %697 = arith.truncf %696 : vector<2x8x8xf32> to vector<2x8x8xbf16>
    %698 = vector.extract_strided_slice %556 {offsets = [0, 0, 24], sizes = [2, 8, 4], strides = [1, 1, 1]} : vector<2x8x32xbf16> to vector<2x8x4xbf16>
    "tpu.trace_start"() <{level = 10 : i32, message = "bqk,bkh->bqh"}> : () -> ()
    %cst_229 = arith.constant dense<0.000000e+00> : vector<2x8x4xf32>
    %699 = tpu.matmul %697, %698, %cst_229 {dimension_numbers = #tpu.dot_dimension_numbers<[2], [1], [1], [2], [0, 0, 0, 1, 1, 2], [0], [0]>} : vector<2x8x8xbf16>, vector<2x8x4xbf16>, vector<2x8x4xf32> -> vector<2x8x4xf32>
    "tpu.trace_stop"() : () -> ()
    %700 = vector.shape_cast %699 : vector<2x8x4xf32> to vector<16x4xf32>
    %701 = arith.truncf %700 : vector<16x4xf32> to vector<16x4xbf16>
    %702 = vector.extract_strided_slice %541 {offsets = [24, 0], sizes = [4, 32], strides = [1, 1]} : vector<32x32xbf16> to vector<4x32xbf16>
    %cst_230 = arith.constant dense<0.000000e+00> : vector<16x32xf32>
    %703 = tpu.matmul %701, %702, %cst_230 {dimension_numbers = #tpu.dot_dimension_numbers<[1], [0], [0], [1], [0, 0, 1, 1], [], []>} : vector<16x4xbf16>, vector<4x32xbf16>, vector<16x32xf32> -> vector<16x32xf32>
    %704 = arith.addf %683, %703 : vector<16x32xf32>
    %705 = vector.extract_strided_slice %550 {offsets = [0, 0, 28], sizes = [2, 8, 4], strides = [1, 1, 1]} : vector<2x8x32xbf16> to vector<2x8x4xbf16>
    %706 = vector.extract_strided_slice %553 {offsets = [0, 0, 28], sizes = [2, 8, 4], strides = [1, 1, 1]} : vector<2x8x32xbf16> to vector<2x8x4xbf16>
    "tpu.trace_start"() <{level = 10 : i32, message = "bqh,bkh->bqk"}> : () -> ()
    %cst_231 = arith.constant dense<0.000000e+00> : vector<2x8x8xf32>
    %707 = tpu.matmul %705, %706, %cst_231 {dimension_numbers = #tpu.dot_dimension_numbers<[2], [2], [1], [1], [0, 0, 0, 1, 1, 1], [0], [0]>} : vector<2x8x4xbf16>, vector<2x8x4xbf16>, vector<2x8x8xf32> -> vector<2x8x8xf32>
    "tpu.trace_stop"() : () -> ()
    %cst_232 = arith.constant dense<0xFF800000> : vector<2x8xf32>
    %708 = vector.multi_reduction <maximumf>, %707, %cst_232 [2] : vector<2x8x8xf32> to vector<2x8xf32>
    %709 = vector.shape_cast %708 : vector<2x8xf32> to vector<2x8x1xf32>
    %710 = vector.broadcast %709 : vector<2x8x1xf32> to vector<2x8x8xf32>
    %711 = arith.subf %707, %710 : vector<2x8x8xf32>
    %712 = math.exp %711 : vector<2x8x8xf32>
    %cst_233 = arith.constant dense<0.000000e+00> : vector<2x8xf32>
    %713 = vector.multi_reduction <add>, %712, %cst_233 [2] : vector<2x8x8xf32> to vector<2x8xf32>
    %714 = vector.shape_cast %713 : vector<2x8xf32> to vector<2x8x1xf32>
    %715 = tpu.reciprocal %714 : vector<2x8x1xf32> -> vector<2x8x1xf32>
    %716 = vector.broadcast %715 : vector<2x8x1xf32> to vector<2x8x8xf32>
    %717 = arith.mulf %712, %716 : vector<2x8x8xf32>
    %718 = arith.truncf %717 : vector<2x8x8xf32> to vector<2x8x8xbf16>
    %719 = vector.extract_strided_slice %556 {offsets = [0, 0, 28], sizes = [2, 8, 4], strides = [1, 1, 1]} : vector<2x8x32xbf16> to vector<2x8x4xbf16>
    "tpu.trace_start"() <{level = 10 : i32, message = "bqk,bkh->bqh"}> : () -> ()
    %cst_234 = arith.constant dense<0.000000e+00> : vector<2x8x4xf32>
    %720 = tpu.matmul %718, %719, %cst_234 {dimension_numbers = #tpu.dot_dimension_numbers<[2], [1], [1], [2], [0, 0, 0, 1, 1, 2], [0], [0]>} : vector<2x8x8xbf16>, vector<2x8x4xbf16>, vector<2x8x4xf32> -> vector<2x8x4xf32>
    "tpu.trace_stop"() : () -> ()
    %721 = vector.shape_cast %720 : vector<2x8x4xf32> to vector<16x4xf32>
    %722 = arith.truncf %721 : vector<16x4xf32> to vector<16x4xbf16>
    %723 = vector.extract_strided_slice %541 {offsets = [28, 0], sizes = [4, 32], strides = [1, 1]} : vector<32x32xbf16> to vector<4x32xbf16>
    %cst_235 = arith.constant dense<0.000000e+00> : vector<16x32xf32>
    %724 = tpu.matmul %722, %723, %cst_235 {dimension_numbers = #tpu.dot_dimension_numbers<[1], [0], [0], [1], [0, 0, 1, 1], [], []>} : vector<16x4xbf16>, vector<4x32xbf16>, vector<16x32xf32> -> vector<16x32xf32>
    %725 = arith.addf %704, %724 : vector<16x32xf32>
    %c2_236 = arith.constant 2 : index
    %c0_237 = arith.constant 0 : index
    %c0_238 = arith.constant 0 : index
    %726 = vector.load %arg5[%c2_236, %c0_237, %c0_238] : memref<3x1x32xf32, #tpu.memory_space<vmem>>, vector<1x1x32xf32>
    %727 = vector.shape_cast %726 : vector<1x1x32xf32> to vector<1x32xf32>
    %728 = vector.broadcast %727 : vector<1x32xf32> to vector<16x32xf32>
    %729 = arith.addf %725, %728 : vector<16x32xf32>
    %730 = arith.addf %537, %729 : vector<16x32xf32>
    %c2_239 = arith.constant 2 : index
    %c0_240 = arith.constant 0 : index
    %c0_241 = arith.constant 0 : index
    %731 = vector.load %arg6[%c2_239, %c0_240, %c0_241] : memref<3x1x32xf32, #tpu.memory_space<vmem>>, vector<1x1x32xf32>
    %732 = vector.shape_cast %731 : vector<1x1x32xf32> to vector<1x32xf32>
    %c2_242 = arith.constant 2 : index
    %c0_243 = arith.constant 0 : index
    %c0_244 = arith.constant 0 : index
    %733 = vector.load %arg7[%c2_242, %c0_243, %c0_244] : memref<3x1x32xf32, #tpu.memory_space<vmem>>, vector<1x1x32xf32>
    %734 = vector.shape_cast %733 : vector<1x1x32xf32> to vector<1x32xf32>
    %cst_245 = arith.constant dense<0.000000e+00> : vector<16xf32>
    %735 = vector.multi_reduction <add>, %730, %cst_245 [1] : vector<16x32xf32> to vector<16xf32>
    %736 = vector.shape_cast %735 : vector<16xf32> to vector<16x1xf32>
    %cst_246 = arith.constant 3.125000e-02 : f32
    %737 = vector.broadcast %cst_246 : f32 to vector<16x1xf32>
    %738 = arith.mulf %736, %737 : vector<16x1xf32>
    %739 = arith.mulf %730, %730 : vector<16x32xf32>
    %cst_247 = arith.constant dense<0.000000e+00> : vector<16xf32>
    %740 = vector.multi_reduction <add>, %739, %cst_247 [1] : vector<16x32xf32> to vector<16xf32>
    %741 = vector.shape_cast %740 : vector<16xf32> to vector<16x1xf32>
    %cst_248 = arith.constant 3.125000e-02 : f32
    %742 = vector.broadcast %cst_248 : f32 to vector<16x1xf32>
    %743 = arith.mulf %741, %742 : vector<16x1xf32>
    %744 = arith.mulf %738, %738 : vector<16x1xf32>
    %745 = arith.subf %743, %744 : vector<16x1xf32>
    %cst_249 = arith.constant 0.000000e+00 : f32
    %746 = vector.broadcast %cst_249 : f32 to vector<16x1xf32>
    %747 = arith.maximumf %745, %746 : vector<16x1xf32>
    %748 = vector.broadcast %738 : vector<16x1xf32> to vector<16x32xf32>
    %749 = arith.subf %730, %748 : vector<16x32xf32>
    %cst_250 = arith.constant 9.99999974E-6 : f32
    %750 = vector.broadcast %cst_250 : f32 to vector<16x1xf32>
    %751 = arith.addf %747, %750 : vector<16x1xf32>
    %752 = math.rsqrt %751 : vector<16x1xf32>
    %753 = vector.broadcast %752 : vector<16x1xf32> to vector<16x32xf32>
    %754 = arith.mulf %749, %753 : vector<16x32xf32>
    %755 = vector.broadcast %732 : vector<1x32xf32> to vector<16x32xf32>
    %756 = arith.mulf %754, %755 : vector<16x32xf32>
    %757 = vector.broadcast %734 : vector<1x32xf32> to vector<16x32xf32>
    %758 = arith.addf %756, %757 : vector<16x32xf32>
    %759 = arith.truncf %758 : vector<16x32xf32> to vector<16x32xbf16>
    %c2_251 = arith.constant 2 : index
    %c0_252 = arith.constant 0 : index
    %c0_253 = arith.constant 0 : index
    %760 = vector.load %arg8[%c2_251, %c0_252, %c0_253] : memref<3x32x2048xbf16, #tpu.memory_space<vmem>>, vector<1x32x2048xbf16>
    %761 = vector.shape_cast %760 : vector<1x32x2048xbf16> to vector<32x2048xbf16>
    %cst_254 = arith.constant dense<0.000000e+00> : vector<16x2048xf32>
    %762 = tpu.matmul %759, %761, %cst_254 {dimension_numbers = #tpu.dot_dimension_numbers<[1], [0], [0], [1], [0, 0, 1, 1], [], []>} : vector<16x32xbf16>, vector<32x2048xbf16>, vector<16x2048xf32> -> vector<16x2048xf32>
    %c2_255 = arith.constant 2 : index
    %c0_256 = arith.constant 0 : index
    %c0_257 = arith.constant 0 : index
    %763 = vector.load %arg9[%c2_255, %c0_256, %c0_257] : memref<3x1x2048xf32, #tpu.memory_space<vmem>>, vector<1x1x2048xf32>
    %764 = vector.shape_cast %763 : vector<1x1x2048xf32> to vector<1x2048xf32>
    %765 = vector.broadcast %764 : vector<1x2048xf32> to vector<16x2048xf32>
    %766 = arith.addf %762, %765 : vector<16x2048xf32>
    %cst_258 = arith.constant 0.000000e+00 : f32
    %767 = vector.broadcast %cst_258 : f32 to vector<16x2048xf32>
    %768 = arith.maximumf %766, %767 : vector<16x2048xf32>
    %769 = arith.truncf %768 : vector<16x2048xf32> to vector<16x2048xbf16>
    %c2_259 = arith.constant 2 : index
    %c0_260 = arith.constant 0 : index
    %c0_261 = arith.constant 0 : index
    %770 = vector.load %arg10[%c2_259, %c0_260, %c0_261] : memref<3x2048x32xbf16, #tpu.memory_space<vmem>>, vector<1x2048x32xbf16>
    %771 = vector.shape_cast %770 : vector<1x2048x32xbf16> to vector<2048x32xbf16>
    %cst_262 = arith.constant dense<0.000000e+00> : vector<16x32xf32>
    %772 = tpu.matmul %769, %771, %cst_262 {dimension_numbers = #tpu.dot_dimension_numbers<[1], [0], [0], [1], [0, 0, 1, 1], [], []>} : vector<16x2048xbf16>, vector<2048x32xbf16>, vector<16x32xf32> -> vector<16x32xf32>
    %c2_263 = arith.constant 2 : index
    %c0_264 = arith.constant 0 : index
    %c0_265 = arith.constant 0 : index
    %773 = vector.load %arg11[%c2_263, %c0_264, %c0_265] : memref<3x1x32xf32, #tpu.memory_space<vmem>>, vector<1x1x32xf32>
    %774 = vector.shape_cast %773 : vector<1x1x32xf32> to vector<1x32xf32>
    %775 = vector.broadcast %774 : vector<1x32xf32> to vector<16x32xf32>
    %776 = arith.addf %772, %775 : vector<16x32xf32>
    %777 = arith.addf %758, %776 : vector<16x32xf32>
    %c2_266 = arith.constant 2 : index
    %c0_267 = arith.constant 0 : index
    %c0_268 = arith.constant 0 : index
    %778 = vector.load %arg12[%c2_266, %c0_267, %c0_268] : memref<3x1x32xf32, #tpu.memory_space<vmem>>, vector<1x1x32xf32>
    %779 = vector.shape_cast %778 : vector<1x1x32xf32> to vector<1x32xf32>
    %c2_269 = arith.constant 2 : index
    %c0_270 = arith.constant 0 : index
    %c0_271 = arith.constant 0 : index
    %780 = vector.load %arg13[%c2_269, %c0_270, %c0_271] : memref<3x1x32xf32, #tpu.memory_space<vmem>>, vector<1x1x32xf32>
    %781 = vector.shape_cast %780 : vector<1x1x32xf32> to vector<1x32xf32>
    %cst_272 = arith.constant dense<0.000000e+00> : vector<16xf32>
    %782 = vector.multi_reduction <add>, %777, %cst_272 [1] : vector<16x32xf32> to vector<16xf32>
    %783 = vector.shape_cast %782 : vector<16xf32> to vector<16x1xf32>
    %cst_273 = arith.constant 3.125000e-02 : f32
    %784 = vector.broadcast %cst_273 : f32 to vector<16x1xf32>
    %785 = arith.mulf %783, %784 : vector<16x1xf32>
    %786 = arith.mulf %777, %777 : vector<16x32xf32>
    %cst_274 = arith.constant dense<0.000000e+00> : vector<16xf32>
    %787 = vector.multi_reduction <add>, %786, %cst_274 [1] : vector<16x32xf32> to vector<16xf32>
    %788 = vector.shape_cast %787 : vector<16xf32> to vector<16x1xf32>
    %cst_275 = arith.constant 3.125000e-02 : f32
    %789 = vector.broadcast %cst_275 : f32 to vector<16x1xf32>
    %790 = arith.mulf %788, %789 : vector<16x1xf32>
    %791 = arith.mulf %785, %785 : vector<16x1xf32>
    %792 = arith.subf %790, %791 : vector<16x1xf32>
    %cst_276 = arith.constant 0.000000e+00 : f32
    %793 = vector.broadcast %cst_276 : f32 to vector<16x1xf32>
    %794 = arith.maximumf %792, %793 : vector<16x1xf32>
    %795 = vector.broadcast %785 : vector<16x1xf32> to vector<16x32xf32>
    %796 = arith.subf %777, %795 : vector<16x32xf32>
    %cst_277 = arith.constant 9.99999974E-6 : f32
    %797 = vector.broadcast %cst_277 : f32 to vector<16x1xf32>
    %798 = arith.addf %794, %797 : vector<16x1xf32>
    %799 = math.rsqrt %798 : vector<16x1xf32>
    %800 = vector.broadcast %799 : vector<16x1xf32> to vector<16x32xf32>
    %801 = arith.mulf %796, %800 : vector<16x32xf32>
    %802 = vector.broadcast %779 : vector<1x32xf32> to vector<16x32xf32>
    %803 = arith.mulf %801, %802 : vector<16x32xf32>
    %804 = vector.broadcast %781 : vector<1x32xf32> to vector<16x32xf32>
    %805 = arith.addf %803, %804 : vector<16x32xf32>
    %806 = vector.shape_cast %805 : vector<16x32xf32> to vector<2x8x32xf32>
    %c0_278 = arith.constant 0 : index
    %c0_279 = arith.constant 0 : index
    %c0_280 = arith.constant 0 : index
    %807 = vector.load %arg14[%c0_278, %c0_279, %c0_280] : memref<2x8x32xf32, #tpu.memory_space<vmem>>, vector<2x8x32xf32>
    tpu.vector_store %arg14[%c0_278, %c0_279, %c0_280], %806 {strides = array<i32>} : memref<2x8x32xf32, #tpu.memory_space<vmem>>, vector<2x8x32xf32>,
    return
  }
  func.func @transform_0(%arg0: i32) -> (i32, i32, i32) {
    %c0_i32 = arith.constant 0 : i32
    %c0_i32_0 = arith.constant 0 : i32
    %c0_i32_1 = arith.constant 0 : i32
    return %arg0, %c0_i32, %c0_i32_0 : i32, i32, i32
  }
  func.func @transform_1(%arg0: i32) -> (i32, i32, i32) {
    %c0_i32 = arith.constant 0 : i32
    %c0_i32_0 = arith.constant 0 : i32
    %c0_i32_1 = arith.constant 0 : i32
    %c0_i32_2 = arith.constant 0 : i32
    return %c0_i32, %c0_i32_0, %c0_i32_1 : i32, i32, i32
  }
  func.func @transform_2(%arg0: i32) -> (i32, i32, i32) {
    %c0_i32 = arith.constant 0 : i32
    %c0_i32_0 = arith.constant 0 : i32
    %c0_i32_1 = arith.constant 0 : i32
    %c0_i32_2 = arith.constant 0 : i32
    return %c0_i32, %c0_i32_0, %c0_i32_1 : i32, i32, i32
  }
  func.func @transform_3(%arg0: i32) -> (i32, i32, i32) {
    %c0_i32 = arith.constant 0 : i32
    %c0_i32_0 = arith.constant 0 : i32
    %c0_i32_1 = arith.constant 0 : i32
    %c0_i32_2 = arith.constant 0 : i32
    return %c0_i32, %c0_i32_0, %c0_i32_1 : i32, i32, i32
  }
  func.func @transform_4(%arg0: i32) -> (i32, i32, i32) {
    %c0_i32 = arith.constant 0 : i32
    %c0_i32_0 = arith.constant 0 : i32
    %c0_i32_1 = arith.constant 0 : i32
    %c0_i32_2 = arith.constant 0 : i32
    return %c0_i32, %c0_i32_0, %c0_i32_1 : i32, i32, i32
  }
  func.func @transform_5(%arg0: i32) -> (i32, i32, i32) {
    %c0_i32 = arith.constant 0 : i32
    %c0_i32_0 = arith.constant 0 : i32
    %c0_i32_1 = arith.constant 0 : i32
    %c0_i32_2 = arith.constant 0 : i32
    return %c0_i32, %c0_i32_0, %c0_i32_1 : i32, i32, i32
  }
  func.func @transform_6(%arg0: i32) -> (i32, i32, i32) {
    %c0_i32 = arith.constant 0 : i32
    %c0_i32_0 = arith.constant 0 : i32
    %c0_i32_1 = arith.constant 0 : i32
    %c0_i32_2 = arith.constant 0 : i32
    return %c0_i32, %c0_i32_0, %c0_i32_1 : i32, i32, i32
  }
  func.func @transform_7(%arg0: i32) -> (i32, i32, i32) {
    %c0_i32 = arith.constant 0 : i32
    %c0_i32_0 = arith.constant 0 : i32
    %c0_i32_1 = arith.constant 0 : i32
    %c0_i32_2 = arith.constant 0 : i32
    return %c0_i32, %c0_i32_0, %c0_i32_1 : i32, i32, i32
  }
  func.func @transform_8(%arg0: i32) -> (i32, i32, i32) {
    %c0_i32 = arith.constant 0 : i32
    %c0_i32_0 = arith.constant 0 : i32
    %c0_i32_1 = arith.constant 0 : i32
    %c0_i32_2 = arith.constant 0 : i32
    return %c0_i32, %c0_i32_0, %c0_i32_1 : i32, i32, i32
  }
  func.func @transform_9(%arg0: i32) -> (i32, i32, i32) {
    %c0_i32 = arith.constant 0 : i32
    %c0_i32_0 = arith.constant 0 : i32
    %c0_i32_1 = arith.constant 0 : i32
    %c0_i32_2 = arith.constant 0 : i32
    return %c0_i32, %c0_i32_0, %c0_i32_1 : i32, i32, i32
  }
  func.func @transform_10(%arg0: i32) -> (i32, i32, i32) {
    %c0_i32 = arith.constant 0 : i32
    %c0_i32_0 = arith.constant 0 : i32
    %c0_i32_1 = arith.constant 0 : i32
    %c0_i32_2 = arith.constant 0 : i32
    return %c0_i32, %c0_i32_0, %c0_i32_1 : i32, i32, i32
  }
  func.func @transform_11(%arg0: i32) -> (i32, i32, i32) {
    %c0_i32 = arith.constant 0 : i32
    %c0_i32_0 = arith.constant 0 : i32
    %c0_i32_1 = arith.constant 0 : i32
    %c0_i32_2 = arith.constant 0 : i32
    return %c0_i32, %c0_i32_0, %c0_i32_1 : i32, i32, i32
  }
  func.func @transform_12(%arg0: i32) -> (i32, i32, i32) {
    %c0_i32 = arith.constant 0 : i32
    %c0_i32_0 = arith.constant 0 : i32
    %c0_i32_1 = arith.constant 0 : i32
    %c0_i32_2 = arith.constant 0 : i32
    return %c0_i32, %c0_i32_0, %c0_i32_1 : i32, i32, i32
  }
  func.func @transform_13(%arg0: i32) -> (i32, i32, i32) {
    %c0_i32 = arith.constant 0 : i32
    %c0_i32_0 = arith.constant 0 : i32
    %c0_i32_1 = arith.constant 0 : i32
    return %arg0, %c0_i32, %c0_i32_0 : i32, i32, i32
  }
}

</mosaic_0001>

<bundles_post_ra>
// kernel: _lambda_.1
= control target key start
LH: loop header
LB: loop body
LE: loop exit
PB: predicated region body
PF: predicated region fallthrough
CT: control target
= control target key end

     0   :  { %18 = vsyncpa [#allocation3], 0  ;;  %s18133_s0 = inlined_call_operand.vmem [shape: f32[2,8,32], index: 0, kind: input, shape index: {}]   ;;  %s18134_s1 = inlined_call_operand.hbm [shape: bf16[3,32,96], index: 1, kind: input, shape index: {}]   ;;  %s18135_s2 = inlined_call_operand.hbm [shape: f32[3,1,96], index: 2, kind: input, shape index: {}]   ;;  %s18136_s3 = inlined_call_operand.hbm [shape: bf16[3,32,32], index: 3, kind: input, shape index: {}]   ;;  %s18137_s4 = inlined_call_operand.vmem [shape: f32[3,1,32], index: 4, kind: input, shape index: {}, may-alias: {4,6,10,12}]   ;;  %s18138_s5 = inlined_call_operand.vmem [shape: f32[3,1,32], index: 5, kind: input, shape index: {}, may-alias: {5,11}]   ;;  %s18139_s6 = inlined_call_operand.vmem [shape: f32[3,1,32], index: 6, kind: input, shape index: {}, may-alias: {4,6,10,12}]   ;;  %s18140_s7 = inlined_call_operand.hbm [shape: bf16[3,32,2048], index: 7, kind: input, shape index: {}]   ;;  %s18141_s8 = inlined_call_operand.hbm [shape: f32[3,1,2048], index: 8, kind: input, shape index: {}]   ;;  %s18142_s9 = inlined_call_operand.hbm [shape: bf16[3,2048,32], index: 9, kind: input, shape index: {}]   ;;  %s18143_s10 = inlined_call_operand.vmem [shape: f32[3,1,32], index: 10, kind: input, shape index: {}, may-alias: {4,6,10,12}]   ;;  %s18144_s11 = inlined_call_operand.vmem [shape: f32[3,1,32], index: 11, kind: input, shape index: {}, may-alias: {5,11}]   ;;  %s18145_s12 = inlined_call_operand.vmem [shape: f32[3,1,32], index: 12, kind: input, shape index: {}, may-alias: {4,6,10,12}]   ;;  %s18146_s13 = inlined_call_operand.vmem [shape: f32[2,8,32], index: 13, kind: output, shape index: {}]  }
   0x1   :  { %19 = vsyncpa [#allocation5], 0 }
   0x2   :  { %20 = vsyncpa [#allocation8], 0 }
   0x3   :  { %21 = vsyncpa [#allocation11], 0  ;;  %s16316_s25 = smov [#allocation4]  }
   0x4   :  { %s41_s26 = sshll.u32 %s16316_s25, 4  ;;  %s42_s26 = int_to_ptr.vmem [resolvable:$true] %s41_s26 }
   0x5   :  { %s16196_s27 = scalar_lea.vmem %s42_s26, 48  ;;  %s16200_s28 = scalar_lea.vmem %s42_s26, 64 }
   0x6   :  { %p16197_p0 = scmp.ne.s32.totalorder %s42_s26, %s16196_s27  ;;  %p16201_p1 = scmp.lt.s32.totalorder %s42_s26, %s42_s26 }
   0x7   :  { %p16202_p2 = scmp.lt.s32.totalorder %s16200_s28, %s16196_s27 }
   0x9   :  { %p16203_p3 = por %p16202_p2, %p16201_p1 }
   0xb   :  { %p16204_p4 = pnand %p16203_p3, %p16197_p0 }
   0xd   :  { %16207 = shalt.err (!%p16204_p4)
}
   0xe   :  { %s16317_s29 = smov 16   ;;  %s16318_s30 = smov 1  }
   0xf   :  { %47 = dma.hbm_to_vmem [thread:$0]  %s18135_s2, 48, %s42_s26, [#allocation5], %s16317_s29, %s16317_s29, %s16318_s30  }
  0x10   :  { %s16319_s16 = smov [#allocation7]   ;;  %s16320_s18 = smov [#allocation2]  }
  0x11   :  { %s71_s17 = sshll.u32 %s16319_s16, 4  ;;  %s29_s19 = sshll.u32 %s16320_s18, 4  ;;  %s72_s17 = int_to_ptr.vmem [resolvable:$true] %s71_s17  ;;  %s30_s19 = int_to_ptr.vmem [resolvable:$true] %s29_s19 }
  0x12   :  { %s16216_s20 = scalar_lea.vmem %s72_s17, 12288  ;;  %p16221_p6 = scmp.lt.s32.totalorder %s72_s17, %s72_s17 }
  0x13   :  { %p16217_p5 = scmp.ne.s32.totalorder %s72_s17, %s16216_s20  ;;  %p16222_p7 = scmp.lt.s32.totalorder %s16216_s20, %s16216_s20 }
  0x15   :  { %p16223_p8 = por %p16222_p7, %p16221_p6 }
  0x17   :  { %p16224_p9 = pnand %p16223_p8, %p16217_p5 }
  0x19   :  { %16227 = shalt.err (!%p16224_p9)
}
  0x1a   :  { %s16321_s21 = smov 1024   ;;  %s16322_s22 = smov 64  }
  0x1b   :  { %77 = dma.hbm_to_vmem [thread:$0]  %s18140_s7, 12288, %s72_s17, [#allocation8], %s16321_s21, %s16321_s21, %s16322_s22  }
  0x1c   :  { %s16236_s2 = scalar_lea.vmem %s30_s19, 768  ;;  %p16241_p11 = scmp.lt.s32.totalorder %s30_s19, %s30_s19 }
  0x1d   :  { %p16237_p10 = scmp.ne.s32.totalorder %s30_s19, %s16236_s2  ;;  %p16242_p12 = scmp.lt.s32.totalorder %s16236_s2, %s16236_s2 }
  0x1f   :  { %p16243_p13 = por %p16242_p12, %p16241_p11 }
  0x21   :  { %p16244_p0 = pnand %p16243_p13, %p16237_p10 }
  0x23   :  { %16247 = shalt.err (!%p16244_p0)
}
  0x24   :  { %s16323_s25 = smov 4   ;;  %s16324_s28 = smov [#allocation6]  }
  0x25   :  { %35 = dma.hbm_to_vmem [thread:$0]  %s18134_s1, 768, %s30_s19, [#allocation3], %s16322_s22, %s16322_s22, %s16323_s25  }
  0x26   :  { %s53_s30 = sshll.u32 %s16324_s28, 4  ;;  %s16325_s14 = smov [#allocation9]   ;;  %s54_s30 = int_to_ptr.vmem [resolvable:$true] %s53_s30 }
  0x27   :  { %s83_s7 = sshll.u32 %s16325_s14, 4  ;;  %s16256_s15 = scalar_lea.vmem %s54_s30, 768  ;;  %s84_s7 = int_to_ptr.vmem [resolvable:$true] %s83_s7 }
  0x28   :  { %p16257_p1 = scmp.ne.s32.totalorder %s54_s30, %s16256_s15  ;;  %p16261_p2 = scmp.lt.s32.totalorder %s54_s30, %s54_s30 }
  0x29   :  { %p16262_p3 = scmp.lt.s32.totalorder %s16256_s15, %s16256_s15 }
  0x2b   :  { %p16263_p4 = por %p16262_p3, %p16261_p2 }
  0x2d   :  { %p16264_p5 = pnand %p16263_p4, %p16257_p1 }
  0x2f   :  { %16267 = shalt.err (!%p16264_p5)
}
  0x30   :  { %59 = dma.hbm_to_vmem [thread:$0]  %s18136_s3, 768, %s54_s30, [#allocation5], %s16322_s22, %s16322_s22, %s16323_s25  }
  0x31   :  { %s16276_s1 = scalar_lea.vmem %s84_s7, 768  ;;  %p16281_p7 = scmp.lt.s32.totalorder %s84_s7, %s84_s7 }
  0x32   :  { %p16277_p6 = scmp.ne.s32.totalorder %s84_s7, %s16276_s1  ;;  %p16282_p8 = scmp.lt.s32.totalorder %s16276_s1, %s16276_s1 }
  0x34   :  { %p16283_p9 = por %p16282_p8, %p16281_p7 }
  0x36   :  { %p16284_p10 = pnand %p16283_p9, %p16277_p6 }
  0x38   :  { %16287 = shalt.err (!%p16284_p10)
}
  0x39   :  { %s16326_s18 = smov 256   ;;  %s16327_s21 = smov [#allocation10]  }
  0x3a   :  { %89 = dma.hbm_to_vmem [thread:$0]  %s18141_s8, 768, %s84_s7, [#allocation8], %s16326_s18, %s16326_s18, %s16317_s29  }
  0x3b   :  { %s95_s23 = sshll.u32 %s16327_s21, 4  ;;  %s96_s23 = int_to_ptr.vmem [resolvable:$true] %s95_s23 }
  0x3c   :  { %s16296_s24 = scalar_lea.vmem %s96_s23, 49152  ;;  %p16301_p12 = scmp.lt.s32.totalorder %s96_s23, %s96_s23 }
  0x3d   :  { %p16297_p11 = scmp.ne.s32.totalorder %s96_s23, %s16296_s24  ;;  %p16302_p13 = scmp.lt.s32.totalorder %s16296_s24, %s16296_s24 }
  0x3f   :  { %p16303_p0 = por %p16302_p13, %p16301_p12 }
  0x41   :  { %p16304_p1 = pnand %p16303_p0, %p16297_p11 }
  0x43   :  { %16307 = shalt.err (!%p16304_p1)
}
  0x44   :  { %101 = dma.hbm_to_vmem [thread:$0]  %s18142_s9, 49152, %s96_s23, [#allocation11], %s16322_s22, %s16322_s22, %s16323_s25  }
  0x45   :  { %16308 = dma.done.wait [#allocation3], 768  }
  0x46   :  { %16309 = vsyncadd [#allocation3], 4294966528 }
  0x47   :  { %16310 = dma.done.wait [#allocation5], 816  }
  0x48   :  { %16311 = vsyncadd [#allocation5], 4294966480 }
  0x49   :  { %16312 = dma.done.wait [#allocation8], 13056  }
  0x4a   :  { %16313 = vsyncadd [#allocation8], 4294954240 }
  0x4b   :  { %16314 = dma.done.wait [#allocation11], 49152  }
  0x4c   :  { %16315 = vsyncadd [#allocation11], 4294918144  ;;  %v16328_v0 = vmov 0.0   ;;  %vm16329_vm0 = vmmov 0   ;;  %v15568_v1 = vld [vmem:[#allocation2 + $0x8] sm:$0xff]   ;;  %v15569_v2 = vld [vmem:[#allocation2] sm:$0xff]  }
  0x4d   :  { %14787 = vmatprep.subr.bf16.mxu0 %v16328_v0  ;;  %14791 = vmatprep.mubr.msk.bf16.mxu0 %vm16329_vm0, %v16328_v0  ;;  %v127_v3 = vld [vmem:[%s18133_s0] sm:$0xff]  ;;  %v128_v4 = vld [vmem:[%s18133_s0 + $0x8] sm:$0xff]  ;;  %vm157_vm1 = vcmask 261120   ;;  %v13332_v6 = vld [vmem:[#allocation4] ss:$0 sm:$0xff]  ;;  %s16330_s26 = smov 96  }
  0x4e   :  { %14795 = vmatprep.subr.bf16.mxu1 %v16328_v0  ;;  %14797 = vmatprep.mubr.msk.bf16.mxu1 %vm16329_vm0, %v16328_v0  ;;  %v137_v5 = vpack.c.bf16 %v128_v4, %v127_v3  ;;  %vm207_vm2 = vcmask 31744   ;;  %vm303_vm3 = vcmask 64512   ;;  %s16331_s27 = smov 92   ;;  %vm333_vm4 = vcmask 1043456   ;;  %s16332_s28 = smov 124  }
  0x4f   :  { %14788 = vmatpush3.bf16.msra.mxu0 %v15568_v1  ;;  %s16333_s30 = smov 60   ;;  %s16334_s14 = smov 120   ;;  %vm654_vm5 = vcmask 1041408  }
  0x50   :  { %14789 = vmatprep.subr.bf16.mxu0 %v16328_v0  ;;  %s16335_s7 = smov 88   ;;  %s16336_s15 = smov 56  }
  0x51   :  { %s16337_s16 = smov 84   ;;  %s16338_s17 = smov 116  }
  0x52   :  { %s16339_s1 = smov 52   ;;  %s16340_s18 = smov 80  }
  0x53   :  { %14790 = vmatpush3.bf16.msra.mxu0 %v15569_v2  ;;  %s16341_s19 = smov 112   ;;  %s16342_s20 = smov 48  }
  0x54   :  { %14801 = vmatprep.subr.bf16.mxu0 %v16328_v0  ;;  %s16343_s21 = smov 76   ;;  %s16344_s23 = smov 108  }
  0x55   :  { %s18159_s24 = smov 44   ;;  %s18157_s3 = smov 72  }
  0x56   :  { %14792 = vmatmul.mubr.msk.bf16.vlgmr.msra.gmra.mxu0 %vm157_vm1, %v137_v5  ;;  %s18155_s2 = smov 104   ;;  %s18153_s8 = smov 40  }
  0x57   :  { %14803 = vmatprep.mubr.msk.bf16.mxu0 %vm16329_vm0, %v16328_v0  ;;  %s18151_s9 = smov 68   ;;  %s18149_s29 = smov 100  }
  0x58   :  { %s18147_s25 = smov 36  }
 0x116   :  { %v195_v7 = vpop.f32.mrf.mxu0 }
 0x117   :  { %v196_v8 = vadd.f32 %v13332_v6, %v195_v7 }
 0x118   :  { %v14793_v9 = vpop.f32.mrf.mxu0 }
 0x119   :  { %v16471_v10 = vpack.c.bf16 %v196_v8, %v196_v8 }
 0x11a   :  { %v198_v11 = vpop.f32.mrf.mxu0 }
 0x11b   :  { %v199_v12 = vadd.f32 %v13332_v6, %v198_v11  ;;  %205 = vrot.lane.b32.xlu0 %v16471_v10, %s16330_s26 }
 0x11c   :  { %v14794_v13 = vpop.f32.mrf.mxu0 }
 0x11d   :  { %v16475_v14 = vpack.c.bf16 %v199_v12, %v199_v12 }
 0x11f   :  { %255 = vrot.lane.b32.xlu0 %v16475_v14, %s16330_s26 }
 0x18d   :  { %v206_v15 = vpop.permute.xlu0 %205 }
 0x18e   :  { %v212_v16 = vsel %vm207_vm2, %v206_v15, 0 }
 0x18f   :  { %14796 = vmatpush3.bf16.xpose.msra.mxu1 %v212_v16 }
 0x190   :  { %14807 = vmatprep.subr.bf16.mxu1 %v16328_v0 }
 0x191   :  { %v256_v17 = vpop.permute.xlu0 %255 }
 0x192   :  { %v261_v18 = vsel %vm207_vm2, %v256_v17, 0 }
 0x193   :  { %14802 = vmatpush3.bf16.xpose.msra.mxu0 %v261_v18 }
 0x194   :  { %14813 = vmatprep.subr.bf16.mxu0 %v16328_v0 }
 0x196   :  { %14798 = vmatmul.mubr.msk.bf16.vlgmr.msra.gmra.mxu1 %vm207_vm2, %v16471_v10 }
 0x197   :  { %14809 = vmatprep.mubr.msk.bf16.mxu1 %vm16329_vm0, %v16328_v0 }
 0x19a   :  { %14804 = vmatmul.mubr.msk.bf16.vlgmr.msra.gmra.mxu0 %vm207_vm2, %v16475_v14 }
 0x19b   :  { %14815 = vmatprep.mubr.msk.bf16.mxu0 %vm16329_vm0, %v16328_v0 }
 0x256   :  { %v248_v19 = vpop.f32.mrf.mxu1 }
 0x257   :  { %v304_v20 = vsel %vm303_vm3, %v248_v19, -inf }
 0x258   :  { %305 = vmax.xlane.f32.xlu1 %v304_v20  ;;  %v14799_v21 = vpop.f32.mrf.mxu1 }
 0x25a   :  { %v251_v22 = vpop.f32.mrf.mxu1  ;;  %v297_v23 = vpop.f32.mrf.mxu0 }
 0x25b   :  { %v307_v24 = vsel %vm303_vm3, %v297_v23, -inf }
 0x25c   :  { %v14800_v25 = vpop.f32.mrf.mxu1  ;;  %308 = vmax.xlane.f32.xlu1 %v307_v24  ;;  %v14805_v26 = vpop.f32.mrf.mxu0 }
 0x25e   :  { %v300_v27 = vpop.f32.mrf.mxu0 }
 0x260   :  { %v14806_v28 = vpop.f32.mrf.mxu0 }
 0x26d   :  { %328 = vrot.lane.b32.xlu1 %v16471_v10, %s16322_s22 }
 0x271   :  { %377 = vrot.lane.b32.xlu1 %v16475_v14, %s16322_s22 }
 0x275   :  { %428 = vrot.lane.b32.xlu1 %v16471_v10, %s16331_s27 }
 0x2e1   :  { %v306_v29 = vpop.xlane.xlu1 %305 }
 0x2e2   :  { %v310_v30 = vsub.f32 %v248_v19, %v306_v29 }
 0x2e4   :  { %v312_v31 = vmul.f32 1.442695, %v310_v30 }
 0x2e5   :  { %v309_v32 = vpop.xlane.xlu1 %308 }
 0x2e6   :  { %15970 = vpow2.f32 %v312_v31  ;;  %v311_v33 = vsub.f32 %v297_v23, %v309_v32 }
 0x2e8   :  { %v314_v34 = vmul.f32 1.442695, %v311_v33 }
 0x2e9   :  { %v329_v35 = vpop.permute.xlu1 %328 }
 0x2ea   :  { %15972 = vpow2.f32 %v314_v34  ;;  %v335_v36 = vsel %vm333_vm4, %v329_v35, 0  ;;  %v133_v35 = vld [vmem:[#allocation6] sm:$0xf] }
 0x2eb   :  { %14808 = vmatpush3.bf16.msra.mxu1 %v335_v36 }
 0x2ec   :  { %14819 = vmatprep.subr.bf16.mxu1 %v16328_v0 }
 0x2ed   :  { %v378_v37 = vpop.permute.xlu1 %377 }
 0x2ee   :  { %v383_v38 = vsel %vm333_vm4, %v378_v37, 0 }
 0x2ef   :  { %14814 = vmatpush3.bf16.msra.mxu0 %v383_v38  ;;  %v703_v38 = vsel %vm654_vm5, %v133_v35, 0 }
 0x2f0   :  { %14825 = vmatprep.subr.bf16.mxu0 %v16328_v0 }
 0x2f1   :  { %v429_v43 = vpop.permute.xlu1 %428 }
 0x2f2   :  { %v434_v50 = vsel %vm207_vm2, %v429_v43, 0  ;;  %v13344_v43 = vcombine.low %v133_v35, %v133_v35 }
 0x2f3   :  { %v15971_v39 = vpop.eup %15970 }
 0x2f4   :  { %v316_v40 = vsel %vm303_vm3, %v15971_v39, 0.0 }
 0x2f5   :  { %317 = vadd.xlane.f32.xlu0 %v316_v40 }
 0x2f7   :  { %v15973_v41 = vpop.eup %15972 }
 0x2f8   :  { %v319_v42 = vsel %vm303_vm3, %v15973_v41, 0.0 }
 0x2f9   :  { %320 = vadd.xlane.f32.xlu1 %v319_v42 }
 0x30a   :  { %478 = vrot.lane.b32.xlu1 %v16475_v14, %s16331_s27 }
 0x30b   :  { %426 = vrot.lane.b32.xlu0 %v16471_v10, %s16332_s28 }
 0x30e   :  { %476 = vrot.lane.b32.xlu1 %v16475_v14, %s16332_s28 }
 0x37e   :  { %v318_v44 = vpop.xlane.xlu0 %317 }
 0x37f   :  { %15974 = vrcp.f32 %v318_v44  ;;  %v650_v44 = vrot.slane %v13344_v43, 2 }
 0x382   :  { %v321_v45 = vpop.xlane.xlu1 %320  ;;  %v427_v55 = vpop.permute.xlu0 %426 }
 0x383   :  { %15976 = vrcp.f32 %v321_v45  ;;  %v656_v45 = vsel %vm654_vm5, %v650_v44, 0 }
 0x386   :  { %v479_v52 = vpop.permute.xlu1 %478 }
 0x387   :  { %v484_v54 = vsel %vm207_vm2, %v479_v52, 0 }
 0x38a   :  { %v477_v56 = vpop.permute.xlu1 %476 }
 0x38c   :  { %v15975_v46 = vpop.eup %15974 }
 0x38d   :  { %v324_v47 = vmul.f32 %v15975_v46, %v15971_v39 }
 0x38f   :  { %v326_v48 = vpack.c.bf16 %v324_v47, %v324_v47 }
 0x390   :  { %v15977_v49 = vpop.eup %15976 }
 0x391   :  { %14810 = vmatmul.mubr.msk.bf16.vlgmr.msra.gmra.mxu1 %vm303_vm3, %v326_v48  ;;  %v325_v51 = vmul.f32 %v15977_v49, %v15973_v41 }
 0x392   :  { %14820 = vmatpush3.bf16.xpose.msra.mxu1 %v434_v50  ;;  %14821 = vmatprep.mubr.msk.bf16.mxu1 %vm16329_vm0, %v16328_v0 }
 0x393   :  { %v327_v53 = vpack.c.bf16 %v325_v51, %v325_v51  ;;  %14831 = vmatprep.subr.bf16.mxu1 %v16328_v0 }
 0x395   :  { %14816 = vmatmul.mubr.msk.bf16.vlgmr.msra.gmra.mxu0 %vm303_vm3, %v327_v53 }
 0x396   :  { %14826 = vmatpush3.bf16.xpose.msra.mxu0 %v484_v54  ;;  %14827 = vmatprep.mubr.msk.bf16.mxu0 %vm16329_vm0, %v16328_v0 }
 0x397   :  { %14837 = vmatprep.subr.bf16.mxu0 %v16328_v0 }
 0x399   :  { %14822 = vmatmul.mubr.msk.bf16.vlgmr.msra.gmra.mxu1 %vm207_vm2, %v427_v55 }
 0x39a   :  { %14833 = vmatprep.mubr.msk.bf16.mxu1 %vm16329_vm0, %v16328_v0 }
 0x39d   :  { %14828 = vmatmul.mubr.msk.bf16.vlgmr.msra.gmra.mxu0 %vm207_vm2, %v477_v56 }
 0x39e   :  { %14839 = vmatprep.mubr.msk.bf16.mxu0 %vm16329_vm0, %v16328_v0 }
 0x451   :  { %v16527_v57 = vpop.f32.mrf.mxu1 }
 0x453   :  { %v14811_v58 = vpop.f32.mrf.mxu1 }
 0x455   :  { %v374_v59 = vpop.f32.mrf.mxu1  ;;  %v16529_v60 = vpop.f32.mrf.mxu0 }
 0x456   :  { %v425_v61 = vpack.c.bf16 %v16529_v60, %v16527_v57 }
 0x457   :  { %v14812_v62 = vpop.f32.mrf.mxu1  ;;  %v14817_v63 = vpop.f32.mrf.mxu0 }
 0x459   :  { %v422_v1 = vpop.f32.mrf.mxu0  ;;  %v470_v2 = vpop.f32.mrf.mxu1 }
 0x45a   :  { %v526_v3 = vsel %vm303_vm3, %v470_v2, -inf }
 0x45b   :  { %527 = vmax.xlane.f32.xlu1 %v526_v3  ;;  %v14818_v4 = vpop.f32.mrf.mxu0  ;;  %v14823_v5 = vpop.f32.mrf.mxu1 }
 0x45d   :  { %v473_v6 = vpop.f32.mrf.mxu1  ;;  %v520_v7 = vpop.f32.mrf.mxu0 }
 0x45e   :  { %v529_v8 = vsel %vm303_vm3, %v520_v7, -inf }
 0x45f   :  { %v14824_v9 = vpop.f32.mrf.mxu1  ;;  %530 = vmax.xlane.f32.xlu0 %v529_v8  ;;  %v14829_v11 = vpop.f32.mrf.mxu0 }
 0x461   :  { %v523_v12 = vpop.f32.mrf.mxu0 }
 0x463   :  { %v14830_v13 = vpop.f32.mrf.mxu0 }
 0x475   :  { %598 = vrot.lane.b32.xlu0 %v16475_v14, %s16333_s30 }
 0x479   :  { %746 = vrot.lane.b32.xlu0 %v16471_v10, %s16334_s14 }
 0x4e4   :  { %v528_v15 = vpop.xlane.xlu1 %527 }
 0x4e5   :  { %v532_v16 = vsub.f32 %v470_v2, %v528_v15 }
 0x4e7   :  { %v534_v17 = vmul.f32 1.442695, %v532_v16 }
 0x4e8   :  { %v531_v18 = vpop.xlane.xlu0 %530 }
 0x4e9   :  { %15978 = vpow2.f32 %v534_v17  ;;  %v533_v19 = vsub.f32 %v520_v7, %v531_v18 }
 0x4eb   :  { %v536_v20 = vmul.f32 1.442695, %v533_v19 }
 0x4ec   :  { %v599_v21 = vpop.permute.xlu0 %598 }
 0x4ed   :  { %15980 = vpow2.f32 %v536_v20  ;;  %v604_v22 = vsel %vm333_vm4, %v599_v21, 0 }
 0x4ee   :  { %14838 = vmatpush3.bf16.msra.mxu0 %v604_v22 }
 0x4ef   :  { %14849 = vmatprep.subr.bf16.mxu0 %v16328_v0 }
 0x4f0   :  { %v747_v57 = vpop.permute.xlu0 %746 }
 0x4f6   :  { %v15979_v23 = vpop.eup %15978 }
 0x4f7   :  { %v538_v24 = vsel %vm303_vm3, %v15979_v23, 0.0 }
 0x4f8   :  { %539 = vadd.xlane.f32.xlu1 %v538_v24 }
 0x4fa   :  { %v15981_v25 = vpop.eup %15980 }
 0x4fb   :  { %v541_v26 = vsel %vm303_vm3, %v15981_v25, 0.0 }
 0x4fc   :  { %542 = vadd.xlane.f32.xlu1 %v541_v26 }
 0x50d   :  { %550 = vrot.lane.b32.xlu1 %v16471_v10, %s16333_s30 }
 0x511   :  { %748 = vrot.lane.b32.xlu1 %v16471_v10, %s16335_s7 }
 0x515   :  { %798 = vrot.lane.b32.xlu1 %v16475_v14, %s16335_s7 }
 0x519   :  { %796 = vrot.lane.b32.xlu1 %v16475_v14, %s16334_s14 }
 0x581   :  { %v540_v27 = vpop.xlane.xlu1 %539 }
 0x582   :  { %15982 = vrcp.f32 %v540_v27 }
 0x585   :  { %v543_v28 = vpop.xlane.xlu1 %542 }
 0x586   :  { %15984 = vrcp.f32 %v543_v28 }
 0x589   :  { %v551_v29 = vpop.permute.xlu1 %550 }
 0x58a   :  { %v556_v30 = vsel %vm333_vm4, %v551_v29, 0 }
 0x58b   :  { %14832 = vmatpush3.bf16.msra.mxu1 %v556_v30 }
 0x58c   :  { %14843 = vmatprep.subr.bf16.mxu1 %v16328_v0 }
 0x58d   :  { %v749_v39 = vpop.permute.xlu1 %748 }
 0x58e   :  { %v754_v53 = vsel %vm207_vm2, %v749_v39, 0  ;;  %v16621_v39 = vld [vmem:[#allocation6 + $0x4] sm:$0xf] }
 0x58f   :  { %v15983_v31 = vpop.eup %15982 }
 0x590   :  { %v546_v32 = vmul.f32 %v15983_v31, %v15979_v23 }
 0x591   :  { %v799_v40 = vpop.permute.xlu1 %798 }
 0x592   :  { %v548_v33 = vpack.c.bf16 %v546_v32, %v546_v32  ;;  %v804_v41 = vsel %vm207_vm2, %v799_v40, 0  ;;  %v971_v40 = vsel %vm654_vm5, %v16621_v39, 0 }
 0x593   :  { %v15985_v34 = vpop.eup %15984 }
 0x594   :  { %14834 = vmatmul.mubr.msk.bf16.vlgmr.msra.gmra.mxu1 %vm303_vm3, %v548_v33  ;;  %v547_v36 = vmul.f32 %v15985_v34, %v15981_v25 }
 0x595   :  { %14845 = vmatprep.mubr.msk.bf16.mxu1 %vm16329_vm0, %v16328_v0  ;;  %v797_v42 = vpop.permute.xlu1 %796  ;;  %14844 = vmatpush3.bf16.msra.mxu1 %v656_v45 }
 0x596   :  { %v549_v37 = vpack.c.bf16 %v547_v36, %v547_v36  ;;  %14855 = vmatprep.subr.bf16.mxu1 %v16328_v0 }
 0x598   :  { %14840 = vmatmul.mubr.msk.bf16.vlgmr.msra.gmra.mxu0 %vm303_vm3, %v549_v37 }
 0x599   :  { %14850 = vmatpush3.bf16.msra.mxu0 %v703_v38  ;;  %14851 = vmatprep.mubr.msk.bf16.mxu0 %vm16329_vm0, %v16328_v0 }
 0x59a   :  { %14861 = vmatprep.subr.bf16.mxu0 %v16328_v0 }
 0x5a0   :  { %14852 = vmatmul.mubr.msk.bf16.vlgmr.msra.gmra.mxu0 %vm207_vm2, %v425_v61 }
 0x5a1   :  { %14862 = vmatpush3.bf16.xpose.msra.mxu0 %v804_v41  ;;  %14863 = vmatprep.mubr.msk.bf16.mxu0 %vm16329_vm0, %v16328_v0 }
 0x5a2   :  { %14873 = vmatprep.subr.bf16.mxu0 %v16328_v0 }
 0x5a8   :  { %14864 = vmatmul.mubr.msk.bf16.vlgmr.msra.gmra.mxu0 %vm207_vm2, %v797_v42 }
 0x5a9   :  { %14875 = vmatprep.mubr.msk.bf16.mxu0 %vm16329_vm0, %v16328_v0 }
 0x654   :  { %v592_v46 = vpop.f32.mrf.mxu1 }
 0x656   :  { %v14835_v47 = vpop.f32.mrf.mxu1 }
 0x658   :  { %v595_v48 = vpop.f32.mrf.mxu1  ;;  %v640_v49 = vpop.f32.mrf.mxu0 }
 0x659   :  { %v646_v50 = vpack.c.bf16 %v640_v49, %v592_v46 }
 0x65a   :  { %v14836_v51 = vpop.f32.mrf.mxu1  ;;  %v14841_v52 = vpop.f32.mrf.mxu0 }
 0x65b   :  { %14846 = vmatmul.mubr.msk.bf16.vlgmr.msra.gmra.mxu1 %vm207_vm2, %v646_v50 }
 0x65c   :  { %14856 = vmatpush3.bf16.xpose.msra.mxu1 %v754_v53  ;;  %v643_v54 = vpop.f32.mrf.mxu0  ;;  %14857 = vmatprep.mubr.msk.bf16.mxu1 %vm16329_vm0, %v16328_v0 }
 0x65d   :  { %14867 = vmatprep.subr.bf16.mxu1 %v16328_v0 }
 0x65e   :  { %v14842_v55 = vpop.f32.mrf.mxu0 }
 0x660   :  { %v16579_v56 = vpop.f32.mrf.mxu0 }
 0x662   :  { %v14853_v58 = vpop.f32.mrf.mxu0 }
 0x663   :  { %14858 = vmatmul.mubr.msk.bf16.vlgmr.msra.gmra.mxu1 %vm207_vm2, %v747_v57 }
 0x664   :  { %v16582_v59 = vpop.f32.mrf.mxu0  ;;  %14869 = vmatprep.mubr.msk.bf16.mxu1 %vm16329_vm0, %v16328_v0 }
 0x666   :  { %v14854_v60 = vpop.f32.mrf.mxu0 }
 0x668   :  { %v840_v61 = vpop.f32.mrf.mxu0 }
 0x669   :  { %v849_v62 = vsel %vm303_vm3, %v840_v61, -inf }
 0x66a   :  { %850 = vmax.xlane.f32.xlu1 %v849_v62  ;;  %v14865_v63 = vpop.f32.mrf.mxu0 }
 0x66c   :  { %v843_v1 = vpop.f32.mrf.mxu0 }
 0x66e   :  { %v14866_v2 = vpop.f32.mrf.mxu0 }
 0x67b   :  { %870 = vrot.lane.b32.xlu1 %v16471_v10, %s16336_s15 }
 0x67f   :  { %1018 = vrot.lane.b32.xlu1 %v16471_v10, %s16337_s16 }
 0x683   :  { %1068 = vrot.lane.b32.xlu1 %v16475_v14, %s16337_s16 }
 0x687   :  { %1066 = vrot.lane.b32.xlu1 %v16475_v14, %s16338_s17 }
 0x6f3   :  { %v851_v3 = vpop.xlane.xlu1 %850 }
 0x6f4   :  { %v853_v6 = vsub.f32 %v840_v61, %v851_v3 }
 0x6f6   :  { %v856_v7 = vmul.f32 1.442695, %v853_v6 }
 0x6f7   :  { %v871_v4 = vpop.permute.xlu1 %870 }
 0x6f8   :  { %v876_v5 = vsel %vm333_vm4, %v871_v4, 0  ;;  %15986 = vpow2.f32 %v856_v7 }
 0x6f9   :  { %14868 = vmatpush3.bf16.msra.mxu1 %v876_v5 }
 0x6fa   :  { %14879 = vmatprep.subr.bf16.mxu1 %v16328_v0 }
 0x6fb   :  { %v1019_v32 = vpop.permute.xlu1 %1018 }
 0x6fc   :  { %v1024_v34 = vsel %vm207_vm2, %v1019_v32, 0 }
 0x6ff   :  { %v1069_v46 = vpop.permute.xlu1 %1068 }
 0x700   :  { %v1074_v53 = vsel %vm207_vm2, %v1069_v46, 0 }
 0x703   :  { %v1067_v58 = vpop.permute.xlu1 %1066 }
 0x705   :  { %v15987_v16 = vpop.eup %15986 }
 0x706   :  { %v861_v19 = vsel %vm303_vm3, %v15987_v16, 0.0 }
 0x71b   :  { %v16597_v8 = vpop.f32.mrf.mxu1 }
 0x71c   :  { %v740_v2 = vadd.f32 %v16579_v56, %v16597_v8 }
 0x71d   :  { %v14847_v9 = vpop.f32.mrf.mxu1 }
 0x71f   :  { %v16599_v11 = vpop.f32.mrf.mxu1 }
 0x720   :  { %v743_v6 = vadd.f32 %v16582_v59, %v16599_v11 }
 0x721   :  { %v14848_v12 = vpop.f32.mrf.mxu1 }
 0x723   :  { %v790_v13 = vpop.f32.mrf.mxu1 }
 0x724   :  { %v846_v15 = vsel %vm303_vm3, %v790_v13, -inf }
 0x725   :  { %847 = vmax.xlane.f32.xlu0 %v846_v15  ;;  %v14859_v17 = vpop.f32.mrf.mxu1 }
 0x727   :  { %v793_v18 = vpop.f32.mrf.mxu1 }
 0x729   :  { %v14860_v20 = vpop.f32.mrf.mxu1  ;;  %862 = vadd.xlane.f32.xlu0 %v861_v19 }
 0x7ae   :  { %v848_v21 = vpop.xlane.xlu0 %847 }
 0x7af   :  { %v852_v22 = vsub.f32 %v790_v13, %v848_v21 }
 0x7b1   :  { %v854_v23 = vmul.f32 1.442695, %v852_v22 }
 0x7b2   :  { %v863_v26 = vpop.xlane.xlu0 %862 }
 0x7b3   :  { %15988 = vpow2.f32 %v854_v23 }
 0x7b4   :  { %15990 = vrcp.f32 %v863_v26  ;;  %v13356_v26 = vcombine.low %v16621_v39, %v16621_v39 }
 0x7c0   :  { %v15989_v24 = vpop.eup %15988 }
 0x7c1   :  { %v858_v25 = vsel %vm303_vm3, %v15989_v24, 0.0  ;;  %v15991_v27 = vpop.eup %15990 }
 0x7c2   :  { %859 = vadd.xlane.f32.xlu0 %v858_v25  ;;  %v867_v29 = vmul.f32 %v15991_v27, %v15987_v16  ;;  %v1240_v27 = vrot.slane %v13356_v26, 2 }
 0x7c4   :  { %v869_v33 = vpack.c.bf16 %v867_v29, %v867_v29 }
 0x7d8   :  { %918 = vrot.lane.b32.xlu0 %v16475_v14, %s16336_s15 }
 0x7dc   :  { %1016 = vrot.lane.b32.xlu0 %v16471_v10, %s16338_s17 }
 0x84b   :  { %v860_v28 = vpop.xlane.xlu0 %859 }
 0x84c   :  { %15992 = vrcp.f32 %v860_v28  ;;  %v1245_v28 = vsel %vm654_vm5, %v1240_v27, 0 }
 0x84f   :  { %v919_v30 = vpop.permute.xlu0 %918 }
 0x850   :  { %v924_v31 = vsel %vm333_vm4, %v919_v30, 0 }
 0x851   :  { %14874 = vmatpush3.bf16.msra.mxu0 %v924_v31 }
 0x852   :  { %14885 = vmatprep.subr.bf16.mxu0 %v16328_v0 }
 0x853   :  { %v1017_v37 = vpop.permute.xlu0 %1016 }
 0x854   :  { %14876 = vmatmul.mubr.msk.bf16.vlgmr.msra.gmra.mxu0 %vm303_vm3, %v869_v33 }
 0x855   :  { %14886 = vmatpush3.bf16.xpose.msra.mxu0 %v1024_v34  ;;  %14887 = vmatprep.mubr.msk.bf16.mxu0 %vm16329_vm0, %v16328_v0 }
 0x856   :  { %14897 = vmatprep.subr.bf16.mxu0 %v16328_v0 }
 0x859   :  { %v15993_v35 = vpop.eup %15992 }
 0x85a   :  { %v866_v36 = vmul.f32 %v15993_v35, %v15989_v24 }
 0x85c   :  { %14888 = vmatmul.mubr.msk.bf16.vlgmr.msra.gmra.mxu0 %vm207_vm2, %v1017_v37  ;;  %v868_v38 = vpack.c.bf16 %v866_v36, %v866_v36 }
 0x85d   :  { %14899 = vmatprep.mubr.msk.bf16.mxu0 %vm16329_vm0, %v16328_v0 }
 0x85e   :  { %14870 = vmatmul.mubr.msk.bf16.vlgmr.msra.gmra.mxu1 %vm303_vm3, %v868_v38 }
 0x85f   :  { %14881 = vmatprep.mubr.msk.bf16.mxu1 %vm16329_vm0, %v16328_v0  ;;  %14880 = vmatpush3.bf16.msra.mxu1 %v971_v40 }
 0x860   :  { %14891 = vmatprep.subr.bf16.mxu1 %v16328_v0 }
 0x914   :  { %v960_v41 = vpop.f32.mrf.mxu0 }
 0x916   :  { %v14877_v42 = vpop.f32.mrf.mxu0 }
 0x918   :  { %v963_v43 = vpop.f32.mrf.mxu0 }
 0x91a   :  { %v14878_v44 = vpop.f32.mrf.mxu0 }
 0x91c   :  { %v1060_v45 = vpop.f32.mrf.mxu0 }
 0x91d   :  { %v1116_v47 = vsel %vm303_vm3, %v1060_v45, -inf }
 0x91e   :  { %v912_v48 = vpop.f32.mrf.mxu1  ;;  %1117 = vmax.xlane.f32.xlu0 %v1116_v47  ;;  %v14889_v49 = vpop.f32.mrf.mxu0 }
 0x91f   :  { %v966_v50 = vpack.c.bf16 %v960_v41, %v912_v48 }
 0x920   :  { %v14871_v51 = vpop.f32.mrf.mxu1  ;;  %v1063_v52 = vpop.f32.mrf.mxu0 }
 0x921   :  { %14882 = vmatmul.mubr.msk.bf16.vlgmr.msra.gmra.mxu1 %vm207_vm2, %v966_v50 }
 0x922   :  { %14892 = vmatpush3.bf16.xpose.msra.mxu1 %v1074_v53  ;;  %v915_v54 = vpop.f32.mrf.mxu1  ;;  %v14890_v55 = vpop.f32.mrf.mxu0  ;;  %14893 = vmatprep.mubr.msk.bf16.mxu1 %vm16329_vm0, %v16328_v0 }
 0x923   :  { %14903 = vmatprep.subr.bf16.mxu1 %v16328_v0 }
 0x924   :  { %v14872_v57 = vpop.f32.mrf.mxu1 }
 0x929   :  { %14894 = vmatmul.mubr.msk.bf16.vlgmr.msra.gmra.mxu1 %vm207_vm2, %v1067_v58 }
 0x92a   :  { %14905 = vmatprep.mubr.msk.bf16.mxu1 %vm16329_vm0, %v16328_v0 }
 0x9a7   :  { %v1118_v60 = vpop.xlane.xlu0 %1117 }
 0x9a8   :  { %v1122_v61 = vsub.f32 %v1060_v45, %v1118_v60 }
 0x9aa   :  { %v1124_v62 = vmul.f32 1.442695, %v1122_v61 }
 0x9ac   :  { %15994 = vpow2.f32 %v1124_v62 }
 0x9b9   :  { %v15995_v63 = vpop.eup %15994 }
 0x9ba   :  { %v1128_v1 = vsel %vm303_vm3, %v15995_v63, 0.0 }
 0x9bb   :  { %1129 = vadd.xlane.f32.xlu0 %v1128_v1 }
 0x9e1   :  { %v1007_v3 = vpop.f32.mrf.mxu1 }
 0x9e2   :  { %v16638_v4 = vadd.f32 %v1007_v3, %v740_v2 }
 0x9e3   :  { %v14883_v5 = vpop.f32.mrf.mxu1 }
 0x9e5   :  { %v1010_v7 = vpop.f32.mrf.mxu1 }
 0x9e6   :  { %v16642_v9 = vadd.f32 %v1010_v7, %v743_v6 }
 0x9e7   :  { %v14884_v12 = vpop.f32.mrf.mxu1 }
 0x9e9   :  { %v1110_v13 = vpop.f32.mrf.mxu1 }
 0x9ea   :  { %v1119_v15 = vsel %vm303_vm3, %v1110_v13, -inf }
 0x9eb   :  { %1120 = vmax.xlane.f32.xlu1 %v1119_v15  ;;  %v14895_v16 = vpop.f32.mrf.mxu1 }
 0x9ed   :  { %v1113_v17 = vpop.f32.mrf.mxu1 }
 0x9ef   :  { %v14896_v18 = vpop.f32.mrf.mxu1 }
 0x9fc   :  { %1140 = vrot.lane.b32.xlu1 %v16471_v10, %s16339_s1 }
 0xa00   :  { %1292 = vrot.lane.b32.xlu1 %v16471_v10, %s16340_s18 }
 0xa04   :  { %1342 = vrot.lane.b32.xlu1 %v16475_v14, %s16340_s18 }
 0xa08   :  { %1340 = vrot.lane.b32.xlu1 %v16475_v14, %s16341_s19 }
 0xa44   :  { %v1130_v56 = vpop.xlane.xlu0 %1129 }
 0xa45   :  { %15996 = vrcp.f32 %v1130_v56 }
 0xa52   :  { %v15997_v59 = vpop.eup %15996 }
 0xa53   :  { %v1136_v20 = vmul.f32 %v15997_v59, %v15995_v63 }
 0xa55   :  { %v1138_v23 = vpack.c.bf16 %v1136_v20, %v1136_v20 }
 0xa74   :  { %v1121_v8 = vpop.xlane.xlu1 %1120 }
 0xa75   :  { %v1123_v11 = vsub.f32 %v1110_v13, %v1121_v8 }
 0xa77   :  { %v1126_v19 = vmul.f32 1.442695, %v1123_v11 }
 0xa78   :  { %v1141_v21 = vpop.permute.xlu1 %1140 }
 0xa79   :  { %15998 = vpow2.f32 %v1126_v19  ;;  %v1146_v22 = vsel %vm333_vm4, %v1141_v21, 0  ;;  %v16712_v21 = vld [vmem:[#allocation6 + $0x8] sm:$0xf] }
 0xa7a   :  { %14898 = vmatpush3.bf16.msra.mxu0 %v1146_v22  ;;  %v1515_v22 = vsel %vm654_vm5, %v16712_v21, 0 }
 0xa7b   :  { %14909 = vmatprep.subr.bf16.mxu0 %v16328_v0 }
 0xa7c   :  { %v1293_v34 = vpop.permute.xlu1 %1292 }
 0xa7d   :  { %14900 = vmatmul.mubr.msk.bf16.vlgmr.msra.gmra.mxu0 %vm303_vm3, %v1138_v23  ;;  %v1298_v36 = vsel %vm207_vm2, %v1293_v34, 0 }
 0xa7e   :  { %14911 = vmatprep.mubr.msk.bf16.mxu0 %vm16329_vm0, %v16328_v0  ;;  %14910 = vmatpush3.bf16.msra.mxu0 %v1245_v28 }
 0xa7f   :  { %14921 = vmatprep.subr.bf16.mxu0 %v16328_v0 }
 0xa80   :  { %v1343_v42 = vpop.permute.xlu1 %1342 }
 0xa81   :  { %v1348_v46 = vsel %vm207_vm2, %v1343_v42, 0 }
 0xa84   :  { %v1341_v51 = vpop.permute.xlu1 %1340 }
 0xa86   :  { %v15999_v24 = vpop.eup %15998 }
 0xa87   :  { %v1131_v25 = vsel %vm303_vm3, %v15999_v24, 0.0 }
 0xa88   :  { %1132 = vadd.xlane.f32.xlu0 %v1131_v25 }
 0xa9e   :  { %1188 = vrot.lane.b32.xlu0 %v16475_v14, %s16339_s1 }
 0xaa2   :  { %1290 = vrot.lane.b32.xlu0 %v16471_v10, %s16341_s19 }
 0xb11   :  { %v1133_v29 = vpop.xlane.xlu0 %1132 }
 0xb12   :  { %16000 = vrcp.f32 %v1133_v29 }
 0xb15   :  { %v1189_v30 = vpop.permute.xlu0 %1188 }
 0xb16   :  { %v1194_v31 = vsel %vm333_vm4, %v1189_v30, 0 }
 0xb17   :  { %14904 = vmatpush3.bf16.msra.mxu1 %v1194_v31 }
 0xb18   :  { %14915 = vmatprep.subr.bf16.mxu1 %v16328_v0 }
 0xb19   :  { %v1291_v37 = vpop.permute.xlu0 %1290 }
 0xb1f   :  { %v16001_v32 = vpop.eup %16000 }
 0xb20   :  { %v1137_v33 = vmul.f32 %v16001_v32, %v15999_v24 }
 0xb22   :  { %v1139_v35 = vpack.c.bf16 %v1137_v33, %v1137_v33 }
 0xb24   :  { %14906 = vmatmul.mubr.msk.bf16.vlgmr.msra.gmra.mxu1 %vm303_vm3, %v1139_v35 }
 0xb25   :  { %14916 = vmatpush3.bf16.xpose.msra.mxu1 %v1298_v36  ;;  %14917 = vmatprep.mubr.msk.bf16.mxu1 %vm16329_vm0, %v16328_v0 }
 0xb26   :  { %14927 = vmatprep.subr.bf16.mxu1 %v16328_v0 }
 0xb2c   :  { %14918 = vmatmul.mubr.msk.bf16.vlgmr.msra.gmra.mxu1 %vm207_vm2, %v1291_v37 }
 0xb2d   :  { %14929 = vmatprep.mubr.msk.bf16.mxu1 %vm16329_vm0, %v16328_v0 }
 0xb3d   :  { %v1182_v38 = vpop.f32.mrf.mxu0 }
 0xb3f   :  { %v14901_v39 = vpop.f32.mrf.mxu0 }
 0xb41   :  { %v1185_v40 = vpop.f32.mrf.mxu0 }
 0xb43   :  { %v14902_v41 = vpop.f32.mrf.mxu0 }
 0xbe4   :  { %v1230_v43 = vpop.f32.mrf.mxu1 }
 0xbe5   :  { %v1236_v44 = vpack.c.bf16 %v1230_v43, %v1182_v38 }
 0xbe6   :  { %v14907_v45 = vpop.f32.mrf.mxu1 }
 0xbe7   :  { %14912 = vmatmul.mubr.msk.bf16.vlgmr.msra.gmra.mxu0 %vm207_vm2, %v1236_v44 }
 0xbe8   :  { %14922 = vmatpush3.bf16.xpose.msra.mxu0 %v1348_v46  ;;  %v1233_v47 = vpop.f32.mrf.mxu1  ;;  %14923 = vmatprep.mubr.msk.bf16.mxu0 %vm16329_vm0, %v16328_v0 }
 0xbe9   :  { %14933 = vmatprep.subr.bf16.mxu0 %v16328_v0 }
 0xbea   :  { %v14908_v48 = vpop.f32.mrf.mxu1 }
 0xbec   :  { %v1334_v49 = vpop.f32.mrf.mxu1 }
 0xbed   :  { %v1390_v50 = vsel %vm303_vm3, %v1334_v49, -inf }
 0xbee   :  { %1391 = vmax.xlane.f32.xlu0 %v1390_v50  ;;  %v14919_v52 = vpop.f32.mrf.mxu1 }
 0xbef   :  { %14924 = vmatmul.mubr.msk.bf16.vlgmr.msra.gmra.mxu0 %vm207_vm2, %v1341_v51 }
 0xbf0   :  { %v1337_v53 = vpop.f32.mrf.mxu1  ;;  %14935 = vmatprep.mubr.msk.bf16.mxu0 %vm16329_vm0, %v16328_v0 }
 0xbf2   :  { %v14920_v54 = vpop.f32.mrf.mxu1 }
 0xc77   :  { %v1392_v55 = vpop.xlane.xlu0 %1391 }
 0xc78   :  { %v1396_v57 = vsub.f32 %v1334_v49, %v1392_v55 }
 0xc7a   :  { %v1398_v58 = vmul.f32 1.442695, %v1396_v57 }
 0xc7c   :  { %16002 = vpow2.f32 %v1398_v58 }
 0xc89   :  { %v16003_v60 = vpop.eup %16002 }
 0xc8a   :  { %v1402_v61 = vsel %vm303_vm3, %v16003_v60, 0.0 }
 0xc8b   :  { %1403 = vadd.xlane.f32.xlu0 %v1402_v61 }
 0xca7   :  { %v1281_v62 = vpop.f32.mrf.mxu0 }
 0xca8   :  { %v16688_v63 = vadd.f32 %v1281_v62, %v16638_v4 }
 0xca9   :  { %v14913_v1 = vpop.f32.mrf.mxu0 }
 0xcab   :  { %v1284_v2 = vpop.f32.mrf.mxu0 }
 0xcac   :  { %v16691_v3 = vadd.f32 %v1284_v2, %v16642_v9 }
 0xcad   :  { %v14914_v5 = vpop.f32.mrf.mxu0 }
 0xcaf   :  { %v1384_v6 = vpop.f32.mrf.mxu0 }
 0xcb0   :  { %v1393_v7 = vsel %vm303_vm3, %v1384_v6, -inf }
 0xcb1   :  { %1394 = vmax.xlane.f32.xlu1 %v1393_v7  ;;  %v14925_v12 = vpop.f32.mrf.mxu0 }
 0xcb3   :  { %v1387_v13 = vpop.f32.mrf.mxu0 }
 0xcb5   :  { %v14926_v15 = vpop.f32.mrf.mxu0 }
 0xcc2   :  { %1414 = vrot.lane.b32.xlu1 %v16471_v10, %s16342_s20 }
 0xcc6   :  { %1562 = vrot.lane.b32.xlu1 %v16471_v10, %s16343_s21 }
 0xcca   :  { %1612 = vrot.lane.b32.xlu1 %v16475_v14, %s16343_s21 }
 0xcce   :  { %1610 = vrot.lane.b32.xlu1 %v16475_v14, %s16344_s23 }
 0xd14   :  { %v1404_v4 = vpop.xlane.xlu0 %1403 }
 0xd15   :  { %16004 = vrcp.f32 %v1404_v4 }
 0xd22   :  { %v16005_v9 = vpop.eup %16004 }
 0xd23   :  { %v1410_v56 = vmul.f32 %v16005_v9, %v16003_v60 }
 0xd25   :  { %v1412_v11 = vpack.c.bf16 %v1410_v56, %v1410_v56  ;;  %v13367_v56 = vcombine.low %v16712_v21, %v16712_v21 }
 0xd3a   :  { %v1395_v16 = vpop.xlane.xlu1 %1394 }
 0xd3b   :  { %v1397_v17 = vsub.f32 %v1384_v6, %v1395_v16 }
 0xd3d   :  { %v1400_v18 = vmul.f32 1.442695, %v1397_v17 }
 0xd3e   :  { %v1415_v59 = vpop.permute.xlu1 %1414 }
 0xd3f   :  { %16006 = vpow2.f32 %v1400_v18  ;;  %v1420_v8 = vsel %vm333_vm4, %v1415_v59, 0  ;;  %v1784_v59 = vrot.slane %v13367_v56, 2 }
 0xd40   :  { %14928 = vmatpush3.bf16.msra.mxu1 %v1420_v8 }
 0xd41   :  { %14939 = vmatprep.subr.bf16.mxu1 %v16328_v0  ;;  %v1789_v8 = vsel %vm654_vm5, %v1784_v59, 0 }
 0xd42   :  { %v1563_v28 = vpop.permute.xlu1 %1562 }
 0xd43   :  { %14930 = vmatmul.mubr.msk.bf16.vlgmr.msra.gmra.mxu1 %vm303_vm3, %v1412_v11  ;;  %v1568_v30 = vsel %vm207_vm2, %v1563_v28, 0 }
 0xd44   :  { %14941 = vmatprep.mubr.msk.bf16.mxu1 %vm16329_vm0, %v16328_v0  ;;  %14940 = vmatpush3.bf16.msra.mxu1 %v1515_v22 }
 0xd45   :  { %14951 = vmatprep.subr.bf16.mxu1 %v16328_v0 }
 0xd46   :  { %v1613_v36 = vpop.permute.xlu1 %1612 }
 0xd47   :  { %v1618_v40 = vsel %vm207_vm2, %v1613_v36, 0 }
 0xd4a   :  { %v1611_v45 = vpop.permute.xlu1 %1610 }
 0xd4c   :  { %v16007_v19 = vpop.eup %16006 }
 0xd4d   :  { %v1405_v20 = vsel %vm303_vm3, %v16007_v19, 0.0 }
 0xd4e   :  { %1406 = vadd.xlane.f32.xlu0 %v1405_v20 }
 0xd64   :  { %1462 = vrot.lane.b32.xlu0 %v16475_v14, %s16342_s20 }
 0xd68   :  { %1560 = vrot.lane.b32.xlu0 %v16471_v10, %s16344_s23 }
 0xdd7   :  { %v1407_v23 = vpop.xlane.xlu0 %1406 }
 0xdd8   :  { %16008 = vrcp.f32 %v1407_v23 }
 0xddb   :  { %v1463_v24 = vpop.permute.xlu0 %1462 }
 0xddc   :  { %v1468_v25 = vsel %vm333_vm4, %v1463_v24, 0 }
 0xddd   :  { %14934 = vmatpush3.bf16.msra.mxu0 %v1468_v25 }
 0xdde   :  { %14945 = vmatprep.subr.bf16.mxu0 %v16328_v0 }
 0xddf   :  { %v1561_v31 = vpop.permute.xlu0 %1560 }
 0xde5   :  { %v16009_v26 = vpop.eup %16008 }
 0xde6   :  { %v1411_v27 = vmul.f32 %v16009_v26, %v16007_v19 }
 0xde8   :  { %v1413_v29 = vpack.c.bf16 %v1411_v27, %v1411_v27 }
 0xdea   :  { %14936 = vmatmul.mubr.msk.bf16.vlgmr.msra.gmra.mxu0 %vm303_vm3, %v1413_v29 }
 0xdeb   :  { %14946 = vmatpush3.bf16.xpose.msra.mxu0 %v1568_v30  ;;  %14947 = vmatprep.mubr.msk.bf16.mxu0 %vm16329_vm0, %v16328_v0 }
 0xdec   :  { %14957 = vmatprep.subr.bf16.mxu0 %v16328_v0 }
 0xdf2   :  { %14948 = vmatmul.mubr.msk.bf16.vlgmr.msra.gmra.mxu0 %vm207_vm2, %v1561_v31 }
 0xdf3   :  { %14959 = vmatprep.mubr.msk.bf16.mxu0 %vm16329_vm0, %v16328_v0 }
 0xe03   :  { %v1456_v32 = vpop.f32.mrf.mxu1 }
 0xe05   :  { %v14931_v33 = vpop.f32.mrf.mxu1 }
 0xe07   :  { %v1459_v34 = vpop.f32.mrf.mxu1 }
 0xe09   :  { %v14932_v35 = vpop.f32.mrf.mxu1 }
 0xeaa   :  { %v1504_v37 = vpop.f32.mrf.mxu0 }
 0xeab   :  { %v1510_v38 = vpack.c.bf16 %v1504_v37, %v1456_v32 }
 0xeac   :  { %v14937_v39 = vpop.f32.mrf.mxu0 }
 0xead   :  { %14942 = vmatmul.mubr.msk.bf16.vlgmr.msra.gmra.mxu1 %vm207_vm2, %v1510_v38 }
 0xeae   :  { %14952 = vmatpush3.bf16.xpose.msra.mxu1 %v1618_v40  ;;  %v1507_v41 = vpop.f32.mrf.mxu0  ;;  %14953 = vmatprep.mubr.msk.bf16.mxu1 %vm16329_vm0, %v16328_v0 }
 0xeaf   :  { %14963 = vmatprep.subr.bf16.mxu1 %v16328_v0 }
 0xeb0   :  { %v14938_v42 = vpop.f32.mrf.mxu0 }
 0xeb2   :  { %v1604_v43 = vpop.f32.mrf.mxu0 }
 0xeb3   :  { %v1660_v44 = vsel %vm303_vm3, %v1604_v43, -inf }
 0xeb4   :  { %1661 = vmax.xlane.f32.xlu0 %v1660_v44  ;;  %v14949_v46 = vpop.f32.mrf.mxu0 }
 0xeb5   :  { %14954 = vmatmul.mubr.msk.bf16.vlgmr.msra.gmra.mxu1 %vm207_vm2, %v1611_v45 }
 0xeb6   :  { %v1607_v47 = vpop.f32.mrf.mxu0  ;;  %14965 = vmatprep.mubr.msk.bf16.mxu1 %vm16329_vm0, %v16328_v0 }
 0xeb8   :  { %v14950_v48 = vpop.f32.mrf.mxu0 }
 0xf3d   :  { %v1662_v49 = vpop.xlane.xlu0 %1661 }
 0xf3e   :  { %v1666_v50 = vsub.f32 %v1604_v43, %v1662_v49 }
 0xf40   :  { %v1668_v51 = vmul.f32 1.442695, %v1666_v50 }
 0xf42   :  { %16010 = vpow2.f32 %v1668_v51 }
 0xf4f   :  { %v16011_v52 = vpop.eup %16010 }
 0xf50   :  { %v1672_v53 = vsel %vm303_vm3, %v16011_v52, 0.0 }
 0xf51   :  { %1673 = vadd.xlane.f32.xlu0 %v1672_v53 }
 0xf6d   :  { %v1551_v54 = vpop.f32.mrf.mxu1 }
 0xf6e   :  { %v16738_v55 = vadd.f32 %v1551_v54, %v16688_v63 }
 0xf6f   :  { %v14943_v57 = vpop.f32.mrf.mxu1 }
 0xf71   :  { %v1554_v58 = vpop.f32.mrf.mxu1 }
 0xf72   :  { %v16741_v60 = vadd.f32 %v1554_v58, %v16691_v3 }
 0xf73   :  { %v14944_v61 = vpop.f32.mrf.mxu1 }
 0xf75   :  { %v1654_v62 = vpop.f32.mrf.mxu1 }
 0xf76   :  { %v1663_v1 = vsel %vm303_vm3, %v1654_v62, -inf }
 0xf77   :  { %1664 = vmax.xlane.f32.xlu1 %v1663_v1  ;;  %v14955_v2 = vpop.f32.mrf.mxu1 }
 0xf79   :  { %v1657_v5 = vpop.f32.mrf.mxu1 }
 0xf7b   :  { %v14956_v6 = vpop.f32.mrf.mxu1 }
 0xf88   :  { %1684 = vrot.lane.b32.xlu1 %v16471_v10, %s18159_s24 }
 0xf8c   :  { %1836 = vrot.lane.b32.xlu1 %v16471_v10, %s18157_s3 }
 0xf90   :  { %1886 = vrot.lane.b32.xlu1 %v16475_v14, %s18157_s3 }
 0xf94   :  { %1884 = vrot.lane.b32.xlu1 %v16475_v14, %s18155_s2 }
 0xfda   :  { %v1674_v63 = vpop.xlane.xlu0 %1673 }
 0xfdb   :  { %16012 = vrcp.f32 %v1674_v63 }
 0xfe8   :  { %v16013_v3 = vpop.eup %16012 }
 0xfe9   :  { %v1680_v15 = vmul.f32 %v16013_v3, %v16011_v52 }
 0xfeb   :  { %v1682_v16 = vpack.c.bf16 %v1680_v15, %v1680_v15 }
0x1000   :  { %v1665_v7 = vpop.xlane.xlu1 %1664 }
0x1001   :  { %v1667_v12 = vsub.f32 %v1654_v62, %v1665_v7 }
0x1003   :  { %v1670_v13 = vmul.f32 1.442695, %v1667_v12 }
0x1004   :  { %v1685_v4 = vpop.permute.xlu1 %1684 }
0x1005   :  { %16014 = vpow2.f32 %v1670_v13  ;;  %v1690_v9 = vsel %vm333_vm4, %v1685_v4, 0  ;;  %v16811_v4 = vld [vmem:[#allocation6 + $0xc] sm:$0xf] }
0x1006   :  { %14958 = vmatpush3.bf16.msra.mxu0 %v1690_v9  ;;  %v2059_v9 = vsel %vm654_vm5, %v16811_v4, 0 }
0x1007   :  { %14969 = vmatprep.subr.bf16.mxu0 %v16328_v0 }
0x1008   :  { %v1837_v24 = vpop.permute.xlu1 %1836 }
0x1009   :  { %14960 = vmatmul.mubr.msk.bf16.vlgmr.msra.gmra.mxu0 %vm303_vm3, %v1682_v16  ;;  %v1842_v21 = vsel %vm207_vm2, %v1837_v24, 0 }
0x100a   :  { %14971 = vmatprep.mubr.msk.bf16.mxu0 %vm16329_vm0, %v16328_v0  ;;  %14970 = vmatpush3.bf16.msra.mxu0 %v1789_v8 }
0x100b   :  { %14981 = vmatprep.subr.bf16.mxu0 %v16328_v0 }
0x100c   :  { %v1887_v31 = vpop.permute.xlu1 %1886 }
0x100d   :  { %v1892_v35 = vsel %vm207_vm2, %v1887_v31, 0 }
0x1010   :  { %v1885_v40 = vpop.permute.xlu1 %1884 }
0x1012   :  { %v16015_v17 = vpop.eup %16014 }
0x1013   :  { %v1675_v18 = vsel %vm303_vm3, %v16015_v17, 0.0 }
0x1014   :  { %1676 = vadd.xlane.f32.xlu0 %v1675_v18 }
0x102a   :  { %1732 = vrot.lane.b32.xlu0 %v16475_v14, %s18159_s24 }
0x102e   :  { %1834 = vrot.lane.b32.xlu0 %v16471_v10, %s18155_s2 }
0x109d   :  { %v1677_v11 = vpop.xlane.xlu0 %1676 }
0x109e   :  { %16016 = vrcp.f32 %v1677_v11 }
0x10a1   :  { %v1733_v19 = vpop.permute.xlu0 %1732 }
0x10a2   :  { %v1738_v20 = vsel %vm333_vm4, %v1733_v19, 0 }
0x10a3   :  { %14964 = vmatpush3.bf16.msra.mxu1 %v1738_v20 }
0x10a4   :  { %14975 = vmatprep.subr.bf16.mxu1 %v16328_v0 }
0x10a5   :  { %v1835_v26 = vpop.permute.xlu0 %1834 }
0x10ab   :  { %v16017_v22 = vpop.eup %16016 }
0x10ac   :  { %v1681_v23 = vmul.f32 %v16017_v22, %v16015_v17 }
0x10ae   :  { %v1683_v25 = vpack.c.bf16 %v1681_v23, %v1681_v23 }
0x10b0   :  { %14966 = vmatmul.mubr.msk.bf16.vlgmr.msra.gmra.mxu1 %vm303_vm3, %v1683_v25 }
0x10b1   :  { %14976 = vmatpush3.bf16.xpose.msra.mxu1 %v1842_v21  ;;  %14977 = vmatprep.mubr.msk.bf16.mxu1 %vm16329_vm0, %v16328_v0 }
0x10b2   :  { %14987 = vmatprep.subr.bf16.mxu1 %v16328_v0 }
0x10b8   :  { %14978 = vmatmul.mubr.msk.bf16.vlgmr.msra.gmra.mxu1 %vm207_vm2, %v1835_v26 }
0x10b9   :  { %14989 = vmatprep.mubr.msk.bf16.mxu1 %vm16329_vm0, %v16328_v0 }
0x10c9   :  { %v1726_v27 = vpop.f32.mrf.mxu0 }
0x10cb   :  { %v14961_v28 = vpop.f32.mrf.mxu0 }
0x10cd   :  { %v1729_v29 = vpop.f32.mrf.mxu0 }
0x10cf   :  { %v14962_v30 = vpop.f32.mrf.mxu0 }
0x1170   :  { %v1774_v32 = vpop.f32.mrf.mxu1 }
0x1171   :  { %v1780_v33 = vpack.c.bf16 %v1774_v32, %v1726_v27 }
0x1172   :  { %v14967_v34 = vpop.f32.mrf.mxu1 }
0x1173   :  { %14972 = vmatmul.mubr.msk.bf16.vlgmr.msra.gmra.mxu0 %vm207_vm2, %v1780_v33 }
0x1174   :  { %14982 = vmatpush3.bf16.xpose.msra.mxu0 %v1892_v35  ;;  %v1777_v36 = vpop.f32.mrf.mxu1  ;;  %14983 = vmatprep.mubr.msk.bf16.mxu0 %vm16329_vm0, %v16328_v0 }
0x1175   :  { %14993 = vmatprep.subr.bf16.mxu0 %v16328_v0 }
0x1176   :  { %v14968_v37 = vpop.f32.mrf.mxu1 }
0x1178   :  { %v1878_v38 = vpop.f32.mrf.mxu1 }
0x1179   :  { %v1934_v39 = vsel %vm303_vm3, %v1878_v38, -inf }
0x117a   :  { %1935 = vmax.xlane.f32.xlu0 %v1934_v39  ;;  %v14979_v41 = vpop.f32.mrf.mxu1 }
0x117b   :  { %14984 = vmatmul.mubr.msk.bf16.vlgmr.msra.gmra.mxu0 %vm207_vm2, %v1885_v40 }
0x117c   :  { %v1881_v42 = vpop.f32.mrf.mxu1  ;;  %14995 = vmatprep.mubr.msk.bf16.mxu0 %vm16329_vm0, %v16328_v0 }
0x117e   :  { %v14980_v43 = vpop.f32.mrf.mxu1 }
0x1203   :  { %v1936_v44 = vpop.xlane.xlu0 %1935 }
0x1204   :  { %v1940_v45 = vsub.f32 %v1878_v38, %v1936_v44 }
0x1206   :  { %v1942_v46 = vmul.f32 1.442695, %v1940_v45 }
0x1208   :  { %16018 = vpow2.f32 %v1942_v46 }
0x1215   :  { %v16019_v47 = vpop.eup %16018 }
0x1216   :  { %v1946_v48 = vsel %vm303_vm3, %v16019_v47, 0.0 }
0x1217   :  { %1947 = vadd.xlane.f32.xlu0 %v1946_v48 }
0x1233   :  { %v1825_v49 = vpop.f32.mrf.mxu0 }
0x1234   :  { %v16787_v50 = vadd.f32 %v1825_v49, %v16738_v55 }
0x1235   :  { %v14973_v51 = vpop.f32.mrf.mxu0 }
0x1237   :  { %v1828_v52 = vpop.f32.mrf.mxu0 }
0x1238   :  { %v16790_v53 = vadd.f32 %v1828_v52, %v16741_v60 }
0x1239   :  { %v14974_v54 = vpop.f32.mrf.mxu0 }
0x123b   :  { %v1928_v57 = vpop.f32.mrf.mxu0 }
0x123c   :  { %v1937_v58 = vsel %vm303_vm3, %v1928_v57, -inf }
0x123d   :  { %1938 = vmax.xlane.f32.xlu1 %v1937_v58  ;;  %v14985_v61 = vpop.f32.mrf.mxu0 }
0x123f   :  { %v1931_v62 = vpop.f32.mrf.mxu0 }
0x1241   :  { %v14986_v1 = vpop.f32.mrf.mxu0 }
0x124e   :  { %1958 = vrot.lane.b32.xlu1 %v16471_v10, %s18153_s8 }
0x1252   :  { %2106 = vrot.lane.b32.xlu1 %v16471_v10, %s18151_s9 }
0x1256   :  { %2156 = vrot.lane.b32.xlu1 %v16475_v14, %s18151_s9  ;;  %s18163_s9 = smov 100  }
0x125a   :  { %2154 = vrot.lane.b32.xlu1 %v16475_v14, %s18149_s29 }
0x12a0   :  { %v1948_v55 = vpop.xlane.xlu0 %1947 }
0x12a1   :  { %16020 = vrcp.f32 %v1948_v55 }
0x12ae   :  { %v16021_v60 = vpop.eup %16020 }
0x12af   :  { %v1954_v63 = vmul.f32 %v16021_v60, %v16019_v47 }
0x12b1   :  { %v1956_v12 = vpack.c.bf16 %v1954_v63, %v1954_v63 }
0x12c6   :  { %v1939_v2 = vpop.xlane.xlu1 %1938 }
0x12c7   :  { %v1941_v5 = vsub.f32 %v1928_v57, %v1939_v2 }
0x12c9   :  { %v1944_v6 = vmul.f32 1.442695, %v1941_v5 }
0x12ca   :  { %v1959_v3 = vpop.permute.xlu1 %1958 }
0x12cb   :  { %16022 = vpow2.f32 %v1944_v6  ;;  %v1964_v7 = vsel %vm333_vm4, %v1959_v3, 0  ;;  %v13378_v6 = vcombine.low %v16811_v4, %v16811_v4 }
0x12cc   :  { %14988 = vmatpush3.bf16.msra.mxu1 %v1964_v7 }
0x12cd   :  { %14999 = vmatprep.subr.bf16.mxu1 %v16328_v0  ;;  %v2328_v63 = vrot.slane %v13378_v6, 2 }
0x12ce   :  { %v2107_v8 = vpop.permute.xlu1 %2106 }
0x12cf   :  { %14990 = vmatmul.mubr.msk.bf16.vlgmr.msra.gmra.mxu1 %vm303_vm3, %v1956_v12  ;;  %v2112_v19 = vsel %vm207_vm2, %v2107_v8, 0  ;;  %v2333_v3 = vsel %vm654_vm5, %v2328_v63, 0 }
0x12d0   :  { %15001 = vmatprep.mubr.msk.bf16.mxu1 %vm16329_vm0, %v16328_v0  ;;  %15000 = vmatpush3.bf16.msra.mxu1 %v2059_v9 }
0x12d1   :  { %15011 = vmatprep.subr.bf16.mxu1 %v16328_v0 }
0x12d2   :  { %v2157_v21 = vpop.permute.xlu1 %2156 }
0x12d3   :  { %v2162_v29 = vsel %vm207_vm2, %v2157_v21, 0 }
0x12d6   :  { %v2155_v34 = vpop.permute.xlu1 %2154 }
0x12d8   :  { %v16023_v13 = vpop.eup %16022 }
0x12d9   :  { %v1949_v15 = vsel %vm303_vm3, %v16023_v13, 0.0 }
0x12da   :  { %1950 = vadd.xlane.f32.xlu0 %v1949_v15 }
0x12f0   :  { %2006 = vrot.lane.b32.xlu0 %v16475_v14, %s18153_s8  ;;  %s18162_s8 = smov 68  }
0x12f4   :  { %2104 = vrot.lane.b32.xlu0 %v16471_v10, %s18149_s29  ;;  %s18164_s29 = smov 36  }
0x1363   :  { %v1951_v16 = vpop.xlane.xlu0 %1950 }
0x1364   :  { %16024 = vrcp.f32 %v1951_v16 }
0x1367   :  { %v2007_v17 = vpop.permute.xlu0 %2006 }
0x1368   :  { %v2012_v18 = vsel %vm333_vm4, %v2007_v17, 0 }
0x1369   :  { %14994 = vmatpush3.bf16.msra.mxu0 %v2012_v18 }
0x136a   :  { %15005 = vmatprep.subr.bf16.mxu0 %v16328_v0 }
0x136b   :  { %v2105_v20 = vpop.permute.xlu0 %2104 }
0x1371   :  { %v16025_v56 = vpop.eup %16024 }
0x1372   :  { %v1955_v59 = vmul.f32 %v16025_v56, %v16023_v13 }
0x1374   :  { %v1957_v11 = vpack.c.bf16 %v1955_v59, %v1955_v59 }
0x1376   :  { %14996 = vmatmul.mubr.msk.bf16.vlgmr.msra.gmra.mxu0 %vm303_vm3, %v1957_v11 }
0x1377   :  { %15006 = vmatpush3.bf16.xpose.msra.mxu0 %v2112_v19  ;;  %15007 = vmatprep.mubr.msk.bf16.mxu0 %vm16329_vm0, %v16328_v0 }
0x1378   :  { %15017 = vmatprep.subr.bf16.mxu0 %v16328_v0 }
0x137e   :  { %15008 = vmatmul.mubr.msk.bf16.vlgmr.msra.gmra.mxu0 %vm207_vm2, %v2105_v20 }
0x137f   :  { %15019 = vmatprep.mubr.msk.bf16.mxu0 %vm16329_vm0, %v16328_v0 }
0x138f   :  { %v2000_v22 = vpop.f32.mrf.mxu1 }
0x1391   :  { %v14991_v23 = vpop.f32.mrf.mxu1 }
0x1393   :  { %v2003_v24 = vpop.f32.mrf.mxu1 }
0x1395   :  { %v14992_v25 = vpop.f32.mrf.mxu1 }
0x1436   :  { %v2048_v26 = vpop.f32.mrf.mxu0 }
0x1437   :  { %v2054_v27 = vpack.c.bf16 %v2048_v26, %v2000_v22  ;;  %v13380_v22 = vld [vmem:[%s18137_s4] ss:$0 sm:$0xff] }
0x1438   :  { %v14997_v28 = vpop.f32.mrf.mxu0  ;;  %v16186_v26 = vld [vmem:[%s18133_s0] sm:$0xff] }
0x1439   :  { %15002 = vmatmul.mubr.msk.bf16.vlgmr.msra.gmra.mxu1 %vm207_vm2, %v2054_v27 }
0x143a   :  { %15012 = vmatpush3.bf16.xpose.msra.mxu1 %v2162_v29  ;;  %v2051_v30 = vpop.f32.mrf.mxu0  ;;  %15013 = vmatprep.mubr.msk.bf16.mxu1 %vm16329_vm0, %v16328_v0 }
0x143b   :  { %15023 = vmatprep.subr.bf16.mxu1 %v16328_v0 }
0x143c   :  { %v14998_v31 = vpop.f32.mrf.mxu0 }
0x143e   :  { %v2148_v32 = vpop.f32.mrf.mxu0 }
0x143f   :  { %v2204_v33 = vsel %vm303_vm3, %v2148_v32, -inf }
0x1440   :  { %2205 = vmax.xlane.f32.xlu0 %v2204_v33  ;;  %v15009_v35 = vpop.f32.mrf.mxu0  ;;  %v16187_v33 = vld [vmem:[%s18133_s0 + $0x8] sm:$0xff]  ;;  %s18161_s0 = smov 40  }
0x1441   :  { %15014 = vmatmul.mubr.msk.bf16.vlgmr.msra.gmra.mxu1 %vm207_vm2, %v2155_v34 }
0x1442   :  { %v2151_v36 = vpop.f32.mrf.mxu0  ;;  %15025 = vmatprep.mubr.msk.bf16.mxu1 %vm16329_vm0, %v16328_v0 }
0x1444   :  { %v15010_v37 = vpop.f32.mrf.mxu0 }
0x14c9   :  { %v2206_v38 = vpop.xlane.xlu0 %2205 }
0x14ca   :  { %v2210_v39 = vsub.f32 %v2148_v32, %v2206_v38 }
0x14cc   :  { %v2212_v40 = vmul.f32 1.442695, %v2210_v39  ;;  %v2456_v39 = vld [vmem:[#allocation7 + $0x80] sm:$0xff] }
0x14ce   :  { %16026 = vpow2.f32 %v2212_v40  ;;  %v2464_v40 = vld [vmem:[#allocation7 + $0xc0] sm:$0xff] }
0x14db   :  { %v16027_v41 = vpop.eup %16026 }
0x14dc   :  { %v2216_v42 = vsel %vm303_vm3, %v16027_v41, 0.0 }
0x14dd   :  { %2217 = vadd.xlane.f32.xlu0 %v2216_v42  ;;  %v13400_v42 = vcombine.high %v2456_v39, %v2464_v40 }
0x14f9   :  { %v2095_v43 = vpop.f32.mrf.mxu1 }
0x14fa   :  { %v2102_v44 = vadd.f32 %v2095_v43, %v16787_v50  ;;  %v2465_v43 = vld [vmem:[#allocation7 + $0xc8] sm:$0xff] }
0x14fb   :  { %v15003_v45 = vpop.f32.mrf.mxu1 }
0x14fd   :  { %v2098_v46 = vpop.f32.mrf.mxu1 }
0x14fe   :  { %v2103_v47 = vadd.f32 %v2098_v46, %v16790_v53 }
0x14ff   :  { %v15004_v48 = vpop.f32.mrf.mxu1 }
0x1500   :  { %v2448_v48 = vld [vmem:[#allocation7 + $0x40] sm:$0xff] }
0x1501   :  { %v2198_v49 = vpop.f32.mrf.mxu1 }
0x1502   :  { %v2207_v51 = vsel %vm303_vm3, %v2198_v49, -inf }
0x1503   :  { %2208 = vmax.xlane.f32.xlu1 %v2207_v51  ;;  %v15015_v52 = vpop.f32.mrf.mxu1 }
0x1504   :  { %v2449_v52 = vld [vmem:[#allocation7 + $0x48] sm:$0xff] }
0x1505   :  { %v2201_v54 = vpop.f32.mrf.mxu1 }
0x1507   :  { %v15016_v57 = vpop.f32.mrf.mxu1 }
0x1514   :  { %2228 = vrot.lane.b32.xlu1 %v16471_v10, %s18147_s25 }
0x1566   :  { %v2218_v58 = vpop.xlane.xlu0 %2217 }
0x1567   :  { %16028 = vrcp.f32 %v2218_v58 }
0x1574   :  { %v16029_v61 = vpop.eup %16028 }
0x1575   :  { %v2224_v55 = vmul.f32 %v16029_v61, %v16027_v41  ;;  %v2457_v41 = vld [vmem:[#allocation7 + $0x88] sm:$0xff]  ;;  %v2458_v61 = vld [vmem:[#allocation7 + $0x90] sm:$0xff] }
0x1576   :  { %v13401_v45 = vcombine.low %v2457_v41, %v2465_v43  ;;  %v13402_v46 = vcombine.high %v2457_v41, %v2465_v43 }
0x1577   :  { %v2226_v2 = vpack.c.bf16 %v2224_v55, %v2224_v55 }
0x158c   :  { %v2209_v50 = vpop.xlane.xlu1 %2208 }
0x158d   :  { %v2211_v62 = vsub.f32 %v2198_v49, %v2209_v50  ;;  %v2441_v49 = vld [vmem:[#allocation7 + $0x8] sm:$0xff]  ;;  %v2466_v50 = vld [vmem:[#allocation7 + $0xd0] sm:$0xff] }
0x158e   :  { %v13385_v57 = vcombine.low %v2441_v49, %v2449_v52  ;;  %v13386_v58 = vcombine.high %v2441_v49, %v2449_v52  ;;  %v13404_v55 = vcombine.high %v2458_v61, %v2466_v50 }
0x158f   :  { %v2214_v1 = vmul.f32 1.442695, %v2211_v62  ;;  %v2459_v62 = vld [vmem:[#allocation7 + $0x98] sm:$0xff] }
0x1590   :  { %v2229_v53 = vpop.permute.xlu1 %2228 }
0x1591   :  { %16030 = vpow2.f32 %v2214_v1  ;;  %v2234_v60 = vsel %vm333_vm4, %v2229_v53, 0  ;;  %v16352_v1 = vmov 0   ;;  %v2467_v53 = vld [vmem:[#allocation7 + $0xd8] sm:$0xff] }
0x1592   :  { %15018 = vmatpush3.bf16.msra.mxu0 %v2234_v60  ;;  %v13403_v60 = vcombine.low %v2458_v61, %v2466_v50  ;;  %v2471_v61 = vld [vmem:[#allocation7 + $0xf8] sm:$0xff] }
0x1593   :  { %15029 = vmatprep.subr.bf16.mxu0 %v16328_v0 }
0x1595   :  { %15020 = vmatmul.mubr.msk.bf16.vlgmr.msra.gmra.mxu0 %vm303_vm3, %v2226_v2  ;;  %v13405_v2 = vcombine.low %v2459_v62, %v2467_v53 }
0x1596   :  { %15031 = vmatprep.mubr.msk.bf16.mxu0 %vm16329_vm0, %v16328_v0  ;;  %15030 = vmatpush3.bf16.msra.mxu0 %v2333_v3 }
0x1597   :  { %2774 = vmatprep.subr.bf16.mxu0 %v13402_v46  ;;  %v2445_v46 = vld [vmem:[#allocation7 + $0x28] sm:$0xff] }
0x159e   :  { %v16031_v10 = vpop.eup %16030 }
0x159f   :  { %v2219_v5 = vsel %vm303_vm3, %v16031_v10, 0.0 }
0x15a0   :  { %2220 = vadd.xlane.f32.xlu0 %v2219_v5 }
0x15b6   :  { %2276 = vrot.lane.b32.xlu0 %v16475_v14, %s18147_s25 }
0x1629   :  { %v2221_v7 = vpop.xlane.xlu0 %2220 }
0x162a   :  { %16032 = vrcp.f32 %v2221_v7 }
0x162d   :  { %v2277_v12 = vpop.permute.xlu0 %2276 }
0x162e   :  { %v2282_v13 = vsel %vm333_vm4, %v2277_v12, 0 }
0x162f   :  { %15024 = vmatpush3.bf16.msra.mxu1 %v2282_v13 }
0x1630   :  { %2731 = vmatprep.subr.bf16.mxu1 %v13400_v42 }
0x1637   :  { %v16033_v15 = vpop.eup %16032 }
0x1638   :  { %v2225_v9 = vmul.f32 %v16033_v15, %v16031_v10  ;;  %v13406_v10 = vcombine.high %v2459_v62, %v2467_v53 }
0x163a   :  { %v2227_v16 = vpack.c.bf16 %v2225_v9, %v2225_v9 }
0x163c   :  { %15026 = vmatmul.mubr.msk.bf16.vlgmr.msra.gmra.mxu1 %vm303_vm3, %v2227_v16 }
0x163d   :  { %2751 = vmatprep.mubr.bf16.mxu1 %v16352_v1 }
0x1655   :  { %v2270_v17 = vpop.f32.mrf.mxu0 }
0x1657   :  { %v15021_v14 = vpop.f32.mrf.mxu0 }
0x1659   :  { %v2273_v18 = vpop.f32.mrf.mxu0 }
0x165b   :  { %v15022_v56 = vpop.f32.mrf.mxu0 }
0x16fc   :  { %v2318_v4 = vpop.f32.mrf.mxu1 }
0x16fd   :  { %v2324_v59 = vpack.c.bf16 %v2318_v4, %v2270_v17 }
0x16fe   :  { %v15027_v8 = vpop.f32.mrf.mxu1 }
0x16ff   :  { %15032 = vmatmul.mubr.msk.bf16.vlgmr.msra.gmra.mxu0 %vm207_vm2, %v2324_v59 }
0x1700   :  { %v2321_v11 = vpop.f32.mrf.mxu1  ;;  %2775 = vmatpush1.bf16.msra.mxu0 %v13401_v45  ;;  %2794 = vmatprep.mubr.bf16.mxu0 %v16352_v1  ;;  %v2452_v45 = vld [vmem:[#allocation7 + $0x60] sm:$0xff] }
0x1701   :  { %2776 = vmatprep.subr.bf16.mxu0 %v13386_v58  ;;  %v2463_v58 = vld [vmem:[#allocation7 + $0xb8] sm:$0xff] }
0x1702   :  { %v15028_v19 = vpop.f32.mrf.mxu1  ;;  %v13414_v53 = vcombine.high %v2463_v58, %v2471_v61 }
0x1704   :  { %2777 = vmatpush1.bf16.msra.mxu0 %v13385_v57  ;;  %v2470_v57 = vld [vmem:[#allocation7 + $0xf0] sm:$0xff] }
0x1705   :  { %2860 = vmatprep.subr.bf16.mxu0 %v13406_v10  ;;  %v2447_v10 = vld [vmem:[#allocation7 + $0x38] sm:$0xff] }
0x17bf   :  { %v2369_v20 = vpop.f32.mrf.mxu0 }
0x17c0   :  { %v2376_v23 = vadd.f32 %v2369_v20, %v2102_v44  ;;  %v13399_v44 = vcombine.low %v2456_v39, %v2464_v40  ;;  %v13381_v20 = vld [vmem:[%s18138_s5] ss:$0 sm:$0xff]  ;;  %v2469_v39 = vld [vmem:[#allocation7 + $0xe8] sm:$0xff] }
0x17c1   :  { %v15033_v24 = vpop.f32.mrf.mxu0 }
0x17c2   :  { %v2385_v25 = vadd.f32 %v13380_v22, %v2376_v23  ;;  %2732 = vmatpush1.bf16.msra.mxu1 %v13399_v44  ;;  %v2444_v44 = vld [vmem:[#allocation7 + $0x20] sm:$0xff] }
0x17c3   :  { %v2372_v21 = vpop.f32.mrf.mxu0  ;;  %v13391_v50 = vcombine.low %v2444_v44, %v2452_v45 }
0x17c4   :  { %v16861_v27 = vadd.f32 %v16186_v26, %v2385_v25  ;;  %v2377_v28 = vadd.f32 %v2372_v21, %v2103_v47  ;;  %v2440_v47 = vld [vmem:[#allocation7] sm:$0xff]  ;;  %v13382_v21 = vld [vmem:[%s18139_s6] ss:$0 sm:$0xff] }
0x17c5   :  { %v15034_v29 = vpop.f32.mrf.mxu0  ;;  %v13384_v51 = vcombine.high %v2440_v47, %v2448_v48  ;;  %v13383_v54 = vcombine.low %v2440_v47, %v2448_v48  ;;  %v2453_v47 = vld [vmem:[#allocation7 + $0x68] sm:$0xff] }
0x17c6   :  { %v2386_v30 = vadd.f32 %v13380_v22, %v2377_v28  ;;  %v2391_v31 = vsel %vm157_vm1, %v16861_v27, 0.0  ;;  %v2399_v32 = vmul.f32 %v16861_v27, %v16861_v27  ;;  %v2442_v28 = vld [vmem:[#allocation7 + $0x10] sm:$0xff]  ;;  %v13394_v52 = vcombine.high %v2445_v46, %v2453_v47 }
0x17c7   :  { %2392 = vadd.xlane.f32.xlu1 %v2391_v31  ;;  %2733 = vmatprep.subr.bf16.mxu1 %v13384_v51  ;;  %v2450_v29 = vld [vmem:[#allocation7 + $0x50] sm:$0xff]  ;;  %v13392_v51 = vcombine.high %v2444_v44, %v2452_v45  ;;  %v13393_v62 = vcombine.low %v2445_v46, %v2453_v47  ;;  %v2476_v44 = vlaneseq }
0x17c8   :  { %v16870_v34 = vadd.f32 %v16187_v33, %v2386_v30  ;;  %v2401_v35 = vsel %vm157_vm1, %v2399_v32, 0.0  ;;  %2734 = vmatpush1.bf16.msra.mxu1 %v13383_v54  ;;  %v2443_v30 = vld [vmem:[#allocation7 + $0x18] sm:$0xff]  ;;  %v13387_v40 = vcombine.low %v2442_v28, %v2450_v29  ;;  %v2462_v54 = vld [vmem:[#allocation7 + $0xb0] sm:$0xff] }
0x17c9   :  { %2817 = vmatprep.subr.bf16.mxu1 %v13404_v55  ;;  %v13412_v55 = vcombine.high %v2462_v54, %v2470_v57  ;;  %v16918_v45 = vshrl.u32 %v2476_v44, 7  ;;  %v15613_v44 = vld [vmem:[#allocation10 + $0x1b0] sm:$0xff]  }
0x17ca   :  { %v2394_v36 = vsel %vm157_vm1, %v16870_v34, 0.0  ;;  %v2400_v37 = vmul.f32 %v16870_v34, %v16870_v34 }
0x17cb   :  { %2402 = vadd.xlane.f32.xlu1 %v2401_v35  ;;  %2395 = vadd.xlane.f32.xlu0 %v2394_v36  ;;  %v2460_v36 = vld [vmem:[#allocation7 + $0xa0] sm:$0xff]  ;;  %v16921_v46 = vsub.s32 1, %v16918_v45  ;;  %v16924_v47 = vsub.s32 3, %v16918_v45 }
0x17cc   :  { %v2404_v38 = vsel %vm157_vm1, %v2400_v37, 0.0  ;;  %v2468_v37 = vld [vmem:[#allocation7 + $0xe0] sm:$0xff] }
0x17cd   :  { %v13408_v42 = vcombine.high %v2460_v36, %v2468_v37  ;;  %v13407_v48 = vcombine.low %v2460_v36, %v2468_v37  ;;  %v15600_v36 = vld [vmem:[#allocation10 + $0x8] sm:$0xff]  }
0x17ce   :  { %v15601_v37 = vld [vmem:[#allocation10 + $0x88] sm:$0xff]  }
0x17cf   :  { %2405 = vadd.xlane.f32.xlu0 %v2404_v38  ;;  %v2461_v38 = vld [vmem:[#allocation7 + $0xa8] sm:$0xff] }
0x17d0   :  { %v13410_v43 = vcombine.high %v2461_v38, %v2469_v39  ;;  %v13409_v49 = vcombine.low %v2461_v38, %v2469_v39  ;;  %v15602_v38 = vld [vmem:[#allocation10 + $0x40] sm:$0xff]  }
0x17d1   :  { %v15603_v39 = vld [vmem:[#allocation10 + $0xc0] sm:$0xff]  }
0x1850   :  { %v2393_v5 = vpop.xlane.xlu1 %2392 }
0x1851   :  { %v2397_v6 = vmul.f32 0.03125, %v2393_v5  ;;  %v2455_v5 = vld [vmem:[#allocation7 + $0x78] sm:$0xff] }
0x1853   :  { %v2409_v7 = vmul.f32 %v2397_v6, %v2397_v6  ;;  %v2415_v8 = vsub.f32 %v16861_v27, %v2397_v6  ;;  %v2451_v27 = vld [vmem:[#allocation7 + $0x58] sm:$0xff]  ;;  %v13411_v6 = vcombine.low %v2462_v54, %v2470_v57 }
0x1854   :  { %v2403_v63 = vpop.xlane.xlu1 %2402  ;;  %v2396_v3 = vpop.xlane.xlu0 %2395  ;;  %v13390_v35 = vcombine.high %v2443_v30, %v2451_v27  ;;  %v13389_v41 = vcombine.low %v2443_v30, %v2451_v27  ;;  %v15595_v30 = vld [vmem:[#allocation10 + $0xd0] sm:$0xff]  }
0x1855   :  { %v2407_v12 = vmul.f32 0.03125, %v2403_v63  ;;  %v2398_v13 = vmul.f32 0.03125, %v2396_v3  ;;  %v13413_v63 = vcombine.low %v2463_v58, %v2471_v61  ;;  %v15596_v27 = vld [vmem:[#allocation10 + $0x10] sm:$0xff]  }
0x1857   :  { %v2411_v15 = vsub.f32 %v2407_v12, %v2409_v7  ;;  %v2410_v17 = vmul.f32 %v2398_v13, %v2398_v13  ;;  %v2416_v22 = vsub.f32 %v16870_v34, %v2398_v13  ;;  %v13388_v34 = vcombine.high %v2442_v28, %v2450_v29  ;;  %v15593_v28 = vld [vmem:[#allocation10 + $0x98] sm:$0xff]   ;;  %v15594_v29 = vld [vmem:[#allocation10 + $0x50] sm:$0xff]  }
0x1858   :  { %v2406_v9 = vpop.xlane.xlu0 %2405  ;;  %v13398_v7 = vcombine.high %v2447_v10, %v2455_v5  ;;  %v13397_v13 = vcombine.low %v2447_v10, %v2455_v5 }
0x1859   :  { %v2413_v16 = vmax.f32 %v2411_v15, 0.0  ;;  %v2408_v14 = vmul.f32 0.03125, %v2406_v9  ;;  %v15574_v15 = vld [vmem:[#allocation10 + $0x78] sm:$0xff]  }
0x185a   :  { %v15575_v9 = vld [vmem:[#allocation10 + $0xf8] sm:$0xff]  }
0x185b   :  { %v2417_v18 = vadd.f32 1e-05, %v2413_v16  ;;  %v2412_v56 = vsub.f32 %v2408_v14, %v2410_v17  ;;  %v15576_v16 = vld [vmem:[#allocation10 + $0x38] sm:$0xff]   ;;  %v15578_v14 = vld [vmem:[#allocation10 + $0x70] sm:$0xff]  }
0x185c   :  { %v15577_v17 = vld [vmem:[#allocation10 + $0xb8] sm:$0xff]  }
0x185d   :  { %16034 = vrsqrt.f32 %v2417_v18  ;;  %v2414_v4 = vmax.f32 %v2412_v56, 0.0  ;;  %v15579_v18 = vld [vmem:[#allocation10 + $0xf0] sm:$0xff]  }
0x185e   :  { %v15580_v56 = vld [vmem:[#allocation10 + $0x30] sm:$0xff]  }
0x185f   :  { %v2418_v59 = vadd.f32 1e-05, %v2414_v4  ;;  %v15581_v4 = vld [vmem:[#allocation10 + $0xb0] sm:$0xff]  }
0x1861   :  { %16036 = vrsqrt.f32 %v2418_v59  ;;  %v15582_v59 = vld [vmem:[#allocation10 + $0x68] sm:$0xff]  }
0x186a   :  { %v16035_v11 = vpop.eup %16034 }
0x186b   :  { %v2421_v19 = vmul.f32 %v16035_v11, %v2415_v8  ;;  %v15583_v8 = vld [vmem:[#allocation10 + $0xe8] sm:$0xff]  }
0x186c   :  { %v15584_v11 = vld [vmem:[#allocation10 + $0x28] sm:$0xff]  }
0x186d   :  { %v2429_v24 = vmul.f32 %v13381_v20, %v2421_v19  ;;  %v15585_v19 = vld [vmem:[#allocation10 + $0xa8] sm:$0xff]  }
0x186e   :  { %v16037_v23 = vpop.eup %16036 }
0x186f   :  { %v2422_v25 = vmul.f32 %v16037_v23, %v2416_v22  ;;  %v16888_v31 = vadd.f32 %v13382_v21, %v2429_v24  ;;  %v15587_v22 = vld [vmem:[#allocation10 + $0xe0] sm:$0xff]  }
0x1870   :  { %v15588_v23 = vld [vmem:[#allocation10 + $0x20] sm:$0xff]  }
0x1871   :  { %v2430_v26 = vmul.f32 %v13381_v20, %v2422_v25  ;;  %v15586_v20 = vld [vmem:[#allocation10 + $0x60] sm:$0xff]   ;;  %v15590_v25 = vld [vmem:[#allocation10 + $0x58] sm:$0xff]  }
0x1872   :  { %v15589_v24 = vld [vmem:[#allocation10 + $0xa0] sm:$0xff]  }
0x1873   :  { %v16890_v32 = vadd.f32 %v13382_v21, %v2430_v26  ;;  %v15591_v21 = vld [vmem:[#allocation10 + $0xd8] sm:$0xff]  }
0x1874   :  { %v15592_v26 = vld [vmem:[#allocation10 + $0x18] sm:$0xff]  }
0x1875   :  { %v16894_v33 = vpack.c.bf16 %v16890_v32, %v16888_v31 }
0x1877   :  { %13415 = vmatmul.mubr.msk.bf16.vlgmr.msra.gmra.mxu1 %vm157_vm1, %v16894_v33  ;;  %13416 = vmatmul.mubr.msk.bf16.vlgmr.msra.gmra.mxu0 %vm157_vm1, %v16894_v33 }
0x1878   :  { %2818 = vmatpush1.bf16.msra.mxu1 %v13403_v60  ;;  %2861 = vmatpush1.bf16.msra.mxu0 %v13405_v2  ;;  %v2446_v60 = vld [vmem:[#allocation7 + $0x30] sm:$0xff] }
0x1879   :  { %2819 = vmatprep.subr.bf16.mxu1 %v13388_v34  ;;  %2862 = vmatprep.subr.bf16.mxu0 %v13390_v35  ;;  %v2454_v2 = vld [vmem:[#allocation7 + $0x70] sm:$0xff]  ;;  %v15598_v34 = vld [vmem:[#allocation10 + $0x48] sm:$0xff]  }
0x187a   :  { %2837 = vmatprep.mubr.bf16.mxu1 %v16352_v1  ;;  %2880 = vmatprep.mubr.bf16.mxu0 %v16352_v1  ;;  %v13396_v3 = vcombine.high %v2446_v60, %v2454_v2  ;;  %v13395_v12 = vcombine.low %v2446_v60, %v2454_v2  ;;  %v15599_v35 = vld [vmem:[#allocation10 + $0xc8] sm:$0xff]   ;;  %v16943_v2 = vsub.s32 5, %v16918_v45 }
0x187c   :  { %2820 = vmatpush1.bf16.msra.mxu1 %v13387_v40  ;;  %2863 = vmatpush1.bf16.msra.mxu0 %v13389_v41  ;;  %v15604_v40 = vld [vmem:[#allocation10] sm:$0xff]  }
0x187d   :  { %2903 = vmatprep.subr.bf16.mxu1 %v13408_v42  ;;  %2946 = vmatprep.subr.bf16.mxu0 %v13410_v43  ;;  %v15605_v41 = vld [vmem:[#allocation10 + $0x80] sm:$0xff]   ;;  %v15606_v42 = vld [vmem:[#allocation10 + $0x178] sm:$0xff]  }
0x187e   :  { %v15607_v43 = vld [vmem:[#allocation10 + $0x1f8] sm:$0xff]  }
0x187f   :  { %13417 = vmatmul.mubr.msk.bf16.vlgmr.msra.gmra.mxu1 %vm157_vm1, %v16894_v33  ;;  %13418 = vmatmul.mubr.msk.bf16.vlgmr.msra.gmra.mxu0 %vm157_vm1, %v16894_v33 }
0x1880   :  { %2904 = vmatpush1.bf16.msra.mxu1 %v13407_v48  ;;  %2947 = vmatpush1.bf16.msra.mxu0 %v13409_v49  ;;  %v16927_v48 = vsub.s32 0, %v16918_v45  ;;  %v16930_v49 = vsub.s32 2, %v16918_v45 }
0x1881   :  { %2905 = vmatprep.subr.bf16.mxu1 %v13392_v51  ;;  %2948 = vmatprep.subr.bf16.mxu0 %v13394_v52  ;;  %v16932_v51 = vld [vmem:[#allocation9] sm:$0xff] }
0x1882   :  { %2923 = vmatprep.mubr.bf16.mxu1 %v16352_v1  ;;  %2966 = vmatprep.mubr.bf16.mxu0 %v16352_v1  ;;  %v2483_v57 = vrot.slane %v16932_v51, %v16921_v46  ;;  %v2491_v58 = vrot.slane %v16932_v51, %v16924_v47  ;;  %v2479_v61 = vrot.slane %v16932_v51, %v16927_v48 }
0x1884   :  { %2906 = vmatpush1.bf16.msra.mxu1 %v13391_v50  ;;  %2949 = vmatpush1.bf16.msra.mxu0 %v13393_v62  ;;  %v2487_v50 = vrot.slane %v16932_v51, %v16930_v49 }
0x1885   :  { %2989 = vmatprep.subr.bf16.mxu1 %v13412_v55  ;;  %3032 = vmatprep.subr.bf16.mxu0 %v13414_v53 }
0x1887   :  { %13419 = vmatmul.mubr.msk.bf16.vlgmr.msra.gmra.mxu1 %vm157_vm1, %v16894_v33  ;;  %13420 = vmatmul.mubr.msk.bf16.vlgmr.msra.gmra.mxu0 %vm157_vm1, %v16894_v33 }
0x1888   :  { %2990 = vmatpush1.bf16.msra.mxu1 %v13411_v6  ;;  %3033 = vmatpush1.bf16.msra.mxu0 %v13413_v63 }
0x1889   :  { %2991 = vmatprep.subr.bf16.mxu1 %v13396_v3  ;;  %3034 = vmatprep.subr.bf16.mxu0 %v13398_v7 }
0x188a   :  { %3009 = vmatprep.mubr.bf16.mxu1 %v16352_v1  ;;  %3052 = vmatprep.mubr.bf16.mxu0 %v16352_v1 }
0x188c   :  { %2992 = vmatpush1.bf16.msra.mxu1 %v13395_v12  ;;  %3035 = vmatpush1.bf16.msra.mxu0 %v13397_v13 }
0x188d   :  { %14093 = vmatprep.subr.bf16.mxu1 %v15574_v15  ;;  %14115 = vmatprep.subr.bf16.mxu0 %v15575_v9  ;;  %v16946_v15 = vsub.s32 7, %v16918_v45 }
0x188f   :  { %13421 = vmatmul.mubr.msk.bf16.vlgmr.msra.gmra.mxu1 %vm157_vm1, %v16894_v33  ;;  %13422 = vmatmul.mubr.msk.bf16.vlgmr.msra.gmra.mxu0 %vm157_vm1, %v16894_v33  ;;  %v15597_v33 = vld [vmem:[#allocation10 + $0x90] sm:$0xff]  }
0x1890   :  { %14094 = vmatpush3.bf16.msra.mxu1 %v15576_v16  ;;  %14116 = vmatpush3.bf16.msra.mxu0 %v15577_v17 }
0x1891   :  { %14095 = vmatprep.subr.bf16.mxu1 %v15578_v14  ;;  %14117 = vmatprep.subr.bf16.mxu0 %v15579_v18 }
0x1894   :  { %14096 = vmatpush3.bf16.msra.mxu1 %v15580_v56  ;;  %14118 = vmatpush3.bf16.msra.mxu0 %v15581_v4  ;;  %v2499_v4 = vrot.slane %v16932_v51, %v16943_v2 }
0x1895   :  { %14097 = vmatprep.subr.bf16.mxu1 %v15582_v59  ;;  %14119 = vmatprep.subr.bf16.mxu0 %v15583_v8 }
0x1898   :  { %14098 = vmatpush3.bf16.msra.mxu1 %v15584_v11  ;;  %14120 = vmatpush3.bf16.msra.mxu0 %v15585_v19 }
0x1899   :  { %14099 = vmatprep.subr.bf16.mxu1 %v15586_v20  ;;  %14121 = vmatprep.subr.bf16.mxu0 %v15587_v22 }
0x189c   :  { %14100 = vmatpush3.bf16.msra.mxu1 %v15588_v23  ;;  %14122 = vmatpush3.bf16.msra.mxu0 %v15589_v24  ;;  %v2507_v24 = vrot.slane %v16932_v51, %v16946_v15 }
0x189d   :  { %14101 = vmatprep.subr.bf16.mxu1 %v15590_v25  ;;  %14123 = vmatprep.subr.bf16.mxu0 %v15591_v21 }
0x18a0   :  { %14102 = vmatpush3.bf16.msra.mxu1 %v15592_v26  ;;  %14124 = vmatpush3.bf16.msra.mxu0 %v15593_v28  ;;  %v15608_v28 = vld [vmem:[#allocation10 + $0x138] sm:$0xff]  }
0x18a1   :  { %14103 = vmatprep.subr.bf16.mxu1 %v15594_v29  ;;  %14125 = vmatprep.subr.bf16.mxu0 %v15595_v30  ;;  %v15609_v29 = vld [vmem:[#allocation10 + $0x1b8] sm:$0xff]  }
0x18a4   :  { %14104 = vmatpush3.bf16.msra.mxu1 %v15596_v27  ;;  %14126 = vmatpush3.bf16.msra.mxu0 %v15597_v33 }
0x18a5   :  { %14105 = vmatprep.subr.bf16.mxu1 %v15598_v34  ;;  %14127 = vmatprep.subr.bf16.mxu0 %v15599_v35  ;;  %v15610_v35 = vld [vmem:[#allocation10 + $0x170] sm:$0xff]  }
0x18a8   :  { %14106 = vmatpush3.bf16.msra.mxu1 %v15600_v36  ;;  %14128 = vmatpush3.bf16.msra.mxu0 %v15601_v37  ;;  %v15611_v36 = vld [vmem:[#allocation10 + $0x1f0] sm:$0xff]  }
0x18a9   :  { %14107 = vmatprep.subr.bf16.mxu1 %v15602_v38  ;;  %14129 = vmatprep.subr.bf16.mxu0 %v15603_v39 }
0x18ac   :  { %14108 = vmatpush3.bf16.msra.mxu1 %v15604_v40  ;;  %14130 = vmatpush3.bf16.msra.mxu0 %v15605_v41 }
0x18ad   :  { %14137 = vmatprep.subr.bf16.mxu1 %v15606_v42  ;;  %14159 = vmatprep.subr.bf16.mxu0 %v15607_v43  ;;  %v15612_v43 = vld [vmem:[#allocation10 + $0x130] sm:$0xff]  }
0x1937   :  { %v2753_v52 = vpop.f32.mrf.mxu1  ;;  %v2796_v54 = vpop.f32.mrf.mxu0 }
0x1938   :  { %v2754_v3 = vadd.f32 %v2753_v52, %v2479_v61  ;;  %v2797_v7 = vadd.f32 %v2796_v54, %v2487_v50  ;;  %v15614_v52 = vld [vmem:[#allocation10 + $0x168] sm:$0xff]  }
0x1939   :  { %v2755_v62 = vpop.f32.mrf.mxu1  ;;  %v2798_v55 = vpop.f32.mrf.mxu0  ;;  %v15615_v54 = vld [vmem:[#allocation10 + $0x1e8] sm:$0xff]  }
0x193a   :  { %v2756_v10 = vadd.f32 %v2755_v62, %v2483_v57  ;;  %v2799_v5 = vadd.f32 %v2798_v55, %v2491_v58  ;;  %v3063_v20 = vmax.f32 %v2754_v3, 0.0  ;;  %v3065_v22 = vmax.f32 %v2797_v7, 0.0  ;;  %v15616_v55 = vld [vmem:[#allocation10 + $0x128] sm:$0xff]   ;;  %v15620_v3 = vld [vmem:[#allocation10 + $0x120] sm:$0xff]  }
0x193b   :  { %v2757_v53 = vpop.f32.mrf.mxu1  ;;  %v2800_v60 = vpop.f32.mrf.mxu0  ;;  %v15621_v7 = vld [vmem:[#allocation10 + $0x1a0] sm:$0xff]  }
0x193c   :  { %v2758_v6 = vadd.f32 %v2757_v53, %v2479_v61  ;;  %v2801_v63 = vadd.f32 %v2800_v60, %v2487_v50  ;;  %v3064_v59 = vmax.f32 %v2756_v10, 0.0  ;;  %v3066_v8 = vmax.f32 %v2799_v5, 0.0  ;;  %v15617_v53 = vld [vmem:[#allocation10 + $0x1a8] sm:$0xff]   ;;  %v15618_v10 = vld [vmem:[#allocation10 + $0x160] sm:$0xff]  }
0x193d   :  { %v2759_v12 = vpop.f32.mrf.mxu1  ;;  %v2802_v13 = vpop.f32.mrf.mxu0  ;;  %v15619_v5 = vld [vmem:[#allocation10 + $0x1e0] sm:$0xff]  }
0x193e   :  { %v2760_v9 = vadd.f32 %v2759_v12, %v2483_v57  ;;  %v2803_v16 = vadd.f32 %v2802_v13, %v2491_v58  ;;  %v3079_v17 = vmax.f32 %v2758_v6, 0.0  ;;  %v3081_v14 = vmax.f32 %v2801_v63, 0.0  ;;  %v15622_v12 = vld [vmem:[#allocation10 + $0x158] sm:$0xff]  }
0x193f   :  { %v16948_v18 = vpop.f32.mrf.mxu1  ;;  %v16950_v56 = vpop.f32.mrf.mxu0  ;;  %v15623_v13 = vld [vmem:[#allocation10 + $0x1d8] sm:$0xff]  }
0x1940   :  { %v3080_v11 = vmax.f32 %v2760_v9, 0.0  ;;  %v3082_v19 = vmax.f32 %v2803_v16, 0.0  ;;  %v3095_v30 = vpack.c.bf16 %v3079_v17, %v3063_v20  ;;  %v3097_v27 = vpack.c.bf16 %v3081_v14, %v3065_v22  ;;  %v15624_v17 = vld [vmem:[#allocation10 + $0x118] sm:$0xff]   ;;  %v15628_v22 = vld [vmem:[#allocation10 + $0x110] sm:$0xff]  }
0x1941   :  { %v2841_v23 = vpop.f32.mrf.mxu1  ;;  %v2884_v25 = vpop.f32.mrf.mxu0  ;;  %v15625_v14 = vld [vmem:[#allocation10 + $0x198] sm:$0xff]  }
0x1942   :  { %v3096_v21 = vpack.c.bf16 %v3080_v11, %v3064_v59  ;;  %v3098_v26 = vpack.c.bf16 %v3082_v19, %v3066_v8  ;;  %v2842_v37 = vadd.f32 %v2841_v23, %v2499_v4  ;;  %v2885_v38 = vadd.f32 %v2884_v25, %v2507_v24  ;;  %v15627_v59 = vld [vmem:[#allocation10 + $0x1d0] sm:$0xff]   ;;  %v15631_v25 = vld [vmem:[#allocation10 + $0x1c8] sm:$0xff]  }
0x1943   :  { %v16956_v33 = vpop.f32.mrf.mxu1  ;;  %v16958_v34 = vpop.f32.mrf.mxu0  ;;  %v16965_v8 = vsub.s32 4, %v16918_v45  ;;  %v16968_v11 = vsub.s32 6, %v16918_v45  ;;  %v15629_v23 = vld [vmem:[#allocation10 + $0x190] sm:$0xff]   ;;  %v16978_v45 = vld [vmem:[#allocation9 + $0x8] sm:$0xff] }
0x1944   :  { %4174 = vmatprep.mubr.bf16.mxu1 %v3096_v21  ;;  %4215 = vmatprep.mubr.bf16.mxu0 %v3098_v26  ;;  %v3068_v57 = vmax.f32 %v2842_v37, 0.0  ;;  %v3070_v50 = vmax.f32 %v2885_v38, 0.0  ;;  %v2523_v38 = vrot.slane %v16978_v45, %v16924_v47 }
0x1945   :  { %v2845_v39 = vpop.f32.mrf.mxu1  ;;  %v2888_v40 = vpop.f32.mrf.mxu0  ;;  %4175 = vmatmul.mubr.bf16.vlgmr.msra.gmra.mxu1 %v3095_v30  ;;  %4216 = vmatmul.mubr.bf16.vlgmr.msra.gmra.mxu0 %v3097_v27  ;;  %v2495_v21 = vrot.slane %v16932_v51, %v16965_v8  ;;  %v2503_v26 = vrot.slane %v16932_v51, %v16968_v11  ;;  %v15632_v27 = vld [vmem:[#allocation10 + $0x108] sm:$0xff]   ;;  %v15634_v51 = vld [vmem:[#allocation10 + $0x140] sm:$0xff]  }
0x1946   :  { %v2846_v41 = vadd.f32 %v2845_v39, %v2499_v4  ;;  %v2889_v42 = vadd.f32 %v2888_v40, %v2507_v24  ;;  %14138 = vmatpush3.bf16.msra.mxu1 %v15608_v28  ;;  %14160 = vmatpush3.bf16.msra.mxu0 %v15609_v29  ;;  %v15626_v4 = vld [vmem:[#allocation10 + $0x150] sm:$0xff]   ;;  %v15630_v24 = vld [vmem:[#allocation10 + $0x148] sm:$0xff]   ;;  %v2515_v29 = vrot.slane %v16978_v45, %v16921_v46  ;;  %v15635_v39 = vld [vmem:[#allocation10 + $0x1c0] sm:$0xff]  }
0x1947   :  { %14139 = vmatprep.subr.bf16.mxu1 %v15610_v35  ;;  %14161 = vmatprep.subr.bf16.mxu0 %v15611_v36  ;;  %v16960_v6 = vpop.f32.mrf.mxu1  ;;  %v16962_v63 = vpop.f32.mrf.mxu0  ;;  %v15633_v35 = vld [vmem:[#allocation10 + $0x188] sm:$0xff]   ;;  %v2844_v36 = vadd.f32 %v16956_v33, %v2495_v21  ;;  %v2887_v37 = vadd.f32 %v16958_v34, %v2503_v26  ;;  %v15637_v33 = vld [vmem:[#allocation10 + $0x180] sm:$0xff]  }
0x1948   :  { %v3084_v58 = vmax.f32 %v2846_v41, 0.0  ;;  %v3086_v61 = vmax.f32 %v2889_v42, 0.0  ;;  %v2840_v41 = vadd.f32 %v16948_v18, %v2495_v21  ;;  %v2883_v42 = vadd.f32 %v16950_v56, %v2503_v26  ;;  %v15640_v56 = vld [vmem:[#allocation10 + $0x238] sm:$0xff]   ;;  %v15652_v21 = vld [vmem:[#allocation10 + $0x220] sm:$0xff]  }
0x1949   :  { %v2927_v9 = vpop.f32.mrf.mxu1  ;;  %v2970_v16 = vpop.f32.mrf.mxu0  ;;  %v3085_v34 = vmax.f32 %v2887_v37, 0.0  ;;  %v15657_v37 = vld [vmem:[#allocation10 + $0x298] sm:$0xff]  }
0x194a   :  { %14140 = vmatpush3.bf16.msra.mxu1 %v15612_v43  ;;  %14162 = vmatpush3.bf16.msra.mxu0 %v15613_v44  ;;  %v3100_v62 = vpack.c.bf16 %v3084_v58, %v3068_v57  ;;  %v3102_v60 = vpack.c.bf16 %v3086_v61, %v3070_v50  ;;  %v2928_v44 = vadd.f32 %v2927_v9, %v2515_v29  ;;  %v15638_v58 = vld [vmem:[#allocation10 + $0x278] sm:$0xff]  }
0x194b   :  { %14141 = vmatprep.subr.bf16.mxu1 %v15614_v52  ;;  %14163 = vmatprep.subr.bf16.mxu0 %v15615_v54  ;;  %v16970_v19 = vpop.f32.mrf.mxu1  ;;  %v16972_v20 = vpop.f32.mrf.mxu0  ;;  %v15636_v52 = vld [vmem:[#allocation10 + $0x100] sm:$0xff]   ;;  %v3083_v54 = vmax.f32 %v2844_v36, 0.0  ;;  %v2971_v57 = vadd.f32 %v2970_v16, %v2523_v38  ;;  %v15639_v61 = vld [vmem:[#allocation10 + $0x2f8] sm:$0xff]   ;;  %v15644_v16 = vld [vmem:[#allocation10 + $0x230] sm:$0xff]  }
0x194c   :  { %4256 = vmatprep.mubr.bf16.mxu1 %v3100_v62  ;;  %4297 = vmatprep.mubr.bf16.mxu0 %v3102_v60  ;;  %v3067_v62 = vmax.f32 %v2840_v41, 0.0  ;;  %v3072_v18 = vmax.f32 %v2928_v44, 0.0  ;;  %v15663_v44 = vld [vmem:[#allocation10 + $0x2c8] sm:$0xff]  }
0x194d   :  { %v2931_v28 = vpop.f32.mrf.mxu1  ;;  %v2974_v30 = vpop.f32.mrf.mxu0 }
0x194e   :  { %14142 = vmatpush3.bf16.msra.mxu1 %v15616_v55  ;;  %14164 = vmatpush3.bf16.msra.mxu0 %v15617_v53  ;;  %v2932_v40 = vadd.f32 %v2931_v28, %v2515_v29  ;;  %v2975_v43 = vadd.f32 %v2974_v30, %v2523_v38  ;;  %v3069_v55 = vmax.f32 %v2883_v42, 0.0  ;;  %v3099_v60 = vpack.c.bf16 %v3083_v54, %v3067_v62  ;;  %v15653_v28 = vld [vmem:[#allocation10 + $0x2a0] sm:$0xff]   ;;  %v15654_v29 = vld [vmem:[#allocation10 + $0x258] sm:$0xff]   ;;  %v15658_v38 = vld [vmem:[#allocation10 + $0x250] sm:$0xff]  }
0x194f   :  { %14143 = vmatprep.subr.bf16.mxu1 %v15618_v10  ;;  %14165 = vmatprep.subr.bf16.mxu0 %v15619_v5  ;;  %v3074_v5 = vmax.f32 %v2971_v57, 0.0  ;;  %v16990_v26 = vpop.f32.mrf.mxu0  ;;  %v15655_v30 = vld [vmem:[#allocation10 + $0x2d8] sm:$0xff]   ;;  %v15661_v42 = vld [vmem:[#allocation10 + $0x290] sm:$0xff]   ;;  %v15666_v62 = vld [vmem:[#allocation10 + $0x240] sm:$0xff]  }
0x1950   :  { %v3088_v50 = vmax.f32 %v2932_v40, 0.0  ;;  %v3090_v53 = vmax.f32 %v2975_v43, 0.0  ;;  %v3101_v10 = vpack.c.bf16 %v3085_v34, %v3069_v55  ;;  %v15660_v40 = vld [vmem:[#allocation10 + $0x210] sm:$0xff]   ;;  %v15662_v43 = vld [vmem:[#allocation10 + $0x248] sm:$0xff]  }
0x1951   :  { %v3056_v36 = vpop.f32.mrf.mxu0  ;;  %v15664_v34 = vld [vmem:[#allocation10 + $0x208] sm:$0xff]  }
0x1952   :  { %14144 = vmatpush3.bf16.msra.mxu1 %v15620_v3  ;;  %14166 = vmatpush3.bf16.msra.mxu0 %v15621_v7  ;;  %v15641_v3 = vld [vmem:[#allocation10 + $0x2b8] sm:$0xff]   ;;  %v3104_v7 = vpack.c.bf16 %v3088_v50, %v3072_v18  ;;  %v3106_v9 = vpack.c.bf16 %v3090_v53, %v3074_v5  ;;  %v15665_v50 = vld [vmem:[#allocation10 + $0x288] sm:$0xff]   ;;  %v2539_v53 = vrot.slane %v16978_v45, %v16946_v15  ;;  %v15667_v18 = vld [vmem:[#allocation10 + $0x2c0] sm:$0xff]  }
0x1953   :  { %14145 = vmatprep.subr.bf16.mxu1 %v15622_v12  ;;  %14167 = vmatprep.subr.bf16.mxu0 %v15623_v13  ;;  %v15642_v12 = vld [vmem:[#allocation10 + $0x270] sm:$0xff]   ;;  %v16994_v41 = vpop.f32.mrf.mxu0  ;;  %v15668_v5 = vld [vmem:[#allocation10 + $0x200] sm:$0xff]  }
0x1954   :  { %v15643_v13 = vld [vmem:[#allocation10 + $0x2f0] sm:$0xff]  }
0x1956   :  { %14146 = vmatpush3.bf16.msra.mxu1 %v15624_v17  ;;  %14168 = vmatpush3.bf16.msra.mxu0 %v15625_v14  ;;  %v15645_v17 = vld [vmem:[#allocation10 + $0x2b0] sm:$0xff]   ;;  %v15646_v14 = vld [vmem:[#allocation10 + $0x268] sm:$0xff]  }
0x1957   :  { %14147 = vmatprep.subr.bf16.mxu1 %v15626_v4  ;;  %14169 = vmatprep.subr.bf16.mxu0 %v15627_v59  ;;  %v15647_v4 = vld [vmem:[#allocation10 + $0x2e8] sm:$0xff]  }
0x1958   :  { %v15648_v59 = vld [vmem:[#allocation10 + $0x228] sm:$0xff]  }
0x195a   :  { %14148 = vmatpush3.bf16.msra.mxu1 %v15628_v22  ;;  %14170 = vmatpush3.bf16.msra.mxu0 %v15629_v23  ;;  %v15649_v22 = vld [vmem:[#allocation10 + $0x2a8] sm:$0xff]   ;;  %v15650_v23 = vld [vmem:[#allocation10 + $0x260] sm:$0xff]  }
0x195b   :  { %14149 = vmatprep.subr.bf16.mxu1 %v15630_v24  ;;  %14171 = vmatprep.subr.bf16.mxu0 %v15631_v25  ;;  %v15651_v24 = vld [vmem:[#allocation10 + $0x2e0] sm:$0xff]   ;;  %v16988_v25 = vpop.f32.mrf.mxu1 }
0x195e   :  { %14150 = vmatpush3.bf16.msra.mxu1 %v15632_v27  ;;  %14172 = vmatpush3.bf16.msra.mxu0 %v15633_v35  ;;  %v3013_v27 = vpop.f32.mrf.mxu1  ;;  %v15656_v35 = vld [vmem:[#allocation10 + $0x218] sm:$0xff]  }
0x195f   :  { %14151 = vmatprep.subr.bf16.mxu1 %v15634_v51  ;;  %14173 = vmatprep.subr.bf16.mxu0 %v15635_v39  ;;  %v15659_v51 = vld [vmem:[#allocation10 + $0x2d0] sm:$0xff]  }
0x1960   :  { %v16992_v39 = vpop.f32.mrf.mxu1 }
0x1962   :  { %14152 = vmatpush3.bf16.msra.mxu1 %v15636_v52  ;;  %14174 = vmatpush3.bf16.msra.mxu0 %v15637_v33  ;;  %v2511_v52 = vrot.slane %v16978_v45, %v16927_v48  ;;  %v2519_v33 = vrot.slane %v16978_v45, %v16930_v49  ;;  %v3017_v54 = vpop.f32.mrf.mxu1 }
0x1963   :  { %14181 = vmatprep.subr.bf16.mxu1 %v15638_v58  ;;  %14203 = vmatprep.subr.bf16.mxu0 %v15639_v61  ;;  %v2531_v58 = vrot.slane %v16978_v45, %v16943_v2  ;;  %v3060_v61 = vpop.f32.mrf.mxu0 }
0x1964   :  { %v2930_v57 = vadd.f32 %v16970_v19, %v2511_v52  ;;  %v2973_v55 = vadd.f32 %v16972_v20, %v2519_v33  ;;  %v2969_v19 = vadd.f32 %v16962_v63, %v2519_v33  ;;  %v15686_v33 = vld [vmem:[#allocation10 + $0x358] sm:$0xff]  }
0x1965   :  { %4257 = vmatmul.mubr.bf16.vlgmr.msra.gmra.mxu1 %v3099_v60  ;;  %4298 = vmatmul.mubr.bf16.vlgmr.msra.gmra.mxu0 %v3101_v10  ;;  %v3018_v60 = vadd.f32 %v3017_v54, %v2531_v58  ;;  %v3061_v10 = vadd.f32 %v3060_v61, %v2539_v53  ;;  %v15687_v54 = vld [vmem:[#allocation10 + $0x3d8] sm:$0xff]   ;;  %v15691_v61 = vld [vmem:[#allocation10 + $0x3d0] sm:$0xff]  }
0x1966   :  { %14182 = vmatpush3.bf16.msra.mxu1 %v15640_v56  ;;  %4338 = vmatprep.mubr.bf16.mxu1 %v3104_v7  ;;  %v2926_v56 = vadd.f32 %v16960_v6, %v2511_v52  ;;  %v3014_v7 = vadd.f32 %v3013_v27, %v2531_v58  ;;  %v3089_v20 = vmax.f32 %v2973_v55, 0.0  ;;  %v15685_v52 = vld [vmem:[#allocation10 + $0x3a0] sm:$0xff]   ;;  %v15690_v58 = vld [vmem:[#allocation10 + $0x350] sm:$0xff]   ;;  %v15694_v55 = vld [vmem:[#allocation10 + $0x348] sm:$0xff]  }
0x1967   :  { %14204 = vmatpush3.bf16.msra.mxu0 %v15641_v3  ;;  %4379 = vmatprep.mubr.bf16.mxu0 %v3106_v9  ;;  %v3087_v3 = vmax.f32 %v2930_v57, 0.0  ;;  %v3057_v9 = vadd.f32 %v3056_v36, %v2539_v53  ;;  %v3094_v6 = vmax.f32 %v3061_v10, 0.0  ;;  %v15677_v36 = vld [vmem:[#allocation10 + $0x3b0] sm:$0xff]   ;;  %v15689_v57 = vld [vmem:[#allocation10 + $0x398] sm:$0xff]   ;;  %v15695_v53 = vld [vmem:[#allocation10 + $0x3c8] sm:$0xff]  }
0x1968   :  { %14183 = vmatprep.subr.bf16.mxu1 %v15642_v12  ;;  %14205 = vmatprep.subr.bf16.mxu0 %v15643_v13  ;;  %v15669_v12 = vld [vmem:[#allocation10 + $0x280] sm:$0xff]   ;;  %v15670_v13 = vld [vmem:[#allocation10 + $0x378] sm:$0xff]   ;;  %v15697_v10 = vld [vmem:[#allocation10 + $0x388] sm:$0xff]  }
0x196a   :  { %14184 = vmatpush3.bf16.msra.mxu1 %v15644_v16  ;;  %v15671_v16 = vld [vmem:[#allocation10 + $0x3f8] sm:$0xff]  }
0x196b   :  { %14206 = vmatpush3.bf16.msra.mxu0 %v15645_v17  ;;  %14185 = vmatprep.subr.bf16.mxu1 %v15646_v14  ;;  %v3071_v17 = vmax.f32 %v2926_v56, 0.0  ;;  %v3092_v14 = vmax.f32 %v3018_v60, 0.0  ;;  %v2535_v56 = vrot.slane %v16978_v45, %v16968_v11  ;;  %v15696_v60 = vld [vmem:[#allocation10 + $0x308] sm:$0xff]  }
0x196c   :  { %14207 = vmatprep.subr.bf16.mxu0 %v15647_v4  ;;  %v3073_v4 = vmax.f32 %v2969_v19, 0.0 }
0x196d   :  { %v3103_v63 = vpack.c.bf16 %v3087_v3, %v3071_v17  ;;  %v3059_v3 = vadd.f32 %v16994_v41, %v2535_v56 }
0x196e   :  { %14186 = vmatpush3.bf16.msra.mxu1 %v15648_v59  ;;  %v15672_v59 = vld [vmem:[#allocation10 + $0x338] sm:$0xff]  }
0x196f   :  { %14208 = vmatpush3.bf16.msra.mxu0 %v15649_v22  ;;  %14187 = vmatprep.subr.bf16.mxu1 %v15650_v23  ;;  %v3076_v22 = vmax.f32 %v3014_v7, 0.0  ;;  %v15673_v23 = vld [vmem:[#allocation10 + $0x3b8] sm:$0xff]   ;;  %v15699_v7 = vld [vmem:[#allocation10 + $0x3c0] sm:$0xff]  }
0x1970   :  { %14209 = vmatprep.subr.bf16.mxu0 %v15651_v24  ;;  %v3105_v24 = vpack.c.bf16 %v3089_v20, %v3073_v4  ;;  %v15700_v20 = vld [vmem:[#allocation10 + $0x300] sm:$0xff]  }
0x1972   :  { %14188 = vmatpush3.bf16.msra.mxu1 %v15652_v21  ;;  %v3078_v21 = vmax.f32 %v3057_v9, 0.0 }
0x1973   :  { %14210 = vmatpush3.bf16.msra.mxu0 %v15653_v28  ;;  %14189 = vmatprep.subr.bf16.mxu1 %v15654_v29  ;;  %v15674_v28 = vld [vmem:[#allocation10 + $0x370] sm:$0xff]   ;;  %v3108_v29 = vpack.c.bf16 %v3092_v14, %v3076_v22 }
0x1974   :  { %14211 = vmatprep.subr.bf16.mxu0 %v15655_v30  ;;  %v15675_v30 = vld [vmem:[#allocation10 + $0x3f0] sm:$0xff]   ;;  %v3110_v27 = vpack.c.bf16 %v3094_v6, %v3078_v21 }
0x1976   :  { %14190 = vmatpush3.bf16.msra.mxu1 %v15656_v35  ;;  %v15676_v35 = vld [vmem:[#allocation10 + $0x330] sm:$0xff]  }
0x1977   :  { %14212 = vmatpush3.bf16.msra.mxu0 %v15657_v37  ;;  %14191 = vmatprep.subr.bf16.mxu1 %v15658_v38  ;;  %v15678_v37 = vld [vmem:[#allocation10 + $0x368] sm:$0xff]  }
0x1978   :  { %14213 = vmatprep.subr.bf16.mxu0 %v15659_v51  ;;  %v15679_v38 = vld [vmem:[#allocation10 + $0x3e8] sm:$0xff]  }
0x1979   :  { %v15680_v51 = vld [vmem:[#allocation10 + $0x328] sm:$0xff]  }
0x197a   :  { %14192 = vmatpush3.bf16.msra.mxu1 %v15660_v40  ;;  %v15681_v40 = vld [vmem:[#allocation10 + $0x3a8] sm:$0xff]  }
0x197b   :  { %14214 = vmatpush3.bf16.msra.mxu0 %v15661_v42  ;;  %14193 = vmatprep.subr.bf16.mxu1 %v15662_v43  ;;  %v15682_v42 = vld [vmem:[#allocation10 + $0x360] sm:$0xff]  }
0x197c   :  { %14215 = vmatprep.subr.bf16.mxu0 %v15663_v44  ;;  %v15683_v43 = vld [vmem:[#allocation10 + $0x3e0] sm:$0xff]  }
0x197d   :  { %v15684_v44 = vld [vmem:[#allocation10 + $0x320] sm:$0xff]  }
0x197e   :  { %14194 = vmatpush3.bf16.msra.mxu1 %v15664_v34  ;;  %v15688_v34 = vld [vmem:[#allocation10 + $0x318] sm:$0xff]  }
0x197f   :  { %14216 = vmatpush3.bf16.msra.mxu0 %v15665_v50  ;;  %14195 = vmatprep.subr.bf16.mxu1 %v15666_v62  ;;  %v15692_v50 = vld [vmem:[#allocation10 + $0x310] sm:$0xff]  }
0x1980   :  { %14217 = vmatprep.subr.bf16.mxu0 %v15667_v18  ;;  %v15693_v62 = vld [vmem:[#allocation10 + $0x390] sm:$0xff]   ;;  %v2527_v18 = vrot.slane %v16978_v45, %v16965_v8  ;;  %v15701_v45 = vld [vmem:[#allocation10 + $0x380] sm:$0xff]  }
0x1982   :  { %14196 = vmatpush3.bf16.msra.mxu1 %v15668_v5  ;;  %v3016_v19 = vadd.f32 %v16992_v39, %v2527_v18  ;;  %v15698_v5 = vld [vmem:[#allocation10 + $0x340] sm:$0xff]  }
0x1983   :  { %14218 = vmatpush3.bf16.msra.mxu0 %v15669_v12  ;;  %14225 = vmatprep.subr.bf16.mxu1 %v15670_v13  ;;  %v3012_v12 = vadd.f32 %v16988_v25, %v2527_v18  ;;  %v3055_v13 = vadd.f32 %v16990_v26, %v2535_v56 }
0x1984   :  { %14247 = vmatprep.subr.bf16.mxu0 %v15671_v16  ;;  %v3091_v9 = vmax.f32 %v3016_v19, 0.0  ;;  %v3093_v16 = vmax.f32 %v3059_v3, 0.0 }
0x1985   :  { %4339 = vmatmul.mubr.bf16.vlgmr.msra.gmra.mxu1 %v3103_v63  ;;  %v3075_v39 = vmax.f32 %v3012_v12, 0.0  ;;  %v3077_v17 = vmax.f32 %v3055_v13, 0.0 }
0x1986   :  { %4380 = vmatmul.mubr.bf16.vlgmr.msra.gmra.mxu0 %v3105_v24  ;;  %14226 = vmatpush3.bf16.msra.mxu1 %v15672_v59 }
0x1987   :  { %4420 = vmatprep.mubr.bf16.mxu1 %v3108_v29  ;;  %14248 = vmatpush3.bf16.msra.mxu0 %v15673_v23  ;;  %v3107_v14 = vpack.c.bf16 %v3091_v9, %v3075_v39  ;;  %v3109_v41 = vpack.c.bf16 %v3093_v16, %v3077_v17 }
0x1988   :  { %4461 = vmatprep.mubr.bf16.mxu0 %v3110_v27  ;;  %14227 = vmatprep.subr.bf16.mxu1 %v15674_v28 }
0x1989   :  { %14249 = vmatprep.subr.bf16.mxu0 %v15675_v30 }
0x198a   :  { %14228 = vmatpush3.bf16.msra.mxu1 %v15676_v35 }
0x198b   :  { %14250 = vmatpush3.bf16.msra.mxu0 %v15677_v36  ;;  %14229 = vmatprep.subr.bf16.mxu1 %v15678_v37  ;;  %v13423_v37 = vld [vmem:[%s18143_s10] ss:$0 sm:$0xff] }
0x198c   :  { %14251 = vmatprep.subr.bf16.mxu0 %v15679_v38 }
0x198e   :  { %14230 = vmatpush3.bf16.msra.mxu1 %v15680_v51 }
0x198f   :  { %14252 = vmatpush3.bf16.msra.mxu0 %v15681_v40  ;;  %14231 = vmatprep.subr.bf16.mxu1 %v15682_v42 }
0x1990   :  { %14253 = vmatprep.subr.bf16.mxu0 %v15683_v43 }
0x1992   :  { %14232 = vmatpush3.bf16.msra.mxu1 %v15684_v44 }
0x1993   :  { %14254 = vmatpush3.bf16.msra.mxu0 %v15685_v52  ;;  %14233 = vmatprep.subr.bf16.mxu1 %v15686_v33 }
0x1994   :  { %14255 = vmatprep.subr.bf16.mxu0 %v15687_v54 }
0x1996   :  { %14234 = vmatpush3.bf16.msra.mxu1 %v15688_v34 }
0x1997   :  { %14256 = vmatpush3.bf16.msra.mxu0 %v15689_v57  ;;  %14235 = vmatprep.subr.bf16.mxu1 %v15690_v58 }
0x1998   :  { %14257 = vmatprep.subr.bf16.mxu0 %v15691_v61 }
0x199a   :  { %14236 = vmatpush3.bf16.msra.mxu1 %v15692_v50 }
0x199b   :  { %14258 = vmatpush3.bf16.msra.mxu0 %v15693_v62  ;;  %14237 = vmatprep.subr.bf16.mxu1 %v15694_v55 }
0x199c   :  { %14259 = vmatprep.subr.bf16.mxu0 %v15695_v53 }
0x199e   :  { %14238 = vmatpush3.bf16.msra.mxu1 %v15696_v60 }
0x199f   :  { %14260 = vmatpush3.bf16.msra.mxu0 %v15697_v10  ;;  %14239 = vmatprep.subr.bf16.mxu1 %v15698_v5 }
0x19a0   :  { %14261 = vmatprep.subr.bf16.mxu0 %v15699_v7 }
0x19a2   :  { %14240 = vmatpush3.bf16.msra.mxu1 %v15700_v20 }
0x19a3   :  { %14262 = vmatpush3.bf16.msra.mxu0 %v15701_v45  ;;  %15035 = vmatprep.subr.bf16.mxu1 %v16328_v0 }
0x19a4   :  { %15043 = vmatprep.subr.bf16.mxu0 %v16328_v0 }
0x19a5   :  { %4421 = vmatmul.mubr.bf16.vlgmr.msra.gmra.mxu1 %v3107_v14 }
0x19a6   :  { %4462 = vmatmul.mubr.bf16.vlgmr.msra.gmra.mxu0 %v3109_v41  ;;  %15039 = vmatprep.mubr.msk.bf16.mxu1 %vm16329_vm0, %v16328_v0 }
0x19a7   :  { %15045 = vmatprep.mubr.msk.bf16.mxu0 %vm16329_vm0, %v16328_v0 }
0x1a05   :  { %v14109_v25 = vpop.f32.mrf.mxu1  ;;  %v14131_v26 = vpop.f32.mrf.mxu0 }
0x1a07   :  { %v14110_v4 = vpop.f32.mrf.mxu1  ;;  %v14132_v6 = vpop.f32.mrf.mxu0 }
0x1a08   :  { %v14111_v36 = vadd.f32 %v14110_v4, %v14109_v25  ;;  %v14133_v52 = vadd.f32 %v14132_v6, %v14131_v26 }
0x1a09   :  { %v14112_v59 = vpop.f32.mrf.mxu1  ;;  %v14134_v63 = vpop.f32.mrf.mxu0 }
0x1a0a   :  { %v4177_v40 = vadd.f32 %v14111_v36, %v13423_v37 }
0x1a0b   :  { %v14113_v22 = vpop.f32.mrf.mxu1  ;;  %v14135_v24 = vpop.f32.mrf.mxu0 }
0x1a0c   :  { %v14114_v42 = vadd.f32 %v14113_v22, %v14112_v59  ;;  %v4218_v54 = vadd.f32 %v14133_v52, %v4177_v40  ;;  %v14136_v61 = vadd.f32 %v14135_v24, %v14134_v63 }
0x1a0e   :  { %v4180_v34 = vadd.f32 %v14114_v42, %v13423_v37 }
0x1a10   :  { %v4221_v55 = vadd.f32 %v14136_v61, %v4180_v34 }
0x1a25   :  { %v14153_v23 = vpop.f32.mrf.mxu1  ;;  %v14175_v21 = vpop.f32.mrf.mxu0 }
0x1a27   :  { %v14154_v28 = vpop.f32.mrf.mxu1  ;;  %v14176_v29 = vpop.f32.mrf.mxu0 }
0x1a28   :  { %v14155_v33 = vadd.f32 %v14154_v28, %v14153_v23  ;;  %v14177_v53 = vadd.f32 %v14176_v29, %v14175_v21 }
0x1a29   :  { %v14156_v30 = vpop.f32.mrf.mxu1  ;;  %v14178_v27 = vpop.f32.mrf.mxu0 }
0x1a2a   :  { %v4259_v50 = vadd.f32 %v14155_v33, %v4218_v54 }
0x1a2b   :  { %v14157_v35 = vpop.f32.mrf.mxu1  ;;  %v14179_v51 = vpop.f32.mrf.mxu0 }
0x1a2c   :  { %v14158_v62 = vadd.f32 %v14157_v35, %v14156_v30  ;;  %v4300_v19 = vadd.f32 %v14177_v53, %v4259_v50  ;;  %v14180_v5 = vadd.f32 %v14179_v51, %v14178_v27 }
0x1a2e   :  { %v4262_v10 = vadd.f32 %v14158_v62, %v4221_v55 }
0x1a30   :  { %v4303_v20 = vadd.f32 %v14180_v5, %v4262_v10 }
0x1a45   :  { %v14197_v38 = vpop.f32.mrf.mxu1 }
0x1a46   :  { %v14219_v43 = vpop.f32.mrf.mxu0 }
0x1a47   :  { %v14198_v44 = vpop.f32.mrf.mxu1 }
0x1a48   :  { %v14220_v57 = vpop.f32.mrf.mxu0  ;;  %v14199_v18 = vadd.f32 %v14198_v44, %v14197_v38 }
0x1a49   :  { %v14200_v58 = vpop.f32.mrf.mxu1  ;;  %v14221_v9 = vadd.f32 %v14220_v57, %v14219_v43  ;;  %v15703_v43 = vld [vmem:[#allocation2 + $0x10] sm:$0xff]  }
0x1a4a   :  { %v14222_v56 = vpop.f32.mrf.mxu0  ;;  %v4341_v3 = vadd.f32 %v14199_v18, %v4300_v19 }
0x1a4b   :  { %v14201_v60 = vpop.f32.mrf.mxu1 }
0x1a4c   :  { %v14202_v7 = vadd.f32 %v14201_v60, %v14200_v58  ;;  %v14223_v12 = vpop.f32.mrf.mxu0  ;;  %v4382_v39 = vadd.f32 %v14221_v9, %v4341_v3  ;;  %v13552_v3 = vld [vmem:[%s18144_s11] ss:$0 sm:$0xff] }
0x1a4d   :  { %v14224_v26 = vadd.f32 %v14223_v12, %v14222_v56  ;;  %v13553_v9 = vld [vmem:[%s18145_s12] ss:$0 sm:$0xff] }
0x1a4e   :  { %v4344_v17 = vadd.f32 %v14202_v7, %v4303_v20 }
0x1a50   :  { %v4385_v22 = vadd.f32 %v14224_v26, %v4344_v17 }
0x1a65   :  { %v14241_v13 = vpop.f32.mrf.mxu1 }
0x1a66   :  { %v14263_v45 = vpop.f32.mrf.mxu0 }
0x1a67   :  { %v14242_v16 = vpop.f32.mrf.mxu1 }
0x1a68   :  { %v14243_v14 = vadd.f32 %v14242_v16, %v14241_v13  ;;  %v14264_v41 = vpop.f32.mrf.mxu0 }
0x1a69   :  { %v14244_v25 = vpop.f32.mrf.mxu1  ;;  %v14265_v6 = vadd.f32 %v14264_v41, %v14263_v45 }
0x1a6a   :  { %v4423_v4 = vadd.f32 %v14243_v14, %v4382_v39  ;;  %v14266_v59 = vpop.f32.mrf.mxu0  ;;  %v13554_v14 = vld [vmem:[#allocation4 + $0x1] ss:$0 sm:$0xff] }
0x1a6b   :  { %v14245_v63 = vpop.f32.mrf.mxu1 }
0x1a6c   :  { %v4464_v23 = vadd.f32 %v14265_v6, %v4423_v4  ;;  %v14246_v24 = vadd.f32 %v14245_v63, %v14244_v25  ;;  %v14267_v21 = vpop.f32.mrf.mxu0 }
0x1a6d   :  { %v14268_v30 = vadd.f32 %v14267_v21, %v14266_v59 }
0x1a6e   :  { %v4470_v28 = vadd.f32 %v4464_v23, %v16888_v31  ;;  %v4426_v29 = vadd.f32 %v14246_v24, %v4385_v22  ;;  %v15702_v31 = vld [vmem:[#allocation2 + $0x18] sm:$0xff]  }
0x1a6f   :  { %15036 = vmatpush3.bf16.msra.mxu1 %v15702_v31 }
0x1a70   :  { %v4467_v27 = vadd.f32 %v14268_v30, %v4426_v29  ;;  %v4474_v35 = vsel %vm157_vm1, %v4470_v28, 0.0  ;;  %v4482_v36 = vmul.f32 %v4470_v28, %v4470_v28  ;;  %15037 = vmatprep.subr.bf16.mxu1 %v16328_v0 }
0x1a71   :  { %4475 = vadd.xlane.f32.xlu1 %v4474_v35 }
0x1a72   :  { %v4471_v37 = vadd.f32 %v4467_v27, %v16890_v32  ;;  %v4484_v51 = vsel %vm157_vm1, %v4482_v36, 0.0 }
0x1a73   :  { %15038 = vmatpush3.bf16.msra.mxu1 %v15703_v43 }
0x1a74   :  { %v4477_v38 = vsel %vm157_vm1, %v4471_v37, 0.0  ;;  %v4483_v40 = vmul.f32 %v4471_v37, %v4471_v37  ;;  %15049 = vmatprep.subr.bf16.mxu1 %v16328_v0 }
0x1a75   :  { %4478 = vadd.xlane.f32.xlu0 %v4477_v38  ;;  %4485 = vadd.xlane.f32.xlu1 %v4484_v51 }
0x1a76   :  { %v4487_v42 = vsel %vm157_vm1, %v4483_v40, 0.0 }
0x1a79   :  { %4488 = vadd.xlane.f32.xlu0 %v4487_v42 }
0x1afa   :  { %v4476_v44 = vpop.xlane.xlu1 %4475 }
0x1afb   :  { %v4480_v32 = vmul.f32 0.03125, %v4476_v44 }
0x1afd   :  { %v4492_v54 = vmul.f32 %v4480_v32, %v4480_v32  ;;  %v4498_v19 = vsub.f32 %v4470_v28, %v4480_v32 }
0x1afe   :  { %v4479_v52 = vpop.xlane.xlu0 %4478  ;;  %v4486_v33 = vpop.xlane.xlu1 %4485 }
0x1aff   :  { %v4481_v34 = vmul.f32 0.03125, %v4479_v52  ;;  %v4490_v57 = vmul.f32 0.03125, %v4486_v33 }
0x1b01   :  { %v4494_v58 = vsub.f32 %v4490_v57, %v4492_v54  ;;  %v4493_v50 = vmul.f32 %v4481_v34, %v4481_v34  ;;  %v4499_v7 = vsub.f32 %v4471_v37, %v4481_v34 }
0x1b02   :  { %v4489_v61 = vpop.xlane.xlu0 %4488 }
0x1b03   :  { %v4496_v62 = vmax.f32 %v4494_v58, 0.0  ;;  %v4491_v55 = vmul.f32 0.03125, %v4489_v61 }
0x1b05   :  { %v4500_v53 = vadd.f32 1e-05, %v4496_v62  ;;  %v4495_v18 = vsub.f32 %v4491_v55, %v4493_v50 }
0x1b07   :  { %16038 = vrsqrt.f32 %v4500_v53  ;;  %v4497_v56 = vmax.f32 %v4495_v18, 0.0 }
0x1b09   :  { %v4501_v60 = vadd.f32 1e-05, %v4497_v56 }
0x1b0b   :  { %16040 = vrsqrt.f32 %v4501_v60 }
0x1b14   :  { %v16039_v10 = vpop.eup %16038 }
0x1b15   :  { %v4504_v5 = vmul.f32 %v16039_v10, %v4498_v19 }
0x1b17   :  { %v4512_v13 = vmul.f32 %v13552_v3, %v4504_v5 }
0x1b18   :  { %v16041_v12 = vpop.eup %16040 }
0x1b19   :  { %v4505_v20 = vmul.f32 %v16041_v12, %v4499_v7  ;;  %v17039_v16 = vadd.f32 %v13553_v9, %v4512_v13 }
0x1b1b   :  { %v4513_v45 = vmul.f32 %v13552_v3, %v4505_v20 }
0x1b1d   :  { %v17041_v39 = vadd.f32 %v13553_v9, %v4513_v45 }
0x1b1f   :  { %v4532_v17 = vpack.c.bf16 %v17041_v39, %v17039_v16 }
0x1b21   :  { %15040 = vmatmul.mubr.msk.bf16.vlgmr.msra.gmra.mxu1 %vm157_vm1, %v4532_v17 }
0x1b22   :  { %15051 = vmatprep.mubr.msk.bf16.mxu1 %vm16329_vm0, %v16328_v0 }
0x1be1   :  { %v4590_v41 = vpop.f32.mrf.mxu1 }
0x1be2   :  { %v4591_v25 = vadd.f32 %v13554_v14, %v4590_v41 }
0x1be3   :  { %v15041_v26 = vpop.f32.mrf.mxu1 }
0x1be4   :  { %v17048_v4 = vpack.c.bf16 %v4591_v25, %v4591_v25 }
0x1be5   :  { %v4593_v6 = vpop.f32.mrf.mxu1 }
0x1be6   :  { %v4594_v59 = vadd.f32 %v13554_v14, %v4593_v6  ;;  %4600 = vrot.lane.b32.xlu1 %v17048_v4, %s16330_s26 }
0x1be7   :  { %v15042_v63 = vpop.f32.mrf.mxu1 }
0x1be8   :  { %v17052_v22 = vpack.c.bf16 %v4594_v59, %v4594_v59 }
0x1bea   :  { %4649 = vrot.lane.b32.xlu0 %v17052_v22, %s16330_s26 }
0x1c58   :  { %v4601_v23 = vpop.permute.xlu1 %4600 }
0x1c59   :  { %v4606_v24 = vsel %vm207_vm2, %v4601_v23, 0 }
0x1c5a   :  { %15044 = vmatpush3.bf16.xpose.msra.mxu0 %v4606_v24 }
0x1c5b   :  { %15055 = vmatprep.subr.bf16.mxu0 %v16328_v0 }
0x1c5c   :  { %v4650_v21 = vpop.permute.xlu0 %4649 }
0x1c5d   :  { %v4655_v28 = vsel %vm207_vm2, %v4650_v21, 0 }
0x1c5e   :  { %15050 = vmatpush3.bf16.xpose.msra.mxu1 %v4655_v28 }
0x1c5f   :  { %15061 = vmatprep.subr.bf16.mxu1 %v16328_v0 }
0x1c61   :  { %15046 = vmatmul.mubr.msk.bf16.vlgmr.msra.gmra.mxu0 %vm207_vm2, %v17048_v4 }
0x1c62   :  { %15057 = vmatprep.mubr.msk.bf16.mxu0 %vm16329_vm0, %v16328_v0 }
0x1c65   :  { %15052 = vmatmul.mubr.msk.bf16.vlgmr.msra.gmra.mxu1 %vm207_vm2, %v17052_v22 }
0x1c66   :  { %15063 = vmatprep.mubr.msk.bf16.mxu1 %vm16329_vm0, %v16328_v0 }
0x1d21   :  { %v4642_v29 = vpop.f32.mrf.mxu0 }
0x1d22   :  { %v4697_v30 = vsel %vm303_vm3, %v4642_v29, -inf }
0x1d23   :  { %4698 = vmax.xlane.f32.xlu1 %v4697_v30  ;;  %v15047_v27 = vpop.f32.mrf.mxu0 }
0x1d25   :  { %v4645_v35 = vpop.f32.mrf.mxu0  ;;  %v4691_v36 = vpop.f32.mrf.mxu1 }
0x1d26   :  { %v4700_v37 = vsel %vm303_vm3, %v4691_v36, -inf }
0x1d27   :  { %v15048_v38 = vpop.f32.mrf.mxu0  ;;  %4701 = vmax.xlane.f32.xlu0 %v4700_v37  ;;  %v15053_v51 = vpop.f32.mrf.mxu1 }
0x1d29   :  { %v4694_v40 = vpop.f32.mrf.mxu1 }
0x1d2b   :  { %v15054_v42 = vpop.f32.mrf.mxu1 }
0x1d34   :  { %4721 = vrot.lane.b32.xlu1 %v17048_v4, %s16322_s22 }
0x1dac   :  { %v4699_v31 = vpop.xlane.xlu1 %4698 }
0x1dad   :  { %v4703_v43 = vsub.f32 %v4642_v29, %v4699_v31 }
0x1daf   :  { %v4705_v44 = vmul.f32 1.442695, %v4703_v43 }
0x1db0   :  { %v4722_v32 = vpop.permute.xlu1 %4721  ;;  %v4702_v52 = vpop.xlane.xlu0 %4701 }
0x1db1   :  { %16042 = vpow2.f32 %v4705_v44  ;;  %v4727_v33 = vsel %vm333_vm4, %v4722_v32, 0  ;;  %v4704_v54 = vsub.f32 %v4691_v36, %v4702_v52 }
0x1db2   :  { %15056 = vmatpush3.bf16.msra.mxu0 %v4727_v33 }
0x1db3   :  { %v4707_v34 = vmul.f32 1.442695, %v4704_v54  ;;  %15067 = vmatprep.subr.bf16.mxu0 %v16328_v0 }
0x1db5   :  { %16044 = vpow2.f32 %v4707_v34 }
0x1dbe   :  { %v16043_v57 = vpop.eup %16042 }
0x1dbf   :  { %v4709_v58 = vsel %vm303_vm3, %v16043_v57, 0.0 }
0x1dc0   :  { %4710 = vadd.xlane.f32.xlu1 %v4709_v58 }
0x1dc2   :  { %v16045_v61 = vpop.eup %16044 }
0x1dc3   :  { %v4712_v50 = vsel %vm303_vm3, %v16045_v61, 0.0 }
0x1dc4   :  { %4713 = vadd.xlane.f32.xlu0 %v4712_v50 }
0x1dd1   :  { %4820 = vrot.lane.b32.xlu1 %v17048_v4, %s16331_s27 }
0x1dd5   :  { %4870 = vrot.lane.b32.xlu1 %v17052_v22, %s16331_s27 }
0x1dd9   :  { %4868 = vrot.lane.b32.xlu1 %v17052_v22, %s16332_s28 }
0x1dda   :  { %4769 = vrot.lane.b32.xlu0 %v17052_v22, %s16322_s22 }
0x1dde   :  { %4818 = vrot.lane.b32.xlu0 %v17048_v4, %s16332_s28 }
0x1e49   :  { %v4711_v62 = vpop.xlane.xlu1 %4710 }
0x1e4a   :  { %16046 = vrcp.f32 %v4711_v62 }
0x1e4d   :  { %v4714_v55 = vpop.xlane.xlu0 %4713  ;;  %v4821_v60 = vpop.permute.xlu1 %4820 }
0x1e4e   :  { %16048 = vrcp.f32 %v4714_v55  ;;  %v4826_v3 = vsel %vm207_vm2, %v4821_v60, 0  ;;  %v4528_v60 = vld [vmem:[#allocation6 + $0x10] sm:$0xf] }
0x1e51   :  { %v4770_v53 = vpop.permute.xlu0 %4769  ;;  %v4871_v12 = vpop.permute.xlu1 %4870 }
0x1e52   :  { %v4775_v18 = vsel %vm333_vm4, %v4770_v53, 0  ;;  %v4876_v20 = vsel %vm207_vm2, %v4871_v12, 0 }
0x1e53   :  { %15062 = vmatpush3.bf16.msra.mxu1 %v4775_v18 }
0x1e54   :  { %15073 = vmatprep.subr.bf16.mxu1 %v16328_v0 }
0x1e55   :  { %v4819_v9 = vpop.permute.xlu0 %4818  ;;  %v4869_v45 = vpop.permute.xlu1 %4868 }
0x1e57   :  { %v16047_v56 = vpop.eup %16046 }
0x1e58   :  { %v4717_v19 = vmul.f32 %v16047_v56, %v16043_v57 }
0x1e5a   :  { %v4719_v10 = vpack.c.bf16 %v4717_v19, %v4717_v19 }
0x1e5b   :  { %v16049_v5 = vpop.eup %16048 }
0x1e5c   :  { %v4718_v7 = vmul.f32 %v16049_v5, %v16045_v61  ;;  %15058 = vmatmul.mubr.msk.bf16.vlgmr.msra.gmra.mxu0 %vm303_vm3, %v4719_v10  ;;  %v5094_v5 = vsel %vm654_vm5, %v4528_v60, 0 }
0x1e5d   :  { %15068 = vmatpush3.bf16.xpose.msra.mxu0 %v4826_v3  ;;  %15069 = vmatprep.mubr.msk.bf16.mxu0 %vm16329_vm0, %v16328_v0 }
0x1e5e   :  { %v4720_v13 = vpack.c.bf16 %v4718_v7, %v4718_v7  ;;  %15079 = vmatprep.subr.bf16.mxu0 %v16328_v0 }
0x1e60   :  { %15064 = vmatmul.mubr.msk.bf16.vlgmr.msra.gmra.mxu1 %vm303_vm3, %v4720_v13 }
0x1e61   :  { %15074 = vmatpush3.bf16.xpose.msra.mxu1 %v4876_v20  ;;  %15075 = vmatprep.mubr.msk.bf16.mxu1 %vm16329_vm0, %v16328_v0  ;;  %v13566_v20 = vcombine.low %v4528_v60, %v4528_v60 }
0x1e62   :  { %15085 = vmatprep.subr.bf16.mxu1 %v16328_v0 }
0x1e64   :  { %15070 = vmatmul.mubr.msk.bf16.vlgmr.msra.gmra.mxu0 %vm207_vm2, %v4819_v9  ;;  %v5042_v9 = vrot.slane %v13566_v20, 2 }
0x1e65   :  { %15081 = vmatprep.mubr.msk.bf16.mxu0 %vm16329_vm0, %v16328_v0 }
0x1e68   :  { %15076 = vmatmul.mubr.msk.bf16.vlgmr.msra.gmra.mxu1 %vm207_vm2, %v4869_v45  ;;  %v5047_v45 = vsel %vm654_vm5, %v5042_v9, 0 }
0x1e69   :  { %15087 = vmatprep.mubr.msk.bf16.mxu1 %vm16329_vm0, %v16328_v0 }
0x1f1c   :  { %v17104_v17 = vpop.f32.mrf.mxu0 }
0x1f1e   :  { %v15059_v14 = vpop.f32.mrf.mxu0 }
0x1f20   :  { %v4766_v41 = vpop.f32.mrf.mxu0  ;;  %v17106_v25 = vpop.f32.mrf.mxu1 }
0x1f21   :  { %v4817_v26 = vpack.c.bf16 %v17106_v25, %v17104_v17 }
0x1f22   :  { %v15060_v6 = vpop.f32.mrf.mxu0  ;;  %v15065_v59 = vpop.f32.mrf.mxu1 }
0x1f24   :  { %v4814_v63 = vpop.f32.mrf.mxu1  ;;  %v4862_v23 = vpop.f32.mrf.mxu0 }
0x1f25   :  { %v4918_v24 = vsel %vm303_vm3, %v4862_v23, -inf }
0x1f26   :  { %4919 = vmax.xlane.f32.xlu0 %v4918_v24  ;;  %v15066_v21 = vpop.f32.mrf.mxu1  ;;  %v15071_v28 = vpop.f32.mrf.mxu0 }
0x1f28   :  { %v4865_v29 = vpop.f32.mrf.mxu0  ;;  %v4912_v30 = vpop.f32.mrf.mxu1 }
0x1f29   :  { %v4921_v27 = vsel %vm303_vm3, %v4912_v30, -inf }
0x1f2a   :  { %v15072_v35 = vpop.f32.mrf.mxu0  ;;  %4922 = vmax.xlane.f32.xlu1 %v4921_v27  ;;  %v15077_v36 = vpop.f32.mrf.mxu1 }
0x1f2c   :  { %v4915_v37 = vpop.f32.mrf.mxu1 }
0x1f2e   :  { %v15078_v38 = vpop.f32.mrf.mxu1 }
0x1f3b   :  { %4942 = vrot.lane.b32.xlu1 %v17048_v4, %s16333_s30 }
0x1f3f   :  { %5139 = vrot.lane.b32.xlu1 %v17048_v4, %s16335_s7 }
0x1f43   :  { %5189 = vrot.lane.b32.xlu1 %v17052_v22, %s16335_s7 }
0x1f47   :  { %5187 = vrot.lane.b32.xlu1 %v17052_v22, %s16334_s14 }
0x1faf   :  { %v4920_v51 = vpop.xlane.xlu0 %4919 }
0x1fb0   :  { %v4924_v40 = vsub.f32 %v4862_v23, %v4920_v51 }
0x1fb2   :  { %v4926_v42 = vmul.f32 1.442695, %v4924_v40 }
0x1fb3   :  { %v4923_v31 = vpop.xlane.xlu1 %4922 }
0x1fb4   :  { %16050 = vpow2.f32 %v4926_v42  ;;  %v4925_v43 = vsub.f32 %v4912_v30, %v4923_v31 }
0x1fb6   :  { %v4928_v44 = vmul.f32 1.442695, %v4925_v43 }
0x1fb7   :  { %v4943_v32 = vpop.permute.xlu1 %4942 }
0x1fb8   :  { %16052 = vpow2.f32 %v4928_v44  ;;  %v4948_v52 = vsel %vm333_vm4, %v4943_v32, 0 }
0x1fb9   :  { %15080 = vmatpush3.bf16.msra.mxu0 %v4948_v52 }
0x1fba   :  { %15091 = vmatprep.subr.bf16.mxu0 %v16328_v0 }
0x1fbb   :  { %v5140_v3 = vpop.permute.xlu1 %5139 }
0x1fbc   :  { %v5145_v63 = vsel %vm207_vm2, %v5140_v3, 0 }
0x1fbf   :  { %v5190_v7 = vpop.permute.xlu1 %5189 }
0x1fc0   :  { %v5195_v12 = vsel %vm207_vm2, %v5190_v7, 0 }
0x1fc1   :  { %v16051_v33 = vpop.eup %16050 }
0x1fc2   :  { %v4930_v54 = vsel %vm303_vm3, %v16051_v33, 0.0 }
0x1fc3   :  { %4931 = vadd.xlane.f32.xlu0 %v4930_v54  ;;  %v5188_v13 = vpop.permute.xlu1 %5187 }
0x1fc5   :  { %v16053_v34 = vpop.eup %16052 }
0x1fc6   :  { %v4933_v57 = vsel %vm303_vm3, %v16053_v34, 0.0 }
0x1fc7   :  { %4934 = vadd.xlane.f32.xlu0 %v4933_v57 }
0x1fdd   :  { %4990 = vrot.lane.b32.xlu0 %v17052_v22, %s16333_s30 }
0x1fe1   :  { %5137 = vrot.lane.b32.xlu0 %v17048_v4, %s16334_s14 }
0x204c   :  { %v4932_v58 = vpop.xlane.xlu0 %4931 }
0x204d   :  { %16054 = vrcp.f32 %v4932_v58 }
0x2050   :  { %v4935_v61 = vpop.xlane.xlu0 %4934 }
0x2051   :  { %16056 = vrcp.f32 %v4935_v61 }
0x2054   :  { %v4991_v50 = vpop.permute.xlu0 %4990 }
0x2055   :  { %v4996_v62 = vsel %vm333_vm4, %v4991_v50, 0 }
0x2056   :  { %15086 = vmatpush3.bf16.msra.mxu1 %v4996_v62 }
0x2057   :  { %15097 = vmatprep.subr.bf16.mxu1 %v16328_v0 }
0x2058   :  { %v5138_v28 = vpop.permute.xlu0 %5137 }
0x205a   :  { %v16055_v55 = vpop.eup %16054 }
0x205b   :  { %v4938_v53 = vmul.f32 %v16055_v55, %v16051_v33 }
0x205d   :  { %v4940_v18 = vpack.c.bf16 %v4938_v53, %v4938_v53 }
0x205e   :  { %v16057_v56 = vpop.eup %16056 }
0x205f   :  { %v4939_v19 = vmul.f32 %v16057_v56, %v16053_v34  ;;  %15082 = vmatmul.mubr.msk.bf16.vlgmr.msra.gmra.mxu0 %vm303_vm3, %v4940_v18 }
0x2060   :  { %15093 = vmatprep.mubr.msk.bf16.mxu0 %vm16329_vm0, %v16328_v0  ;;  %15092 = vmatpush3.bf16.msra.mxu0 %v5047_v45 }
0x2061   :  { %v4941_v10 = vpack.c.bf16 %v4939_v19, %v4939_v19  ;;  %15103 = vmatprep.subr.bf16.mxu0 %v16328_v0 }
0x2063   :  { %15088 = vmatmul.mubr.msk.bf16.vlgmr.msra.gmra.mxu1 %vm303_vm3, %v4941_v10 }
0x2064   :  { %15098 = vmatpush3.bf16.msra.mxu1 %v5094_v5  ;;  %15099 = vmatprep.mubr.msk.bf16.mxu1 %vm16329_vm0, %v16328_v0 }
0x2065   :  { %15109 = vmatprep.subr.bf16.mxu1 %v16328_v0 }
0x206b   :  { %15100 = vmatmul.mubr.msk.bf16.vlgmr.msra.gmra.mxu1 %vm207_vm2, %v4817_v26 }
0x206c   :  { %15110 = vmatpush3.bf16.xpose.msra.mxu1 %v5195_v12  ;;  %15111 = vmatprep.mubr.msk.bf16.mxu1 %vm16329_vm0, %v16328_v0 }
0x206d   :  { %15121 = vmatprep.subr.bf16.mxu1 %v16328_v0 }
0x2073   :  { %15112 = vmatmul.mubr.msk.bf16.vlgmr.msra.gmra.mxu1 %vm207_vm2, %v5188_v13 }
0x2074   :  { %15123 = vmatprep.mubr.msk.bf16.mxu1 %vm16329_vm0, %v16328_v0 }
0x211f   :  { %v4984_v17 = vpop.f32.mrf.mxu0 }
0x2121   :  { %v15083_v14 = vpop.f32.mrf.mxu0 }
0x2123   :  { %v4987_v41 = vpop.f32.mrf.mxu0  ;;  %v5032_v25 = vpop.f32.mrf.mxu1 }
0x2124   :  { %v5038_v26 = vpack.c.bf16 %v5032_v25, %v4984_v17 }
0x2125   :  { %v15084_v6 = vpop.f32.mrf.mxu0  ;;  %v15089_v59 = vpop.f32.mrf.mxu1 }
0x2126   :  { %15094 = vmatmul.mubr.msk.bf16.vlgmr.msra.gmra.mxu0 %vm207_vm2, %v5038_v26  ;;  %v17198_v26 = vld [vmem:[#allocation6 + $0x14] sm:$0xf] }
0x2127   :  { %15104 = vmatpush3.bf16.xpose.msra.mxu0 %v5145_v63  ;;  %v5035_v23 = vpop.f32.mrf.mxu1  ;;  %15105 = vmatprep.mubr.msk.bf16.mxu0 %vm16329_vm0, %v16328_v0  ;;  %v5362_v6 = vsel %vm654_vm5, %v17198_v26, 0 }
0x2128   :  { %15115 = vmatprep.subr.bf16.mxu0 %v16328_v0 }
0x2129   :  { %v15090_v24 = vpop.f32.mrf.mxu1 }
0x212b   :  { %v17156_v21 = vpop.f32.mrf.mxu1 }
0x212d   :  { %v15101_v29 = vpop.f32.mrf.mxu1 }
0x212e   :  { %15106 = vmatmul.mubr.msk.bf16.vlgmr.msra.gmra.mxu0 %vm207_vm2, %v5138_v28 }
0x212f   :  { %v17159_v30 = vpop.f32.mrf.mxu1  ;;  %15117 = vmatprep.mubr.msk.bf16.mxu0 %vm16329_vm0, %v16328_v0 }
0x2131   :  { %v15102_v27 = vpop.f32.mrf.mxu1 }
0x2133   :  { %v5231_v35 = vpop.f32.mrf.mxu1 }
0x2134   :  { %v5240_v36 = vsel %vm303_vm3, %v5231_v35, -inf }
0x2135   :  { %5241 = vmax.xlane.f32.xlu1 %v5240_v36  ;;  %v15113_v37 = vpop.f32.mrf.mxu1 }
0x2137   :  { %v5234_v38 = vpop.f32.mrf.mxu1 }
0x2139   :  { %v15114_v51 = vpop.f32.mrf.mxu1 }
0x2146   :  { %5261 = vrot.lane.b32.xlu1 %v17048_v4, %s16336_s15 }
0x214a   :  { %5409 = vrot.lane.b32.xlu1 %v17048_v4, %s16337_s16 }
0x214e   :  { %5459 = vrot.lane.b32.xlu1 %v17052_v22, %s16337_s16 }
0x2152   :  { %5457 = vrot.lane.b32.xlu1 %v17052_v22, %s16338_s17 }
0x21be   :  { %v5242_v40 = vpop.xlane.xlu1 %5241 }
0x21bf   :  { %v5244_v43 = vsub.f32 %v5231_v35, %v5242_v40 }
0x21c1   :  { %v5247_v44 = vmul.f32 1.442695, %v5244_v43 }
0x21c2   :  { %v5262_v42 = vpop.permute.xlu1 %5261 }
0x21c3   :  { %v5267_v31 = vsel %vm333_vm4, %v5262_v42, 0  ;;  %16058 = vpow2.f32 %v5247_v44 }
0x21c4   :  { %15116 = vmatpush3.bf16.msra.mxu0 %v5267_v31 }
0x21c5   :  { %15127 = vmatprep.subr.bf16.mxu0 %v16328_v0 }
0x21c6   :  { %v5410_v20 = vpop.permute.xlu1 %5409 }
0x21c7   :  { %v5415_v45 = vsel %vm207_vm2, %v5410_v20, 0 }
0x21ca   :  { %v5460_v29 = vpop.permute.xlu1 %5459 }
0x21cb   :  { %v5465_v40 = vsel %vm207_vm2, %v5460_v29, 0 }
0x21ce   :  { %v5458_v44 = vpop.permute.xlu1 %5457 }
0x21d0   :  { %v16059_v58 = vpop.eup %16058 }
0x21d1   :  { %v5252_v62 = vsel %vm303_vm3, %v16059_v58, 0.0 }
0x21e6   :  { %v17174_v32 = vpop.f32.mrf.mxu0 }
0x21e8   :  { %v15095_v52 = vpop.f32.mrf.mxu0 }
0x21ea   :  { %v17176_v33 = vpop.f32.mrf.mxu0 }
0x21ec   :  { %v15096_v54 = vpop.f32.mrf.mxu0 }
0x21ee   :  { %v5181_v34 = vpop.f32.mrf.mxu0 }
0x21ef   :  { %v5237_v57 = vsel %vm303_vm3, %v5181_v34, -inf }
0x21f0   :  { %5238 = vmax.xlane.f32.xlu0 %v5237_v57  ;;  %v15107_v61 = vpop.f32.mrf.mxu0 }
0x21f1   :  { %v5131_v61 = vadd.f32 %v17156_v21, %v17174_v32 }
0x21f2   :  { %v5184_v50 = vpop.f32.mrf.mxu0 }
0x21f4   :  { %v15108_v55 = vpop.f32.mrf.mxu0  ;;  %5253 = vadd.xlane.f32.xlu0 %v5252_v62 }
0x2279   :  { %v5239_v53 = vpop.xlane.xlu0 %5238 }
0x227a   :  { %v5243_v18 = vsub.f32 %v5181_v34, %v5239_v53  ;;  %v5134_v53 = vadd.f32 %v17159_v30, %v17176_v33 }
0x227c   :  { %v5245_v56 = vmul.f32 1.442695, %v5243_v18 }
0x227d   :  { %v5254_v10 = vpop.xlane.xlu0 %5253 }
0x227e   :  { %16060 = vpow2.f32 %v5245_v56 }
0x227f   :  { %16062 = vrcp.f32 %v5254_v10 }
0x228b   :  { %v16061_v60 = vpop.eup %16060 }
0x228c   :  { %v5249_v19 = vsel %vm303_vm3, %v16061_v60, 0.0  ;;  %v16063_v5 = vpop.eup %16062 }
0x228d   :  { %5250 = vadd.xlane.f32.xlu0 %v5249_v19  ;;  %v5258_v7 = vmul.f32 %v16063_v5, %v16059_v58 }
0x228f   :  { %v5260_v9 = vpack.c.bf16 %v5258_v7, %v5258_v7 }
0x22a3   :  { %5309 = vrot.lane.b32.xlu0 %v17052_v22, %s16336_s15 }
0x22a7   :  { %5407 = vrot.lane.b32.xlu0 %v17048_v4, %s16338_s17 }
0x2316   :  { %v5251_v3 = vpop.xlane.xlu0 %5250 }
0x2317   :  { %16064 = vrcp.f32 %v5251_v3 }
0x231a   :  { %v5310_v12 = vpop.permute.xlu0 %5309 }
0x231b   :  { %v5315_v13 = vsel %vm333_vm4, %v5310_v12, 0 }
0x231c   :  { %15122 = vmatpush3.bf16.msra.mxu1 %v5315_v13 }
0x231d   :  { %15133 = vmatprep.subr.bf16.mxu1 %v16328_v0 }
0x231e   :  { %v5408_v41 = vpop.permute.xlu0 %5407 }
0x231f   :  { %15124 = vmatmul.mubr.msk.bf16.vlgmr.msra.gmra.mxu1 %vm303_vm3, %v5260_v9 }
0x2320   :  { %15134 = vmatpush3.bf16.xpose.msra.mxu1 %v5415_v45  ;;  %15135 = vmatprep.mubr.msk.bf16.mxu1 %vm16329_vm0, %v16328_v0 }
0x2321   :  { %15145 = vmatprep.subr.bf16.mxu1 %v16328_v0 }
0x2324   :  { %v16065_v17 = vpop.eup %16064 }
0x2325   :  { %v5257_v14 = vmul.f32 %v16065_v17, %v16061_v60 }
0x2327   :  { %v5259_v25 = vpack.c.bf16 %v5257_v14, %v5257_v14  ;;  %15136 = vmatmul.mubr.msk.bf16.vlgmr.msra.gmra.mxu1 %vm207_vm2, %v5408_v41  ;;  %v13578_v41 = vcombine.low %v17198_v26, %v17198_v26 }
0x2328   :  { %15147 = vmatprep.mubr.msk.bf16.mxu1 %vm16329_vm0, %v16328_v0 }
0x2329   :  { %15118 = vmatmul.mubr.msk.bf16.vlgmr.msra.gmra.mxu0 %vm303_vm3, %v5259_v25  ;;  %v5631_v25 = vrot.slane %v13578_v41, 2 }
0x232a   :  { %15129 = vmatprep.mubr.msk.bf16.mxu0 %vm16329_vm0, %v16328_v0  ;;  %15128 = vmatpush3.bf16.msra.mxu0 %v5362_v6 }
0x232b   :  { %15139 = vmatprep.subr.bf16.mxu0 %v16328_v0  ;;  %v5636_v6 = vsel %vm654_vm5, %v5631_v25, 0 }
0x23df   :  { %v5351_v59 = vpop.f32.mrf.mxu1 }
0x23e1   :  { %v15125_v63 = vpop.f32.mrf.mxu1 }
0x23e3   :  { %v5354_v23 = vpop.f32.mrf.mxu1 }
0x23e5   :  { %v15126_v24 = vpop.f32.mrf.mxu1 }
0x23e7   :  { %v5451_v28 = vpop.f32.mrf.mxu1 }
0x23e8   :  { %v5507_v27 = vsel %vm303_vm3, %v5451_v28, -inf }
0x23e9   :  { %v5303_v35 = vpop.f32.mrf.mxu0  ;;  %5508 = vmax.xlane.f32.xlu0 %v5507_v27  ;;  %v15137_v36 = vpop.f32.mrf.mxu1 }
0x23ea   :  { %v5357_v37 = vpack.c.bf16 %v5351_v59, %v5303_v35 }
0x23eb   :  { %v15119_v38 = vpop.f32.mrf.mxu0  ;;  %v5454_v51 = vpop.f32.mrf.mxu1 }
0x23ec   :  { %15130 = vmatmul.mubr.msk.bf16.vlgmr.msra.gmra.mxu0 %vm207_vm2, %v5357_v37 }
0x23ed   :  { %15140 = vmatpush3.bf16.xpose.msra.mxu0 %v5465_v40  ;;  %v5306_v42 = vpop.f32.mrf.mxu0  ;;  %v15138_v31 = vpop.f32.mrf.mxu1  ;;  %15141 = vmatprep.mubr.msk.bf16.mxu0 %vm16329_vm0, %v16328_v0 }
0x23ee   :  { %15151 = vmatprep.subr.bf16.mxu0 %v16328_v0 }
0x23ef   :  { %v15120_v43 = vpop.f32.mrf.mxu0 }
0x23f4   :  { %15142 = vmatmul.mubr.msk.bf16.vlgmr.msra.gmra.mxu0 %vm207_vm2, %v5458_v44 }
0x23f5   :  { %15153 = vmatprep.mubr.msk.bf16.mxu0 %vm16329_vm0, %v16328_v0 }
0x2472   :  { %v5509_v52 = vpop.xlane.xlu0 %5508 }
0x2473   :  { %v5513_v54 = vsub.f32 %v5451_v28, %v5509_v52 }
0x2475   :  { %v5515_v34 = vmul.f32 1.442695, %v5513_v54 }
0x2477   :  { %16066 = vpow2.f32 %v5515_v34 }
0x2484   :  { %v16067_v57 = vpop.eup %16066 }
0x2485   :  { %v5519_v58 = vsel %vm303_vm3, %v16067_v57, 0.0 }
0x2486   :  { %5520 = vadd.xlane.f32.xlu0 %v5519_v58 }
0x24ac   :  { %v5398_v50 = vpop.f32.mrf.mxu0 }
0x24ad   :  { %v17215_v62 = vadd.f32 %v5398_v50, %v5131_v61 }
0x24ae   :  { %v15131_v55 = vpop.f32.mrf.mxu0 }
0x24b0   :  { %v5401_v18 = vpop.f32.mrf.mxu0 }
0x24b1   :  { %v17219_v56 = vadd.f32 %v5401_v18, %v5134_v53 }
0x24b2   :  { %v15132_v60 = vpop.f32.mrf.mxu0 }
0x24b4   :  { %v5501_v19 = vpop.f32.mrf.mxu0 }
0x24b5   :  { %v5510_v10 = vsel %vm303_vm3, %v5501_v19, -inf }
0x24b6   :  { %5511 = vmax.xlane.f32.xlu1 %v5510_v10  ;;  %v15143_v5 = vpop.f32.mrf.mxu0 }
0x24b8   :  { %v5504_v3 = vpop.f32.mrf.mxu0 }
0x24ba   :  { %v15144_v7 = vpop.f32.mrf.mxu0 }
0x24c7   :  { %5531 = vrot.lane.b32.xlu1 %v17048_v4, %s16339_s1 }
0x24cb   :  { %5683 = vrot.lane.b32.xlu1 %v17048_v4, %s16340_s18 }
0x24cf   :  { %5733 = vrot.lane.b32.xlu1 %v17052_v22, %s16340_s18 }
0x24d3   :  { %5731 = vrot.lane.b32.xlu1 %v17052_v22, %s16341_s19 }
0x250f   :  { %v5521_v21 = vpop.xlane.xlu0 %5520 }
0x2510   :  { %16068 = vrcp.f32 %v5521_v21 }
0x251d   :  { %v16069_v30 = vpop.eup %16068 }
0x251e   :  { %v5527_v12 = vmul.f32 %v16069_v30, %v16067_v57 }
0x2520   :  { %v5529_v45 = vpack.c.bf16 %v5527_v12, %v5527_v12 }
0x253f   :  { %v5512_v32 = vpop.xlane.xlu1 %5511 }
0x2540   :  { %v5514_v33 = vsub.f32 %v5501_v19, %v5512_v32 }
0x2542   :  { %v5517_v13 = vmul.f32 1.442695, %v5514_v33 }
0x2543   :  { %v5532_v20 = vpop.permute.xlu1 %5531 }
0x2544   :  { %16070 = vpow2.f32 %v5517_v13  ;;  %v5537_v9 = vsel %vm333_vm4, %v5532_v20, 0 }
0x2545   :  { %15146 = vmatpush3.bf16.msra.mxu1 %v5537_v9 }
0x2546   :  { %15157 = vmatprep.subr.bf16.mxu1 %v16328_v0 }
0x2547   :  { %v5684_v29 = vpop.permute.xlu1 %5683 }
0x2548   :  { %15148 = vmatmul.mubr.msk.bf16.vlgmr.msra.gmra.mxu1 %vm303_vm3, %v5529_v45  ;;  %v5689_v26 = vsel %vm207_vm2, %v5684_v29, 0 }
0x2549   :  { %15159 = vmatprep.mubr.msk.bf16.mxu1 %vm16329_vm0, %v16328_v0  ;;  %15158 = vmatpush3.bf16.msra.mxu1 %v5636_v6 }
0x254a   :  { %15169 = vmatprep.subr.bf16.mxu1 %v16328_v0 }
0x254b   :  { %v5734_v40 = vpop.permute.xlu1 %5733 }
0x254c   :  { %v5739_v44 = vsel %vm207_vm2, %v5734_v40, 0 }
0x254f   :  { %v5732_v58 = vpop.permute.xlu1 %5731 }
0x2551   :  { %v16071_v17 = vpop.eup %16070 }
0x2552   :  { %v5522_v14 = vsel %vm303_vm3, %v16071_v17, 0.0 }
0x2553   :  { %5523 = vadd.xlane.f32.xlu0 %v5522_v14 }
0x2569   :  { %5579 = vrot.lane.b32.xlu0 %v17052_v22, %s16339_s1 }
0x256d   :  { %5681 = vrot.lane.b32.xlu0 %v17048_v4, %s16341_s19 }
0x25dc   :  { %v5524_v59 = vpop.xlane.xlu0 %5523 }
0x25dd   :  { %16072 = vrcp.f32 %v5524_v59 }
0x25e0   :  { %v5580_v63 = vpop.permute.xlu0 %5579 }
0x25e1   :  { %v5585_v23 = vsel %vm333_vm4, %v5580_v63, 0 }
0x25e2   :  { %15152 = vmatpush3.bf16.msra.mxu0 %v5585_v23 }
0x25e3   :  { %15163 = vmatprep.subr.bf16.mxu0 %v16328_v0 }
0x25e4   :  { %v5682_v35 = vpop.permute.xlu0 %5681 }
0x25ea   :  { %v16073_v24 = vpop.eup %16072 }
0x25eb   :  { %v5528_v28 = vmul.f32 %v16073_v24, %v16071_v17  ;;  %v17289_v24 = vld [vmem:[#allocation6 + $0x18] sm:$0xf] }
0x25ed   :  { %v5530_v27 = vpack.c.bf16 %v5528_v28, %v5528_v28  ;;  %v5906_v28 = vsel %vm654_vm5, %v17289_v24, 0 }
0x25ef   :  { %15154 = vmatmul.mubr.msk.bf16.vlgmr.msra.gmra.mxu0 %vm303_vm3, %v5530_v27 }
0x25f0   :  { %15164 = vmatpush3.bf16.xpose.msra.mxu0 %v5689_v26  ;;  %15165 = vmatprep.mubr.msk.bf16.mxu0 %vm16329_vm0, %v16328_v0 }
0x25f1   :  { %15175 = vmatprep.subr.bf16.mxu0 %v16328_v0 }
0x25f7   :  { %15166 = vmatmul.mubr.msk.bf16.vlgmr.msra.gmra.mxu0 %vm207_vm2, %v5682_v35 }
0x25f8   :  { %15177 = vmatprep.mubr.msk.bf16.mxu0 %vm16329_vm0, %v16328_v0 }
0x2608   :  { %v5573_v36 = vpop.f32.mrf.mxu1 }
0x260a   :  { %v15149_v37 = vpop.f32.mrf.mxu1 }
0x260c   :  { %v5576_v38 = vpop.f32.mrf.mxu1 }
0x260e   :  { %v15150_v51 = vpop.f32.mrf.mxu1 }
0x26af   :  { %v5621_v42 = vpop.f32.mrf.mxu0 }
0x26b0   :  { %v5627_v31 = vpack.c.bf16 %v5621_v42, %v5573_v36 }
0x26b1   :  { %v15155_v43 = vpop.f32.mrf.mxu0 }
0x26b2   :  { %15160 = vmatmul.mubr.msk.bf16.vlgmr.msra.gmra.mxu1 %vm207_vm2, %v5627_v31 }
0x26b3   :  { %15170 = vmatpush3.bf16.xpose.msra.mxu1 %v5739_v44  ;;  %v5624_v52 = vpop.f32.mrf.mxu0  ;;  %15171 = vmatprep.mubr.msk.bf16.mxu1 %vm16329_vm0, %v16328_v0 }
0x26b4   :  { %15181 = vmatprep.subr.bf16.mxu1 %v16328_v0 }
0x26b5   :  { %v15156_v54 = vpop.f32.mrf.mxu0 }
0x26b7   :  { %v5725_v34 = vpop.f32.mrf.mxu0 }
0x26b8   :  { %v5781_v57 = vsel %vm303_vm3, %v5725_v34, -inf }
0x26b9   :  { %5782 = vmax.xlane.f32.xlu0 %v5781_v57  ;;  %v15167_v61 = vpop.f32.mrf.mxu0 }
0x26ba   :  { %15172 = vmatmul.mubr.msk.bf16.vlgmr.msra.gmra.mxu1 %vm207_vm2, %v5732_v58 }
0x26bb   :  { %v5728_v50 = vpop.f32.mrf.mxu0  ;;  %15183 = vmatprep.mubr.msk.bf16.mxu1 %vm16329_vm0, %v16328_v0 }
0x26bd   :  { %v15168_v55 = vpop.f32.mrf.mxu0 }
0x2742   :  { %v5783_v53 = vpop.xlane.xlu0 %5782 }
0x2743   :  { %v5787_v18 = vsub.f32 %v5725_v34, %v5783_v53 }
0x2745   :  { %v5789_v60 = vmul.f32 1.442695, %v5787_v18 }
0x2747   :  { %16074 = vpow2.f32 %v5789_v60 }
0x2754   :  { %v16075_v19 = vpop.eup %16074 }
0x2755   :  { %v5793_v10 = vsel %vm303_vm3, %v16075_v19, 0.0 }
0x2756   :  { %5794 = vadd.xlane.f32.xlu0 %v5793_v10 }
0x2772   :  { %v5672_v5 = vpop.f32.mrf.mxu1 }
0x2773   :  { %v17265_v3 = vadd.f32 %v5672_v5, %v17215_v62 }
0x2774   :  { %v15161_v7 = vpop.f32.mrf.mxu1 }
0x2776   :  { %v5675_v21 = vpop.f32.mrf.mxu1 }
0x2777   :  { %v17268_v30 = vadd.f32 %v5675_v21, %v17219_v56 }
0x2778   :  { %v15162_v32 = vpop.f32.mrf.mxu1 }
0x277a   :  { %v5775_v33 = vpop.f32.mrf.mxu1 }
0x277b   :  { %v5784_v12 = vsel %vm303_vm3, %v5775_v33, -inf }
0x277c   :  { %5785 = vmax.xlane.f32.xlu1 %v5784_v12  ;;  %v15173_v13 = vpop.f32.mrf.mxu1 }
0x277e   :  { %v5778_v20 = vpop.f32.mrf.mxu1 }
0x2780   :  { %v15174_v9 = vpop.f32.mrf.mxu1 }
0x278d   :  { %5805 = vrot.lane.b32.xlu1 %v17048_v4, %s16342_s20 }
0x2791   :  { %5953 = vrot.lane.b32.xlu1 %v17048_v4, %s16343_s21 }
0x2795   :  { %6003 = vrot.lane.b32.xlu1 %v17052_v22, %s16343_s21 }
0x2799   :  { %6001 = vrot.lane.b32.xlu1 %v17052_v22, %s16344_s23 }
0x27df   :  { %v5795_v62 = vpop.xlane.xlu0 %5794 }
0x27e0   :  { %16076 = vrcp.f32 %v5795_v62 }
0x27ed   :  { %v16077_v56 = vpop.eup %16076 }
0x27ee   :  { %v5801_v14 = vmul.f32 %v16077_v56, %v16075_v19 }
0x27f0   :  { %v5803_v59 = vpack.c.bf16 %v5801_v14, %v5801_v14 }
0x2805   :  { %v5786_v45 = vpop.xlane.xlu1 %5785 }
0x2806   :  { %v5788_v17 = vsub.f32 %v5775_v33, %v5786_v45 }
0x2808   :  { %v5791_v41 = vmul.f32 1.442695, %v5788_v17 }
0x2809   :  { %v5806_v25 = vpop.permute.xlu1 %5805 }
0x280a   :  { %16078 = vpow2.f32 %v5791_v41  ;;  %v5811_v6 = vsel %vm333_vm4, %v5806_v25, 0 }
0x280b   :  { %15176 = vmatpush3.bf16.msra.mxu0 %v5811_v6 }
0x280c   :  { %15187 = vmatprep.subr.bf16.mxu0 %v16328_v0 }
0x280d   :  { %v5954_v37 = vpop.permute.xlu1 %5953 }
0x280e   :  { %15178 = vmatmul.mubr.msk.bf16.vlgmr.msra.gmra.mxu0 %vm303_vm3, %v5803_v59  ;;  %v5959_v51 = vsel %vm207_vm2, %v5954_v37, 0 }
0x280f   :  { %15189 = vmatprep.mubr.msk.bf16.mxu0 %vm16329_vm0, %v16328_v0  ;;  %15188 = vmatpush3.bf16.msra.mxu0 %v5906_v28 }
0x2810   :  { %15199 = vmatprep.subr.bf16.mxu0 %v16328_v0 }
0x2811   :  { %v6004_v52 = vpop.permute.xlu1 %6003 }
0x2812   :  { %v6009_v58 = vsel %vm207_vm2, %v6004_v52, 0 }
0x2815   :  { %v6002_v18 = vpop.permute.xlu1 %6001 }
0x2817   :  { %v16079_v63 = vpop.eup %16078 }
0x2818   :  { %v5796_v23 = vsel %vm303_vm3, %v16079_v63, 0.0 }
0x2819   :  { %5797 = vadd.xlane.f32.xlu0 %v5796_v23 }
0x282f   :  { %5853 = vrot.lane.b32.xlu0 %v17052_v22, %s16342_s20 }
0x2833   :  { %5951 = vrot.lane.b32.xlu0 %v17048_v4, %s16344_s23 }
0x28a2   :  { %v5798_v29 = vpop.xlane.xlu0 %5797 }
0x28a3   :  { %16080 = vrcp.f32 %v5798_v29 }
0x28a6   :  { %v5854_v27 = vpop.permute.xlu0 %5853 }
0x28a7   :  { %v5859_v26 = vsel %vm333_vm4, %v5854_v27, 0 }
0x28a8   :  { %15182 = vmatpush3.bf16.msra.mxu1 %v5859_v26 }
0x28a9   :  { %15193 = vmatprep.subr.bf16.mxu1 %v16328_v0 }
0x28aa   :  { %v5952_v40 = vpop.permute.xlu0 %5951 }
0x28b0   :  { %v16081_v35 = vpop.eup %16080 }
0x28b1   :  { %v5802_v36 = vmul.f32 %v16081_v35, %v16079_v63 }
0x28b3   :  { %v5804_v38 = vpack.c.bf16 %v5802_v36, %v5802_v36  ;;  %v13589_v36 = vcombine.low %v17289_v24, %v17289_v24 }
0x28b5   :  { %15184 = vmatmul.mubr.msk.bf16.vlgmr.msra.gmra.mxu1 %vm303_vm3, %v5804_v38  ;;  %v6175_v37 = vrot.slane %v13589_v36, 2 }
0x28b6   :  { %15194 = vmatpush3.bf16.xpose.msra.mxu1 %v5959_v51  ;;  %15195 = vmatprep.mubr.msk.bf16.mxu1 %vm16329_vm0, %v16328_v0 }
0x28b7   :  { %15205 = vmatprep.subr.bf16.mxu1 %v16328_v0  ;;  %v6180_v38 = vsel %vm654_vm5, %v6175_v37, 0 }
0x28bd   :  { %15196 = vmatmul.mubr.msk.bf16.vlgmr.msra.gmra.mxu1 %vm207_vm2, %v5952_v40 }
0x28be   :  { %15207 = vmatprep.mubr.msk.bf16.mxu1 %vm16329_vm0, %v16328_v0 }
0x28ce   :  { %v5847_v42 = vpop.f32.mrf.mxu0 }
0x28d0   :  { %v15179_v31 = vpop.f32.mrf.mxu0 }
0x28d2   :  { %v5850_v43 = vpop.f32.mrf.mxu0 }
0x28d4   :  { %v15180_v44 = vpop.f32.mrf.mxu0 }
0x2975   :  { %v5895_v54 = vpop.f32.mrf.mxu1 }
0x2976   :  { %v5901_v34 = vpack.c.bf16 %v5895_v54, %v5847_v42 }
0x2977   :  { %v15185_v57 = vpop.f32.mrf.mxu1 }
0x2978   :  { %15190 = vmatmul.mubr.msk.bf16.vlgmr.msra.gmra.mxu0 %vm207_vm2, %v5901_v34 }
0x2979   :  { %15200 = vmatpush3.bf16.xpose.msra.mxu0 %v6009_v58  ;;  %v5898_v61 = vpop.f32.mrf.mxu1  ;;  %15201 = vmatprep.mubr.msk.bf16.mxu0 %vm16329_vm0, %v16328_v0 }
0x297a   :  { %15211 = vmatprep.subr.bf16.mxu0 %v16328_v0 }
0x297b   :  { %v15186_v50 = vpop.f32.mrf.mxu1 }
0x297d   :  { %v5995_v55 = vpop.f32.mrf.mxu1 }
0x297e   :  { %v6051_v53 = vsel %vm303_vm3, %v5995_v55, -inf }
0x297f   :  { %6052 = vmax.xlane.f32.xlu0 %v6051_v53  ;;  %v15197_v60 = vpop.f32.mrf.mxu1 }
0x2980   :  { %15202 = vmatmul.mubr.msk.bf16.vlgmr.msra.gmra.mxu0 %vm207_vm2, %v6002_v18 }
0x2981   :  { %v5998_v19 = vpop.f32.mrf.mxu1  ;;  %15213 = vmatprep.mubr.msk.bf16.mxu0 %vm16329_vm0, %v16328_v0 }
0x2983   :  { %v15198_v10 = vpop.f32.mrf.mxu1 }
0x2a08   :  { %v6053_v5 = vpop.xlane.xlu0 %6052 }
0x2a09   :  { %v6057_v7 = vsub.f32 %v5995_v55, %v6053_v5 }
0x2a0b   :  { %v6059_v21 = vmul.f32 1.442695, %v6057_v7 }
0x2a0d   :  { %16082 = vpow2.f32 %v6059_v21 }
0x2a1a   :  { %v16083_v32 = vpop.eup %16082 }
0x2a1b   :  { %v6063_v33 = vsel %vm303_vm3, %v16083_v32, 0.0 }
0x2a1c   :  { %6064 = vadd.xlane.f32.xlu0 %v6063_v33 }
0x2a38   :  { %v5942_v12 = vpop.f32.mrf.mxu0 }
0x2a39   :  { %v17315_v13 = vadd.f32 %v5942_v12, %v17265_v3 }
0x2a3a   :  { %v15191_v20 = vpop.f32.mrf.mxu0 }
0x2a3c   :  { %v5945_v9 = vpop.f32.mrf.mxu0 }
0x2a3d   :  { %v17318_v62 = vadd.f32 %v5945_v9, %v17268_v30 }
0x2a3e   :  { %v15192_v56 = vpop.f32.mrf.mxu0 }
0x2a40   :  { %v6045_v45 = vpop.f32.mrf.mxu0 }
0x2a41   :  { %v6054_v17 = vsel %vm303_vm3, %v6045_v45, -inf }
0x2a42   :  { %6055 = vmax.xlane.f32.xlu1 %v6054_v17  ;;  %v15203_v14 = vpop.f32.mrf.mxu0 }
0x2a44   :  { %v6048_v41 = vpop.f32.mrf.mxu0 }
0x2a46   :  { %v15204_v25 = vpop.f32.mrf.mxu0 }
0x2a53   :  { %6075 = vrot.lane.b32.xlu1 %v17048_v4, %s18159_s24 }
0x2a57   :  { %6227 = vrot.lane.b32.xlu1 %v17048_v4, %s18157_s3 }
0x2a5b   :  { %6277 = vrot.lane.b32.xlu1 %v17052_v22, %s18157_s3 }
0x2a5f   :  { %6275 = vrot.lane.b32.xlu1 %v17052_v22, %s18155_s2 }
0x2aa5   :  { %v6065_v3 = vpop.xlane.xlu0 %6064 }
0x2aa6   :  { %16084 = vrcp.f32 %v6065_v3 }
0x2ab3   :  { %v16085_v30 = vpop.eup %16084 }
0x2ab4   :  { %v6071_v63 = vmul.f32 %v16085_v30, %v16083_v32 }
0x2ab6   :  { %v6073_v27 = vpack.c.bf16 %v6071_v63, %v6071_v63 }
0x2acb   :  { %v6056_v6 = vpop.xlane.xlu1 %6055 }
0x2acc   :  { %v6058_v59 = vsub.f32 %v6045_v45, %v6056_v6 }
0x2ace   :  { %v6061_v23 = vmul.f32 1.442695, %v6058_v59 }
0x2acf   :  { %v6076_v28 = vpop.permute.xlu1 %6075 }
0x2ad0   :  { %16086 = vpow2.f32 %v6061_v23  ;;  %v6081_v29 = vsel %vm333_vm4, %v6076_v28, 0 }
0x2ad1   :  { %15206 = vmatpush3.bf16.msra.mxu1 %v6081_v29 }
0x2ad2   :  { %15217 = vmatprep.subr.bf16.mxu1 %v16328_v0 }
0x2ad3   :  { %v6228_v44 = vpop.permute.xlu1 %6227 }
0x2ad4   :  { %15208 = vmatmul.mubr.msk.bf16.vlgmr.msra.gmra.mxu1 %vm303_vm3, %v6073_v27  ;;  %v6233_v24 = vsel %vm207_vm2, %v6228_v44, 0 }
0x2ad5   :  { %15219 = vmatprep.mubr.msk.bf16.mxu1 %vm16329_vm0, %v16328_v0  ;;  %15218 = vmatpush3.bf16.msra.mxu1 %v6180_v38 }
0x2ad6   :  { %15229 = vmatprep.subr.bf16.mxu1 %v16328_v0 }
0x2ad7   :  { %v6278_v50 = vpop.permute.xlu1 %6277 }
0x2ad8   :  { %v6283_v60 = vsel %vm207_vm2, %v6278_v50, 0 }
0x2adb   :  { %v6276_v21 = vpop.permute.xlu1 %6275 }
0x2add   :  { %v16087_v26 = vpop.eup %16086 }
0x2ade   :  { %v6066_v35 = vsel %vm303_vm3, %v16087_v26, 0.0 }
0x2adf   :  { %6067 = vadd.xlane.f32.xlu0 %v6066_v35 }
0x2af5   :  { %6123 = vrot.lane.b32.xlu0 %v17052_v22, %s18159_s24 }
0x2af9   :  { %6225 = vrot.lane.b32.xlu0 %v17048_v4, %s18155_s2 }
0x2b68   :  { %v6068_v51 = vpop.xlane.xlu0 %6067 }
0x2b69   :  { %16088 = vrcp.f32 %v6068_v51 }
0x2b6c   :  { %v6124_v40 = vpop.permute.xlu0 %6123 }
0x2b6d   :  { %v6129_v42 = vsel %vm333_vm4, %v6124_v40, 0 }
0x2b6e   :  { %15212 = vmatpush3.bf16.msra.mxu0 %v6129_v42 }
0x2b6f   :  { %15223 = vmatprep.subr.bf16.mxu0 %v16328_v0 }
0x2b70   :  { %v6226_v54 = vpop.permute.xlu0 %6225 }
0x2b76   :  { %v16089_v31 = vpop.eup %16088 }
0x2b77   :  { %v6072_v43 = vmul.f32 %v16089_v31, %v16087_v26  ;;  %v17388_v31 = vld [vmem:[#allocation6 + $0x1c] sm:$0xf] }
0x2b79   :  { %v6074_v52 = vpack.c.bf16 %v6072_v43, %v6072_v43  ;;  %v6450_v43 = vsel %vm654_vm5, %v17388_v31, 0 }
0x2b7b   :  { %15214 = vmatmul.mubr.msk.bf16.vlgmr.msra.gmra.mxu0 %vm303_vm3, %v6074_v52 }
0x2b7c   :  { %15224 = vmatpush3.bf16.xpose.msra.mxu0 %v6233_v24  ;;  %15225 = vmatprep.mubr.msk.bf16.mxu0 %vm16329_vm0, %v16328_v0 }
0x2b7d   :  { %15235 = vmatprep.subr.bf16.mxu0 %v16328_v0 }
0x2b83   :  { %15226 = vmatmul.mubr.msk.bf16.vlgmr.msra.gmra.mxu0 %vm207_vm2, %v6226_v54 }
0x2b84   :  { %15237 = vmatprep.mubr.msk.bf16.mxu0 %vm16329_vm0, %v16328_v0 }
0x2b94   :  { %v6117_v34 = vpop.f32.mrf.mxu1 }
0x2b96   :  { %v15209_v57 = vpop.f32.mrf.mxu1 }
0x2b98   :  { %v6120_v58 = vpop.f32.mrf.mxu1 }
0x2b9a   :  { %v15210_v61 = vpop.f32.mrf.mxu1 }
0x2c3b   :  { %v6165_v55 = vpop.f32.mrf.mxu0 }
0x2c3c   :  { %v6171_v53 = vpack.c.bf16 %v6165_v55, %v6117_v34 }
0x2c3d   :  { %v15215_v18 = vpop.f32.mrf.mxu0 }
0x2c3e   :  { %15220 = vmatmul.mubr.msk.bf16.vlgmr.msra.gmra.mxu1 %vm207_vm2, %v6171_v53 }
0x2c3f   :  { %15230 = vmatpush3.bf16.xpose.msra.mxu1 %v6283_v60  ;;  %v6168_v19 = vpop.f32.mrf.mxu0  ;;  %15231 = vmatprep.mubr.msk.bf16.mxu1 %vm16329_vm0, %v16328_v0 }
0x2c40   :  { %15241 = vmatprep.subr.bf16.mxu1 %v16328_v0 }
0x2c41   :  { %v15216_v10 = vpop.f32.mrf.mxu0 }
0x2c43   :  { %v6269_v5 = vpop.f32.mrf.mxu0 }
0x2c44   :  { %v6325_v7 = vsel %vm303_vm3, %v6269_v5, -inf }
0x2c45   :  { %6326 = vmax.xlane.f32.xlu0 %v6325_v7  ;;  %v15227_v32 = vpop.f32.mrf.mxu0 }
0x2c46   :  { %15232 = vmatmul.mubr.msk.bf16.vlgmr.msra.gmra.mxu1 %vm207_vm2, %v6276_v21 }
0x2c47   :  { %v6272_v33 = vpop.f32.mrf.mxu0  ;;  %15243 = vmatprep.mubr.msk.bf16.mxu1 %vm16329_vm0, %v16328_v0 }
0x2c49   :  { %v15228_v12 = vpop.f32.mrf.mxu0 }
0x2cce   :  { %v6327_v20 = vpop.xlane.xlu0 %6326 }
0x2ccf   :  { %v6331_v9 = vsub.f32 %v6269_v5, %v6327_v20 }
0x2cd1   :  { %v6333_v56 = vmul.f32 1.442695, %v6331_v9 }
0x2cd3   :  { %16090 = vpow2.f32 %v6333_v56 }
0x2ce0   :  { %v16091_v45 = vpop.eup %16090 }
0x2ce1   :  { %v6337_v17 = vsel %vm303_vm3, %v16091_v45, 0.0 }
0x2ce2   :  { %6338 = vadd.xlane.f32.xlu0 %v6337_v17 }
0x2cfe   :  { %v6216_v14 = vpop.f32.mrf.mxu1 }
0x2cff   :  { %v17364_v41 = vadd.f32 %v6216_v14, %v17315_v13 }
0x2d00   :  { %v15221_v25 = vpop.f32.mrf.mxu1 }
0x2d02   :  { %v6219_v3 = vpop.f32.mrf.mxu1 }
0x2d03   :  { %v17367_v30 = vadd.f32 %v6219_v3, %v17318_v62 }
0x2d04   :  { %v15222_v6 = vpop.f32.mrf.mxu1 }
0x2d06   :  { %v6319_v59 = vpop.f32.mrf.mxu1 }
0x2d07   :  { %v6328_v63 = vsel %vm303_vm3, %v6319_v59, -inf }
0x2d08   :  { %6329 = vmax.xlane.f32.xlu1 %v6328_v63  ;;  %v15233_v23 = vpop.f32.mrf.mxu1 }
0x2d0a   :  { %v6322_v28 = vpop.f32.mrf.mxu1 }
0x2d0c   :  { %v15234_v29 = vpop.f32.mrf.mxu1 }
0x2d19   :  { %6349 = vrot.lane.b32.xlu1 %v17048_v4, %s18161_s0 }
0x2d1d   :  { %6497 = vrot.lane.b32.xlu1 %v17048_v4, %s18162_s8 }
0x2d21   :  { %6547 = vrot.lane.b32.xlu1 %v17052_v22, %s18162_s8 }
0x2d25   :  { %6545 = vrot.lane.b32.xlu1 %v17052_v22, %s18163_s9 }
0x2d6b   :  { %v6339_v13 = vpop.xlane.xlu0 %6338 }
0x2d6c   :  { %16092 = vrcp.f32 %v6339_v13 }
0x2d79   :  { %v16093_v62 = vpop.eup %16092 }
0x2d7a   :  { %v6345_v35 = vmul.f32 %v16093_v62, %v16091_v45 }
0x2d7c   :  { %v6347_v51 = vpack.c.bf16 %v6345_v35, %v6345_v35 }
0x2d91   :  { %v6330_v27 = vpop.xlane.xlu1 %6329 }
0x2d92   :  { %v6332_v26 = vsub.f32 %v6319_v59, %v6330_v27 }
0x2d94   :  { %v6335_v36 = vmul.f32 1.442695, %v6332_v26 }
0x2d95   :  { %v6350_v37 = vpop.permute.xlu1 %6349 }
0x2d96   :  { %16094 = vpow2.f32 %v6335_v36  ;;  %v6355_v38 = vsel %vm333_vm4, %v6350_v37, 0 }
0x2d97   :  { %15236 = vmatpush3.bf16.msra.mxu0 %v6355_v38 }
0x2d98   :  { %15247 = vmatprep.subr.bf16.mxu0 %v16328_v0 }
0x2d99   :  { %v6498_v57 = vpop.permute.xlu1 %6497 }
0x2d9a   :  { %15238 = vmatmul.mubr.msk.bf16.vlgmr.msra.gmra.mxu0 %vm303_vm3, %v6347_v51  ;;  %v6503_v61 = vsel %vm207_vm2, %v6498_v57, 0 }
0x2d9b   :  { %15249 = vmatprep.mubr.msk.bf16.mxu0 %vm16329_vm0, %v16328_v0  ;;  %15248 = vmatpush3.bf16.msra.mxu0 %v6450_v43 }
0x2d9c   :  { %15259 = vmatprep.subr.bf16.mxu0 %v16328_v0 }
0x2d9d   :  { %v6548_v19 = vpop.permute.xlu1 %6547 }
0x2d9e   :  { %v6553_v21 = vsel %vm207_vm2, %v6548_v19, 0 }
0x2da1   :  { %v6546_v9 = vpop.permute.xlu1 %6545 }
0x2da3   :  { %v16095_v40 = vpop.eup %16094 }
0x2da4   :  { %v6340_v42 = vsel %vm303_vm3, %v16095_v40, 0.0 }
0x2da5   :  { %6341 = vadd.xlane.f32.xlu0 %v6340_v42 }
0x2dbb   :  { %6397 = vrot.lane.b32.xlu0 %v17052_v22, %s18161_s0 }
0x2dbf   :  { %6495 = vrot.lane.b32.xlu0 %v17048_v4, %s18163_s9 }
0x2e2e   :  { %v6342_v44 = vpop.xlane.xlu0 %6341 }
0x2e2f   :  { %16096 = vrcp.f32 %v6342_v44 }
0x2e32   :  { %v6398_v52 = vpop.permute.xlu0 %6397 }
0x2e33   :  { %v6403_v24 = vsel %vm333_vm4, %v6398_v52, 0 }
0x2e34   :  { %15242 = vmatpush3.bf16.msra.mxu1 %v6403_v24 }
0x2e35   :  { %15253 = vmatprep.subr.bf16.mxu1 %v16328_v0 }
0x2e36   :  { %v6496_v50 = vpop.permute.xlu0 %6495 }
0x2e3c   :  { %v16097_v54 = vpop.eup %16096 }
0x2e3d   :  { %v6346_v34 = vmul.f32 %v16097_v54, %v16095_v40  ;;  %v13600_v54 = vcombine.low %v17388_v31, %v17388_v31 }
0x2e3f   :  { %v6348_v58 = vpack.c.bf16 %v6346_v34, %v6346_v34  ;;  %v6719_v34 = vrot.slane %v13600_v54, 2 }
0x2e41   :  { %15244 = vmatmul.mubr.msk.bf16.vlgmr.msra.gmra.mxu1 %vm303_vm3, %v6348_v58  ;;  %v6724_v57 = vsel %vm654_vm5, %v6719_v34, 0 }
0x2e42   :  { %15254 = vmatpush3.bf16.xpose.msra.mxu1 %v6503_v61  ;;  %15255 = vmatprep.mubr.msk.bf16.mxu1 %vm16329_vm0, %v16328_v0 }
0x2e43   :  { %15265 = vmatprep.subr.bf16.mxu1 %v16328_v0 }
0x2e49   :  { %15256 = vmatmul.mubr.msk.bf16.vlgmr.msra.gmra.mxu1 %vm207_vm2, %v6496_v50 }
0x2e4a   :  { %15267 = vmatprep.mubr.msk.bf16.mxu1 %vm16329_vm0, %v16328_v0 }
0x2e5a   :  { %v6391_v55 = vpop.f32.mrf.mxu0 }
0x2e5c   :  { %v15239_v53 = vpop.f32.mrf.mxu0 }
0x2e5e   :  { %v6394_v18 = vpop.f32.mrf.mxu0 }
0x2e60   :  { %v15240_v60 = vpop.f32.mrf.mxu0 }
0x2f01   :  { %v6439_v10 = vpop.f32.mrf.mxu1 }
0x2f02   :  { %v6445_v5 = vpack.c.bf16 %v6439_v10, %v6391_v55 }
0x2f03   :  { %v15245_v7 = vpop.f32.mrf.mxu1 }
0x2f04   :  { %15250 = vmatmul.mubr.msk.bf16.vlgmr.msra.gmra.mxu0 %vm207_vm2, %v6445_v5 }
0x2f05   :  { %15260 = vmatpush3.bf16.xpose.msra.mxu0 %v6553_v21  ;;  %v6442_v32 = vpop.f32.mrf.mxu1  ;;  %15261 = vmatprep.mubr.msk.bf16.mxu0 %vm16329_vm0, %v16328_v0 }
0x2f06   :  { %15271 = vmatprep.subr.bf16.mxu0 %v16328_v0 }
0x2f07   :  { %v15246_v33 = vpop.f32.mrf.mxu1 }
0x2f09   :  { %v6539_v12 = vpop.f32.mrf.mxu1 }
0x2f0a   :  { %v6595_v20 = vsel %vm303_vm3, %v6539_v12, -inf }
0x2f0b   :  { %6596 = vmax.xlane.f32.xlu0 %v6595_v20  ;;  %v15257_v56 = vpop.f32.mrf.mxu1 }
0x2f0c   :  { %15262 = vmatmul.mubr.msk.bf16.vlgmr.msra.gmra.mxu0 %vm207_vm2, %v6546_v9 }
0x2f0d   :  { %v6542_v45 = vpop.f32.mrf.mxu1  ;;  %15273 = vmatprep.mubr.msk.bf16.mxu0 %vm16329_vm0, %v16328_v0 }
0x2f0f   :  { %v15258_v17 = vpop.f32.mrf.mxu1 }
0x2f94   :  { %v6597_v14 = vpop.xlane.xlu0 %6596 }
0x2f95   :  { %v6601_v25 = vsub.f32 %v6539_v12, %v6597_v14  ;;  %v13603_v12 = vld [vmem:[%s18137_s4 + $0x1] ss:$0 sm:$0xff] }
0x2f97   :  { %v6603_v3 = vmul.f32 1.442695, %v6601_v25 }
0x2f99   :  { %16098 = vpow2.f32 %v6603_v3 }
0x2fa6   :  { %v16099_v6 = vpop.eup %16098 }
0x2fa7   :  { %v6607_v59 = vsel %vm303_vm3, %v16099_v6, 0.0 }
0x2fa8   :  { %6608 = vadd.xlane.f32.xlu0 %v6607_v59 }
0x2fc4   :  { %v6486_v63 = vpop.f32.mrf.mxu0 }
0x2fc5   :  { %v6493_v23 = vadd.f32 %v6486_v63, %v17364_v41 }
0x2fc6   :  { %v15251_v28 = vpop.f32.mrf.mxu0 }
0x2fc8   :  { %v6489_v29 = vpop.f32.mrf.mxu0 }
0x2fc9   :  { %v6494_v13 = vadd.f32 %v6489_v29, %v17367_v30 }
0x2fca   :  { %v15252_v62 = vpop.f32.mrf.mxu0 }
0x2fcb   :  { %v6859_v62 = vld [vmem:[#allocation7 + $0x1c0] sm:$0xff] }
0x2fcc   :  { %v6589_v27 = vpop.f32.mrf.mxu0 }
0x2fcd   :  { %v6598_v26 = vsel %vm303_vm3, %v6589_v27, -inf }
0x2fce   :  { %6599 = vmax.xlane.f32.xlu1 %v6598_v26  ;;  %v15263_v35 = vpop.f32.mrf.mxu0 }
0x2fcf   :  { %v6860_v35 = vld [vmem:[#allocation7 + $0x1c8] sm:$0xff] }
0x2fd0   :  { %v6592_v36 = vpop.f32.mrf.mxu0 }
0x2fd2   :  { %v15264_v37 = vpop.f32.mrf.mxu0 }
0x2fdf   :  { %6619 = vrot.lane.b32.xlu1 %v17048_v4, %s18164_s29 }
0x3031   :  { %v6609_v38 = vpop.xlane.xlu0 %6608 }
0x3032   :  { %16100 = vrcp.f32 %v6609_v38  ;;  %v6835_v38 = vld [vmem:[#allocation7 + $0x100] sm:$0xff] }
0x303f   :  { %v16101_v51 = vpop.eup %16100 }
0x3040   :  { %v6615_v42 = vmul.f32 %v16101_v51, %v16099_v6  ;;  %v6843_v51 = vld [vmem:[#allocation7 + $0x140] sm:$0xff] }
0x3042   :  { %v6617_v52 = vpack.c.bf16 %v6615_v42, %v6615_v42  ;;  %v6844_v42 = vld [vmem:[#allocation7 + $0x148] sm:$0xff] }
0x3057   :  { %v6600_v40 = vpop.xlane.xlu1 %6599 }
0x3058   :  { %v6602_v41 = vsub.f32 %v6589_v27, %v6600_v40  ;;  %v6852_v27 = vld [vmem:[#allocation7 + $0x188] sm:$0xff] }
0x3059   :  { %v13626_v36 = vcombine.low %v6852_v27, %v6860_v35  ;;  %v13627_v37 = vcombine.high %v6852_v27, %v6860_v35  ;;  %v6836_v40 = vld [vmem:[#allocation7 + $0x108] sm:$0xff] }
0x305a   :  { %v6605_v43 = vmul.f32 1.442695, %v6602_v41  ;;  %v13609_v41 = vcombine.high %v6835_v38, %v6843_v51 }
0x305b   :  { %v6620_v44 = vpop.permute.xlu1 %6619 }
0x305c   :  { %16102 = vpow2.f32 %v6605_v43  ;;  %v6625_v30 = vsel %vm333_vm4, %v6620_v44, 0  ;;  %v13608_v43 = vcombine.low %v6835_v38, %v6843_v51  ;;  %v13610_v44 = vcombine.low %v6836_v40, %v6844_v42  ;;  %v6864_v38 = vld [vmem:[#allocation7 + $0x1e8] sm:$0xff] }
0x305d   :  { %15266 = vmatpush3.bf16.msra.mxu1 %v6625_v30  ;;  %v13611_v30 = vcombine.high %v6836_v40, %v6844_v42 }
0x305e   :  { %15277 = vmatprep.subr.bf16.mxu1 %v16328_v0 }
0x3060   :  { %15268 = vmatmul.mubr.msk.bf16.vlgmr.msra.gmra.mxu1 %vm303_vm3, %v6617_v52  ;;  %v6853_v52 = vld [vmem:[#allocation7 + $0x190] sm:$0xff] }
0x3061   :  { %15279 = vmatprep.mubr.msk.bf16.mxu1 %vm16329_vm0, %v16328_v0  ;;  %15278 = vmatpush3.bf16.msra.mxu1 %v6724_v57  ;;  %v6862_v57 = vld [vmem:[#allocation7 + $0x1d8] sm:$0xff] }
0x3062   :  { %7170 = vmatprep.subr.bf16.mxu1 %v13627_v37  ;;  %v6856_v37 = vld [vmem:[#allocation7 + $0x1a8] sm:$0xff] }
0x3063   :  { %v13635_v42 = vcombine.high %v6856_v37, %v6864_v38 }
0x3069   :  { %v16103_v4 = vpop.eup %16102 }
0x306a   :  { %v6610_v24 = vsel %vm303_vm3, %v16103_v4, 0.0 }
0x306b   :  { %6611 = vadd.xlane.f32.xlu0 %v6610_v24  ;;  %v6854_v24 = vld [vmem:[#allocation7 + $0x198] sm:$0xff] }
0x3081   :  { %6667 = vrot.lane.b32.xlu0 %v17052_v22, %s18164_s29 }
0x30f4   :  { %v6612_v58 = vpop.xlane.xlu0 %6611 }
0x30f5   :  { %16104 = vrcp.f32 %v6612_v58  ;;  %v13630_v58 = vcombine.low %v6854_v24, %v6862_v57 }
0x30f8   :  { %v6668_v61 = vpop.permute.xlu0 %6667 }
0x30f9   :  { %v6673_v50 = vsel %vm333_vm4, %v6668_v61, 0  ;;  %v13631_v61 = vcombine.high %v6854_v24, %v6862_v57  ;;  %v13634_v24 = vcombine.low %v6856_v37, %v6864_v38  ;;  %v6857_v57 = vld [vmem:[#allocation7 + $0x1b0] sm:$0xff]  ;;  %v15728_v37 = vld [vmem:[#allocation10 + $0x450] sm:$0xff]  }
0x30fa   :  { %15272 = vmatpush3.bf16.msra.mxu0 %v6673_v50  ;;  %v15729_v38 = vld [vmem:[#allocation10 + $0x4d0] sm:$0xff]  }
0x3102   :  { %v16105_v55 = vpop.eup %16104 }
0x3103   :  { %v6616_v53 = vmul.f32 %v16105_v55, %v16103_v4  ;;  %v6861_v4 = vld [vmem:[#allocation7 + $0x1d0] sm:$0xff] }
0x3104   :  { %v13628_v54 = vcombine.low %v6853_v52, %v6861_v4  ;;  %v13629_v34 = vcombine.high %v6853_v52, %v6861_v4  ;;  %v6848_v52 = vld [vmem:[#allocation7 + $0x168] sm:$0xff] }
0x3105   :  { %v6618_v18 = vpack.c.bf16 %v6616_v53, %v6616_v53 }
0x3107   :  { %15274 = vmatmul.mubr.msk.bf16.vlgmr.msra.gmra.mxu0 %vm303_vm3, %v6618_v18 }
0x3108   :  { %7147 = vmatprep.mubr.bf16.mxu0 %v16352_v1 }
0x3120   :  { %v6661_v22 = vpop.f32.mrf.mxu1 }
0x3122   :  { %v15269_v60 = vpop.f32.mrf.mxu1 }
0x3124   :  { %v6664_v31 = vpop.f32.mrf.mxu1 }
0x3126   :  { %v15270_v19 = vpop.f32.mrf.mxu1 }
0x31c7   :  { %v6709_v10 = vpop.f32.mrf.mxu0 }
0x31c8   :  { %v6715_v5 = vpack.c.bf16 %v6709_v10, %v6661_v22 }
0x31c9   :  { %v15275_v7 = vpop.f32.mrf.mxu0 }
0x31ca   :  { %15280 = vmatmul.mubr.msk.bf16.vlgmr.msra.gmra.mxu1 %vm207_vm2, %v6715_v5 }
0x31cb   :  { %v6712_v21 = vpop.f32.mrf.mxu0  ;;  %7190 = vmatprep.mubr.bf16.mxu1 %v16352_v1  ;;  %7171 = vmatpush1.bf16.msra.mxu1 %v13626_v36  ;;  %v6863_v36 = vld [vmem:[#allocation7 + $0x1e0] sm:$0xff] }
0x31cc   :  { %7172 = vmatprep.subr.bf16.mxu1 %v13611_v30  ;;  %v6840_v30 = vld [vmem:[#allocation7 + $0x128] sm:$0xff] }
0x31cd   :  { %v15276_v32 = vpop.f32.mrf.mxu0 }
0x31cf   :  { %7173 = vmatpush1.bf16.msra.mxu1 %v13610_v44  ;;  %v6847_v44 = vld [vmem:[#allocation7 + $0x160] sm:$0xff] }
0x31d0   :  { %7256 = vmatprep.subr.bf16.mxu1 %v13631_v61  ;;  %v6858_v61 = vld [vmem:[#allocation7 + $0x1b8] sm:$0xff] }
0x328a   :  { %v6760_v33 = vpop.f32.mrf.mxu1 }
0x328b   :  { %v6767_v20 = vadd.f32 %v6760_v33, %v6493_v23 }
0x328c   :  { %v15281_v9 = vpop.f32.mrf.mxu1 }
0x328d   :  { %v6777_v56 = vadd.f32 %v13603_v12, %v6767_v20 }
0x328e   :  { %v6763_v45 = vpop.f32.mrf.mxu1 }
0x328f   :  { %v17438_v17 = vadd.f32 %v6777_v56, %v17039_v16  ;;  %v6768_v14 = vadd.f32 %v6763_v45, %v6494_v13  ;;  %v6851_v13 = vld [vmem:[#allocation7 + $0x180] sm:$0xff] }
0x3290   :  { %v15282_v25 = vpop.f32.mrf.mxu1  ;;  %v13625_v26 = vcombine.high %v6851_v13, %v6859_v62 }
0x3291   :  { %v6778_v3 = vadd.f32 %v13603_v12, %v6768_v14  ;;  %v6785_v6 = vsel %vm157_vm1, %v17438_v17, 0.0  ;;  %v6793_v59 = vmul.f32 %v17438_v17, %v17438_v17  ;;  %v13606_v14 = vld [vmem:[%s18138_s5 + $0x1] ss:$0 sm:$0xff] }
0x3292   :  { %6786 = vadd.xlane.f32.xlu1 %v6785_v6  ;;  %7127 = vmatprep.subr.bf16.mxu0 %v13625_v26 }
0x3293   :  { %v17445_v63 = vadd.f32 %v6778_v3, %v17041_v39  ;;  %v6795_v23 = vsel %vm157_vm1, %v6793_v59, 0.0  ;;  %v13624_v39 = vcombine.low %v6851_v13, %v6859_v62  ;;  %v6838_v13 = vld [vmem:[#allocation7 + $0x118] sm:$0xff] }
0x3295   :  { %v6788_v28 = vsel %vm157_vm1, %v17445_v63, 0.0  ;;  %v6794_v16 = vmul.f32 %v17445_v63, %v17445_v63  ;;  %7128 = vmatpush1.bf16.msra.mxu0 %v13624_v39  ;;  %v6855_v39 = vld [vmem:[#allocation7 + $0x1a0] sm:$0xff] }
0x3296   :  { %6796 = vadd.xlane.f32.xlu1 %v6795_v23  ;;  %6789 = vadd.xlane.f32.xlu0 %v6788_v28  ;;  %v13607_v23 = vld [vmem:[%s18139_s6 + $0x1] ss:$0 sm:$0xff]  ;;  %v13632_v4 = vcombine.low %v6855_v39, %v6863_v36 }
0x3297   :  { %v6798_v29 = vsel %vm157_vm1, %v6794_v16, 0.0  ;;  %7129 = vmatprep.subr.bf16.mxu0 %v13609_v41  ;;  %v6837_v16 = vld [vmem:[#allocation7 + $0x110] sm:$0xff]  ;;  %v13633_v41 = vcombine.high %v6855_v39, %v6863_v36  ;;  %v15726_v39 = vld [vmem:[#allocation10 + $0x418] sm:$0xff]  }
0x3298   :  { %v15727_v36 = vld [vmem:[#allocation10 + $0x498] sm:$0xff]  }
0x3299   :  { %7130 = vmatpush1.bf16.msra.mxu0 %v13608_v43  ;;  %v6839_v43 = vld [vmem:[#allocation7 + $0x120] sm:$0xff] }
0x329a   :  { %6799 = vadd.xlane.f32.xlu0 %v6798_v29  ;;  %7213 = vmatprep.subr.bf16.mxu0 %v13629_v34  ;;  %v6845_v29 = vld [vmem:[#allocation7 + $0x150] sm:$0xff]  ;;  %v13619_v34 = vcombine.high %v6840_v30, %v6848_v52 }
0x329b   :  { %v13612_v51 = vcombine.low %v6837_v16, %v6845_v29 }
0x331b   :  { %v6787_v50 = vpop.xlane.xlu1 %6786 }
0x331c   :  { %v6791_v55 = vmul.f32 0.03125, %v6787_v50  ;;  %v6866_v50 = vld [vmem:[#allocation7 + $0x1f8] sm:$0xff] }
0x331e   :  { %v6803_v22 = vmul.f32 %v6791_v55, %v6791_v55  ;;  %v6809_v9 = vsub.f32 %v17438_v17, %v6791_v55  ;;  %v6846_v17 = vld [vmem:[#allocation7 + $0x158] sm:$0xff]  ;;  %v13616_v55 = vcombine.low %v6839_v43, %v6847_v44 }
0x331f   :  { %v6797_v53 = vpop.xlane.xlu1 %6796  ;;  %v6790_v18 = vpop.xlane.xlu0 %6789  ;;  %v13615_v35 = vcombine.high %v6838_v13, %v6846_v17  ;;  %v13614_v40 = vcombine.low %v6838_v13, %v6846_v17  ;;  %v15721_v13 = vld [vmem:[#allocation10 + $0x4e0] sm:$0xff]  }
0x3320   :  { %v6801_v60 = vmul.f32 0.03125, %v6797_v53  ;;  %v6792_v31 = vmul.f32 0.03125, %v6790_v18  ;;  %v13618_v53 = vcombine.low %v6840_v30, %v6848_v52  ;;  %v15722_v17 = vld [vmem:[#allocation10 + $0x420] sm:$0xff]  }
0x3321   :  { %v15736_v30 = vld [vmem:[#allocation10 + $0x440] sm:$0xff]  }
0x3322   :  { %v6805_v19 = vsub.f32 %v6801_v60, %v6803_v22  ;;  %v6804_v7 = vmul.f32 %v6792_v31, %v6792_v31  ;;  %v6810_v25 = vsub.f32 %v17445_v63, %v6792_v31  ;;  %v13613_v63 = vcombine.high %v6837_v16, %v6845_v29  ;;  %v6841_v60 = vld [vmem:[#allocation7 + $0x130] sm:$0xff]  ;;  %v15719_v16 = vld [vmem:[#allocation10 + $0x4a8] sm:$0xff]  }
0x3323   :  { %v6800_v10 = vpop.xlane.xlu0 %6799  ;;  %v13639_v22 = vcombine.high %v6858_v61, %v6866_v50  ;;  %v6849_v31 = vld [vmem:[#allocation7 + $0x170] sm:$0xff] }
0x3324   :  { %v6807_v5 = vmax.f32 %v6805_v19, 0.0  ;;  %v6802_v21 = vmul.f32 0.03125, %v6800_v10  ;;  %v6842_v19 = vld [vmem:[#allocation7 + $0x138] sm:$0xff]  ;;  %v15720_v29 = vld [vmem:[#allocation10 + $0x460] sm:$0xff]  }
0x3325   :  { %v6850_v10 = vld [vmem:[#allocation7 + $0x178] sm:$0xff]  ;;  %v15737_v52 = vld [vmem:[#allocation10 + $0x4c0] sm:$0xff]  }
0x3326   :  { %v6811_v32 = vadd.f32 1e-05, %v6807_v5  ;;  %v6806_v33 = vsub.f32 %v6802_v21, %v6804_v7  ;;  %v13638_v7 = vcombine.low %v6858_v61, %v6866_v50  ;;  %v13621_v21 = vcombine.high %v6841_v60, %v6849_v31 }
0x3328   :  { %16106 = vrsqrt.f32 %v6811_v32  ;;  %v6808_v12 = vmax.f32 %v6806_v33, 0.0  ;;  %v13623_v32 = vcombine.high %v6842_v19, %v6850_v10  ;;  %v13620_v33 = vcombine.low %v6841_v60, %v6849_v31 }
0x332a   :  { %v6812_v20 = vadd.f32 1e-05, %v6808_v12  ;;  %v13622_v12 = vcombine.low %v6842_v19, %v6850_v10 }
0x332c   :  { %16108 = vrsqrt.f32 %v6812_v20  ;;  %v15708_v20 = vld [vmem:[#allocation10 + $0x478] sm:$0xff]  }
0x3335   :  { %v16107_v56 = vpop.eup %16106 }
0x3336   :  { %v6815_v45 = vmul.f32 %v16107_v56, %v6809_v9  ;;  %v15709_v9 = vld [vmem:[#allocation10 + $0x4f8] sm:$0xff]  }
0x3337   :  { %v15710_v56 = vld [vmem:[#allocation10 + $0x438] sm:$0xff]  }
0x3338   :  { %v6823_v6 = vmul.f32 %v13606_v14, %v6815_v45  ;;  %v15711_v45 = vld [vmem:[#allocation10 + $0x4b8] sm:$0xff]  }
0x3339   :  { %v16109_v3 = vpop.eup %16108 }
0x333a   :  { %v6816_v59 = vmul.f32 %v16109_v3, %v6810_v25  ;;  %v17461_v62 = vadd.f32 %v13607_v23, %v6823_v6  ;;  %v15713_v25 = vld [vmem:[#allocation10 + $0x4f0] sm:$0xff]  }
0x333b   :  { %v15714_v3 = vld [vmem:[#allocation10 + $0x430] sm:$0xff]  }
0x333c   :  { %v6824_v28 = vmul.f32 %v13606_v14, %v6816_v59  ;;  %v15712_v14 = vld [vmem:[#allocation10 + $0x470] sm:$0xff]   ;;  %v15716_v59 = vld [vmem:[#allocation10 + $0x468] sm:$0xff]  }
0x333d   :  { %v15715_v6 = vld [vmem:[#allocation10 + $0x4b0] sm:$0xff]  }
0x333e   :  { %v17463_v27 = vadd.f32 %v13607_v23, %v6824_v28  ;;  %v15717_v23 = vld [vmem:[#allocation10 + $0x4e8] sm:$0xff]  }
0x333f   :  { %v15718_v28 = vld [vmem:[#allocation10 + $0x428] sm:$0xff]  }
0x3340   :  { %v17467_v26 = vpack.c.bf16 %v17463_v27, %v17461_v62 }
0x3342   :  { %13640 = vmatmul.mubr.msk.bf16.vlgmr.msra.gmra.mxu0 %vm157_vm1, %v17467_v26  ;;  %13641 = vmatmul.mubr.msk.bf16.vlgmr.msra.gmra.mxu1 %vm157_vm1, %v17467_v26 }
0x3343   :  { %7214 = vmatpush1.bf16.msra.mxu0 %v13628_v54  ;;  %7257 = vmatpush1.bf16.msra.mxu1 %v13630_v58  ;;  %v13617_v54 = vcombine.high %v6839_v43, %v6847_v44  ;;  %v6865_v58 = vld [vmem:[#allocation7 + $0x1f0] sm:$0xff]  ;;  %v15734_v43 = vld [vmem:[#allocation10 + $0x408] sm:$0xff]  }
0x3344   :  { %7215 = vmatprep.subr.bf16.mxu0 %v13613_v63  ;;  %7258 = vmatprep.subr.bf16.mxu1 %v13615_v35  ;;  %v13637_v18 = vcombine.high %v6857_v57, %v6865_v58  ;;  %v13636_v5 = vcombine.low %v6857_v57, %v6865_v58  ;;  %v15724_v63 = vld [vmem:[#allocation10 + $0x458] sm:$0xff]   ;;  %v15735_v44 = vld [vmem:[#allocation10 + $0x488] sm:$0xff]   ;;  %v17491_v57 = vld [vmem:[#allocation9 + $0x10] sm:$0xff] }
0x3345   :  { %7233 = vmatprep.mubr.bf16.mxu0 %v16352_v1  ;;  %7276 = vmatprep.mubr.bf16.mxu1 %v16352_v1  ;;  %v15725_v35 = vld [vmem:[#allocation10 + $0x4d8] sm:$0xff]   ;;  %v6879_v50 = vrot.slane %v17491_v57, %v16921_v46 }
0x3347   :  { %7216 = vmatpush1.bf16.msra.mxu0 %v13612_v51  ;;  %7259 = vmatpush1.bf16.msra.mxu1 %v13614_v40  ;;  %v15730_v51 = vld [vmem:[#allocation10 + $0x410] sm:$0xff]  }
0x3348   :  { %7299 = vmatprep.subr.bf16.mxu0 %v13633_v41  ;;  %7342 = vmatprep.subr.bf16.mxu1 %v13635_v42  ;;  %v15731_v40 = vld [vmem:[#allocation10 + $0x490] sm:$0xff]   ;;  %v15732_v41 = vld [vmem:[#allocation10 + $0x448] sm:$0xff]  }
0x3349   :  { %v15733_v42 = vld [vmem:[#allocation10 + $0x4c8] sm:$0xff]  }
0x334a   :  { %13642 = vmatmul.mubr.msk.bf16.vlgmr.msra.gmra.mxu0 %vm157_vm1, %v17467_v26  ;;  %13643 = vmatmul.mubr.msk.bf16.vlgmr.msra.gmra.mxu1 %vm157_vm1, %v17467_v26 }
0x334b   :  { %7300 = vmatpush1.bf16.msra.mxu0 %v13632_v4  ;;  %7343 = vmatpush1.bf16.msra.mxu1 %v13634_v24  ;;  %v15738_v4 = vld [vmem:[#allocation10 + $0x400] sm:$0xff]  }
0x334c   :  { %7301 = vmatprep.subr.bf16.mxu0 %v13617_v54  ;;  %7344 = vmatprep.subr.bf16.mxu1 %v13619_v34  ;;  %v15739_v24 = vld [vmem:[#allocation10 + $0x480] sm:$0xff]   ;;  %v15740_v54 = vld [vmem:[#allocation10 + $0x578] sm:$0xff]  }
0x334d   :  { %7319 = vmatprep.mubr.bf16.mxu0 %v16352_v1  ;;  %7362 = vmatprep.mubr.bf16.mxu1 %v16352_v1  ;;  %v15741_v34 = vld [vmem:[#allocation10 + $0x5f8] sm:$0xff]  }
0x334f   :  { %7302 = vmatpush1.bf16.msra.mxu0 %v13616_v55  ;;  %7345 = vmatpush1.bf16.msra.mxu1 %v13618_v53  ;;  %v6887_v55 = vrot.slane %v17491_v57, %v16924_v47  ;;  %v6875_v53 = vrot.slane %v17491_v57, %v16927_v48 }
0x3350   :  { %7385 = vmatprep.subr.bf16.mxu0 %v13637_v18  ;;  %7428 = vmatprep.subr.bf16.mxu1 %v13639_v22  ;;  %v6883_v18 = vrot.slane %v17491_v57, %v16930_v49 }
0x3352   :  { %13644 = vmatmul.mubr.msk.bf16.vlgmr.msra.gmra.mxu0 %vm157_vm1, %v17467_v26  ;;  %13645 = vmatmul.mubr.msk.bf16.vlgmr.msra.gmra.mxu1 %vm157_vm1, %v17467_v26 }
0x3353   :  { %7386 = vmatpush1.bf16.msra.mxu0 %v13636_v5  ;;  %7429 = vmatpush1.bf16.msra.mxu1 %v13638_v7 }
0x3354   :  { %7387 = vmatprep.subr.bf16.mxu0 %v13621_v21  ;;  %7430 = vmatprep.subr.bf16.mxu1 %v13623_v32 }
0x3355   :  { %7405 = vmatprep.mubr.bf16.mxu0 %v16352_v1  ;;  %7448 = vmatprep.mubr.bf16.mxu1 %v16352_v1 }
0x3357   :  { %7388 = vmatpush1.bf16.msra.mxu0 %v13620_v33  ;;  %7431 = vmatpush1.bf16.msra.mxu1 %v13622_v12 }
0x3358   :  { %14352 = vmatprep.subr.bf16.mxu0 %v15708_v20  ;;  %14374 = vmatprep.subr.bf16.mxu1 %v15709_v9 }
0x335a   :  { %13646 = vmatmul.mubr.msk.bf16.vlgmr.msra.gmra.mxu0 %vm157_vm1, %v17467_v26  ;;  %13647 = vmatmul.mubr.msk.bf16.vlgmr.msra.gmra.mxu1 %vm157_vm1, %v17467_v26  ;;  %v15723_v26 = vld [vmem:[#allocation10 + $0x4a0] sm:$0xff]  }
0x335b   :  { %14353 = vmatpush3.bf16.msra.mxu0 %v15710_v56  ;;  %14375 = vmatpush3.bf16.msra.mxu1 %v15711_v45 }
0x335c   :  { %14354 = vmatprep.subr.bf16.mxu0 %v15712_v14  ;;  %14376 = vmatprep.subr.bf16.mxu1 %v15713_v25 }
0x335f   :  { %14355 = vmatpush3.bf16.msra.mxu0 %v15714_v3  ;;  %14377 = vmatpush3.bf16.msra.mxu1 %v15715_v6  ;;  %v6895_v6 = vrot.slane %v17491_v57, %v16943_v2 }
0x3360   :  { %14356 = vmatprep.subr.bf16.mxu0 %v15716_v59  ;;  %14378 = vmatprep.subr.bf16.mxu1 %v15717_v23 }
0x3363   :  { %14357 = vmatpush3.bf16.msra.mxu0 %v15718_v28  ;;  %14379 = vmatpush3.bf16.msra.mxu1 %v15719_v16 }
0x3364   :  { %14358 = vmatprep.subr.bf16.mxu0 %v15720_v29  ;;  %14380 = vmatprep.subr.bf16.mxu1 %v15721_v13 }
0x3367   :  { %14359 = vmatpush3.bf16.msra.mxu0 %v15722_v17  ;;  %14381 = vmatpush3.bf16.msra.mxu1 %v15723_v26  ;;  %v6903_v26 = vrot.slane %v17491_v57, %v16946_v15 }
0x3368   :  { %14360 = vmatprep.subr.bf16.mxu0 %v15724_v63  ;;  %14382 = vmatprep.subr.bf16.mxu1 %v15725_v35 }
0x336b   :  { %14361 = vmatpush3.bf16.msra.mxu0 %v15726_v39  ;;  %14383 = vmatpush3.bf16.msra.mxu1 %v15727_v36  ;;  %v15742_v36 = vld [vmem:[#allocation10 + $0x538] sm:$0xff]  }
0x336c   :  { %14362 = vmatprep.subr.bf16.mxu0 %v15728_v37  ;;  %14384 = vmatprep.subr.bf16.mxu1 %v15729_v38  ;;  %v15743_v37 = vld [vmem:[#allocation10 + $0x5b8] sm:$0xff]  }
0x336f   :  { %14363 = vmatpush3.bf16.msra.mxu0 %v15730_v51  ;;  %14385 = vmatpush3.bf16.msra.mxu1 %v15731_v40 }
0x3370   :  { %14364 = vmatprep.subr.bf16.mxu0 %v15732_v41  ;;  %14386 = vmatprep.subr.bf16.mxu1 %v15733_v42  ;;  %v15744_v42 = vld [vmem:[#allocation10 + $0x570] sm:$0xff]  }
0x3373   :  { %14365 = vmatpush3.bf16.msra.mxu0 %v15734_v43  ;;  %14387 = vmatpush3.bf16.msra.mxu1 %v15735_v44  ;;  %v15745_v43 = vld [vmem:[#allocation10 + $0x5f0] sm:$0xff]  }
0x3374   :  { %14366 = vmatprep.subr.bf16.mxu0 %v15736_v30  ;;  %14388 = vmatprep.subr.bf16.mxu1 %v15737_v52 }
0x3377   :  { %14367 = vmatpush3.bf16.msra.mxu0 %v15738_v4  ;;  %14389 = vmatpush3.bf16.msra.mxu1 %v15739_v24 }
0x3378   :  { %14396 = vmatprep.subr.bf16.mxu0 %v15740_v54  ;;  %14418 = vmatprep.subr.bf16.mxu1 %v15741_v34  ;;  %v15746_v34 = vld [vmem:[#allocation10 + $0x530] sm:$0xff]  }
0x3402   :  { %v7149_v58 = vpop.f32.mrf.mxu0  ;;  %v7192_v61 = vpop.f32.mrf.mxu1 }
0x3403   :  { %v7150_v32 = vadd.f32 %v7149_v58, %v6875_v53  ;;  %v7193_v33 = vadd.f32 %v7192_v61, %v6883_v18  ;;  %v15747_v58 = vld [vmem:[#allocation10 + $0x5b0] sm:$0xff]   ;;  %v15748_v61 = vld [vmem:[#allocation10 + $0x568] sm:$0xff]  }
0x3404   :  { %v7151_v22 = vpop.f32.mrf.mxu0  ;;  %v7194_v60 = vpop.f32.mrf.mxu1 }
0x3405   :  { %v7152_v10 = vadd.f32 %v7151_v22, %v6879_v50  ;;  %v7195_v5 = vadd.f32 %v7194_v60, %v6887_v55  ;;  %v7459_v29 = vmax.f32 %v7150_v32, 0.0  ;;  %v7461_v13 = vmax.f32 %v7193_v33, 0.0  ;;  %v15754_v33 = vld [vmem:[#allocation10 + $0x520] sm:$0xff]  }
0x3406   :  { %v7153_v31 = vpop.f32.mrf.mxu0  ;;  %v7196_v19 = vpop.f32.mrf.mxu1 }
0x3407   :  { %v7154_v7 = vadd.f32 %v7153_v31, %v6875_v53  ;;  %v7197_v21 = vadd.f32 %v7196_v19, %v6883_v18  ;;  %v7460_v59 = vmax.f32 %v7152_v10, 0.0  ;;  %v7462_v23 = vmax.f32 %v7195_v5, 0.0  ;;  %v15750_v31 = vld [vmem:[#allocation10 + $0x528] sm:$0xff]   ;;  %v15752_v5 = vld [vmem:[#allocation10 + $0x560] sm:$0xff]  }
0x3408   :  { %v7155_v12 = vpop.f32.mrf.mxu0  ;;  %v7198_v20 = vpop.f32.mrf.mxu1  ;;  %v15751_v19 = vld [vmem:[#allocation10 + $0x5a8] sm:$0xff]  }
0x3409   :  { %v7156_v9 = vadd.f32 %v7155_v12, %v6879_v50  ;;  %v7199_v56 = vadd.f32 %v7198_v20, %v6887_v55  ;;  %v7475_v45 = vmax.f32 %v7154_v7, 0.0  ;;  %v7477_v14 = vmax.f32 %v7197_v21, 0.0  ;;  %v15749_v50 = vld [vmem:[#allocation10 + $0x5e8] sm:$0xff]   ;;  %v15753_v7 = vld [vmem:[#allocation10 + $0x5e0] sm:$0xff]   ;;  %v15756_v20 = vld [vmem:[#allocation10 + $0x558] sm:$0xff]  }
0x340a   :  { %v17501_v25 = vpop.f32.mrf.mxu0  ;;  %v17503_v3 = vpop.f32.mrf.mxu1  ;;  %v15755_v12 = vld [vmem:[#allocation10 + $0x5a0] sm:$0xff]  }
0x340b   :  { %v7476_v28 = vmax.f32 %v7156_v9, 0.0  ;;  %v7478_v16 = vmax.f32 %v7199_v56, 0.0  ;;  %v7491_v38 = vpack.c.bf16 %v7475_v45, %v7459_v29  ;;  %v7493_v51 = vpack.c.bf16 %v7477_v14, %v7461_v13  ;;  %v15757_v9 = vld [vmem:[#allocation10 + $0x5d8] sm:$0xff]   ;;  %v15762_v29 = vld [vmem:[#allocation10 + $0x510] sm:$0xff]  }
0x340c   :  { %v7237_v17 = vpop.f32.mrf.mxu0  ;;  %v7280_v63 = vpop.f32.mrf.mxu1  ;;  %v15758_v14 = vld [vmem:[#allocation10 + $0x518] sm:$0xff]   ;;  %v15763_v13 = vld [vmem:[#allocation10 + $0x590] sm:$0xff]  }
0x340d   :  { %v7492_v35 = vpack.c.bf16 %v7476_v28, %v7460_v59  ;;  %v7494_v39 = vpack.c.bf16 %v7478_v16, %v7462_v23  ;;  %v7238_v44 = vadd.f32 %v7237_v17, %v6895_v6  ;;  %v7281_v30 = vadd.f32 %v7280_v63, %v6903_v26  ;;  %v15760_v59 = vld [vmem:[#allocation10 + $0x550] sm:$0xff]   ;;  %v15764_v17 = vld [vmem:[#allocation10 + $0x548] sm:$0xff]  }
0x340e   :  { %v17509_v40 = vpop.f32.mrf.mxu0  ;;  %v17511_v41 = vpop.f32.mrf.mxu1  ;;  %v15761_v23 = vld [vmem:[#allocation10 + $0x5d0] sm:$0xff]   ;;  %v6891_v63 = vrot.slane %v17491_v57, %v16965_v8 }
0x340f   :  { %8572 = vmatprep.mubr.bf16.mxu0 %v7492_v35  ;;  %8613 = vmatprep.mubr.bf16.mxu1 %v7494_v39  ;;  %v7464_v55 = vmax.f32 %v7238_v44, 0.0  ;;  %v7466_v22 = vmax.f32 %v7281_v30, 0.0  ;;  %v6899_v35 = vrot.slane %v17491_v57, %v16968_v11  ;;  %v17525_v39 = vld [vmem:[#allocation9 + $0x18] sm:$0xff]  ;;  %v15768_v57 = vld [vmem:[#allocation10 + $0x540] sm:$0xff]  }
0x3410   :  { %v7241_v52 = vpop.f32.mrf.mxu0  ;;  %v7284_v4 = vpop.f32.mrf.mxu1  ;;  %8573 = vmatmul.mubr.bf16.vlgmr.msra.gmra.mxu0 %v7491_v38  ;;  %8614 = vmatmul.mubr.bf16.vlgmr.msra.gmra.mxu1 %v7493_v51  ;;  %v15766_v51 = vld [vmem:[#allocation10 + $0x508] sm:$0xff]   ;;  %v6919_v30 = vrot.slane %v17525_v39, %v16924_v47 }
0x3411   :  { %v7242_v24 = vadd.f32 %v7241_v52, %v6895_v6  ;;  %v7285_v54 = vadd.f32 %v7284_v4, %v6903_v26  ;;  %14397 = vmatpush3.bf16.msra.mxu0 %v15742_v36  ;;  %14419 = vmatpush3.bf16.msra.mxu1 %v15743_v37  ;;  %v15759_v6 = vld [vmem:[#allocation10 + $0x598] sm:$0xff]   ;;  %v15765_v26 = vld [vmem:[#allocation10 + $0x5c8] sm:$0xff]   ;;  %v6911_v37 = vrot.slane %v17525_v39, %v16921_v46  ;;  %v15769_v52 = vld [vmem:[#allocation10 + $0x5c0] sm:$0xff]  }
0x3412   :  { %14398 = vmatprep.subr.bf16.mxu0 %v15744_v42  ;;  %14420 = vmatprep.subr.bf16.mxu1 %v15745_v43  ;;  %v17513_v21 = vpop.f32.mrf.mxu0  ;;  %v17515_v32 = vpop.f32.mrf.mxu1  ;;  %v15767_v42 = vld [vmem:[#allocation10 + $0x588] sm:$0xff]   ;;  %v7240_v43 = vadd.f32 %v17509_v40, %v6891_v63  ;;  %v7283_v44 = vadd.f32 %v17511_v41, %v6899_v35  ;;  %v15771_v40 = vld [vmem:[#allocation10 + $0x580] sm:$0xff]  }
0x3413   :  { %v7480_v53 = vmax.f32 %v7242_v24, 0.0  ;;  %v7482_v18 = vmax.f32 %v7285_v54, 0.0  ;;  %v7236_v24 = vadd.f32 %v17501_v25, %v6891_v63  ;;  %v7279_v54 = vadd.f32 %v17503_v3, %v6899_v35  ;;  %v15774_v3 = vld [vmem:[#allocation10 + $0x638] sm:$0xff]   ;;  %v15786_v63 = vld [vmem:[#allocation10 + $0x620] sm:$0xff]  }
0x3414   :  { %v7323_v56 = vpop.f32.mrf.mxu0  ;;  %v7366_v45 = vpop.f32.mrf.mxu1  ;;  %v7481_v41 = vmax.f32 %v7283_v44, 0.0  ;;  %v15791_v44 = vld [vmem:[#allocation10 + $0x698] sm:$0xff]  }
0x3415   :  { %14399 = vmatpush3.bf16.msra.mxu0 %v15746_v34  ;;  %14421 = vmatpush3.bf16.msra.mxu1 %v15747_v58  ;;  %v7496_v60 = vpack.c.bf16 %v7480_v53, %v7464_v55  ;;  %v7498_v10 = vpack.c.bf16 %v7482_v18, %v7466_v22  ;;  %v7324_v58 = vadd.f32 %v7323_v56, %v6911_v37  ;;  %v15772_v53 = vld [vmem:[#allocation10 + $0x678] sm:$0xff]  }
0x3416   :  { %14400 = vmatprep.subr.bf16.mxu0 %v15748_v61  ;;  %14422 = vmatprep.subr.bf16.mxu1 %v15749_v50  ;;  %v17517_v28 = vpop.f32.mrf.mxu0  ;;  %v17519_v16 = vpop.f32.mrf.mxu1  ;;  %v15770_v61 = vld [vmem:[#allocation10 + $0x500] sm:$0xff]   ;;  %v7479_v50 = vmax.f32 %v7240_v43, 0.0  ;;  %v7367_v55 = vadd.f32 %v7366_v45, %v6919_v30  ;;  %v15773_v18 = vld [vmem:[#allocation10 + $0x6f8] sm:$0xff]   ;;  %v15778_v45 = vld [vmem:[#allocation10 + $0x630] sm:$0xff]  }
0x3417   :  { %8654 = vmatprep.mubr.bf16.mxu0 %v7496_v60  ;;  %8695 = vmatprep.mubr.bf16.mxu1 %v7498_v10  ;;  %v7463_v60 = vmax.f32 %v7236_v24, 0.0  ;;  %v7468_v25 = vmax.f32 %v7324_v58, 0.0  ;;  %v15797_v58 = vld [vmem:[#allocation10 + $0x6c8] sm:$0xff]  }
0x3418   :  { %v7327_v36 = vpop.f32.mrf.mxu0  ;;  %v7370_v38 = vpop.f32.mrf.mxu1 }
0x3419   :  { %14401 = vmatpush3.bf16.msra.mxu0 %v15750_v31  ;;  %14423 = vmatpush3.bf16.msra.mxu1 %v15751_v19  ;;  %v7328_v4 = vadd.f32 %v7327_v36, %v6911_v37  ;;  %v7371_v34 = vadd.f32 %v7370_v38, %v6919_v30  ;;  %v7465_v31 = vmax.f32 %v7279_v54, 0.0  ;;  %v7495_v10 = vpack.c.bf16 %v7479_v50, %v7463_v60  ;;  %v15787_v36 = vld [vmem:[#allocation10 + $0x6a0] sm:$0xff]   ;;  %v15788_v37 = vld [vmem:[#allocation10 + $0x658] sm:$0xff]   ;;  %v15792_v30 = vld [vmem:[#allocation10 + $0x650] sm:$0xff]  }
0x341a   :  { %14402 = vmatprep.subr.bf16.mxu0 %v15752_v5  ;;  %14424 = vmatprep.subr.bf16.mxu1 %v15753_v7  ;;  %v7470_v7 = vmax.f32 %v7367_v55, 0.0  ;;  %v17537_v35 = vpop.f32.mrf.mxu1  ;;  %v15789_v38 = vld [vmem:[#allocation10 + $0x6d8] sm:$0xff]   ;;  %v15795_v54 = vld [vmem:[#allocation10 + $0x690] sm:$0xff]   ;;  %v15800_v60 = vld [vmem:[#allocation10 + $0x640] sm:$0xff]  }
0x341b   :  { %v7484_v22 = vmax.f32 %v7328_v4, 0.0  ;;  %v7486_v19 = vmax.f32 %v7371_v34, 0.0  ;;  %v7497_v5 = vpack.c.bf16 %v7481_v41, %v7465_v31  ;;  %v15794_v4 = vld [vmem:[#allocation10 + $0x610] sm:$0xff]   ;;  %v15796_v34 = vld [vmem:[#allocation10 + $0x648] sm:$0xff]  }
0x341c   :  { %v7452_v43 = vpop.f32.mrf.mxu1  ;;  %v15798_v41 = vld [vmem:[#allocation10 + $0x608] sm:$0xff]  }
0x341d   :  { %14403 = vmatpush3.bf16.msra.mxu0 %v15754_v33  ;;  %14425 = vmatpush3.bf16.msra.mxu1 %v15755_v12  ;;  %v15775_v33 = vld [vmem:[#allocation10 + $0x6b8] sm:$0xff]   ;;  %v7500_v12 = vpack.c.bf16 %v7484_v22, %v7468_v25  ;;  %v7502_v56 = vpack.c.bf16 %v7486_v19, %v7470_v7  ;;  %v15799_v22 = vld [vmem:[#allocation10 + $0x688] sm:$0xff]   ;;  %v6935_v19 = vrot.slane %v17525_v39, %v16946_v15  ;;  %v15801_v25 = vld [vmem:[#allocation10 + $0x6c0] sm:$0xff]  }
0x341e   :  { %14404 = vmatprep.subr.bf16.mxu0 %v15756_v20  ;;  %14426 = vmatprep.subr.bf16.mxu1 %v15757_v9  ;;  %v15776_v20 = vld [vmem:[#allocation10 + $0x670] sm:$0xff]   ;;  %v17541_v24 = vpop.f32.mrf.mxu1  ;;  %v15802_v7 = vld [vmem:[#allocation10 + $0x600] sm:$0xff]  }
0x341f   :  { %v15777_v9 = vld [vmem:[#allocation10 + $0x6f0] sm:$0xff]  }
0x3421   :  { %14405 = vmatpush3.bf16.msra.mxu0 %v15758_v14  ;;  %14427 = vmatpush3.bf16.msra.mxu1 %v15759_v6  ;;  %v15779_v14 = vld [vmem:[#allocation10 + $0x6b0] sm:$0xff]   ;;  %v15780_v6 = vld [vmem:[#allocation10 + $0x668] sm:$0xff]  }
0x3422   :  { %14406 = vmatprep.subr.bf16.mxu0 %v15760_v59  ;;  %14428 = vmatprep.subr.bf16.mxu1 %v15761_v23  ;;  %v15781_v59 = vld [vmem:[#allocation10 + $0x6e8] sm:$0xff]  }
0x3423   :  { %v15782_v23 = vld [vmem:[#allocation10 + $0x628] sm:$0xff]  }
0x3425   :  { %14407 = vmatpush3.bf16.msra.mxu0 %v15762_v29  ;;  %14429 = vmatpush3.bf16.msra.mxu1 %v15763_v13  ;;  %v15783_v29 = vld [vmem:[#allocation10 + $0x6a8] sm:$0xff]   ;;  %v15784_v13 = vld [vmem:[#allocation10 + $0x660] sm:$0xff]  }
0x3426   :  { %14408 = vmatprep.subr.bf16.mxu0 %v15764_v17  ;;  %14430 = vmatprep.subr.bf16.mxu1 %v15765_v26  ;;  %v15785_v17 = vld [vmem:[#allocation10 + $0x6e0] sm:$0xff]   ;;  %v17535_v26 = vpop.f32.mrf.mxu0 }
0x3429   :  { %14409 = vmatpush3.bf16.msra.mxu0 %v15766_v51  ;;  %14431 = vmatpush3.bf16.msra.mxu1 %v15767_v42  ;;  %v7409_v51 = vpop.f32.mrf.mxu0  ;;  %v15790_v42 = vld [vmem:[#allocation10 + $0x618] sm:$0xff]  }
0x342a   :  { %14410 = vmatprep.subr.bf16.mxu0 %v15768_v57  ;;  %14432 = vmatprep.subr.bf16.mxu1 %v15769_v52  ;;  %v15793_v57 = vld [vmem:[#allocation10 + $0x6d0] sm:$0xff]  }
0x342b   :  { %v17539_v52 = vpop.f32.mrf.mxu0 }
0x342d   :  { %14411 = vmatpush3.bf16.msra.mxu0 %v15770_v61  ;;  %14433 = vmatpush3.bf16.msra.mxu1 %v15771_v40  ;;  %v6907_v61 = vrot.slane %v17525_v39, %v16927_v48  ;;  %v6915_v40 = vrot.slane %v17525_v39, %v16930_v49  ;;  %v7413_v50 = vpop.f32.mrf.mxu0 }
0x342e   :  { %14440 = vmatprep.subr.bf16.mxu0 %v15772_v53  ;;  %14462 = vmatprep.subr.bf16.mxu1 %v15773_v18  ;;  %v6927_v53 = vrot.slane %v17525_v39, %v16943_v2  ;;  %v7456_v18 = vpop.f32.mrf.mxu1 }
0x342f   :  { %v7326_v55 = vadd.f32 %v17517_v28, %v6907_v61  ;;  %v7369_v31 = vadd.f32 %v17519_v16, %v6915_v40  ;;  %v7365_v28 = vadd.f32 %v17515_v32, %v6915_v40  ;;  %v15820_v40 = vld [vmem:[#allocation10 + $0x758] sm:$0xff]  }
0x3430   :  { %8655 = vmatmul.mubr.bf16.vlgmr.msra.gmra.mxu0 %v7495_v10  ;;  %8696 = vmatmul.mubr.bf16.vlgmr.msra.gmra.mxu1 %v7497_v5  ;;  %v7414_v10 = vadd.f32 %v7413_v50, %v6927_v53  ;;  %v7457_v5 = vadd.f32 %v7456_v18, %v6935_v19  ;;  %v15821_v50 = vld [vmem:[#allocation10 + $0x7d8] sm:$0xff]   ;;  %v15825_v18 = vld [vmem:[#allocation10 + $0x7d0] sm:$0xff]  }
0x3431   :  { %14441 = vmatpush3.bf16.msra.mxu0 %v15774_v3  ;;  %8736 = vmatprep.mubr.bf16.mxu0 %v7500_v12  ;;  %v7322_v3 = vadd.f32 %v17513_v21, %v6907_v61  ;;  %v7410_v12 = vadd.f32 %v7409_v51, %v6927_v53  ;;  %v7485_v16 = vmax.f32 %v7369_v31, 0.0  ;;  %v15819_v61 = vld [vmem:[#allocation10 + $0x7a0] sm:$0xff]   ;;  %v15824_v53 = vld [vmem:[#allocation10 + $0x750] sm:$0xff]   ;;  %v15828_v31 = vld [vmem:[#allocation10 + $0x748] sm:$0xff]  }
0x3432   :  { %14463 = vmatpush3.bf16.msra.mxu1 %v15775_v33  ;;  %8777 = vmatprep.mubr.bf16.mxu1 %v7502_v56  ;;  %v7483_v33 = vmax.f32 %v7326_v55, 0.0  ;;  %v7453_v56 = vadd.f32 %v7452_v43, %v6935_v19  ;;  %v7490_v21 = vmax.f32 %v7457_v5, 0.0  ;;  %v15811_v43 = vld [vmem:[#allocation10 + $0x7b0] sm:$0xff]   ;;  %v15823_v55 = vld [vmem:[#allocation10 + $0x798] sm:$0xff]   ;;  %v15829_v19 = vld [vmem:[#allocation10 + $0x7c8] sm:$0xff]  }
0x3433   :  { %14442 = vmatprep.subr.bf16.mxu0 %v15776_v20  ;;  %14464 = vmatprep.subr.bf16.mxu1 %v15777_v9  ;;  %v15803_v20 = vld [vmem:[#allocation10 + $0x680] sm:$0xff]   ;;  %v15804_v9 = vld [vmem:[#allocation10 + $0x778] sm:$0xff]   ;;  %v15831_v5 = vld [vmem:[#allocation10 + $0x788] sm:$0xff]  }
0x3435   :  { %14443 = vmatpush3.bf16.msra.mxu0 %v15778_v45  ;;  %v15805_v45 = vld [vmem:[#allocation10 + $0x7f8] sm:$0xff]  }
0x3436   :  { %14465 = vmatpush3.bf16.msra.mxu1 %v15779_v14  ;;  %14444 = vmatprep.subr.bf16.mxu0 %v15780_v6  ;;  %v7467_v14 = vmax.f32 %v7322_v3, 0.0  ;;  %v7488_v6 = vmax.f32 %v7414_v10, 0.0  ;;  %v6931_v3 = vrot.slane %v17525_v39, %v16968_v11  ;;  %v15830_v10 = vld [vmem:[#allocation10 + $0x708] sm:$0xff]  }
0x3437   :  { %14466 = vmatprep.subr.bf16.mxu1 %v15781_v59  ;;  %v7469_v59 = vmax.f32 %v7365_v28, 0.0 }
0x3438   :  { %v7499_v32 = vpack.c.bf16 %v7483_v33, %v7467_v14  ;;  %v7455_v33 = vadd.f32 %v17541_v24, %v6931_v3 }
0x3439   :  { %14445 = vmatpush3.bf16.msra.mxu0 %v15782_v23  ;;  %v15806_v23 = vld [vmem:[#allocation10 + $0x738] sm:$0xff]  }
0x343a   :  { %14467 = vmatpush3.bf16.msra.mxu1 %v15783_v29  ;;  %14446 = vmatprep.subr.bf16.mxu0 %v15784_v13  ;;  %v7472_v29 = vmax.f32 %v7410_v12, 0.0  ;;  %v15807_v13 = vld [vmem:[#allocation10 + $0x7b8] sm:$0xff]   ;;  %v15833_v12 = vld [vmem:[#allocation10 + $0x7c0] sm:$0xff]  }
0x343b   :  { %14468 = vmatprep.subr.bf16.mxu1 %v15785_v17  ;;  %v7501_v17 = vpack.c.bf16 %v7485_v16, %v7469_v59  ;;  %v15834_v16 = vld [vmem:[#allocation10 + $0x700] sm:$0xff]  }
0x343d   :  { %14447 = vmatpush3.bf16.msra.mxu0 %v15786_v63  ;;  %v7474_v63 = vmax.f32 %v7453_v56, 0.0 }
0x343e   :  { %14469 = vmatpush3.bf16.msra.mxu1 %v15787_v36  ;;  %14448 = vmatprep.subr.bf16.mxu0 %v15788_v37  ;;  %v15808_v36 = vld [vmem:[#allocation10 + $0x770] sm:$0xff]   ;;  %v7504_v37 = vpack.c.bf16 %v7488_v6, %v7472_v29 }
0x343f   :  { %14470 = vmatprep.subr.bf16.mxu1 %v15789_v38  ;;  %v15809_v38 = vld [vmem:[#allocation10 + $0x7f0] sm:$0xff]   ;;  %v7506_v51 = vpack.c.bf16 %v7490_v21, %v7474_v63 }
0x3441   :  { %14449 = vmatpush3.bf16.msra.mxu0 %v15790_v42  ;;  %v15810_v42 = vld [vmem:[#allocation10 + $0x730] sm:$0xff]  }
0x3442   :  { %14471 = vmatpush3.bf16.msra.mxu1 %v15791_v44  ;;  %14450 = vmatprep.subr.bf16.mxu0 %v15792_v30  ;;  %v15812_v44 = vld [vmem:[#allocation10 + $0x768] sm:$0xff]  }
0x3443   :  { %14472 = vmatprep.subr.bf16.mxu1 %v15793_v57  ;;  %v15813_v30 = vld [vmem:[#allocation10 + $0x7e8] sm:$0xff]  }
0x3444   :  { %v15814_v57 = vld [vmem:[#allocation10 + $0x728] sm:$0xff]  }
0x3445   :  { %14451 = vmatpush3.bf16.msra.mxu0 %v15794_v4  ;;  %v15815_v4 = vld [vmem:[#allocation10 + $0x7a8] sm:$0xff]  }
0x3446   :  { %14473 = vmatpush3.bf16.msra.mxu1 %v15795_v54  ;;  %14452 = vmatprep.subr.bf16.mxu0 %v15796_v34  ;;  %v15816_v54 = vld [vmem:[#allocation10 + $0x760] sm:$0xff]  }
0x3447   :  { %14474 = vmatprep.subr.bf16.mxu1 %v15797_v58  ;;  %v15817_v34 = vld [vmem:[#allocation10 + $0x7e0] sm:$0xff]  }
0x3448   :  { %v15818_v58 = vld [vmem:[#allocation10 + $0x720] sm:$0xff]  }
0x3449   :  { %14453 = vmatpush3.bf16.msra.mxu0 %v15798_v41  ;;  %v15822_v41 = vld [vmem:[#allocation10 + $0x718] sm:$0xff]  }
0x344a   :  { %14475 = vmatpush3.bf16.msra.mxu1 %v15799_v22  ;;  %14454 = vmatprep.subr.bf16.mxu0 %v15800_v60  ;;  %v15826_v22 = vld [vmem:[#allocation10 + $0x710] sm:$0xff]  }
0x344b   :  { %14476 = vmatprep.subr.bf16.mxu1 %v15801_v25  ;;  %v15827_v60 = vld [vmem:[#allocation10 + $0x790] sm:$0xff]   ;;  %v6923_v25 = vrot.slane %v17525_v39, %v16965_v8  ;;  %v15835_v39 = vld [vmem:[#allocation10 + $0x780] sm:$0xff]  }
0x344d   :  { %14455 = vmatpush3.bf16.msra.mxu0 %v15802_v7  ;;  %v7412_v28 = vadd.f32 %v17539_v52, %v6923_v25  ;;  %v15832_v7 = vld [vmem:[#allocation10 + $0x740] sm:$0xff]  }
0x344e   :  { %14477 = vmatpush3.bf16.msra.mxu1 %v15803_v20  ;;  %14484 = vmatprep.subr.bf16.mxu0 %v15804_v9  ;;  %v7408_v20 = vadd.f32 %v17535_v26, %v6923_v25  ;;  %v7451_v9 = vadd.f32 %v17537_v35, %v6931_v3 }
0x344f   :  { %14506 = vmatprep.subr.bf16.mxu1 %v15805_v45  ;;  %v7487_v56 = vmax.f32 %v7412_v28, 0.0  ;;  %v7489_v45 = vmax.f32 %v7455_v33, 0.0 }
0x3450   :  { %8737 = vmatmul.mubr.bf16.vlgmr.msra.gmra.mxu0 %v7499_v32  ;;  %v7471_v52 = vmax.f32 %v7408_v20, 0.0  ;;  %v7473_v14 = vmax.f32 %v7451_v9, 0.0 }
0x3451   :  { %8778 = vmatmul.mubr.bf16.vlgmr.msra.gmra.mxu1 %v7501_v17  ;;  %14485 = vmatpush3.bf16.msra.mxu0 %v15806_v23 }
0x3452   :  { %8818 = vmatprep.mubr.bf16.mxu0 %v7504_v37  ;;  %14507 = vmatpush3.bf16.msra.mxu1 %v15807_v13  ;;  %v7503_v6 = vpack.c.bf16 %v7487_v56, %v7471_v52  ;;  %v7505_v24 = vpack.c.bf16 %v7489_v45, %v7473_v14 }
0x3453   :  { %8859 = vmatprep.mubr.bf16.mxu1 %v7506_v51  ;;  %14486 = vmatprep.subr.bf16.mxu0 %v15808_v36 }
0x3454   :  { %14508 = vmatprep.subr.bf16.mxu1 %v15809_v38 }
0x3455   :  { %14487 = vmatpush3.bf16.msra.mxu0 %v15810_v42 }
0x3456   :  { %14509 = vmatpush3.bf16.msra.mxu1 %v15811_v43  ;;  %14488 = vmatprep.subr.bf16.mxu0 %v15812_v44  ;;  %v13649_v44 = vld [vmem:[%s18143_s10 + $0x1] ss:$0 sm:$0xff] }
0x3457   :  { %14510 = vmatprep.subr.bf16.mxu1 %v15813_v30 }
0x3459   :  { %14489 = vmatpush3.bf16.msra.mxu0 %v15814_v57 }
0x345a   :  { %14511 = vmatpush3.bf16.msra.mxu1 %v15815_v4  ;;  %14490 = vmatprep.subr.bf16.mxu0 %v15816_v54 }
0x345b   :  { %14512 = vmatprep.subr.bf16.mxu1 %v15817_v34 }
0x345d   :  { %14491 = vmatpush3.bf16.msra.mxu0 %v15818_v58 }
0x345e   :  { %14513 = vmatpush3.bf16.msra.mxu1 %v15819_v61  ;;  %14492 = vmatprep.subr.bf16.mxu0 %v15820_v40 }
0x345f   :  { %14514 = vmatprep.subr.bf16.mxu1 %v15821_v50 }
0x3461   :  { %14493 = vmatpush3.bf16.msra.mxu0 %v15822_v41 }
0x3462   :  { %14515 = vmatpush3.bf16.msra.mxu1 %v15823_v55  ;;  %14494 = vmatprep.subr.bf16.mxu0 %v15824_v53 }
0x3463   :  { %14516 = vmatprep.subr.bf16.mxu1 %v15825_v18 }
0x3465   :  { %14495 = vmatpush3.bf16.msra.mxu0 %v15826_v22 }
0x3466   :  { %14517 = vmatpush3.bf16.msra.mxu1 %v15827_v60  ;;  %14496 = vmatprep.subr.bf16.mxu0 %v15828_v31 }
0x3467   :  { %14518 = vmatprep.subr.bf16.mxu1 %v15829_v19 }
0x3469   :  { %14497 = vmatpush3.bf16.msra.mxu0 %v15830_v10 }
0x346a   :  { %14519 = vmatpush3.bf16.msra.mxu1 %v15831_v5  ;;  %14498 = vmatprep.subr.bf16.mxu0 %v15832_v7 }
0x346b   :  { %14520 = vmatprep.subr.bf16.mxu1 %v15833_v12 }
0x346d   :  { %14499 = vmatpush3.bf16.msra.mxu0 %v15834_v16 }
0x346e   :  { %14521 = vmatpush3.bf16.msra.mxu1 %v15835_v39  ;;  %15283 = vmatprep.subr.bf16.mxu0 %v16328_v0 }
0x346f   :  { %15291 = vmatprep.subr.bf16.mxu1 %v16328_v0 }
0x3470   :  { %8819 = vmatmul.mubr.bf16.vlgmr.msra.gmra.mxu0 %v7503_v6 }
0x3471   :  { %8860 = vmatmul.mubr.bf16.vlgmr.msra.gmra.mxu1 %v7505_v24  ;;  %15287 = vmatprep.mubr.msk.bf16.mxu0 %vm16329_vm0, %v16328_v0 }
0x3472   :  { %15293 = vmatprep.mubr.msk.bf16.mxu1 %vm16329_vm0, %v16328_v0 }
0x34d0   :  { %v14368_v26 = vpop.f32.mrf.mxu0  ;;  %v14390_v35 = vpop.f32.mrf.mxu1 }
0x34d2   :  { %v14369_v59 = vpop.f32.mrf.mxu0  ;;  %v14391_v21 = vpop.f32.mrf.mxu1 }
0x34d3   :  { %v14370_v43 = vadd.f32 %v14369_v59, %v14368_v26  ;;  %v14392_v61 = vadd.f32 %v14391_v21, %v14390_v35 }
0x34d4   :  { %v14371_v23 = vpop.f32.mrf.mxu0  ;;  %v14393_v32 = vpop.f32.mrf.mxu1 }
0x34d5   :  { %v8575_v4 = vadd.f32 %v14370_v43, %v13649_v44 }
0x34d6   :  { %v14372_v29 = vpop.f32.mrf.mxu0  ;;  %v14394_v17 = vpop.f32.mrf.mxu1 }
0x34d7   :  { %v14373_v54 = vadd.f32 %v14372_v29, %v14371_v23  ;;  %v8616_v50 = vadd.f32 %v14392_v61, %v8575_v4  ;;  %v14395_v18 = vadd.f32 %v14394_v17, %v14393_v32 }
0x34d9   :  { %v8578_v41 = vadd.f32 %v14373_v54, %v13649_v44 }
0x34db   :  { %v8619_v31 = vadd.f32 %v14395_v18, %v8578_v41 }
0x34f0   :  { %v14412_v13 = vpop.f32.mrf.mxu0  ;;  %v14434_v63 = vpop.f32.mrf.mxu1 }
0x34f2   :  { %v14413_v36 = vpop.f32.mrf.mxu0  ;;  %v14435_v37 = vpop.f32.mrf.mxu1 }
0x34f3   :  { %v14414_v40 = vadd.f32 %v14413_v36, %v14412_v13  ;;  %v14436_v19 = vadd.f32 %v14435_v37, %v14434_v63 }
0x34f4   :  { %v14415_v38 = vpop.f32.mrf.mxu0  ;;  %v14437_v51 = vpop.f32.mrf.mxu1 }
0x34f5   :  { %v8657_v22 = vadd.f32 %v14414_v40, %v8616_v50 }
0x34f6   :  { %v14416_v42 = vpop.f32.mrf.mxu0  ;;  %v14438_v57 = vpop.f32.mrf.mxu1 }
0x34f7   :  { %v14417_v60 = vadd.f32 %v14416_v42, %v14415_v38  ;;  %v8698_v28 = vadd.f32 %v14436_v19, %v8657_v22  ;;  %v14439_v7 = vadd.f32 %v14438_v57, %v14437_v51 }
0x34f9   :  { %v8660_v5 = vadd.f32 %v14417_v60, %v8619_v31 }
0x34fb   :  { %v8701_v16 = vadd.f32 %v14439_v7, %v8660_v5 }
0x3510   :  { %v14456_v30 = vpop.f32.mrf.mxu0 }
0x3511   :  { %v14478_v34 = vpop.f32.mrf.mxu1 }
0x3512   :  { %v14457_v58 = vpop.f32.mrf.mxu0 }
0x3513   :  { %v14479_v55 = vpop.f32.mrf.mxu1  ;;  %v14458_v25 = vadd.f32 %v14457_v58, %v14456_v30 }
0x3514   :  { %v14459_v53 = vpop.f32.mrf.mxu0  ;;  %v14480_v56 = vadd.f32 %v14479_v55, %v14478_v34  ;;  %v15837_v34 = vld [vmem:[#allocation2 + $0x20] sm:$0xff]  }
0x3515   :  { %v14481_v3 = vpop.f32.mrf.mxu1  ;;  %v8739_v33 = vadd.f32 %v14458_v25, %v8698_v28 }
0x3516   :  { %v14460_v10 = vpop.f32.mrf.mxu0 }
0x3517   :  { %v14461_v12 = vadd.f32 %v14460_v10, %v14459_v53  ;;  %v14482_v20 = vpop.f32.mrf.mxu1  ;;  %v8780_v52 = vadd.f32 %v14480_v56, %v8739_v33  ;;  %v13780_v33 = vld [vmem:[%s18144_s11 + $0x1] ss:$0 sm:$0xff] }
0x3518   :  { %v14483_v35 = vadd.f32 %v14482_v20, %v14481_v3  ;;  %v13781_v56 = vld [vmem:[%s18145_s12 + $0x1] ss:$0 sm:$0xff] }
0x3519   :  { %v8742_v14 = vadd.f32 %v14461_v12, %v8701_v16 }
0x351b   :  { %v8783_v29 = vadd.f32 %v14483_v35, %v8742_v14 }
0x3530   :  { %v14500_v9 = vpop.f32.mrf.mxu0 }
0x3531   :  { %v14522_v39 = vpop.f32.mrf.mxu1 }
0x3532   :  { %v14501_v45 = vpop.f32.mrf.mxu0 }
0x3533   :  { %v14502_v6 = vadd.f32 %v14501_v45, %v14500_v9  ;;  %v14523_v24 = vpop.f32.mrf.mxu1 }
0x3534   :  { %v14503_v26 = vpop.f32.mrf.mxu0  ;;  %v14524_v21 = vadd.f32 %v14523_v24, %v14522_v39 }
0x3535   :  { %v8821_v59 = vadd.f32 %v14502_v6, %v8780_v52  ;;  %v14525_v23 = vpop.f32.mrf.mxu1  ;;  %v13782_v6 = vld [vmem:[#allocation4 + $0x2] ss:$0 sm:$0xff] }
0x3536   :  { %v14504_v32 = vpop.f32.mrf.mxu0 }
0x3537   :  { %v8862_v13 = vadd.f32 %v14524_v21, %v8821_v59  ;;  %v14505_v17 = vadd.f32 %v14504_v32, %v14503_v26  ;;  %v14526_v63 = vpop.f32.mrf.mxu1 }
0x3538   :  { %v14527_v38 = vadd.f32 %v14526_v63, %v14525_v23 }
0x3539   :  { %v8868_v36 = vadd.f32 %v8862_v13, %v17461_v62  ;;  %v8824_v37 = vadd.f32 %v14505_v17, %v8783_v29  ;;  %v15836_v62 = vld [vmem:[#allocation2 + $0x28] sm:$0xff]  }
0x353a   :  { %15284 = vmatpush3.bf16.msra.mxu0 %v15836_v62 }
0x353b   :  { %v8865_v51 = vadd.f32 %v14527_v38, %v8824_v37  ;;  %v8874_v42 = vsel %vm157_vm1, %v8868_v36, 0.0  ;;  %v8882_v43 = vmul.f32 %v8868_v36, %v8868_v36  ;;  %15285 = vmatprep.subr.bf16.mxu0 %v16328_v0 }
0x353c   :  { %8875 = vadd.xlane.f32.xlu1 %v8874_v42 }
0x353d   :  { %v8869_v44 = vadd.f32 %v8865_v51, %v17463_v27  ;;  %v8884_v57 = vsel %vm157_vm1, %v8882_v43, 0.0 }
0x353e   :  { %15286 = vmatpush3.bf16.msra.mxu0 %v15837_v34 }
0x353f   :  { %v8877_v30 = vsel %vm157_vm1, %v8869_v44, 0.0  ;;  %v8883_v4 = vmul.f32 %v8869_v44, %v8869_v44  ;;  %15297 = vmatprep.subr.bf16.mxu0 %v16328_v0 }
0x3540   :  { %8878 = vadd.xlane.f32.xlu0 %v8877_v30  ;;  %8885 = vadd.xlane.f32.xlu1 %v8884_v57 }
0x3541   :  { %v8887_v54 = vsel %vm157_vm1, %v8883_v4, 0.0 }
0x3544   :  { %8888 = vadd.xlane.f32.xlu0 %v8887_v54 }
0x35c5   :  { %v8876_v58 = vpop.xlane.xlu1 %8875 }
0x35c6   :  { %v8880_v27 = vmul.f32 0.03125, %v8876_v58 }
0x35c8   :  { %v8892_v50 = vmul.f32 %v8880_v27, %v8880_v27  ;;  %v8898_v28 = vsub.f32 %v8868_v36, %v8880_v27 }
0x35c9   :  { %v8879_v61 = vpop.xlane.xlu0 %8878  ;;  %v8886_v40 = vpop.xlane.xlu1 %8885 }
0x35ca   :  { %v8881_v41 = vmul.f32 0.03125, %v8879_v61  ;;  %v8890_v55 = vmul.f32 0.03125, %v8886_v40 }
0x35cc   :  { %v8894_v53 = vsub.f32 %v8890_v55, %v8892_v50  ;;  %v8893_v22 = vmul.f32 %v8881_v41, %v8881_v41  ;;  %v8899_v12 = vsub.f32 %v8869_v44, %v8881_v41 }
0x35cd   :  { %v8889_v18 = vpop.xlane.xlu0 %8888 }
0x35ce   :  { %v8896_v60 = vmax.f32 %v8894_v53, 0.0  ;;  %v8891_v31 = vmul.f32 0.03125, %v8889_v18 }
0x35d0   :  { %v8900_v19 = vadd.f32 1e-05, %v8896_v60  ;;  %v8895_v25 = vsub.f32 %v8891_v31, %v8893_v22 }
0x35d2   :  { %16110 = vrsqrt.f32 %v8900_v19  ;;  %v8897_v3 = vmax.f32 %v8895_v25, 0.0 }
0x35d4   :  { %v8901_v10 = vadd.f32 1e-05, %v8897_v3 }
0x35d6   :  { %16112 = vrsqrt.f32 %v8901_v10 }
0x35df   :  { %v16111_v5 = vpop.eup %16110 }
0x35e0   :  { %v8904_v7 = vmul.f32 %v16111_v5, %v8898_v28 }
0x35e2   :  { %v8912_v9 = vmul.f32 %v13780_v33, %v8904_v7 }
0x35e3   :  { %v16113_v20 = vpop.eup %16112 }
0x35e4   :  { %v8905_v16 = vmul.f32 %v16113_v20, %v8899_v12  ;;  %v17586_v45 = vadd.f32 %v13781_v56, %v8912_v9 }
0x35e6   :  { %v8913_v39 = vmul.f32 %v13780_v33, %v8905_v16 }
0x35e8   :  { %v17588_v52 = vadd.f32 %v13781_v56, %v8913_v39 }
0x35ea   :  { %v8932_v14 = vpack.c.bf16 %v17588_v52, %v17586_v45 }
0x35ec   :  { %15288 = vmatmul.mubr.msk.bf16.vlgmr.msra.gmra.mxu0 %vm157_vm1, %v8932_v14 }
0x35ed   :  { %15299 = vmatprep.mubr.msk.bf16.mxu0 %vm16329_vm0, %v16328_v0 }
0x36ac   :  { %v8990_v24 = vpop.f32.mrf.mxu0 }
0x36ad   :  { %v8991_v26 = vadd.f32 %v13782_v6, %v8990_v24 }
0x36ae   :  { %v15289_v35 = vpop.f32.mrf.mxu0 }
0x36af   :  { %v17595_v59 = vpack.c.bf16 %v8991_v26, %v8991_v26 }
0x36b0   :  { %v8993_v21 = vpop.f32.mrf.mxu0 }
0x36b1   :  { %v8994_v23 = vadd.f32 %v13782_v6, %v8993_v21  ;;  %9000 = vrot.lane.b32.xlu1 %v17595_v59, %s16330_s26 }
0x36b2   :  { %v15290_v32 = vpop.f32.mrf.mxu0 }
0x36b3   :  { %v17599_v29 = vpack.c.bf16 %v8994_v23, %v8994_v23 }
0x36b5   :  { %9049 = vrot.lane.b32.xlu0 %v17599_v29, %s16330_s26  ;;  %s18166_s26 = smov 72  }
0x3723   :  { %v9001_v13 = vpop.permute.xlu1 %9000 }
0x3724   :  { %v9006_v17 = vsel %vm207_vm2, %v9001_v13, 0 }
0x3725   :  { %15292 = vmatpush3.bf16.xpose.msra.mxu1 %v9006_v17 }
0x3726   :  { %15303 = vmatprep.subr.bf16.mxu1 %v16328_v0 }
0x3727   :  { %v9050_v63 = vpop.permute.xlu0 %9049 }
0x3728   :  { %v9055_v36 = vsel %vm207_vm2, %v9050_v63, 0 }
0x3729   :  { %15298 = vmatpush3.bf16.xpose.msra.mxu0 %v9055_v36 }
0x372a   :  { %15309 = vmatprep.subr.bf16.mxu0 %v16328_v0 }
0x372c   :  { %15294 = vmatmul.mubr.msk.bf16.vlgmr.msra.gmra.mxu1 %vm207_vm2, %v17595_v59 }
0x372d   :  { %15305 = vmatprep.mubr.msk.bf16.mxu1 %vm16329_vm0, %v16328_v0 }
0x3730   :  { %15300 = vmatmul.mubr.msk.bf16.vlgmr.msra.gmra.mxu0 %vm207_vm2, %v17599_v29 }
0x3731   :  { %15311 = vmatprep.mubr.msk.bf16.mxu0 %vm16329_vm0, %v16328_v0 }
0x37ec   :  { %v9042_v37 = vpop.f32.mrf.mxu1 }
0x37ed   :  { %v9097_v38 = vsel %vm303_vm3, %v9042_v37, -inf }
0x37ee   :  { %9098 = vmax.xlane.f32.xlu1 %v9097_v38  ;;  %v15295_v51 = vpop.f32.mrf.mxu1 }
0x37f0   :  { %v9045_v42 = vpop.f32.mrf.mxu1  ;;  %v9091_v43 = vpop.f32.mrf.mxu0 }
0x37f1   :  { %v9100_v44 = vsel %vm303_vm3, %v9091_v43, -inf }
0x37f2   :  { %v15296_v30 = vpop.f32.mrf.mxu1  ;;  %9101 = vmax.xlane.f32.xlu0 %v9100_v44  ;;  %v15301_v57 = vpop.f32.mrf.mxu0 }
0x37f4   :  { %v9094_v4 = vpop.f32.mrf.mxu0 }
0x37f6   :  { %v15302_v54 = vpop.f32.mrf.mxu0 }
0x37ff   :  { %9121 = vrot.lane.b32.xlu1 %v17595_v59, %s16322_s22 }
0x3877   :  { %v9099_v62 = vpop.xlane.xlu1 %9098 }
0x3878   :  { %v9103_v34 = vsub.f32 %v9042_v37, %v9099_v62 }
0x387a   :  { %v9105_v58 = vmul.f32 1.442695, %v9103_v34 }
0x387b   :  { %v9122_v27 = vpop.permute.xlu1 %9121  ;;  %v9102_v61 = vpop.xlane.xlu0 %9101 }
0x387c   :  { %16114 = vpow2.f32 %v9105_v58  ;;  %v9127_v40 = vsel %vm333_vm4, %v9122_v27, 0  ;;  %v9104_v50 = vsub.f32 %v9091_v43, %v9102_v61 }
0x387d   :  { %15304 = vmatpush3.bf16.msra.mxu1 %v9127_v40 }
0x387e   :  { %v9107_v41 = vmul.f32 1.442695, %v9104_v50  ;;  %15315 = vmatprep.subr.bf16.mxu1 %v16328_v0 }
0x3880   :  { %16116 = vpow2.f32 %v9107_v41 }
0x3889   :  { %v16115_v55 = vpop.eup %16114 }
0x388a   :  { %v9109_v53 = vsel %vm303_vm3, %v16115_v55, 0.0 }
0x388b   :  { %9110 = vadd.xlane.f32.xlu1 %v9109_v53 }
0x388d   :  { %v16117_v18 = vpop.eup %16116 }
0x388e   :  { %v9112_v22 = vsel %vm303_vm3, %v16117_v18, 0.0 }
0x388f   :  { %9113 = vadd.xlane.f32.xlu0 %v9112_v22 }
0x389c   :  { %9220 = vrot.lane.b32.xlu1 %v17595_v59, %s16331_s27 }
0x38a0   :  { %9270 = vrot.lane.b32.xlu1 %v17599_v29, %s16331_s27  ;;  %s18167_s27 = smov 104  }
0x38a4   :  { %9268 = vrot.lane.b32.xlu1 %v17599_v29, %s16332_s28 }
0x38a5   :  { %9169 = vrot.lane.b32.xlu0 %v17599_v29, %s16322_s22  ;;  %s18165_s22 = smov 44  }
0x38a9   :  { %9218 = vrot.lane.b32.xlu0 %v17595_v59, %s16332_s28 }
0x3914   :  { %v9111_v60 = vpop.xlane.xlu1 %9110 }
0x3915   :  { %16118 = vrcp.f32 %v9111_v60 }
0x3918   :  { %v9114_v31 = vpop.xlane.xlu0 %9113  ;;  %v9221_v10 = vpop.permute.xlu1 %9220 }
0x3919   :  { %16120 = vrcp.f32 %v9114_v31  ;;  %v9226_v33 = vsel %vm207_vm2, %v9221_v10, 0  ;;  %v8928_v10 = vld [vmem:[#allocation6 + $0x20] sm:$0xf] }
0x391c   :  { %v9170_v19 = vpop.permute.xlu0 %9169  ;;  %v9271_v20 = vpop.permute.xlu1 %9270 }
0x391d   :  { %v9175_v25 = vsel %vm333_vm4, %v9170_v19, 0  ;;  %v9276_v16 = vsel %vm207_vm2, %v9271_v20, 0 }
0x391e   :  { %15310 = vmatpush3.bf16.msra.mxu0 %v9175_v25 }
0x391f   :  { %15321 = vmatprep.subr.bf16.mxu0 %v16328_v0 }
0x3920   :  { %v9219_v56 = vpop.permute.xlu0 %9218  ;;  %v9269_v39 = vpop.permute.xlu1 %9268 }
0x3922   :  { %v16119_v3 = vpop.eup %16118 }
0x3923   :  { %v9117_v28 = vmul.f32 %v16119_v3, %v16115_v55 }
0x3925   :  { %v9119_v5 = vpack.c.bf16 %v9117_v28, %v9117_v28 }
0x3926   :  { %v16121_v7 = vpop.eup %16120 }
0x3927   :  { %v9118_v12 = vmul.f32 %v16121_v7, %v16117_v18  ;;  %15306 = vmatmul.mubr.msk.bf16.vlgmr.msra.gmra.mxu1 %vm303_vm3, %v9119_v5  ;;  %v9494_v7 = vsel %vm654_vm5, %v8928_v10, 0 }
0x3928   :  { %15316 = vmatpush3.bf16.xpose.msra.mxu1 %v9226_v33  ;;  %15317 = vmatprep.mubr.msk.bf16.mxu1 %vm16329_vm0, %v16328_v0 }
0x3929   :  { %v9120_v9 = vpack.c.bf16 %v9118_v12, %v9118_v12  ;;  %15327 = vmatprep.subr.bf16.mxu1 %v16328_v0 }
0x392b   :  { %15312 = vmatmul.mubr.msk.bf16.vlgmr.msra.gmra.mxu0 %vm303_vm3, %v9120_v9 }
0x392c   :  { %15322 = vmatpush3.bf16.xpose.msra.mxu0 %v9276_v16  ;;  %15323 = vmatprep.mubr.msk.bf16.mxu0 %vm16329_vm0, %v16328_v0  ;;  %v13794_v16 = vcombine.low %v8928_v10, %v8928_v10 }
0x392d   :  { %15333 = vmatprep.subr.bf16.mxu0 %v16328_v0 }
0x392f   :  { %15318 = vmatmul.mubr.msk.bf16.vlgmr.msra.gmra.mxu1 %vm207_vm2, %v9219_v56  ;;  %v9442_v56 = vrot.slane %v13794_v16, 2 }
0x3930   :  { %15329 = vmatprep.mubr.msk.bf16.mxu1 %vm16329_vm0, %v16328_v0 }
0x3933   :  { %15324 = vmatmul.mubr.msk.bf16.vlgmr.msra.gmra.mxu0 %vm207_vm2, %v9269_v39  ;;  %v9447_v39 = vsel %vm654_vm5, %v9442_v56, 0 }
0x3934   :  { %15335 = vmatprep.mubr.msk.bf16.mxu0 %vm16329_vm0, %v16328_v0 }
0x39e7   :  { %v17651_v14 = vpop.f32.mrf.mxu1 }
0x39e9   :  { %v15307_v6 = vpop.f32.mrf.mxu1 }
0x39eb   :  { %v9166_v24 = vpop.f32.mrf.mxu1  ;;  %v17653_v26 = vpop.f32.mrf.mxu0 }
0x39ec   :  { %v9217_v35 = vpack.c.bf16 %v17653_v26, %v17651_v14 }
0x39ed   :  { %v15308_v21 = vpop.f32.mrf.mxu1  ;;  %v15313_v23 = vpop.f32.mrf.mxu0 }
0x39ef   :  { %v9214_v32 = vpop.f32.mrf.mxu0  ;;  %v9262_v13 = vpop.f32.mrf.mxu1 }
0x39f0   :  { %v9318_v17 = vsel %vm303_vm3, %v9262_v13, -inf }
0x39f1   :  { %9319 = vmax.xlane.f32.xlu0 %v9318_v17  ;;  %v15314_v63 = vpop.f32.mrf.mxu0  ;;  %v15319_v36 = vpop.f32.mrf.mxu1 }
0x39f3   :  { %v9265_v37 = vpop.f32.mrf.mxu1  ;;  %v9312_v38 = vpop.f32.mrf.mxu0 }
0x39f4   :  { %v9321_v51 = vsel %vm303_vm3, %v9312_v38, -inf }
0x39f5   :  { %v15320_v42 = vpop.f32.mrf.mxu1  ;;  %9322 = vmax.xlane.f32.xlu1 %v9321_v51  ;;  %v15325_v43 = vpop.f32.mrf.mxu0 }
0x39f7   :  { %v9315_v44 = vpop.f32.mrf.mxu0 }
0x39f9   :  { %v15326_v30 = vpop.f32.mrf.mxu0 }
0x3a06   :  { %9342 = vrot.lane.b32.xlu1 %v17595_v59, %s16333_s30 }
0x3a0a   :  { %9539 = vrot.lane.b32.xlu1 %v17595_v59, %s16335_s7 }
0x3a0e   :  { %9589 = vrot.lane.b32.xlu1 %v17599_v29, %s16335_s7 }
0x3a12   :  { %9587 = vrot.lane.b32.xlu1 %v17599_v29, %s16334_s14 }
0x3a7a   :  { %v9320_v57 = vpop.xlane.xlu0 %9319 }
0x3a7b   :  { %v9324_v4 = vsub.f32 %v9262_v13, %v9320_v57 }
0x3a7d   :  { %v9326_v54 = vmul.f32 1.442695, %v9324_v4 }
0x3a7e   :  { %v9323_v62 = vpop.xlane.xlu1 %9322 }
0x3a7f   :  { %16122 = vpow2.f32 %v9326_v54  ;;  %v9325_v34 = vsub.f32 %v9312_v38, %v9323_v62 }
0x3a81   :  { %v9328_v58 = vmul.f32 1.442695, %v9325_v34 }
0x3a82   :  { %v9343_v27 = vpop.permute.xlu1 %9342 }
0x3a83   :  { %16124 = vpow2.f32 %v9328_v58  ;;  %v9348_v61 = vsel %vm333_vm4, %v9343_v27, 0 }
0x3a84   :  { %15328 = vmatpush3.bf16.msra.mxu1 %v9348_v61 }
0x3a85   :  { %15339 = vmatprep.subr.bf16.mxu1 %v16328_v0 }
0x3a86   :  { %v9540_v33 = vpop.permute.xlu1 %9539 }
0x3a87   :  { %v9545_v32 = vsel %vm207_vm2, %v9540_v33, 0 }
0x3a8a   :  { %v9590_v12 = vpop.permute.xlu1 %9589 }
0x3a8b   :  { %v9595_v20 = vsel %vm207_vm2, %v9590_v12, 0 }
0x3a8c   :  { %v16123_v40 = vpop.eup %16122 }
0x3a8d   :  { %v9330_v50 = vsel %vm303_vm3, %v16123_v40, 0.0 }
0x3a8e   :  { %9331 = vadd.xlane.f32.xlu0 %v9330_v50  ;;  %v9588_v9 = vpop.permute.xlu1 %9587 }
0x3a90   :  { %v16125_v41 = vpop.eup %16124 }
0x3a91   :  { %v9333_v55 = vsel %vm303_vm3, %v16125_v41, 0.0 }
0x3a92   :  { %9334 = vadd.xlane.f32.xlu0 %v9333_v55 }
0x3aa8   :  { %9390 = vrot.lane.b32.xlu0 %v17599_v29, %s16333_s30 }
0x3aac   :  { %9537 = vrot.lane.b32.xlu0 %v17595_v59, %s16334_s14 }
0x3b17   :  { %v9332_v53 = vpop.xlane.xlu0 %9331 }
0x3b18   :  { %16126 = vrcp.f32 %v9332_v53 }
0x3b1b   :  { %v9335_v18 = vpop.xlane.xlu0 %9334 }
0x3b1c   :  { %16128 = vrcp.f32 %v9335_v18 }
0x3b1f   :  { %v9391_v22 = vpop.permute.xlu0 %9390 }
0x3b20   :  { %v9396_v60 = vsel %vm333_vm4, %v9391_v22, 0 }
0x3b21   :  { %15334 = vmatpush3.bf16.msra.mxu0 %v9396_v60 }
0x3b22   :  { %15345 = vmatprep.subr.bf16.mxu0 %v16328_v0 }
0x3b23   :  { %v9538_v36 = vpop.permute.xlu0 %9537 }
0x3b25   :  { %v16127_v31 = vpop.eup %16126 }
0x3b26   :  { %v9338_v19 = vmul.f32 %v16127_v31, %v16123_v40 }
0x3b28   :  { %v9340_v25 = vpack.c.bf16 %v9338_v19, %v9338_v19 }
0x3b29   :  { %v16129_v3 = vpop.eup %16128 }
0x3b2a   :  { %v9339_v28 = vmul.f32 %v16129_v3, %v16125_v41  ;;  %15330 = vmatmul.mubr.msk.bf16.vlgmr.msra.gmra.mxu1 %vm303_vm3, %v9340_v25 }
0x3b2b   :  { %15341 = vmatprep.mubr.msk.bf16.mxu1 %vm16329_vm0, %v16328_v0  ;;  %15340 = vmatpush3.bf16.msra.mxu1 %v9447_v39 }
0x3b2c   :  { %v9341_v5 = vpack.c.bf16 %v9339_v28, %v9339_v28  ;;  %15351 = vmatprep.subr.bf16.mxu1 %v16328_v0 }
0x3b2e   :  { %15336 = vmatmul.mubr.msk.bf16.vlgmr.msra.gmra.mxu0 %vm303_vm3, %v9341_v5 }
0x3b2f   :  { %15346 = vmatpush3.bf16.msra.mxu0 %v9494_v7  ;;  %15347 = vmatprep.mubr.msk.bf16.mxu0 %vm16329_vm0, %v16328_v0 }
0x3b30   :  { %15357 = vmatprep.subr.bf16.mxu0 %v16328_v0 }
0x3b36   :  { %15348 = vmatmul.mubr.msk.bf16.vlgmr.msra.gmra.mxu0 %vm207_vm2, %v9217_v35 }
0x3b37   :  { %15358 = vmatpush3.bf16.xpose.msra.mxu0 %v9595_v20  ;;  %15359 = vmatprep.mubr.msk.bf16.mxu0 %vm16329_vm0, %v16328_v0 }
0x3b38   :  { %15369 = vmatprep.subr.bf16.mxu0 %v16328_v0 }
0x3b3e   :  { %15360 = vmatmul.mubr.msk.bf16.vlgmr.msra.gmra.mxu0 %vm207_vm2, %v9588_v9 }
0x3b3f   :  { %15371 = vmatprep.mubr.msk.bf16.mxu0 %vm16329_vm0, %v16328_v0 }
0x3bea   :  { %v9384_v14 = vpop.f32.mrf.mxu1 }
0x3bec   :  { %v15331_v6 = vpop.f32.mrf.mxu1 }
0x3bee   :  { %v9387_v24 = vpop.f32.mrf.mxu1  ;;  %v9432_v26 = vpop.f32.mrf.mxu0 }
0x3bef   :  { %v9438_v35 = vpack.c.bf16 %v9432_v26, %v9384_v14 }
0x3bf0   :  { %v15332_v21 = vpop.f32.mrf.mxu1  ;;  %v15337_v23 = vpop.f32.mrf.mxu0 }
0x3bf1   :  { %15342 = vmatmul.mubr.msk.bf16.vlgmr.msra.gmra.mxu1 %vm207_vm2, %v9438_v35  ;;  %v17745_v35 = vld [vmem:[#allocation6 + $0x24] sm:$0xf] }
0x3bf2   :  { %15352 = vmatpush3.bf16.xpose.msra.mxu1 %v9545_v32  ;;  %v9435_v13 = vpop.f32.mrf.mxu0  ;;  %15353 = vmatprep.mubr.msk.bf16.mxu1 %vm16329_vm0, %v16328_v0  ;;  %v9762_v21 = vsel %vm654_vm5, %v17745_v35, 0 }
0x3bf3   :  { %15363 = vmatprep.subr.bf16.mxu1 %v16328_v0 }
0x3bf4   :  { %v15338_v17 = vpop.f32.mrf.mxu0 }
0x3bf6   :  { %v17703_v63 = vpop.f32.mrf.mxu0 }
0x3bf8   :  { %v15349_v37 = vpop.f32.mrf.mxu0 }
0x3bf9   :  { %15354 = vmatmul.mubr.msk.bf16.vlgmr.msra.gmra.mxu1 %vm207_vm2, %v9538_v36 }
0x3bfa   :  { %v17706_v38 = vpop.f32.mrf.mxu0  ;;  %15365 = vmatprep.mubr.msk.bf16.mxu1 %vm16329_vm0, %v16328_v0 }
0x3bfc   :  { %v15350_v51 = vpop.f32.mrf.mxu0 }
0x3bfe   :  { %v9631_v42 = vpop.f32.mrf.mxu0 }
0x3bff   :  { %v9640_v43 = vsel %vm303_vm3, %v9631_v42, -inf }
0x3c00   :  { %9641 = vmax.xlane.f32.xlu1 %v9640_v43  ;;  %v15361_v44 = vpop.f32.mrf.mxu0 }
0x3c02   :  { %v9634_v30 = vpop.f32.mrf.mxu0 }
0x3c04   :  { %v15362_v57 = vpop.f32.mrf.mxu0 }
0x3c11   :  { %9661 = vrot.lane.b32.xlu1 %v17595_v59, %s16336_s15 }
0x3c15   :  { %9809 = vrot.lane.b32.xlu1 %v17595_v59, %s16337_s16 }
0x3c19   :  { %9859 = vrot.lane.b32.xlu1 %v17599_v29, %s16337_s16 }
0x3c1d   :  { %9857 = vrot.lane.b32.xlu1 %v17599_v29, %s16338_s17 }
0x3c89   :  { %v9642_v4 = vpop.xlane.xlu1 %9641 }
0x3c8a   :  { %v9644_v34 = vsub.f32 %v9631_v42, %v9642_v4 }
0x3c8c   :  { %v9647_v58 = vmul.f32 1.442695, %v9644_v34 }
0x3c8d   :  { %v9662_v54 = vpop.permute.xlu1 %9661 }
0x3c8e   :  { %v9667_v62 = vsel %vm333_vm4, %v9662_v54, 0  ;;  %16130 = vpow2.f32 %v9647_v58 }
0x3c8f   :  { %15364 = vmatpush3.bf16.msra.mxu1 %v9667_v62 }
0x3c90   :  { %15375 = vmatprep.subr.bf16.mxu1 %v16328_v0 }
0x3c91   :  { %v9810_v16 = vpop.permute.xlu1 %9809 }
0x3c92   :  { %v9815_v39 = vsel %vm207_vm2, %v9810_v16, 0 }
0x3c95   :  { %v9860_v37 = vpop.permute.xlu1 %9859 }
0x3c96   :  { %v9865_v4 = vsel %vm207_vm2, %v9860_v37, 0 }
0x3c99   :  { %v9858_v58 = vpop.permute.xlu1 %9857 }
0x3c9b   :  { %v16131_v53 = vpop.eup %16130 }
0x3c9c   :  { %v9652_v60 = vsel %vm303_vm3, %v16131_v53, 0.0 }
0x3cb1   :  { %v17721_v27 = vpop.f32.mrf.mxu1 }
0x3cb3   :  { %v15343_v61 = vpop.f32.mrf.mxu1 }
0x3cb5   :  { %v17723_v40 = vpop.f32.mrf.mxu1 }
0x3cb7   :  { %v15344_v50 = vpop.f32.mrf.mxu1 }
0x3cb9   :  { %v9581_v41 = vpop.f32.mrf.mxu1 }
0x3cba   :  { %v9637_v55 = vsel %vm303_vm3, %v9581_v41, -inf }
0x3cbb   :  { %9638 = vmax.xlane.f32.xlu0 %v9637_v55  ;;  %v15355_v18 = vpop.f32.mrf.mxu1 }
0x3cbc   :  { %v9531_v18 = vadd.f32 %v17703_v63, %v17721_v27 }
0x3cbd   :  { %v9584_v22 = vpop.f32.mrf.mxu1 }
0x3cbf   :  { %v15356_v31 = vpop.f32.mrf.mxu1  ;;  %9653 = vadd.xlane.f32.xlu0 %v9652_v60 }
0x3d44   :  { %v9639_v19 = vpop.xlane.xlu0 %9638 }
0x3d45   :  { %v9643_v25 = vsub.f32 %v9581_v41, %v9639_v19  ;;  %v9534_v19 = vadd.f32 %v17706_v38, %v17723_v40 }
0x3d47   :  { %v9645_v3 = vmul.f32 1.442695, %v9643_v25 }
0x3d48   :  { %v9654_v5 = vpop.xlane.xlu0 %9653 }
0x3d49   :  { %16132 = vpow2.f32 %v9645_v3 }
0x3d4a   :  { %16134 = vrcp.f32 %v9654_v5 }
0x3d56   :  { %v16133_v10 = vpop.eup %16132 }
0x3d57   :  { %v9649_v28 = vsel %vm303_vm3, %v16133_v10, 0.0  ;;  %v16135_v7 = vpop.eup %16134 }
0x3d58   :  { %9650 = vadd.xlane.f32.xlu0 %v9649_v28  ;;  %v9658_v12 = vmul.f32 %v16135_v7, %v16131_v53 }
0x3d5a   :  { %v9660_v56 = vpack.c.bf16 %v9658_v12, %v9658_v12 }
0x3d6e   :  { %9709 = vrot.lane.b32.xlu0 %v17599_v29, %s16336_s15 }
0x3d72   :  { %9807 = vrot.lane.b32.xlu0 %v17595_v59, %s16338_s17 }
0x3de1   :  { %v9651_v33 = vpop.xlane.xlu0 %9650 }
0x3de2   :  { %16136 = vrcp.f32 %v9651_v33 }
0x3de5   :  { %v9710_v20 = vpop.permute.xlu0 %9709 }
0x3de6   :  { %v9715_v9 = vsel %vm333_vm4, %v9710_v20, 0 }
0x3de7   :  { %15370 = vmatpush3.bf16.msra.mxu0 %v9715_v9 }
0x3de8   :  { %15381 = vmatprep.subr.bf16.mxu0 %v16328_v0 }
0x3de9   :  { %v9808_v24 = vpop.permute.xlu0 %9807 }
0x3dea   :  { %15372 = vmatmul.mubr.msk.bf16.vlgmr.msra.gmra.mxu0 %vm303_vm3, %v9660_v56 }
0x3deb   :  { %15382 = vmatpush3.bf16.xpose.msra.mxu0 %v9815_v39  ;;  %15383 = vmatprep.mubr.msk.bf16.mxu0 %vm16329_vm0, %v16328_v0 }
0x3dec   :  { %15393 = vmatprep.subr.bf16.mxu0 %v16328_v0 }
0x3def   :  { %v16137_v14 = vpop.eup %16136 }
0x3df0   :  { %v9657_v6 = vmul.f32 %v16137_v14, %v16133_v10 }
0x3df2   :  { %v9659_v26 = vpack.c.bf16 %v9657_v6, %v9657_v6  ;;  %15384 = vmatmul.mubr.msk.bf16.vlgmr.msra.gmra.mxu0 %vm207_vm2, %v9808_v24  ;;  %v13806_v24 = vcombine.low %v17745_v35, %v17745_v35 }
0x3df3   :  { %15395 = vmatprep.mubr.msk.bf16.mxu0 %vm16329_vm0, %v16328_v0 }
0x3df4   :  { %15366 = vmatmul.mubr.msk.bf16.vlgmr.msra.gmra.mxu1 %vm303_vm3, %v9659_v26  ;;  %v10031_v26 = vrot.slane %v13806_v24, 2 }
0x3df5   :  { %15377 = vmatprep.mubr.msk.bf16.mxu1 %vm16329_vm0, %v16328_v0  ;;  %15376 = vmatpush3.bf16.msra.mxu1 %v9762_v21 }
0x3df6   :  { %15387 = vmatprep.subr.bf16.mxu1 %v16328_v0  ;;  %v10036_v21 = vsel %vm654_vm5, %v10031_v26, 0 }
0x3eaa   :  { %v9751_v23 = vpop.f32.mrf.mxu0 }
0x3eac   :  { %v15373_v32 = vpop.f32.mrf.mxu0 }
0x3eae   :  { %v9754_v13 = vpop.f32.mrf.mxu0 }
0x3eb0   :  { %v15374_v17 = vpop.f32.mrf.mxu0 }
0x3eb2   :  { %v9851_v36 = vpop.f32.mrf.mxu0 }
0x3eb3   :  { %v9907_v51 = vsel %vm303_vm3, %v9851_v36, -inf }
0x3eb4   :  { %v9703_v42 = vpop.f32.mrf.mxu1  ;;  %9908 = vmax.xlane.f32.xlu0 %v9907_v51  ;;  %v15385_v43 = vpop.f32.mrf.mxu0 }
0x3eb5   :  { %v9757_v44 = vpack.c.bf16 %v9751_v23, %v9703_v42 }
0x3eb6   :  { %v15367_v30 = vpop.f32.mrf.mxu1  ;;  %v9854_v57 = vpop.f32.mrf.mxu0 }
0x3eb7   :  { %15378 = vmatmul.mubr.msk.bf16.vlgmr.msra.gmra.mxu1 %vm207_vm2, %v9757_v44 }
0x3eb8   :  { %15388 = vmatpush3.bf16.xpose.msra.mxu1 %v9865_v4  ;;  %v9706_v54 = vpop.f32.mrf.mxu1  ;;  %v15386_v62 = vpop.f32.mrf.mxu0  ;;  %15389 = vmatprep.mubr.msk.bf16.mxu1 %vm16329_vm0, %v16328_v0 }
0x3eb9   :  { %15399 = vmatprep.subr.bf16.mxu1 %v16328_v0 }
0x3eba   :  { %v15368_v34 = vpop.f32.mrf.mxu1 }
0x3ebf   :  { %15390 = vmatmul.mubr.msk.bf16.vlgmr.msra.gmra.mxu1 %vm207_vm2, %v9858_v58 }
0x3ec0   :  { %15401 = vmatprep.mubr.msk.bf16.mxu1 %vm16329_vm0, %v16328_v0 }
0x3f3d   :  { %v9909_v61 = vpop.xlane.xlu0 %9908 }
0x3f3e   :  { %v9913_v50 = vsub.f32 %v9851_v36, %v9909_v61 }
0x3f40   :  { %v9915_v41 = vmul.f32 1.442695, %v9913_v50 }
0x3f42   :  { %16138 = vpow2.f32 %v9915_v41 }
0x3f4f   :  { %v16139_v55 = vpop.eup %16138 }
0x3f50   :  { %v9919_v53 = vsel %vm303_vm3, %v16139_v55, 0.0 }
0x3f51   :  { %9920 = vadd.xlane.f32.xlu0 %v9919_v53 }
0x3f77   :  { %v9798_v22 = vpop.f32.mrf.mxu1 }
0x3f78   :  { %v17762_v60 = vadd.f32 %v9798_v22, %v9531_v18 }
0x3f79   :  { %v15379_v31 = vpop.f32.mrf.mxu1 }
0x3f7b   :  { %v9801_v25 = vpop.f32.mrf.mxu1 }
0x3f7c   :  { %v17766_v3 = vadd.f32 %v9801_v25, %v9534_v19 }
0x3f7d   :  { %v15380_v10 = vpop.f32.mrf.mxu1 }
0x3f7f   :  { %v9901_v28 = vpop.f32.mrf.mxu1 }
0x3f80   :  { %v9910_v5 = vsel %vm303_vm3, %v9901_v28, -inf }
0x3f81   :  { %9911 = vmax.xlane.f32.xlu1 %v9910_v5  ;;  %v15391_v7 = vpop.f32.mrf.mxu1 }
0x3f83   :  { %v9904_v33 = vpop.f32.mrf.mxu1 }
0x3f85   :  { %v15392_v12 = vpop.f32.mrf.mxu1 }
0x3f92   :  { %9931 = vrot.lane.b32.xlu1 %v17595_v59, %s16339_s1 }
0x3f96   :  { %10083 = vrot.lane.b32.xlu1 %v17595_v59, %s16340_s18 }
0x3f9a   :  { %10133 = vrot.lane.b32.xlu1 %v17599_v29, %s16340_s18 }
0x3f9e   :  { %10131 = vrot.lane.b32.xlu1 %v17599_v29, %s16341_s19 }
0x3fda   :  { %v9921_v63 = vpop.xlane.xlu0 %9920 }
0x3fdb   :  { %16140 = vrcp.f32 %v9921_v63 }
0x3fe8   :  { %v16141_v38 = vpop.eup %16140 }
0x3fe9   :  { %v9927_v20 = vmul.f32 %v16141_v38, %v16139_v55 }
0x3feb   :  { %v9929_v39 = vpack.c.bf16 %v9927_v20, %v9927_v20 }
0x400a   :  { %v9912_v27 = vpop.xlane.xlu1 %9911 }
0x400b   :  { %v9914_v40 = vsub.f32 %v9901_v28, %v9912_v27 }
0x400d   :  { %v9917_v9 = vmul.f32 1.442695, %v9914_v40 }
0x400e   :  { %v9932_v16 = vpop.permute.xlu1 %9931 }
0x400f   :  { %16142 = vpow2.f32 %v9917_v9  ;;  %v9937_v56 = vsel %vm333_vm4, %v9932_v16, 0 }
0x4010   :  { %15394 = vmatpush3.bf16.msra.mxu0 %v9937_v56 }
0x4011   :  { %15405 = vmatprep.subr.bf16.mxu0 %v16328_v0 }
0x4012   :  { %v10084_v37 = vpop.permute.xlu1 %10083 }
0x4013   :  { %15396 = vmatmul.mubr.msk.bf16.vlgmr.msra.gmra.mxu0 %vm303_vm3, %v9929_v39  ;;  %v10089_v35 = vsel %vm207_vm2, %v10084_v37, 0 }
0x4014   :  { %15407 = vmatprep.mubr.msk.bf16.mxu0 %vm16329_vm0, %v16328_v0  ;;  %15406 = vmatpush3.bf16.msra.mxu0 %v10036_v21 }
0x4015   :  { %15417 = vmatprep.subr.bf16.mxu0 %v16328_v0 }
0x4016   :  { %v10134_v4 = vpop.permute.xlu1 %10133 }
0x4017   :  { %v10139_v58 = vsel %vm207_vm2, %v10134_v4, 0 }
0x401a   :  { %v10132_v53 = vpop.permute.xlu1 %10131 }
0x401c   :  { %v16143_v14 = vpop.eup %16142 }
0x401d   :  { %v9922_v6 = vsel %vm303_vm3, %v16143_v14, 0.0 }
0x401e   :  { %9923 = vadd.xlane.f32.xlu0 %v9922_v6 }
0x4034   :  { %9979 = vrot.lane.b32.xlu0 %v17599_v29, %s16339_s1 }
0x4038   :  { %10081 = vrot.lane.b32.xlu0 %v17595_v59, %s16341_s19 }
0x40a7   :  { %v9924_v23 = vpop.xlane.xlu0 %9923 }
0x40a8   :  { %16144 = vrcp.f32 %v9924_v23 }
0x40ab   :  { %v9980_v32 = vpop.permute.xlu0 %9979 }
0x40ac   :  { %v9985_v13 = vsel %vm333_vm4, %v9980_v32, 0 }
0x40ad   :  { %15400 = vmatpush3.bf16.msra.mxu1 %v9985_v13 }
0x40ae   :  { %15411 = vmatprep.subr.bf16.mxu1 %v16328_v0 }
0x40af   :  { %v10082_v42 = vpop.permute.xlu0 %10081 }
0x40b5   :  { %v16145_v17 = vpop.eup %16144 }
0x40b6   :  { %v9928_v36 = vmul.f32 %v16145_v17, %v16143_v14  ;;  %v17836_v17 = vld [vmem:[#allocation6 + $0x28] sm:$0xf] }
0x40b8   :  { %v9930_v51 = vpack.c.bf16 %v9928_v36, %v9928_v36  ;;  %v10306_v36 = vsel %vm654_vm5, %v17836_v17, 0 }
0x40ba   :  { %15402 = vmatmul.mubr.msk.bf16.vlgmr.msra.gmra.mxu1 %vm303_vm3, %v9930_v51 }
0x40bb   :  { %15412 = vmatpush3.bf16.xpose.msra.mxu1 %v10089_v35  ;;  %15413 = vmatprep.mubr.msk.bf16.mxu1 %vm16329_vm0, %v16328_v0 }
0x40bc   :  { %15423 = vmatprep.subr.bf16.mxu1 %v16328_v0 }
0x40c2   :  { %15414 = vmatmul.mubr.msk.bf16.vlgmr.msra.gmra.mxu1 %vm207_vm2, %v10082_v42 }
0x40c3   :  { %15425 = vmatprep.mubr.msk.bf16.mxu1 %vm16329_vm0, %v16328_v0 }
0x40d3   :  { %v9973_v43 = vpop.f32.mrf.mxu0 }
0x40d5   :  { %v15397_v44 = vpop.f32.mrf.mxu0 }
0x40d7   :  { %v9976_v30 = vpop.f32.mrf.mxu0 }
0x40d9   :  { %v15398_v57 = vpop.f32.mrf.mxu0 }
0x417a   :  { %v10021_v54 = vpop.f32.mrf.mxu1 }
0x417b   :  { %v10027_v62 = vpack.c.bf16 %v10021_v54, %v9973_v43 }
0x417c   :  { %v15403_v34 = vpop.f32.mrf.mxu1 }
0x417d   :  { %15408 = vmatmul.mubr.msk.bf16.vlgmr.msra.gmra.mxu0 %vm207_vm2, %v10027_v62 }
0x417e   :  { %15418 = vmatpush3.bf16.xpose.msra.mxu0 %v10139_v58  ;;  %v10024_v61 = vpop.f32.mrf.mxu1  ;;  %15419 = vmatprep.mubr.msk.bf16.mxu0 %vm16329_vm0, %v16328_v0 }
0x417f   :  { %15429 = vmatprep.subr.bf16.mxu0 %v16328_v0 }
0x4180   :  { %v15404_v50 = vpop.f32.mrf.mxu1 }
0x4182   :  { %v10125_v41 = vpop.f32.mrf.mxu1 }
0x4183   :  { %v10181_v55 = vsel %vm303_vm3, %v10125_v41, -inf }
0x4184   :  { %10182 = vmax.xlane.f32.xlu0 %v10181_v55  ;;  %v15415_v18 = vpop.f32.mrf.mxu1 }
0x4185   :  { %15420 = vmatmul.mubr.msk.bf16.vlgmr.msra.gmra.mxu0 %vm207_vm2, %v10132_v53 }
0x4186   :  { %v10128_v22 = vpop.f32.mrf.mxu1  ;;  %15431 = vmatprep.mubr.msk.bf16.mxu0 %vm16329_vm0, %v16328_v0 }
0x4188   :  { %v15416_v31 = vpop.f32.mrf.mxu1 }
0x420d   :  { %v10183_v19 = vpop.xlane.xlu0 %10182 }
0x420e   :  { %v10187_v25 = vsub.f32 %v10125_v41, %v10183_v19 }
0x4210   :  { %v10189_v10 = vmul.f32 1.442695, %v10187_v25 }
0x4212   :  { %16146 = vpow2.f32 %v10189_v10 }
0x421f   :  { %v16147_v28 = vpop.eup %16146 }
0x4220   :  { %v10193_v5 = vsel %vm303_vm3, %v16147_v28, 0.0 }
0x4221   :  { %10194 = vadd.xlane.f32.xlu0 %v10193_v5 }
0x423d   :  { %v10072_v7 = vpop.f32.mrf.mxu0 }
0x423e   :  { %v17812_v33 = vadd.f32 %v10072_v7, %v17762_v60 }
0x423f   :  { %v15409_v12 = vpop.f32.mrf.mxu0 }
0x4241   :  { %v10075_v63 = vpop.f32.mrf.mxu0 }
0x4242   :  { %v17815_v38 = vadd.f32 %v10075_v63, %v17766_v3 }
0x4243   :  { %v15410_v27 = vpop.f32.mrf.mxu0 }
0x4245   :  { %v10175_v40 = vpop.f32.mrf.mxu0 }
0x4246   :  { %v10184_v20 = vsel %vm303_vm3, %v10175_v40, -inf }
0x4247   :  { %10185 = vmax.xlane.f32.xlu1 %v10184_v20  ;;  %v15421_v9 = vpop.f32.mrf.mxu0 }
0x4249   :  { %v10178_v16 = vpop.f32.mrf.mxu0 }
0x424b   :  { %v15422_v56 = vpop.f32.mrf.mxu0 }
0x4258   :  { %10205 = vrot.lane.b32.xlu1 %v17595_v59, %s16342_s20 }
0x425c   :  { %10353 = vrot.lane.b32.xlu1 %v17595_v59, %s16343_s21 }
0x4260   :  { %10403 = vrot.lane.b32.xlu1 %v17599_v29, %s16343_s21 }
0x4264   :  { %10401 = vrot.lane.b32.xlu1 %v17599_v29, %s16344_s23 }
0x42aa   :  { %v10195_v60 = vpop.xlane.xlu0 %10194 }
0x42ab   :  { %16148 = vrcp.f32 %v10195_v60 }
0x42b8   :  { %v16149_v3 = vpop.eup %16148 }
0x42b9   :  { %v10201_v6 = vmul.f32 %v16149_v3, %v16147_v28 }
0x42bb   :  { %v10203_v23 = vpack.c.bf16 %v10201_v6, %v10201_v6 }
0x42d0   :  { %v10186_v39 = vpop.xlane.xlu1 %10185 }
0x42d1   :  { %v10188_v14 = vsub.f32 %v10175_v40, %v10186_v39 }
0x42d3   :  { %v10191_v24 = vmul.f32 1.442695, %v10188_v14 }
0x42d4   :  { %v10206_v26 = vpop.permute.xlu1 %10205 }
0x42d5   :  { %16150 = vpow2.f32 %v10191_v24  ;;  %v10211_v21 = vsel %vm333_vm4, %v10206_v26, 0 }
0x42d6   :  { %15424 = vmatpush3.bf16.msra.mxu1 %v10211_v21 }
0x42d7   :  { %15435 = vmatprep.subr.bf16.mxu1 %v16328_v0 }
0x42d8   :  { %v10354_v44 = vpop.permute.xlu1 %10353 }
0x42d9   :  { %15426 = vmatmul.mubr.msk.bf16.vlgmr.msra.gmra.mxu1 %vm303_vm3, %v10203_v23  ;;  %v10359_v57 = vsel %vm207_vm2, %v10354_v44, 0 }
0x42da   :  { %15437 = vmatprep.mubr.msk.bf16.mxu1 %vm16329_vm0, %v16328_v0  ;;  %15436 = vmatpush3.bf16.msra.mxu1 %v10306_v36 }
0x42db   :  { %15447 = vmatprep.subr.bf16.mxu1 %v16328_v0 }
0x42dc   :  { %v10404_v61 = vpop.permute.xlu1 %10403 }
0x42dd   :  { %v10409_v53 = vsel %vm207_vm2, %v10404_v61, 0 }
0x42e0   :  { %v10402_v25 = vpop.permute.xlu1 %10401 }
0x42e2   :  { %v16151_v32 = vpop.eup %16150 }
0x42e3   :  { %v10196_v13 = vsel %vm303_vm3, %v16151_v32, 0.0 }
0x42e4   :  { %10197 = vadd.xlane.f32.xlu0 %v10196_v13 }
0x42fa   :  { %10253 = vrot.lane.b32.xlu0 %v17599_v29, %s16342_s20 }
0x42fe   :  { %10351 = vrot.lane.b32.xlu0 %v17595_v59, %s16344_s23 }
0x436d   :  { %v10198_v37 = vpop.xlane.xlu0 %10197 }
0x436e   :  { %16152 = vrcp.f32 %v10198_v37 }
0x4371   :  { %v10254_v51 = vpop.permute.xlu0 %10253 }
0x4372   :  { %v10259_v35 = vsel %vm333_vm4, %v10254_v51, 0 }
0x4373   :  { %15430 = vmatpush3.bf16.msra.mxu0 %v10259_v35 }
0x4374   :  { %15441 = vmatprep.subr.bf16.mxu0 %v16328_v0 }
0x4375   :  { %v10352_v4 = vpop.permute.xlu0 %10351 }
0x437b   :  { %v16153_v42 = vpop.eup %16152 }
0x437c   :  { %v10202_v43 = vmul.f32 %v16153_v42, %v16151_v32 }
0x437e   :  { %v10204_v30 = vpack.c.bf16 %v10202_v43, %v10202_v43  ;;  %v13817_v43 = vcombine.low %v17836_v17, %v17836_v17 }
0x4380   :  { %15432 = vmatmul.mubr.msk.bf16.vlgmr.msra.gmra.mxu0 %vm303_vm3, %v10204_v30  ;;  %v10575_v44 = vrot.slane %v13817_v43, 2 }
0x4381   :  { %15442 = vmatpush3.bf16.xpose.msra.mxu0 %v10359_v57  ;;  %15443 = vmatprep.mubr.msk.bf16.mxu0 %vm16329_vm0, %v16328_v0 }
0x4382   :  { %15453 = vmatprep.subr.bf16.mxu0 %v16328_v0  ;;  %v10580_v30 = vsel %vm654_vm5, %v10575_v44, 0 }
0x4388   :  { %15444 = vmatmul.mubr.msk.bf16.vlgmr.msra.gmra.mxu0 %vm207_vm2, %v10352_v4 }
0x4389   :  { %15455 = vmatprep.mubr.msk.bf16.mxu0 %vm16329_vm0, %v16328_v0 }
0x4399   :  { %v10247_v54 = vpop.f32.mrf.mxu1 }
0x439b   :  { %v15427_v62 = vpop.f32.mrf.mxu1 }
0x439d   :  { %v10250_v34 = vpop.f32.mrf.mxu1 }
0x439f   :  { %v15428_v58 = vpop.f32.mrf.mxu1 }
0x4440   :  { %v10295_v50 = vpop.f32.mrf.mxu0 }
0x4441   :  { %v10301_v41 = vpack.c.bf16 %v10295_v50, %v10247_v54 }
0x4442   :  { %v15433_v55 = vpop.f32.mrf.mxu0 }
0x4443   :  { %15438 = vmatmul.mubr.msk.bf16.vlgmr.msra.gmra.mxu1 %vm207_vm2, %v10301_v41 }
0x4444   :  { %15448 = vmatpush3.bf16.xpose.msra.mxu1 %v10409_v53  ;;  %v10298_v18 = vpop.f32.mrf.mxu0  ;;  %15449 = vmatprep.mubr.msk.bf16.mxu1 %vm16329_vm0, %v16328_v0 }
0x4445   :  { %15459 = vmatprep.subr.bf16.mxu1 %v16328_v0 }
0x4446   :  { %v15434_v22 = vpop.f32.mrf.mxu0 }
0x4448   :  { %v10395_v31 = vpop.f32.mrf.mxu0 }
0x4449   :  { %v10451_v19 = vsel %vm303_vm3, %v10395_v31, -inf }
0x444a   :  { %10452 = vmax.xlane.f32.xlu0 %v10451_v19  ;;  %v15445_v10 = vpop.f32.mrf.mxu0 }
0x444b   :  { %15450 = vmatmul.mubr.msk.bf16.vlgmr.msra.gmra.mxu1 %vm207_vm2, %v10402_v25 }
0x444c   :  { %v10398_v28 = vpop.f32.mrf.mxu0  ;;  %15461 = vmatprep.mubr.msk.bf16.mxu1 %vm16329_vm0, %v16328_v0 }
0x444e   :  { %v15446_v5 = vpop.f32.mrf.mxu0 }
0x44d3   :  { %v10453_v7 = vpop.xlane.xlu0 %10452 }
0x44d4   :  { %v10457_v12 = vsub.f32 %v10395_v31, %v10453_v7 }
0x44d6   :  { %v10459_v63 = vmul.f32 1.442695, %v10457_v12 }
0x44d8   :  { %16154 = vpow2.f32 %v10459_v63 }
0x44e5   :  { %v16155_v27 = vpop.eup %16154 }
0x44e6   :  { %v10463_v40 = vsel %vm303_vm3, %v16155_v27, 0.0 }
0x44e7   :  { %10464 = vadd.xlane.f32.xlu0 %v10463_v40 }
0x4503   :  { %v10342_v20 = vpop.f32.mrf.mxu1 }
0x4504   :  { %v17862_v9 = vadd.f32 %v10342_v20, %v17812_v33 }
0x4505   :  { %v15439_v16 = vpop.f32.mrf.mxu1 }
0x4507   :  { %v10345_v56 = vpop.f32.mrf.mxu1 }
0x4508   :  { %v17865_v60 = vadd.f32 %v10345_v56, %v17815_v38 }
0x4509   :  { %v15440_v3 = vpop.f32.mrf.mxu1 }
0x450b   :  { %v10445_v39 = vpop.f32.mrf.mxu1 }
0x450c   :  { %v10454_v14 = vsel %vm303_vm3, %v10445_v39, -inf }
0x450d   :  { %10455 = vmax.xlane.f32.xlu1 %v10454_v14  ;;  %v15451_v6 = vpop.f32.mrf.mxu1 }
0x450f   :  { %v10448_v24 = vpop.f32.mrf.mxu1 }
0x4511   :  { %v15452_v26 = vpop.f32.mrf.mxu1 }
0x451e   :  { %10475 = vrot.lane.b32.xlu1 %v17595_v59, %s18165_s22 }
0x4522   :  { %10627 = vrot.lane.b32.xlu1 %v17595_v59, %s18166_s26 }
0x4526   :  { %10677 = vrot.lane.b32.xlu1 %v17599_v29, %s18166_s26 }
0x452a   :  { %10675 = vrot.lane.b32.xlu1 %v17599_v29, %s18167_s27 }
0x4570   :  { %v10465_v33 = vpop.xlane.xlu0 %10464 }
0x4571   :  { %16156 = vrcp.f32 %v10465_v33 }
0x457e   :  { %v16157_v38 = vpop.eup %16156 }
0x457f   :  { %v10471_v32 = vmul.f32 %v16157_v38, %v16155_v27 }
0x4581   :  { %v10473_v51 = vpack.c.bf16 %v10471_v32, %v10471_v32 }
0x4596   :  { %v10456_v21 = vpop.xlane.xlu1 %10455 }
0x4597   :  { %v10458_v23 = vsub.f32 %v10445_v39, %v10456_v21 }
0x4599   :  { %v10461_v13 = vmul.f32 1.442695, %v10458_v23 }
0x459a   :  { %v10476_v36 = vpop.permute.xlu1 %10475 }
0x459b   :  { %16158 = vpow2.f32 %v10461_v13  ;;  %v10481_v37 = vsel %vm333_vm4, %v10476_v36, 0 }
0x459c   :  { %15454 = vmatpush3.bf16.msra.mxu0 %v10481_v37 }
0x459d   :  { %15465 = vmatprep.subr.bf16.mxu0 %v16328_v0 }
0x459e   :  { %v10628_v58 = vpop.permute.xlu1 %10627 }
0x459f   :  { %15456 = vmatmul.mubr.msk.bf16.vlgmr.msra.gmra.mxu0 %vm303_vm3, %v10473_v51  ;;  %v10633_v17 = vsel %vm207_vm2, %v10628_v58, 0 }
0x45a0   :  { %15467 = vmatprep.mubr.msk.bf16.mxu0 %vm16329_vm0, %v16328_v0  ;;  %15466 = vmatpush3.bf16.msra.mxu0 %v10580_v30 }
0x45a1   :  { %15477 = vmatprep.subr.bf16.mxu0 %v16328_v0 }
0x45a2   :  { %v10678_v22 = vpop.permute.xlu1 %10677 }
0x45a3   :  { %v10683_v10 = vsel %vm207_vm2, %v10678_v22, 0 }
0x45a6   :  { %v10676_v63 = vpop.permute.xlu1 %10675 }
0x45a8   :  { %v16159_v35 = vpop.eup %16158 }
0x45a9   :  { %v10466_v42 = vsel %vm303_vm3, %v16159_v35, 0.0 }
0x45aa   :  { %10467 = vadd.xlane.f32.xlu0 %v10466_v42 }
0x45c0   :  { %10523 = vrot.lane.b32.xlu0 %v17599_v29, %s18165_s22 }
0x45c4   :  { %10625 = vrot.lane.b32.xlu0 %v17595_v59, %s18167_s27 }
0x4633   :  { %v10468_v57 = vpop.xlane.xlu0 %10467 }
0x4634   :  { %16160 = vrcp.f32 %v10468_v57 }
0x4637   :  { %v10524_v4 = vpop.permute.xlu0 %10523 }
0x4638   :  { %v10529_v54 = vsel %vm333_vm4, %v10524_v4, 0 }
0x4639   :  { %15460 = vmatpush3.bf16.msra.mxu1 %v10529_v54 }
0x463a   :  { %15471 = vmatprep.subr.bf16.mxu1 %v16328_v0 }
0x463b   :  { %v10626_v50 = vpop.permute.xlu0 %10625 }
0x4641   :  { %v16161_v62 = vpop.eup %16160 }
0x4642   :  { %v10472_v34 = vmul.f32 %v16161_v62, %v16159_v35  ;;  %v17935_v62 = vld [vmem:[#allocation6 + $0x2c] sm:$0xf] }
0x4644   :  { %v10474_v61 = vpack.c.bf16 %v10472_v34, %v10472_v34  ;;  %v10850_v34 = vsel %vm654_vm5, %v17935_v62, 0 }
0x4646   :  { %15462 = vmatmul.mubr.msk.bf16.vlgmr.msra.gmra.mxu1 %vm303_vm3, %v10474_v61 }
0x4647   :  { %15472 = vmatpush3.bf16.xpose.msra.mxu1 %v10633_v17  ;;  %15473 = vmatprep.mubr.msk.bf16.mxu1 %vm16329_vm0, %v16328_v0 }
0x4648   :  { %15483 = vmatprep.subr.bf16.mxu1 %v16328_v0 }
0x464e   :  { %15474 = vmatmul.mubr.msk.bf16.vlgmr.msra.gmra.mxu1 %vm207_vm2, %v10626_v50 }
0x464f   :  { %15485 = vmatprep.mubr.msk.bf16.mxu1 %vm16329_vm0, %v16328_v0 }
0x465f   :  { %v10517_v41 = vpop.f32.mrf.mxu0 }
0x4661   :  { %v15457_v55 = vpop.f32.mrf.mxu0 }
0x4663   :  { %v10520_v53 = vpop.f32.mrf.mxu0 }
0x4665   :  { %v15458_v18 = vpop.f32.mrf.mxu0 }
0x4706   :  { %v10565_v31 = vpop.f32.mrf.mxu1 }
0x4707   :  { %v10571_v19 = vpack.c.bf16 %v10565_v31, %v10517_v41 }
0x4708   :  { %v15463_v25 = vpop.f32.mrf.mxu1 }
0x4709   :  { %15468 = vmatmul.mubr.msk.bf16.vlgmr.msra.gmra.mxu0 %vm207_vm2, %v10571_v19 }
0x470a   :  { %15478 = vmatpush3.bf16.xpose.msra.mxu0 %v10683_v10  ;;  %v10568_v28 = vpop.f32.mrf.mxu1  ;;  %15479 = vmatprep.mubr.msk.bf16.mxu0 %vm16329_vm0, %v16328_v0 }
0x470b   :  { %15489 = vmatprep.subr.bf16.mxu0 %v16328_v0 }
0x470c   :  { %v15464_v5 = vpop.f32.mrf.mxu1 }
0x470e   :  { %v10669_v7 = vpop.f32.mrf.mxu1 }
0x470f   :  { %v10725_v12 = vsel %vm303_vm3, %v10669_v7, -inf }
0x4710   :  { %10726 = vmax.xlane.f32.xlu0 %v10725_v12  ;;  %v15475_v27 = vpop.f32.mrf.mxu1 }
0x4711   :  { %15480 = vmatmul.mubr.msk.bf16.vlgmr.msra.gmra.mxu0 %vm207_vm2, %v10676_v63 }
0x4712   :  { %v10672_v40 = vpop.f32.mrf.mxu1  ;;  %15491 = vmatprep.mubr.msk.bf16.mxu0 %vm16329_vm0, %v16328_v0 }
0x4714   :  { %v15476_v20 = vpop.f32.mrf.mxu1 }
0x4799   :  { %v10727_v16 = vpop.xlane.xlu0 %10726 }
0x479a   :  { %v10731_v56 = vsub.f32 %v10669_v7, %v10727_v16 }
0x479c   :  { %v10733_v3 = vmul.f32 1.442695, %v10731_v56 }
0x479e   :  { %16162 = vpow2.f32 %v10733_v3 }
0x47ab   :  { %v16163_v39 = vpop.eup %16162 }
0x47ac   :  { %v10737_v14 = vsel %vm303_vm3, %v16163_v39, 0.0 }
0x47ad   :  { %10738 = vadd.xlane.f32.xlu0 %v10737_v14 }
0x47c9   :  { %v10616_v6 = vpop.f32.mrf.mxu0 }
0x47ca   :  { %v17911_v24 = vadd.f32 %v10616_v6, %v17862_v9 }
0x47cb   :  { %v15469_v26 = vpop.f32.mrf.mxu0 }
0x47cd   :  { %v10619_v33 = vpop.f32.mrf.mxu0 }
0x47ce   :  { %v17914_v38 = vadd.f32 %v10619_v33, %v17865_v60 }
0x47cf   :  { %v15470_v21 = vpop.f32.mrf.mxu0 }
0x47d1   :  { %v10719_v23 = vpop.f32.mrf.mxu0 }
0x47d2   :  { %v10728_v32 = vsel %vm303_vm3, %v10719_v23, -inf }
0x47d3   :  { %10729 = vmax.xlane.f32.xlu1 %v10728_v32  ;;  %v15481_v13 = vpop.f32.mrf.mxu0 }
0x47d5   :  { %v10722_v36 = vpop.f32.mrf.mxu0 }
0x47d7   :  { %v15482_v37 = vpop.f32.mrf.mxu0 }
0x47e4   :  { %10749 = vrot.lane.b32.xlu1 %v17595_v59, %s18161_s0 }
0x47e8   :  { %10897 = vrot.lane.b32.xlu1 %v17595_v59, %s18162_s8 }
0x47ec   :  { %10947 = vrot.lane.b32.xlu1 %v17599_v29, %s18162_s8 }
0x47f0   :  { %10945 = vrot.lane.b32.xlu1 %v17599_v29, %s18163_s9 }
0x4836   :  { %v10739_v9 = vpop.xlane.xlu0 %10738 }
0x4837   :  { %16164 = vrcp.f32 %v10739_v9 }
0x4844   :  { %v16165_v60 = vpop.eup %16164 }
0x4845   :  { %v10745_v42 = vmul.f32 %v16165_v60, %v16163_v39 }
0x4847   :  { %v10747_v57 = vpack.c.bf16 %v10745_v42, %v10745_v42 }
0x485c   :  { %v10730_v51 = vpop.xlane.xlu1 %10729 }
0x485d   :  { %v10732_v35 = vsub.f32 %v10719_v23, %v10730_v51 }
0x485f   :  { %v10735_v43 = vmul.f32 1.442695, %v10732_v35 }
0x4860   :  { %v10750_v44 = vpop.permute.xlu1 %10749 }
0x4861   :  { %16166 = vpow2.f32 %v10735_v43  ;;  %v10755_v30 = vsel %vm333_vm4, %v10750_v44, 0 }
0x4862   :  { %15484 = vmatpush3.bf16.msra.mxu1 %v10755_v30 }
0x4863   :  { %15495 = vmatprep.subr.bf16.mxu1 %v16328_v0 }
0x4864   :  { %v10898_v55 = vpop.permute.xlu1 %10897 }
0x4865   :  { %15486 = vmatmul.mubr.msk.bf16.vlgmr.msra.gmra.mxu1 %vm303_vm3, %v10747_v57  ;;  %v10903_v18 = vsel %vm207_vm2, %v10898_v55, 0 }
0x4866   :  { %15497 = vmatprep.mubr.msk.bf16.mxu1 %vm16329_vm0, %v16328_v0  ;;  %15496 = vmatpush3.bf16.msra.mxu1 %v10850_v34 }
0x4867   :  { %15507 = vmatprep.subr.bf16.mxu1 %v16328_v0 }
0x4868   :  { %v10948_v28 = vpop.permute.xlu1 %10947 }
0x4869   :  { %v10953_v63 = vsel %vm207_vm2, %v10948_v28, 0 }
0x486c   :  { %v10946_v56 = vpop.permute.xlu1 %10945 }
0x486e   :  { %v16167_v4 = vpop.eup %16166 }
0x486f   :  { %v10740_v54 = vsel %vm303_vm3, %v16167_v4, 0.0 }
0x4870   :  { %10741 = vadd.xlane.f32.xlu0 %v10740_v54 }
0x4886   :  { %10797 = vrot.lane.b32.xlu0 %v17599_v29, %s18161_s0 }
0x488a   :  { %10895 = vrot.lane.b32.xlu0 %v17595_v59, %s18163_s9 }
0x48f9   :  { %v10742_v58 = vpop.xlane.xlu0 %10741 }
0x48fa   :  { %16168 = vrcp.f32 %v10742_v58 }
0x48fd   :  { %v10798_v61 = vpop.permute.xlu0 %10797 }
0x48fe   :  { %v10803_v17 = vsel %vm333_vm4, %v10798_v61, 0 }
0x48ff   :  { %15490 = vmatpush3.bf16.msra.mxu0 %v10803_v17 }
0x4900   :  { %15501 = vmatprep.subr.bf16.mxu0 %v16328_v0 }
0x4901   :  { %v10896_v22 = vpop.permute.xlu0 %10895 }
0x4907   :  { %v16169_v50 = vpop.eup %16168 }
0x4908   :  { %v10746_v41 = vmul.f32 %v16169_v50, %v16167_v4  ;;  %v13828_v50 = vcombine.low %v17935_v62, %v17935_v62 }
0x490a   :  { %v10748_v53 = vpack.c.bf16 %v10746_v41, %v10746_v41  ;;  %v11119_v41 = vrot.slane %v13828_v50, 2 }
0x490c   :  { %15492 = vmatmul.mubr.msk.bf16.vlgmr.msra.gmra.mxu0 %vm303_vm3, %v10748_v53  ;;  %v11124_v55 = vsel %vm654_vm5, %v11119_v41, 0  ;;  %v11262_v41 = vld [vmem:[#allocation7 + $0x2d8] sm:$0xff] }
0x490d   :  { %15502 = vmatpush3.bf16.xpose.msra.mxu0 %v10903_v18  ;;  %15503 = vmatprep.mubr.msk.bf16.mxu0 %vm16329_vm0, %v16328_v0 }
0x490e   :  { %15513 = vmatprep.subr.bf16.mxu0 %v16328_v0 }
0x4914   :  { %15504 = vmatmul.mubr.msk.bf16.vlgmr.msra.gmra.mxu0 %vm207_vm2, %v10896_v22 }
0x4915   :  { %15515 = vmatprep.mubr.msk.bf16.mxu0 %vm16329_vm0, %v16328_v0 }
0x4925   :  { %v10791_v31 = vpop.f32.mrf.mxu1 }
0x4927   :  { %v15487_v19 = vpop.f32.mrf.mxu1 }
0x4929   :  { %v10794_v25 = vpop.f32.mrf.mxu1 }
0x492b   :  { %v15488_v10 = vpop.f32.mrf.mxu1 }
0x49cc   :  { %v10839_v5 = vpop.f32.mrf.mxu0 }
0x49cd   :  { %v10845_v7 = vpack.c.bf16 %v10839_v5, %v10791_v31 }
0x49ce   :  { %v15493_v12 = vpop.f32.mrf.mxu0 }
0x49cf   :  { %15498 = vmatmul.mubr.msk.bf16.vlgmr.msra.gmra.mxu1 %vm207_vm2, %v10845_v7 }
0x49d0   :  { %15508 = vmatpush3.bf16.xpose.msra.mxu1 %v10953_v63  ;;  %v10842_v27 = vpop.f32.mrf.mxu0  ;;  %15509 = vmatprep.mubr.msk.bf16.mxu1 %vm16329_vm0, %v16328_v0 }
0x49d1   :  { %15519 = vmatprep.subr.bf16.mxu1 %v16328_v0 }
0x49d2   :  { %v15494_v40 = vpop.f32.mrf.mxu0 }
0x49d3   :  { %v13831_v40 = vld [vmem:[%s18137_s4 + $0x2] ss:$0 sm:$0xff] }
0x49d4   :  { %v10939_v20 = vpop.f32.mrf.mxu0 }
0x49d5   :  { %v10995_v16 = vsel %vm303_vm3, %v10939_v20, -inf }
0x49d6   :  { %10996 = vmax.xlane.f32.xlu0 %v10995_v16  ;;  %v15505_v3 = vpop.f32.mrf.mxu0 }
0x49d7   :  { %15510 = vmatmul.mubr.msk.bf16.vlgmr.msra.gmra.mxu1 %vm207_vm2, %v10946_v56 }
0x49d8   :  { %v10942_v39 = vpop.f32.mrf.mxu0  ;;  %15521 = vmatprep.mubr.msk.bf16.mxu1 %vm16329_vm0, %v16328_v0 }
0x49da   :  { %v15506_v14 = vpop.f32.mrf.mxu0 }
0x4a5f   :  { %v10997_v6 = vpop.xlane.xlu0 %10996 }
0x4a60   :  { %v11001_v26 = vsub.f32 %v10939_v20, %v10997_v6 }
0x4a62   :  { %v11003_v33 = vmul.f32 1.442695, %v11001_v26 }
0x4a64   :  { %16170 = vpow2.f32 %v11003_v33 }
0x4a71   :  { %v16171_v21 = vpop.eup %16170 }
0x4a72   :  { %v11007_v23 = vsel %vm303_vm3, %v16171_v21, 0.0 }
0x4a73   :  { %11008 = vadd.xlane.f32.xlu0 %v11007_v23 }
0x4a8f   :  { %v10886_v32 = vpop.f32.mrf.mxu1 }
0x4a90   :  { %v10893_v13 = vadd.f32 %v10886_v32, %v17911_v24 }
0x4a91   :  { %v15499_v36 = vpop.f32.mrf.mxu1 }
0x4a93   :  { %v10889_v37 = vpop.f32.mrf.mxu1 }
0x4a94   :  { %v10894_v9 = vadd.f32 %v10889_v37, %v17914_v38  ;;  %v11251_v37 = vld [vmem:[#allocation7 + $0x280] sm:$0xff] }
0x4a95   :  { %v15500_v60 = vpop.f32.mrf.mxu1 }
0x4a96   :  { %v11252_v60 = vld [vmem:[#allocation7 + $0x288] sm:$0xff] }
0x4a97   :  { %v10989_v51 = vpop.f32.mrf.mxu1 }
0x4a98   :  { %v10998_v35 = vsel %vm303_vm3, %v10989_v51, -inf }
0x4a99   :  { %10999 = vmax.xlane.f32.xlu1 %v10998_v35  ;;  %v15511_v42 = vpop.f32.mrf.mxu1  ;;  %v11260_v35 = vld [vmem:[#allocation7 + $0x2c8] sm:$0xff] }
0x4a9a   :  { %v13854_v42 = vcombine.low %v11252_v60, %v11260_v35 }
0x4a9b   :  { %v10992_v43 = vpop.f32.mrf.mxu1 }
0x4a9c   :  { %v13855_v43 = vcombine.high %v11252_v60, %v11260_v35  ;;  %v11255_v35 = vld [vmem:[#allocation7 + $0x2a0] sm:$0xff] }
0x4a9d   :  { %v15512_v44 = vpop.f32.mrf.mxu1 }
0x4a9e   :  { %v11235_v44 = vld [vmem:[#allocation7 + $0x200] sm:$0xff] }
0x4aaa   :  { %11019 = vrot.lane.b32.xlu1 %v17595_v59, %s18164_s29 }
0x4afc   :  { %v11009_v30 = vpop.xlane.xlu0 %11008 }
0x4afd   :  { %16172 = vrcp.f32 %v11009_v30  ;;  %v11243_v30 = vld [vmem:[#allocation7 + $0x240] sm:$0xff] }
0x4b0a   :  { %v16173_v57 = vpop.eup %16172 }
0x4b0b   :  { %v11015_v54 = vmul.f32 %v16173_v57, %v16171_v21  ;;  %v11236_v57 = vld [vmem:[#allocation7 + $0x208] sm:$0xff] }
0x4b0d   :  { %v11017_v61 = vpack.c.bf16 %v11015_v54, %v11015_v54  ;;  %v13836_v54 = vcombine.low %v11235_v44, %v11243_v30 }
0x4b22   :  { %v11000_v4 = vpop.xlane.xlu1 %10999 }
0x4b23   :  { %v11002_v24 = vsub.f32 %v10989_v51, %v11000_v4  ;;  %v13837_v4 = vcombine.high %v11235_v44, %v11243_v30 }
0x4b25   :  { %v11005_v34 = vmul.f32 1.442695, %v11002_v24  ;;  %v11244_v24 = vld [vmem:[#allocation7 + $0x248] sm:$0xff] }
0x4b26   :  { %v11020_v58 = vpop.permute.xlu1 %11019 }
0x4b27   :  { %16174 = vpow2.f32 %v11005_v34  ;;  %v11025_v38 = vsel %vm333_vm4, %v11020_v58, 0  ;;  %v13838_v34 = vcombine.low %v11236_v57, %v11244_v24  ;;  %v13839_v58 = vcombine.high %v11236_v57, %v11244_v24  ;;  %v11239_v24 = vld [vmem:[#allocation7 + $0x220] sm:$0xff] }
0x4b28   :  { %15514 = vmatpush3.bf16.msra.mxu0 %v11025_v38  ;;  %v11253_v38 = vld [vmem:[#allocation7 + $0x290] sm:$0xff] }
0x4b29   :  { %15525 = vmatprep.subr.bf16.mxu0 %v16328_v0 }
0x4b2b   :  { %15516 = vmatmul.mubr.msk.bf16.vlgmr.msra.gmra.mxu0 %vm303_vm3, %v11017_v61  ;;  %v11261_v61 = vld [vmem:[#allocation7 + $0x2d0] sm:$0xff] }
0x4b2c   :  { %15527 = vmatprep.mubr.msk.bf16.mxu0 %vm16329_vm0, %v16328_v0  ;;  %15526 = vmatpush3.bf16.msra.mxu0 %v11124_v55  ;;  %v13857_v50 = vcombine.high %v11253_v38, %v11261_v61 }
0x4b2d   :  { %11570 = vmatprep.subr.bf16.mxu0 %v13855_v43  ;;  %v11264_v43 = vld [vmem:[#allocation7 + $0x2e8] sm:$0xff] }
0x4b34   :  { %v16175_v59 = vpop.eup %16174 }
0x4b35   :  { %v11010_v17 = vsel %vm303_vm3, %v16175_v59, 0.0 }
0x4b36   :  { %11011 = vadd.xlane.f32.xlu0 %v11010_v17  ;;  %v13856_v17 = vcombine.low %v11253_v38, %v11261_v61 }
0x4b4c   :  { %11067 = vrot.lane.b32.xlu0 %v17599_v29, %s18164_s29 }
0x4bbf   :  { %v11012_v53 = vpop.xlane.xlu0 %11011 }
0x4bc0   :  { %16176 = vrcp.f32 %v11012_v53 }
0x4bc3   :  { %v11068_v18 = vpop.permute.xlu0 %11067 }
0x4bc4   :  { %v11073_v22 = vsel %vm333_vm4, %v11068_v18, 0 }
0x4bc5   :  { %15520 = vmatpush3.bf16.msra.mxu1 %v11073_v22 }
0x4bcd   :  { %v16177_v0 = vpop.eup %16176 }
0x4bce   :  { %v11016_v31 = vmul.f32 %v16177_v0, %v16175_v59  ;;  %v11254_v59 = vld [vmem:[#allocation7 + $0x298] sm:$0xff] }
0x4bcf   :  { %v13858_v55 = vcombine.low %v11254_v59, %v11262_v41  ;;  %v13859_v53 = vcombine.high %v11254_v59, %v11262_v41  ;;  %v11265_v41 = vld [vmem:[#allocation7 + $0x2f0] sm:$0xff] }
0x4bd0   :  { %v11018_v19 = vpack.c.bf16 %v11016_v31, %v11016_v31 }
0x4bd2   :  { %15522 = vmatmul.mubr.msk.bf16.vlgmr.msra.gmra.mxu1 %vm303_vm3, %v11018_v19 }
0x4bd3   :  { %11547 = vmatprep.mubr.bf16.mxu1 %v16352_v1 }
0x4beb   :  { %v11061_v29 = vpop.f32.mrf.mxu0 }
0x4bed   :  { %v15517_v25 = vpop.f32.mrf.mxu0 }
0x4bef   :  { %v11064_v62 = vpop.f32.mrf.mxu0 }
0x4bf1   :  { %v15518_v10 = vpop.f32.mrf.mxu0 }
0x4c92   :  { %v11109_v28 = vpop.f32.mrf.mxu1 }
0x4c93   :  { %v11115_v5 = vpack.c.bf16 %v11109_v28, %v11061_v29 }
0x4c94   :  { %v15523_v7 = vpop.f32.mrf.mxu1 }
0x4c95   :  { %15528 = vmatmul.mubr.msk.bf16.vlgmr.msra.gmra.mxu0 %vm207_vm2, %v11115_v5 }
0x4c96   :  { %v11112_v12 = vpop.f32.mrf.mxu1  ;;  %11590 = vmatprep.mubr.bf16.mxu0 %v16352_v1  ;;  %11571 = vmatpush1.bf16.msra.mxu0 %v13854_v42  ;;  %v11256_v42 = vld [vmem:[#allocation7 + $0x2a8] sm:$0xff] }
0x4c97   :  { %11572 = vmatprep.subr.bf16.mxu0 %v13839_v58  ;;  %v11248_v58 = vld [vmem:[#allocation7 + $0x268] sm:$0xff]  ;;  %v13862_v61 = vcombine.low %v11256_v42, %v11264_v43 }
0x4c98   :  { %v15524_v63 = vpop.f32.mrf.mxu1 }
0x4c9a   :  { %11573 = vmatpush1.bf16.msra.mxu0 %v13838_v34  ;;  %v11240_v34 = vld [vmem:[#allocation7 + $0x228] sm:$0xff] }
0x4c9b   :  { %11656 = vmatprep.subr.bf16.mxu0 %v13859_v53  ;;  %v11266_v53 = vld [vmem:[#allocation7 + $0x2f8] sm:$0xff] }
0x4d55   :  { %v11160_v27 = vpop.f32.mrf.mxu0 }
0x4d56   :  { %v11167_v20 = vadd.f32 %v11160_v27, %v10893_v13 }
0x4d57   :  { %v15529_v16 = vpop.f32.mrf.mxu0 }
0x4d58   :  { %v11177_v56 = vadd.f32 %v13831_v40, %v11167_v20 }
0x4d59   :  { %v11163_v3 = vpop.f32.mrf.mxu0 }
0x4d5a   :  { %v17985_v39 = vadd.f32 %v11177_v56, %v17586_v45  ;;  %v11168_v14 = vadd.f32 %v11163_v3, %v10894_v9  ;;  %v11259_v9 = vld [vmem:[#allocation7 + $0x2c0] sm:$0xff]  ;;  %v13834_v3 = vld [vmem:[%s18138_s5 + $0x2] ss:$0 sm:$0xff] }
0x4d5b   :  { %v15530_v6 = vpop.f32.mrf.mxu0  ;;  %v13853_v51 = vcombine.high %v11251_v37, %v11259_v9 }
0x4d5c   :  { %v11178_v26 = vadd.f32 %v13831_v40, %v11168_v14  ;;  %v11185_v33 = vsel %vm157_vm1, %v17985_v39, 0.0  ;;  %v11193_v21 = vmul.f32 %v17985_v39, %v17985_v39 }
0x4d5d   :  { %11186 = vadd.xlane.f32.xlu1 %v11185_v33  ;;  %11527 = vmatprep.subr.bf16.mxu1 %v13853_v51 }
0x4d5e   :  { %v17992_v23 = vadd.f32 %v11178_v26, %v17588_v52  ;;  %v11195_v32 = vsel %vm157_vm1, %v11193_v21, 0.0  ;;  %v13852_v52 = vcombine.low %v11251_v37, %v11259_v9  ;;  %v13835_v21 = vld [vmem:[%s18139_s6 + $0x2] ss:$0 sm:$0xff] }
0x4d60   :  { %v11188_v13 = vsel %vm157_vm1, %v17992_v23, 0.0  ;;  %v11194_v45 = vmul.f32 %v17992_v23, %v17992_v23  ;;  %11528 = vmatpush1.bf16.msra.mxu1 %v13852_v52  ;;  %v11263_v52 = vld [vmem:[#allocation7 + $0x2e0] sm:$0xff] }
0x4d61   :  { %11196 = vadd.xlane.f32.xlu1 %v11195_v32  ;;  %11189 = vadd.xlane.f32.xlu0 %v11188_v13  ;;  %v11237_v13 = vld [vmem:[#allocation7 + $0x210] sm:$0xff]  ;;  %v13861_v57 = vcombine.high %v11255_v35, %v11263_v52  ;;  %v13860_v38 = vcombine.low %v11255_v35, %v11263_v52  ;;  %v15862_v35 = vld [vmem:[#allocation10 + $0x850] sm:$0xff]  }
0x4d62   :  { %v11198_v36 = vsel %vm157_vm1, %v11194_v45, 0.0  ;;  %11529 = vmatprep.subr.bf16.mxu1 %v13837_v4  ;;  %v11245_v45 = vld [vmem:[#allocation7 + $0x250] sm:$0xff]  ;;  %v13863_v4 = vcombine.high %v11256_v42, %v11264_v43  ;;  %v15863_v52 = vld [vmem:[#allocation10 + $0x8d0] sm:$0xff]  }
0x4d63   :  { %v13840_v44 = vcombine.low %v11237_v13, %v11245_v45  ;;  %v15864_v42 = vld [vmem:[#allocation10 + $0x810] sm:$0xff]  }
0x4d64   :  { %11530 = vmatpush1.bf16.msra.mxu1 %v13836_v54  ;;  %v11247_v54 = vld [vmem:[#allocation7 + $0x260] sm:$0xff] }
0x4d65   :  { %11199 = vadd.xlane.f32.xlu0 %v11198_v36  ;;  %11613 = vmatprep.subr.bf16.mxu1 %v13857_v50  ;;  %v11238_v36 = vld [vmem:[#allocation7 + $0x218] sm:$0xff]  ;;  %v13845_v59 = vcombine.high %v11239_v24, %v11247_v54  ;;  %v11257_v50 = vld [vmem:[#allocation7 + $0x2b0] sm:$0xff]  ;;  %v15865_v43 = vld [vmem:[#allocation10 + $0x890] sm:$0xff]  }
0x4de6   :  { %v11187_v18 = vpop.xlane.xlu1 %11186 }
0x4de7   :  { %v11191_v22 = vmul.f32 0.03125, %v11187_v18  ;;  %v13844_v18 = vcombine.low %v11239_v24, %v11247_v54  ;;  %v15870_v24 = vld [vmem:[#allocation10 + $0x840] sm:$0xff]  }
0x4de8   :  { %v15871_v54 = vld [vmem:[#allocation10 + $0x8c0] sm:$0xff]  }
0x4de9   :  { %v11203_v19 = vmul.f32 %v11191_v22, %v11191_v22  ;;  %v11209_v20 = vsub.f32 %v17985_v39, %v11191_v22  ;;  %v11246_v39 = vld [vmem:[#allocation7 + $0x258] sm:$0xff]  ;;  %v13846_v22 = vcombine.low %v11240_v34, %v11248_v58 }
0x4dea   :  { %v11197_v0 = vpop.xlane.xlu1 %11196  ;;  %v11190_v31 = vpop.xlane.xlu0 %11189  ;;  %v13843_v51 = vcombine.high %v11238_v36, %v11246_v39  ;;  %v13842_v30 = vcombine.low %v11238_v36, %v11246_v39  ;;  %v15857_v36 = vld [vmem:[#allocation10 + $0x8a0] sm:$0xff]   ;;  %v15858_v39 = vld [vmem:[#allocation10 + $0x858] sm:$0xff]  }
0x4deb   :  { %v11201_v29 = vmul.f32 0.03125, %v11197_v0  ;;  %v11192_v25 = vmul.f32 0.03125, %v11190_v31  ;;  %v13865_v0 = vcombine.high %v11257_v50, %v11265_v41 }
0x4ded   :  { %v11205_v62 = vsub.f32 %v11201_v29, %v11203_v19  ;;  %v11204_v5 = vmul.f32 %v11192_v25, %v11192_v25  ;;  %v11210_v14 = vsub.f32 %v17992_v23, %v11192_v25  ;;  %v13841_v23 = vcombine.high %v11237_v13, %v11245_v45  ;;  %v11241_v19 = vld [vmem:[#allocation7 + $0x230] sm:$0xff]  ;;  %v11242_v25 = vld [vmem:[#allocation7 + $0x238] sm:$0xff] }
0x4dee   :  { %v11200_v10 = vpop.xlane.xlu0 %11199  ;;  %v11249_v29 = vld [vmem:[#allocation7 + $0x270] sm:$0xff] }
0x4def   :  { %v11207_v28 = vmax.f32 %v11205_v62, 0.0  ;;  %v11202_v7 = vmul.f32 0.03125, %v11200_v10  ;;  %v11250_v62 = vld [vmem:[#allocation7 + $0x278] sm:$0xff]  ;;  %v13864_v10 = vcombine.low %v11257_v50, %v11265_v41  ;;  %v15855_v13 = vld [vmem:[#allocation10 + $0x8e0] sm:$0xff]  }
0x4df0   :  { %v15856_v45 = vld [vmem:[#allocation10 + $0x820] sm:$0xff]  }
0x4df1   :  { %v11211_v12 = vadd.f32 1e-05, %v11207_v28  ;;  %v11206_v63 = vsub.f32 %v11202_v7, %v11204_v5  ;;  %v13849_v5 = vcombine.high %v11241_v19, %v11249_v29  ;;  %v13851_v7 = vcombine.high %v11242_v25, %v11250_v62 }
0x4df3   :  { %16178 = vrsqrt.f32 %v11211_v12  ;;  %v11208_v27 = vmax.f32 %v11206_v63, 0.0  ;;  %v13848_v12 = vcombine.low %v11241_v19, %v11249_v29  ;;  %v13850_v63 = vcombine.low %v11242_v25, %v11250_v62 }
0x4df5   :  { %v11212_v40 = vadd.f32 1e-05, %v11208_v27  ;;  %v15842_v27 = vld [vmem:[#allocation10 + $0x878] sm:$0xff]  }
0x4df7   :  { %16180 = vrsqrt.f32 %v11212_v40  ;;  %v15843_v40 = vld [vmem:[#allocation10 + $0x8f8] sm:$0xff]  }
0x4e00   :  { %v16179_v16 = vpop.eup %16178 }
0x4e01   :  { %v11215_v56 = vmul.f32 %v16179_v16, %v11209_v20  ;;  %v15844_v20 = vld [vmem:[#allocation10 + $0x838] sm:$0xff]  }
0x4e02   :  { %v15845_v16 = vld [vmem:[#allocation10 + $0x8b8] sm:$0xff]  }
0x4e03   :  { %v11223_v26 = vmul.f32 %v13834_v3, %v11215_v56  ;;  %v15846_v56 = vld [vmem:[#allocation10 + $0x870] sm:$0xff]  }
0x4e04   :  { %v16181_v6 = vpop.eup %16180 }
0x4e05   :  { %v11216_v33 = vmul.f32 %v16181_v6, %v11210_v14  ;;  %v18008_v37 = vadd.f32 %v13835_v21, %v11223_v26  ;;  %v15848_v14 = vld [vmem:[#allocation10 + $0x830] sm:$0xff]   ;;  %v15851_v26 = vld [vmem:[#allocation10 + $0x8e8] sm:$0xff]  }
0x4e06   :  { %v15849_v6 = vld [vmem:[#allocation10 + $0x8b0] sm:$0xff]  }
0x4e07   :  { %v11224_v32 = vmul.f32 %v13834_v3, %v11216_v33  ;;  %v15847_v3 = vld [vmem:[#allocation10 + $0x8f0] sm:$0xff]   ;;  %v15852_v33 = vld [vmem:[#allocation10 + $0x828] sm:$0xff]  }
0x4e09   :  { %v18010_v9 = vadd.f32 %v13835_v21, %v11224_v32  ;;  %v15853_v21 = vld [vmem:[#allocation10 + $0x8a8] sm:$0xff]   ;;  %v15854_v32 = vld [vmem:[#allocation10 + $0x860] sm:$0xff]  }
0x4e0b   :  { %v18014_v60 = vpack.c.bf16 %v18010_v9, %v18008_v37 }
0x4e0d   :  { %13868 = vmatmul.mubr.msk.bf16.vlgmr.msra.gmra.mxu1 %vm157_vm1, %v18014_v60  ;;  %13869 = vmatmul.mubr.msk.bf16.vlgmr.msra.gmra.mxu0 %vm157_vm1, %v18014_v60 }
0x4e0e   :  { %11614 = vmatpush1.bf16.msra.mxu1 %v13856_v17  ;;  %11657 = vmatpush1.bf16.msra.mxu0 %v13858_v55  ;;  %v13847_v17 = vcombine.high %v11240_v34, %v11248_v58  ;;  %v11258_v55 = vld [vmem:[#allocation7 + $0x2b8] sm:$0xff]  ;;  %v15872_v34 = vld [vmem:[#allocation10 + $0x800] sm:$0xff]  }
0x4e0f   :  { %11615 = vmatprep.subr.bf16.mxu1 %v13841_v23  ;;  %11658 = vmatprep.subr.bf16.mxu0 %v13843_v51  ;;  %v13867_v31 = vcombine.high %v11258_v55, %v11266_v53  ;;  %v13866_v28 = vcombine.low %v11258_v55, %v11266_v53  ;;  %v15860_v23 = vld [vmem:[#allocation10 + $0x818] sm:$0xff]   ;;  %v15873_v58 = vld [vmem:[#allocation10 + $0x880] sm:$0xff]  }
0x4e10   :  { %11633 = vmatprep.mubr.bf16.mxu1 %v16352_v1  ;;  %11676 = vmatprep.mubr.bf16.mxu0 %v16352_v1  ;;  %v15861_v51 = vld [vmem:[#allocation10 + $0x898] sm:$0xff]  }
0x4e12   :  { %11616 = vmatpush1.bf16.msra.mxu1 %v13840_v44  ;;  %11659 = vmatpush1.bf16.msra.mxu0 %v13842_v30  ;;  %v15866_v44 = vld [vmem:[#allocation10 + $0x848] sm:$0xff]  }
0x4e13   :  { %11699 = vmatprep.subr.bf16.mxu1 %v13861_v57  ;;  %11742 = vmatprep.subr.bf16.mxu0 %v13863_v4  ;;  %v15867_v30 = vld [vmem:[#allocation10 + $0x8c8] sm:$0xff]  }
0x4e14   :  { %v15868_v57 = vld [vmem:[#allocation10 + $0x808] sm:$0xff]  }
0x4e15   :  { %13870 = vmatmul.mubr.msk.bf16.vlgmr.msra.gmra.mxu1 %vm157_vm1, %v18014_v60  ;;  %13871 = vmatmul.mubr.msk.bf16.vlgmr.msra.gmra.mxu0 %vm157_vm1, %v18014_v60  ;;  %v15869_v4 = vld [vmem:[#allocation10 + $0x888] sm:$0xff]  }
0x4e16   :  { %11700 = vmatpush1.bf16.msra.mxu1 %v13860_v38  ;;  %11743 = vmatpush1.bf16.msra.mxu0 %v13862_v61  ;;  %v15874_v38 = vld [vmem:[#allocation10 + $0x978] sm:$0xff]  }
0x4e17   :  { %11701 = vmatprep.subr.bf16.mxu1 %v13845_v59  ;;  %11744 = vmatprep.subr.bf16.mxu0 %v13847_v17  ;;  %v15875_v61 = vld [vmem:[#allocation10 + $0x9f8] sm:$0xff]   ;;  %v18038_v59 = vld [vmem:[#allocation9 + $0x20] sm:$0xff] }
0x4e18   :  { %11719 = vmatprep.mubr.bf16.mxu1 %v16352_v1  ;;  %11762 = vmatprep.mubr.bf16.mxu0 %v16352_v1  ;;  %v11279_v41 = vrot.slane %v18038_v59, %v16921_v46  ;;  %v11287_v55 = vrot.slane %v18038_v59, %v16924_v47  ;;  %v11275_v53 = vrot.slane %v18038_v59, %v16927_v48 }
0x4e1a   :  { %11702 = vmatpush1.bf16.msra.mxu1 %v13844_v18  ;;  %11745 = vmatpush1.bf16.msra.mxu0 %v13846_v22  ;;  %v11283_v18 = vrot.slane %v18038_v59, %v16930_v49 }
0x4e1b   :  { %11785 = vmatprep.subr.bf16.mxu1 %v13865_v0  ;;  %11828 = vmatprep.subr.bf16.mxu0 %v13867_v31 }
0x4e1d   :  { %13872 = vmatmul.mubr.msk.bf16.vlgmr.msra.gmra.mxu1 %vm157_vm1, %v18014_v60  ;;  %13873 = vmatmul.mubr.msk.bf16.vlgmr.msra.gmra.mxu0 %vm157_vm1, %v18014_v60 }
0x4e1e   :  { %11786 = vmatpush1.bf16.msra.mxu1 %v13864_v10  ;;  %11829 = vmatpush1.bf16.msra.mxu0 %v13866_v28 }
0x4e1f   :  { %11787 = vmatprep.subr.bf16.mxu1 %v13849_v5  ;;  %11830 = vmatprep.subr.bf16.mxu0 %v13851_v7 }
0x4e20   :  { %11805 = vmatprep.mubr.bf16.mxu1 %v16352_v1  ;;  %11848 = vmatprep.mubr.bf16.mxu0 %v16352_v1  ;;  %v15850_v1 = vld [vmem:[#allocation10 + $0x868] sm:$0xff]  }
0x4e22   :  { %11788 = vmatpush1.bf16.msra.mxu1 %v13848_v12  ;;  %11831 = vmatpush1.bf16.msra.mxu0 %v13850_v63 }
0x4e23   :  { %14611 = vmatprep.subr.bf16.mxu1 %v15842_v27  ;;  %14633 = vmatprep.subr.bf16.mxu0 %v15843_v40 }
0x4e25   :  { %13874 = vmatmul.mubr.msk.bf16.vlgmr.msra.gmra.mxu1 %vm157_vm1, %v18014_v60  ;;  %13875 = vmatmul.mubr.msk.bf16.vlgmr.msra.gmra.mxu0 %vm157_vm1, %v18014_v60  ;;  %v15859_v60 = vld [vmem:[#allocation10 + $0x8d8] sm:$0xff]  }
0x4e26   :  { %14612 = vmatpush3.bf16.msra.mxu1 %v15844_v20  ;;  %14634 = vmatpush3.bf16.msra.mxu0 %v15845_v16 }
0x4e27   :  { %14613 = vmatprep.subr.bf16.mxu1 %v15846_v56  ;;  %14635 = vmatprep.subr.bf16.mxu0 %v15847_v3  ;;  %v11295_v3 = vrot.slane %v18038_v59, %v16943_v2 }
0x4e2a   :  { %14614 = vmatpush3.bf16.msra.mxu1 %v15848_v14  ;;  %14636 = vmatpush3.bf16.msra.mxu0 %v15849_v6  ;;  %v11303_v14 = vrot.slane %v18038_v59, %v16946_v15 }
0x4e2b   :  { %14615 = vmatprep.subr.bf16.mxu1 %v15850_v1  ;;  %14637 = vmatprep.subr.bf16.mxu0 %v15851_v26 }
0x4e2e   :  { %14616 = vmatpush3.bf16.msra.mxu1 %v15852_v33  ;;  %14638 = vmatpush3.bf16.msra.mxu0 %v15853_v21 }
0x4e2f   :  { %14617 = vmatprep.subr.bf16.mxu1 %v15854_v32  ;;  %14639 = vmatprep.subr.bf16.mxu0 %v15855_v13 }
0x4e32   :  { %14618 = vmatpush3.bf16.msra.mxu1 %v15856_v45  ;;  %14640 = vmatpush3.bf16.msra.mxu0 %v15857_v36 }
0x4e33   :  { %14619 = vmatprep.subr.bf16.mxu1 %v15858_v39  ;;  %14641 = vmatprep.subr.bf16.mxu0 %v15859_v60  ;;  %v15876_v60 = vld [vmem:[#allocation10 + $0x938] sm:$0xff]  }
0x4e36   :  { %14620 = vmatpush3.bf16.msra.mxu1 %v15860_v23  ;;  %14642 = vmatpush3.bf16.msra.mxu0 %v15861_v51  ;;  %v15877_v23 = vld [vmem:[#allocation10 + $0x9b8] sm:$0xff]  }
0x4e37   :  { %14621 = vmatprep.subr.bf16.mxu1 %v15862_v35  ;;  %14643 = vmatprep.subr.bf16.mxu0 %v15863_v52 }
0x4e3a   :  { %14622 = vmatpush3.bf16.msra.mxu1 %v15864_v42  ;;  %14644 = vmatpush3.bf16.msra.mxu0 %v15865_v43  ;;  %v15878_v43 = vld [vmem:[#allocation10 + $0x970] sm:$0xff]  }
0x4e3b   :  { %14623 = vmatprep.subr.bf16.mxu1 %v15866_v44  ;;  %14645 = vmatprep.subr.bf16.mxu0 %v15867_v30  ;;  %v15879_v44 = vld [vmem:[#allocation10 + $0x9f0] sm:$0xff]  }
0x4e3e   :  { %14624 = vmatpush3.bf16.msra.mxu1 %v15868_v57  ;;  %14646 = vmatpush3.bf16.msra.mxu0 %v15869_v4 }
0x4e3f   :  { %14625 = vmatprep.subr.bf16.mxu1 %v15870_v24  ;;  %14647 = vmatprep.subr.bf16.mxu0 %v15871_v54 }
0x4e42   :  { %14626 = vmatpush3.bf16.msra.mxu1 %v15872_v34  ;;  %14648 = vmatpush3.bf16.msra.mxu0 %v15873_v58  ;;  %v15880_v58 = vld [vmem:[#allocation10 + $0x930] sm:$0xff]  }
0x4e43   :  { %14655 = vmatprep.subr.bf16.mxu1 %v15874_v38  ;;  %14677 = vmatprep.subr.bf16.mxu0 %v15875_v61  ;;  %v15881_v38 = vld [vmem:[#allocation10 + $0x9b0] sm:$0xff]   ;;  %v15882_v61 = vld [vmem:[#allocation10 + $0x968] sm:$0xff]  }
0x4ecd   :  { %v11549_v17 = vpop.f32.mrf.mxu1  ;;  %v11592_v50 = vpop.f32.mrf.mxu0 }
0x4ece   :  { %v11550_v28 = vadd.f32 %v11549_v17, %v11275_v53  ;;  %v11593_v5 = vadd.f32 %v11592_v50, %v11283_v18 }
0x4ecf   :  { %v11551_v22 = vpop.f32.mrf.mxu1  ;;  %v11594_v0 = vpop.f32.mrf.mxu0 }
0x4ed0   :  { %v11552_v29 = vadd.f32 %v11551_v22, %v11279_v41  ;;  %v11595_v25 = vadd.f32 %v11594_v0, %v11287_v55  ;;  %v11859_v21 = vmax.f32 %v11550_v28, 0.0  ;;  %v11861_v32 = vmax.f32 %v11593_v5, 0.0  ;;  %v15884_v0 = vld [vmem:[#allocation10 + $0x928] sm:$0xff]   ;;  %v15889_v28 = vld [vmem:[#allocation10 + $0x9a0] sm:$0xff]   ;;  %v15890_v5 = vld [vmem:[#allocation10 + $0x958] sm:$0xff]  }
0x4ed1   :  { %v11553_v31 = vpop.f32.mrf.mxu1  ;;  %v11596_v19 = vpop.f32.mrf.mxu0 }
0x4ed2   :  { %v11554_v62 = vadd.f32 %v11553_v31, %v11275_v53  ;;  %v11597_v10 = vadd.f32 %v11596_v19, %v11283_v18  ;;  %v11860_v6 = vmax.f32 %v11552_v29, 0.0  ;;  %v11862_v1 = vmax.f32 %v11595_v25, 0.0  ;;  %v15883_v53 = vld [vmem:[#allocation10 + $0x9e8] sm:$0xff]   ;;  %v15886_v19 = vld [vmem:[#allocation10 + $0x960] sm:$0xff]  }
0x4ed3   :  { %v11555_v7 = vpop.f32.mrf.mxu1  ;;  %v11598_v12 = vpop.f32.mrf.mxu0  ;;  %v15885_v31 = vld [vmem:[#allocation10 + $0x9a8] sm:$0xff]   ;;  %v15887_v29 = vld [vmem:[#allocation10 + $0x9e0] sm:$0xff]  }
0x4ed4   :  { %v11556_v63 = vadd.f32 %v11555_v7, %v11279_v41  ;;  %v11599_v27 = vadd.f32 %v11598_v12, %v11287_v55  ;;  %v11875_v40 = vmax.f32 %v11554_v62, 0.0  ;;  %v11877_v20 = vmax.f32 %v11597_v10, 0.0  ;;  %v15888_v62 = vld [vmem:[#allocation10 + $0x920] sm:$0xff]   ;;  %v15891_v7 = vld [vmem:[#allocation10 + $0x9d8] sm:$0xff]  }
0x4ed5   :  { %v18048_v16 = vpop.f32.mrf.mxu1  ;;  %v18050_v56 = vpop.f32.mrf.mxu0 }
0x4ed6   :  { %v11876_v26 = vmax.f32 %v11556_v63, 0.0  ;;  %v11878_v33 = vmax.f32 %v11599_v27, 0.0  ;;  %v11891_v51 = vpack.c.bf16 %v11875_v40, %v11859_v21  ;;  %v11893_v35 = vpack.c.bf16 %v11877_v20, %v11861_v32  ;;  %v15892_v63 = vld [vmem:[#allocation10 + $0x918] sm:$0xff]   ;;  %v15894_v20 = vld [vmem:[#allocation10 + $0x950] sm:$0xff]   ;;  %v15899_v21 = vld [vmem:[#allocation10 + $0x9c8] sm:$0xff]  }
0x4ed7   :  { %v11637_v13 = vpop.f32.mrf.mxu1  ;;  %v11680_v45 = vpop.f32.mrf.mxu0  ;;  %v15893_v40 = vld [vmem:[#allocation10 + $0x998] sm:$0xff]   ;;  %v11291_v32 = vrot.slane %v18038_v59, %v16965_v8 }
0x4ed8   :  { %v11892_v36 = vpack.c.bf16 %v11876_v26, %v11860_v6  ;;  %v11894_v39 = vpack.c.bf16 %v11878_v33, %v11862_v1  ;;  %v11638_v30 = vadd.f32 %v11637_v13, %v11295_v3  ;;  %v11681_v57 = vadd.f32 %v11680_v45, %v11303_v14  ;;  %v15896_v6 = vld [vmem:[#allocation10 + $0x910] sm:$0xff]   ;;  %v15898_v33 = vld [vmem:[#allocation10 + $0x948] sm:$0xff]   ;;  %v18072_v45 = vld [vmem:[#allocation9 + $0x28] sm:$0xff] }
0x4ed9   :  { %v18056_v52 = vpop.f32.mrf.mxu1  ;;  %v18058_v42 = vpop.f32.mrf.mxu0  ;;  %v15897_v26 = vld [vmem:[#allocation10 + $0x990] sm:$0xff]   ;;  %v11299_v13 = vrot.slane %v18038_v59, %v16968_v11  ;;  %v11319_v59 = vrot.slane %v18072_v45, %v16924_v47  ;;  %v15907_v47 = vld [vmem:[#allocation10 + $0xaf8] sm:$0xff]  }
0x4eda   :  { %12972 = vmatprep.mubr.bf16.mxu1 %v11892_v36  ;;  %13013 = vmatprep.mubr.bf16.mxu0 %v11894_v39  ;;  %v11864_v17 = vmax.f32 %v11638_v30, 0.0  ;;  %v11866_v50 = vmax.f32 %v11681_v57, 0.0  ;;  %v15900_v39 = vld [vmem:[#allocation10 + $0x908] sm:$0xff]   ;;  %v15903_v30 = vld [vmem:[#allocation10 + $0x9c0] sm:$0xff]   ;;  %v11636_v57 = vadd.f32 %v18048_v16, %v11291_v32 }
0x4edb   :  { %v11641_v4 = vpop.f32.mrf.mxu1  ;;  %v11684_v24 = vpop.f32.mrf.mxu0  ;;  %12973 = vmatmul.mubr.bf16.vlgmr.msra.gmra.mxu1 %v11891_v51  ;;  %13014 = vmatmul.mubr.bf16.vlgmr.msra.gmra.mxu0 %v11893_v35  ;;  %v15901_v35 = vld [vmem:[#allocation10 + $0x988] sm:$0xff]  }
0x4edc   :  { %v11642_v54 = vadd.f32 %v11641_v4, %v11295_v3  ;;  %v11685_v34 = vadd.f32 %v11684_v24, %v11303_v14  ;;  %14656 = vmatpush3.bf16.msra.mxu1 %v15876_v60  ;;  %14678 = vmatpush3.bf16.msra.mxu0 %v15877_v23  ;;  %v15895_v3 = vld [vmem:[#allocation10 + $0x9d0] sm:$0xff]   ;;  %v11640_v60 = vadd.f32 %v18056_v52, %v11291_v32  ;;  %v15923_v32 = vld [vmem:[#allocation10 + $0xad8] sm:$0xff]  }
0x4edd   :  { %14657 = vmatprep.subr.bf16.mxu1 %v15878_v43  ;;  %14679 = vmatprep.subr.bf16.mxu0 %v15879_v44  ;;  %v18060_v25 = vpop.f32.mrf.mxu1  ;;  %v18062_v10 = vpop.f32.mrf.mxu0  ;;  %v11311_v23 = vrot.slane %v18072_v45, %v16921_v46  ;;  %v15902_v43 = vld [vmem:[#allocation10 + $0x940] sm:$0xff]   ;;  %v11683_v44 = vadd.f32 %v18058_v42, %v11299_v13  ;;  %v11679_v52 = vadd.f32 %v18050_v56, %v11299_v13 }
0x4ede   :  { %v11880_v41 = vmax.f32 %v11642_v54, 0.0  ;;  %v11882_v55 = vmax.f32 %v11685_v34, 0.0  ;;  %v15904_v46 = vld [vmem:[#allocation10 + $0x900] sm:$0xff]   ;;  %v11879_v54 = vmax.f32 %v11640_v60, 0.0  ;;  %v15925_v60 = vld [vmem:[#allocation10 + $0xa98] sm:$0xff]  }
0x4edf   :  { %v11723_v12 = vpop.f32.mrf.mxu1  ;;  %v11766_v27 = vpop.f32.mrf.mxu0  ;;  %v11881_v42 = vmax.f32 %v11683_v44, 0.0 }
0x4ee0   :  { %v11896_v18 = vpack.c.bf16 %v11880_v41, %v11864_v17  ;;  %v11898_v22 = vpack.c.bf16 %v11882_v55, %v11866_v50  ;;  %14658 = vmatpush3.bf16.msra.mxu1 %v15880_v58  ;;  %14680 = vmatpush3.bf16.msra.mxu0 %v15881_v38  ;;  %v11724_v34 = vadd.f32 %v11723_v12, %v11311_v23  ;;  %v15905_v58 = vld [vmem:[#allocation10 + $0x980] sm:$0xff]   ;;  %v15906_v38 = vld [vmem:[#allocation10 + $0xa78] sm:$0xff]   ;;  %v11863_v17 = vmax.f32 %v11636_v57, 0.0  ;;  %v15915_v12 = vld [vmem:[#allocation10 + $0xae8] sm:$0xff]  }
0x4ee1   :  { %14659 = vmatprep.subr.bf16.mxu1 %v15882_v61  ;;  %14681 = vmatprep.subr.bf16.mxu0 %v15883_v53  ;;  %v18064_v14 = vpop.f32.mrf.mxu1  ;;  %v18066_v1 = vpop.f32.mrf.mxu0  ;;  %v11767_v61 = vadd.f32 %v11766_v27, %v11319_v59  ;;  %v11865_v41 = vmax.f32 %v11679_v52, 0.0  ;;  %v15908_v55 = vld [vmem:[#allocation10 + $0xa38] sm:$0xff]   ;;  %v15917_v27 = vld [vmem:[#allocation10 + $0xaa8] sm:$0xff]   ;;  %v11315_v52 = vrot.slane %v18072_v45, %v16930_v49  ;;  %v15935_v49 = vld [vmem:[#allocation10 + $0xac0] sm:$0xff]  }
0x4ee2   :  { %13054 = vmatprep.mubr.bf16.mxu1 %v11896_v18  ;;  %13095 = vmatprep.mubr.bf16.mxu0 %v11898_v22  ;;  %v11895_v56 = vpack.c.bf16 %v11879_v54, %v11863_v17  ;;  %v11868_v53 = vmax.f32 %v11724_v34, 0.0  ;;  %v15909_v18 = vld [vmem:[#allocation10 + $0xab8] sm:$0xff]   ;;  %v15931_v57 = vld [vmem:[#allocation10 + $0xac8] sm:$0xff]   ;;  %v11327_v34 = vrot.slane %v18072_v45, %v16943_v2  ;;  %v15936_v2 = vld [vmem:[#allocation10 + $0xa00] sm:$0xff]  }
0x4ee3   :  { %v11727_v36 = vpop.f32.mrf.mxu1  ;;  %v11770_v51 = vpop.f32.mrf.mxu0  ;;  %v11897_v22 = vpack.c.bf16 %v11881_v42, %v11865_v41  ;;  %v15934_v42 = vld [vmem:[#allocation10 + $0xa40] sm:$0xff]  }
0x4ee4   :  { %14660 = vmatpush3.bf16.msra.mxu1 %v15884_v0  ;;  %14682 = vmatpush3.bf16.msra.mxu0 %v15885_v31  ;;  %v11728_v4 = vadd.f32 %v11727_v36, %v11311_v23  ;;  %v11771_v24 = vadd.f32 %v11770_v51, %v11319_v59  ;;  %v11870_v0 = vmax.f32 %v11767_v61, 0.0  ;;  %v15910_v31 = vld [vmem:[#allocation10 + $0xa70] sm:$0xff]   ;;  %v15924_v36 = vld [vmem:[#allocation10 + $0xa18] sm:$0xff]   ;;  %v11769_v61 = vadd.f32 %v18066_v1, %v11315_v52 }
0x4ee5   :  { %14661 = vmatprep.subr.bf16.mxu1 %v15886_v19  ;;  %14683 = vmatprep.subr.bf16.mxu0 %v15887_v29  ;;  %v15911_v29 = vld [vmem:[#allocation10 + $0xaf0] sm:$0xff]  }
0x4ee6   :  { %v11884_v50 = vmax.f32 %v11728_v4, 0.0  ;;  %v11886_v16 = vmax.f32 %v11771_v24, 0.0  ;;  %v15926_v23 = vld [vmem:[#allocation10 + $0xa50] sm:$0xff]   ;;  %v11307_v4 = vrot.slane %v18072_v45, %v16927_v48  ;;  %v11335_v48 = vrot.slane %v18072_v45, %v16946_v15  ;;  %v15939_v15 = vld [vmem:[#allocation10 + $0xbf8] sm:$0xff]  }
0x4ee7   :  { %v15927_v51 = vld [vmem:[#allocation10 + $0xad0] sm:$0xff]   ;;  %v11885_v1 = vmax.f32 %v11769_v61, 0.0 }
0x4ee8   :  { %14662 = vmatpush3.bf16.msra.mxu1 %v15888_v62  ;;  %14684 = vmatpush3.bf16.msra.mxu0 %v15889_v28  ;;  %v11900_v19 = vpack.c.bf16 %v11884_v50, %v11868_v53  ;;  %v11902_v62 = vpack.c.bf16 %v11886_v16, %v11870_v0  ;;  %v15912_v28 = vld [vmem:[#allocation10 + $0xa30] sm:$0xff]   ;;  %v11726_v54 = vadd.f32 %v18064_v14, %v11307_v4 }
0x4ee9   :  { %14663 = vmatprep.subr.bf16.mxu1 %v15890_v5  ;;  %14685 = vmatprep.subr.bf16.mxu0 %v15891_v7  ;;  %v15913_v5 = vld [vmem:[#allocation10 + $0xab0] sm:$0xff]   ;;  %v15914_v7 = vld [vmem:[#allocation10 + $0xa68] sm:$0xff]   ;;  %v11765_v14 = vadd.f32 %v18062_v10, %v11315_v52 }
0x4eea   :  { %v15929_v59 = vld [vmem:[#allocation10 + $0xa90] sm:$0xff]   ;;  %v11883_v41 = vmax.f32 %v11726_v54, 0.0  ;;  %v15962_v52 = vld [vmem:[#allocation10 + $0xb48] sm:$0xff]   ;;  %v11331_v54 = vrot.slane %v18072_v45, %v16968_v11  ;;  %v15969_v11 = vld [vmem:[#allocation10 + $0xb80] sm:$0xff]  }
0x4eeb   :  { %v11869_v0 = vmax.f32 %v11765_v14, 0.0 }
0x4eec   :  { %14664 = vmatpush3.bf16.msra.mxu1 %v15892_v63  ;;  %14686 = vmatpush3.bf16.msra.mxu0 %v15893_v40  ;;  %v15916_v63 = vld [vmem:[#allocation10 + $0xa28] sm:$0xff]   ;;  %v15918_v40 = vld [vmem:[#allocation10 + $0xa60] sm:$0xff]  }
0x4eed   :  { %14665 = vmatprep.subr.bf16.mxu1 %v15894_v20  ;;  %14687 = vmatprep.subr.bf16.mxu0 %v15895_v3  ;;  %v15919_v20 = vld [vmem:[#allocation10 + $0xae0] sm:$0xff]   ;;  %v18082_v3 = vpop.f32.mrf.mxu1 }
0x4eef   :  { %v11809_v13 = vpop.f32.mrf.mxu1 }
0x4ef0   :  { %14666 = vmatpush3.bf16.msra.mxu1 %v15896_v6  ;;  %14688 = vmatpush3.bf16.msra.mxu0 %v15897_v26  ;;  %v15920_v6 = vld [vmem:[#allocation10 + $0xa20] sm:$0xff]   ;;  %v18084_v26 = vpop.f32.mrf.mxu0  ;;  %v11810_v16 = vadd.f32 %v11809_v13, %v11327_v34 }
0x4ef1   :  { %14667 = vmatprep.subr.bf16.mxu1 %v15898_v33  ;;  %14689 = vmatprep.subr.bf16.mxu0 %v15899_v21  ;;  %v15921_v33 = vld [vmem:[#allocation10 + $0xaa0] sm:$0xff]   ;;  %v15922_v21 = vld [vmem:[#allocation10 + $0xa58] sm:$0xff]  }
0x4ef2   :  { %v15951_v13 = vld [vmem:[#allocation10 + $0xbe0] sm:$0xff]  }
0x4ef4   :  { %14668 = vmatpush3.bf16.msra.mxu1 %v15900_v39  ;;  %14690 = vmatpush3.bf16.msra.mxu0 %v15901_v35  ;;  %v11852_v39 = vpop.f32.mrf.mxu0  ;;  %v18086_v35 = vpop.f32.mrf.mxu1 }
0x4ef5   :  { %14669 = vmatprep.subr.bf16.mxu1 %v15902_v43  ;;  %14691 = vmatprep.subr.bf16.mxu0 %v15903_v30  ;;  %v15928_v43 = vld [vmem:[#allocation10 + $0xa10] sm:$0xff]   ;;  %v15930_v30 = vld [vmem:[#allocation10 + $0xa48] sm:$0xff]   ;;  %v11853_v53 = vadd.f32 %v11852_v39, %v11335_v48  ;;  %v15953_v39 = vld [vmem:[#allocation10 + $0xba0] sm:$0xff]  }
0x4ef6   :  { %v18088_v44 = vpop.f32.mrf.mxu0  ;;  %v11813_v24 = vpop.f32.mrf.mxu1 }
0x4ef7   :  { %v11814_v17 = vadd.f32 %v11813_v24, %v11327_v34  ;;  %v15963_v24 = vld [vmem:[#allocation10 + $0xbc8] sm:$0xff]   ;;  %v11855_v61 = vadd.f32 %v18088_v44, %v11331_v54 }
0x4ef8   :  { %14670 = vmatpush3.bf16.msra.mxu1 %v15904_v46  ;;  %14692 = vmatpush3.bf16.msra.mxu0 %v15905_v58  ;;  %v15932_v46 = vld [vmem:[#allocation10 + $0xa08] sm:$0xff]   ;;  %v11856_v58 = vpop.f32.mrf.mxu0 }
0x4ef9   :  { %14699 = vmatprep.subr.bf16.mxu1 %v15906_v38  ;;  %14721 = vmatprep.subr.bf16.mxu0 %v15907_v47  ;;  %v15933_v38 = vld [vmem:[#allocation10 + $0xa88] sm:$0xff]   ;;  %v11722_v47 = vadd.f32 %v18060_v25, %v11307_v4  ;;  %v11857_v50 = vadd.f32 %v11856_v58, %v11335_v48  ;;  %v15961_v4 = vld [vmem:[#allocation10 + $0xb90] sm:$0xff]   ;;  %v15967_v48 = vld [vmem:[#allocation10 + $0xbc0] sm:$0xff]  }
0x4efa   :  { %v15964_v34 = vld [vmem:[#allocation10 + $0xb08] sm:$0xff]  }
0x4efb   :  { %13055 = vmatmul.mubr.bf16.vlgmr.msra.gmra.mxu1 %v11895_v56  ;;  %13096 = vmatmul.mubr.bf16.vlgmr.msra.gmra.mxu0 %v11897_v22  ;;  %v15938_v56 = vld [vmem:[#allocation10 + $0xb78] sm:$0xff]   ;;  %v11888_v22 = vmax.f32 %v11814_v17, 0.0  ;;  %v11890_v25 = vmax.f32 %v11857_v50, 0.0 }
0x4efc   :  { %14700 = vmatpush3.bf16.msra.mxu1 %v15908_v55  ;;  %13136 = vmatprep.mubr.bf16.mxu1 %v11900_v19  ;;  %v15937_v55 = vld [vmem:[#allocation10 + $0xa80] sm:$0xff]   ;;  %v11872_v19 = vmax.f32 %v11810_v16, 0.0 }
0x4efd   :  { %14722 = vmatpush3.bf16.msra.mxu0 %v15909_v18  ;;  %13177 = vmatprep.mubr.bf16.mxu0 %v11902_v62  ;;  %v11867_v18 = vmax.f32 %v11722_v47, 0.0  ;;  %v11901_v62 = vpack.c.bf16 %v11885_v1, %v11869_v0  ;;  %v11851_v47 = vadd.f32 %v18084_v26, %v11331_v54 }
0x4efe   :  { %14701 = vmatprep.subr.bf16.mxu1 %v15910_v31  ;;  %14723 = vmatprep.subr.bf16.mxu0 %v15911_v29  ;;  %v15940_v31 = vld [vmem:[#allocation10 + $0xb38] sm:$0xff]  }
0x4eff   :  { %v11899_v10 = vpack.c.bf16 %v11883_v41, %v11867_v18  ;;  %v15941_v29 = vld [vmem:[#allocation10 + $0xbb8] sm:$0xff]   ;;  %v11873_v14 = vmax.f32 %v11851_v47, 0.0 }
0x4f00   :  { %14702 = vmatpush3.bf16.msra.mxu1 %v15912_v28  ;;  %v11874_v28 = vmax.f32 %v11853_v53, 0.0 }
0x4f01   :  { %14724 = vmatpush3.bf16.msra.mxu0 %v15913_v5  ;;  %14703 = vmatprep.subr.bf16.mxu1 %v15914_v7  ;;  %v15942_v5 = vld [vmem:[#allocation10 + $0xb70] sm:$0xff]   ;;  %v11904_v7 = vpack.c.bf16 %v11888_v22, %v11872_v19  ;;  %v13877_v19 = vld [vmem:[%s18143_s10 + $0x2] ss:$0 sm:$0xff] }
0x4f02   :  { %14725 = vmatprep.subr.bf16.mxu0 %v15915_v12  ;;  %v15943_v12 = vld [vmem:[#allocation10 + $0xbf0] sm:$0xff]  }
0x4f04   :  { %14704 = vmatpush3.bf16.msra.mxu1 %v15916_v63  ;;  %v11906_v63 = vpack.c.bf16 %v11890_v25, %v11874_v28 }
0x4f05   :  { %14726 = vmatpush3.bf16.msra.mxu0 %v15917_v27  ;;  %14705 = vmatprep.subr.bf16.mxu1 %v15918_v40  ;;  %v15944_v27 = vld [vmem:[#allocation10 + $0xb30] sm:$0xff]  }
0x4f06   :  { %14727 = vmatprep.subr.bf16.mxu0 %v15919_v20  ;;  %v15945_v40 = vld [vmem:[#allocation10 + $0xbb0] sm:$0xff]   ;;  %v15946_v20 = vld [vmem:[#allocation10 + $0xb68] sm:$0xff]  }
0x4f08   :  { %14706 = vmatpush3.bf16.msra.mxu1 %v15920_v6  ;;  %v15947_v6 = vld [vmem:[#allocation10 + $0xbe8] sm:$0xff]  }
0x4f09   :  { %14728 = vmatpush3.bf16.msra.mxu0 %v15921_v33  ;;  %14707 = vmatprep.subr.bf16.mxu1 %v15922_v21  ;;  %v15948_v33 = vld [vmem:[#allocation10 + $0xb28] sm:$0xff]  }
0x4f0a   :  { %14729 = vmatprep.subr.bf16.mxu0 %v15923_v32  ;;  %v15949_v21 = vld [vmem:[#allocation10 + $0xba8] sm:$0xff]   ;;  %v15950_v32 = vld [vmem:[#allocation10 + $0xb60] sm:$0xff]  }
0x4f0c   :  { %14708 = vmatpush3.bf16.msra.mxu1 %v15924_v36  ;;  %v15952_v36 = vld [vmem:[#allocation10 + $0xb20] sm:$0xff]  }
0x4f0d   :  { %14730 = vmatpush3.bf16.msra.mxu0 %v15925_v60  ;;  %14709 = vmatprep.subr.bf16.mxu1 %v15926_v23  ;;  %v15954_v60 = vld [vmem:[#allocation10 + $0xb58] sm:$0xff]  }
0x4f0e   :  { %14731 = vmatprep.subr.bf16.mxu0 %v15927_v51  ;;  %v15955_v23 = vld [vmem:[#allocation10 + $0xbd8] sm:$0xff]  }
0x4f0f   :  { %v15956_v51 = vld [vmem:[#allocation10 + $0xb18] sm:$0xff]  }
0x4f10   :  { %14710 = vmatpush3.bf16.msra.mxu1 %v15928_v43  ;;  %v15957_v43 = vld [vmem:[#allocation10 + $0xb98] sm:$0xff]  }
0x4f11   :  { %14732 = vmatpush3.bf16.msra.mxu0 %v15929_v59  ;;  %14711 = vmatprep.subr.bf16.mxu1 %v15930_v30  ;;  %v15958_v59 = vld [vmem:[#allocation10 + $0xb50] sm:$0xff]  }
0x4f12   :  { %14733 = vmatprep.subr.bf16.mxu0 %v15931_v57  ;;  %v15959_v30 = vld [vmem:[#allocation10 + $0xbd0] sm:$0xff]  }
0x4f13   :  { %v15960_v57 = vld [vmem:[#allocation10 + $0xb10] sm:$0xff]  }
0x4f14   :  { %14712 = vmatpush3.bf16.msra.mxu1 %v15932_v46  ;;  %v11323_v46 = vrot.slane %v18072_v45, %v16965_v8  ;;  %v15968_v8 = vld [vmem:[#allocation10 + $0xb00] sm:$0xff]   ;;  %v11889_v45 = vmax.f32 %v11855_v61, 0.0 }
0x4f15   :  { %14734 = vmatpush3.bf16.msra.mxu0 %v15933_v38  ;;  %14713 = vmatprep.subr.bf16.mxu1 %v15934_v42  ;;  %v15965_v38 = vld [vmem:[#allocation10 + $0xb88] sm:$0xff]   ;;  %v15966_v42 = vld [vmem:[#allocation10 + $0xb40] sm:$0xff]  }
0x4f16   :  { %14735 = vmatprep.subr.bf16.mxu0 %v15935_v49  ;;  %v11812_v58 = vadd.f32 %v18086_v35, %v11323_v46  ;;  %v11808_v49 = vadd.f32 %v18082_v3, %v11323_v46  ;;  %v11905_v44 = vpack.c.bf16 %v11889_v45, %v11873_v14 }
0x4f18   :  { %14714 = vmatpush3.bf16.msra.mxu1 %v15936_v2  ;;  %v11887_v17 = vmax.f32 %v11812_v58, 0.0  ;;  %v11871_v35 = vmax.f32 %v11808_v49, 0.0 }
0x4f19   :  { %14736 = vmatpush3.bf16.msra.mxu0 %v15937_v55  ;;  %14743 = vmatprep.subr.bf16.mxu1 %v15938_v56 }
0x4f1a   :  { %14765 = vmatprep.subr.bf16.mxu0 %v15939_v15  ;;  %v11903_v50 = vpack.c.bf16 %v11887_v17, %v11871_v35 }
0x4f1b   :  { %13137 = vmatmul.mubr.bf16.vlgmr.msra.gmra.mxu1 %v11899_v10 }
0x4f1c   :  { %13178 = vmatmul.mubr.bf16.vlgmr.msra.gmra.mxu0 %v11901_v62  ;;  %14744 = vmatpush3.bf16.msra.mxu1 %v15940_v31 }
0x4f1d   :  { %13218 = vmatprep.mubr.bf16.mxu1 %v11904_v7  ;;  %14766 = vmatpush3.bf16.msra.mxu0 %v15941_v29 }
0x4f1e   :  { %13259 = vmatprep.mubr.bf16.mxu0 %v11906_v63  ;;  %14745 = vmatprep.subr.bf16.mxu1 %v15942_v5 }
0x4f1f   :  { %14767 = vmatprep.subr.bf16.mxu0 %v15943_v12 }
0x4f20   :  { %14746 = vmatpush3.bf16.msra.mxu1 %v15944_v27 }
0x4f21   :  { %14768 = vmatpush3.bf16.msra.mxu0 %v15945_v40  ;;  %14747 = vmatprep.subr.bf16.mxu1 %v15946_v20 }
0x4f22   :  { %14769 = vmatprep.subr.bf16.mxu0 %v15947_v6 }
0x4f24   :  { %14748 = vmatpush3.bf16.msra.mxu1 %v15948_v33 }
0x4f25   :  { %14770 = vmatpush3.bf16.msra.mxu0 %v15949_v21  ;;  %14749 = vmatprep.subr.bf16.mxu1 %v15950_v32 }
0x4f26   :  { %14771 = vmatprep.subr.bf16.mxu0 %v15951_v13 }
0x4f28   :  { %14750 = vmatpush3.bf16.msra.mxu1 %v15952_v36 }
0x4f29   :  { %14772 = vmatpush3.bf16.msra.mxu0 %v15953_v39  ;;  %14751 = vmatprep.subr.bf16.mxu1 %v15954_v60 }
0x4f2a   :  { %14773 = vmatprep.subr.bf16.mxu0 %v15955_v23 }
0x4f2c   :  { %14752 = vmatpush3.bf16.msra.mxu1 %v15956_v51 }
0x4f2d   :  { %14774 = vmatpush3.bf16.msra.mxu0 %v15957_v43  ;;  %14753 = vmatprep.subr.bf16.mxu1 %v15958_v59 }
0x4f2e   :  { %14775 = vmatprep.subr.bf16.mxu0 %v15959_v30 }
0x4f30   :  { %14754 = vmatpush3.bf16.msra.mxu1 %v15960_v57 }
0x4f31   :  { %14776 = vmatpush3.bf16.msra.mxu0 %v15961_v4  ;;  %14755 = vmatprep.subr.bf16.mxu1 %v15962_v52 }
0x4f32   :  { %14777 = vmatprep.subr.bf16.mxu0 %v15963_v24 }
0x4f34   :  { %14756 = vmatpush3.bf16.msra.mxu1 %v15964_v34 }
0x4f35   :  { %14778 = vmatpush3.bf16.msra.mxu0 %v15965_v38  ;;  %14757 = vmatprep.subr.bf16.mxu1 %v15966_v42 }
0x4f36   :  { %14779 = vmatprep.subr.bf16.mxu0 %v15967_v48 }
0x4f38   :  { %14758 = vmatpush3.bf16.msra.mxu1 %v15968_v8 }
0x4f39   :  { %14780 = vmatpush3.bf16.msra.mxu0 %v15969_v11 }
0x4f3b   :  { %13219 = vmatmul.mubr.bf16.vlgmr.msra.gmra.mxu1 %v11903_v50 }
0x4f3c   :  { %13260 = vmatmul.mubr.bf16.vlgmr.msra.gmra.mxu0 %v11905_v44 }
0x4f9b   :  { %v14627_v2 = vpop.f32.mrf.mxu1  ;;  %v14649_v3 = vpop.f32.mrf.mxu0 }
0x4f9d   :  { %v14628_v41 = vpop.f32.mrf.mxu1  ;;  %v14650_v26 = vpop.f32.mrf.mxu0 }
0x4f9e   :  { %v14629_v10 = vadd.f32 %v14628_v41, %v14627_v2  ;;  %v14651_v63 = vadd.f32 %v14650_v26, %v14649_v3 }
0x4f9f   :  { %v14630_v16 = vpop.f32.mrf.mxu1  ;;  %v14652_v55 = vpop.f32.mrf.mxu0 }
0x4fa0   :  { %v12975_v28 = vadd.f32 %v14629_v10, %v13877_v19 }
0x4fa1   :  { %v14631_v56 = vpop.f32.mrf.mxu1  ;;  %v14653_v53 = vpop.f32.mrf.mxu0 }
0x4fa2   :  { %v14632_v5 = vadd.f32 %v14631_v56, %v14630_v16  ;;  %v13016_v40 = vadd.f32 %v14651_v63, %v12975_v28  ;;  %v14654_v21 = vadd.f32 %v14653_v53, %v14652_v55 }
0x4fa4   :  { %v12978_v20 = vadd.f32 %v14632_v5, %v13877_v19 }
0x4fa6   :  { %v13019_v36 = vadd.f32 %v14654_v21, %v12978_v20  ;;  %v14009_v21 = vld [vmem:[%s18145_s12 + $0x2] ss:$0 sm:$0xff] }
0x4fbb   :  { %v14671_v1 = vpop.f32.mrf.mxu1  ;;  %v14693_v15 = vpop.f32.mrf.mxu0 }
0x4fbd   :  { %v14672_v18 = vpop.f32.mrf.mxu1  ;;  %v14694_v22 = vpop.f32.mrf.mxu0 }
0x4fbe   :  { %v14673_v27 = vadd.f32 %v14672_v18, %v14671_v1  ;;  %v14695_v39 = vadd.f32 %v14694_v22, %v14693_v15 }
0x4fbf   :  { %v14674_v0 = vpop.f32.mrf.mxu1  ;;  %v14696_v25 = vpop.f32.mrf.mxu0 }
0x4fc0   :  { %v13057_v32 = vadd.f32 %v14673_v27, %v13016_v40 }
0x4fc1   :  { %v14675_v31 = vpop.f32.mrf.mxu1  ;;  %v14697_v62 = vpop.f32.mrf.mxu0 }
0x4fc2   :  { %v14676_v13 = vadd.f32 %v14675_v31, %v14674_v0  ;;  %v13098_v43 = vadd.f32 %v14695_v39, %v13057_v32  ;;  %v14698_v30 = vadd.f32 %v14697_v62, %v14696_v25 }
0x4fc4   :  { %v13060_v59 = vadd.f32 %v14676_v13, %v13019_v36 }
0x4fc6   :  { %v13101_v46 = vadd.f32 %v14698_v30, %v13060_v59 }
0x4fdb   :  { %v14715_v29 = vpop.f32.mrf.mxu1 }
0x4fdc   :  { %v14737_v7 = vpop.f32.mrf.mxu0 }
0x4fdd   :  { %v14716_v12 = vpop.f32.mrf.mxu1 }
0x4fde   :  { %v14738_v6 = vpop.f32.mrf.mxu0  ;;  %v14717_v60 = vadd.f32 %v14716_v12, %v14715_v29 }
0x4fdf   :  { %v14718_v33 = vpop.f32.mrf.mxu1  ;;  %v14739_v54 = vadd.f32 %v14738_v6, %v14737_v7  ;;  %v14008_v6 = vld [vmem:[%s18144_s11 + $0x2] ss:$0 sm:$0xff] }
0x4fe0   :  { %v14740_v23 = vpop.f32.mrf.mxu0  ;;  %v13139_v57 = vadd.f32 %v14717_v60, %v13098_v43 }
0x4fe1   :  { %v14719_v51 = vpop.f32.mrf.mxu1 }
0x4fe2   :  { %v14720_v4 = vadd.f32 %v14719_v51, %v14718_v33  ;;  %v14741_v52 = vpop.f32.mrf.mxu0  ;;  %v13180_v38 = vadd.f32 %v14739_v54, %v13139_v57 }
0x4fe3   :  { %v14742_v47 = vadd.f32 %v14741_v52, %v14740_v23 }
0x4fe4   :  { %v13142_v42 = vadd.f32 %v14720_v4, %v13101_v46 }
0x4fe6   :  { %v13183_v35 = vadd.f32 %v14742_v47, %v13142_v42 }
0x4ffb   :  { %v14759_v24 = vpop.f32.mrf.mxu1 }
0x4ffc   :  { %v14781_v34 = vpop.f32.mrf.mxu0 }
0x4ffd   :  { %v14760_v58 = vpop.f32.mrf.mxu1 }
0x4ffe   :  { %v14761_v61 = vadd.f32 %v14760_v58, %v14759_v24  ;;  %v14782_v48 = vpop.f32.mrf.mxu0 }
0x4fff   :  { %v14762_v49 = vpop.f32.mrf.mxu1  ;;  %v14783_v17 = vadd.f32 %v14782_v48, %v14781_v34 }
0x5000   :  { %v13221_v8 = vadd.f32 %v14761_v61, %v13180_v38  ;;  %v14784_v11 = vpop.f32.mrf.mxu0 }
0x5001   :  { %v14763_v45 = vpop.f32.mrf.mxu1 }
0x5002   :  { %v13262_v14 = vadd.f32 %v14783_v17, %v13221_v8  ;;  %v14764_v50 = vadd.f32 %v14763_v45, %v14762_v49  ;;  %v14785_v44 = vpop.f32.mrf.mxu0 }
0x5003   :  { %v14786_v41 = vadd.f32 %v14785_v44, %v14784_v11 }
0x5004   :  { %v13268_v2 = vadd.f32 %v13262_v14, %v18008_v37  ;;  %v13224_v3 = vadd.f32 %v14764_v50, %v13183_v35 }
0x5006   :  { %v13265_v26 = vadd.f32 %v14786_v41, %v13224_v3  ;;  %v13274_v16 = vsel %vm157_vm1, %v13268_v2, 0.0  ;;  %v13282_v55 = vmul.f32 %v13268_v2, %v13268_v2 }
0x5007   :  { %13275 = vadd.xlane.f32.xlu1 %v13274_v16 }
0x5008   :  { %v13269_v56 = vadd.f32 %v13265_v26, %v18010_v9  ;;  %v13284_v53 = vsel %vm157_vm1, %v13282_v55, 0.0 }
0x500a   :  { %v13277_v1 = vsel %vm157_vm1, %v13269_v56, 0.0  ;;  %v13283_v15 = vmul.f32 %v13269_v56, %v13269_v56 }
0x500b   :  { %13278 = vadd.xlane.f32.xlu0 %v13277_v1  ;;  %13285 = vadd.xlane.f32.xlu1 %v13284_v53 }
0x500c   :  { %v13287_v18 = vsel %vm157_vm1, %v13283_v15, 0.0 }
0x500f   :  { %13288 = vadd.xlane.f32.xlu0 %v13287_v18 }
0x5090   :  { %v13276_v37 = vpop.xlane.xlu1 %13275 }
0x5091   :  { %v13280_v22 = vmul.f32 0.03125, %v13276_v37 }
0x5093   :  { %v13292_v31 = vmul.f32 %v13280_v22, %v13280_v22  ;;  %v13298_v40 = vsub.f32 %v13268_v2, %v13280_v22 }
0x5094   :  { %v13279_v0 = vpop.xlane.xlu0 %13278  ;;  %v13286_v25 = vpop.xlane.xlu1 %13285 }
0x5095   :  { %v13281_v10 = vmul.f32 0.03125, %v13279_v0  ;;  %v13290_v19 = vmul.f32 0.03125, %v13286_v25 }
0x5097   :  { %v13294_v29 = vsub.f32 %v13290_v19, %v13292_v31  ;;  %v13293_v9 = vmul.f32 %v13281_v10, %v13281_v10  ;;  %v13299_v32 = vsub.f32 %v13269_v56, %v13281_v10 }
0x5098   :  { %v13289_v62 = vpop.xlane.xlu0 %13288 }
0x5099   :  { %v13296_v28 = vmax.f32 %v13294_v29, 0.0  ;;  %v13291_v5 = vmul.f32 0.03125, %v13289_v62 }
0x509b   :  { %v13300_v7 = vadd.f32 1e-05, %v13296_v28  ;;  %v13295_v12 = vsub.f32 %v13291_v5, %v13293_v9 }
0x509d   :  { %16182 = vrsqrt.f32 %v13300_v7  ;;  %v13297_v63 = vmax.f32 %v13295_v12, 0.0 }
0x509f   :  { %v13301_v27 = vadd.f32 1e-05, %v13297_v63 }
0x50a1   :  { %16184 = vrsqrt.f32 %v13301_v27 }
0x50aa   :  { %v16183_v20 = vpop.eup %16182 }
0x50ab   :  { %v13304_v33 = vmul.f32 %v16183_v20, %v13298_v40 }
0x50ad   :  { %v13312_v13 = vmul.f32 %v14008_v6, %v13304_v33 }
0x50ae   :  { %v16185_v36 = vpop.eup %16184 }
0x50af   :  { %v13320_v39 = vadd.f32 %v14009_v21, %v13312_v13  ;;  %v13305_v60 = vmul.f32 %v16185_v36, %v13299_v32 }
0x50b1   :  { %13322 = vst.msk [vmem:[%s18146_s13] sm:$0xff] %vm157_vm1, %v13320_v39  ;;  %v13313_v23 = vmul.f32 %v14008_v6, %v13305_v60 }
0x50b3   :  { %v13321_v51 = vadd.f32 %v14009_v21, %v13313_v23 }
0x50b5   :  { %13323 = vst.msk [vmem:[%s18146_s13 + $0x8] sm:$0xff] %vm157_vm1, %v13321_v51 }
0x50b6   :  { %13328 = vsyncpa [#allocation3], 1 }
0x50b7   :  { %13329 = vsyncpa [#allocation5], 1 }
0x50b8   :  { %13330 = vsyncpa [#allocation8], 1 }
0x50b9   :  { %13331 = vsyncpa [#allocation11], 1 }

</bundles_post_ra>
